<compile_context>
chip_gen: v6e
topology: v6e:2x2x1
jax: 0.10.0
libtpu: 0.0.40
codegen_flags: <defaults>
</compile_context>

<pallas_src>
import functools

import jax
import jax.numpy as jnp
from jax.experimental import pallas as pl
from jax.experimental.pallas import tpu as pltpu


# ----------------------------------------------------------------------------
# Kernel
# ----------------------------------------------------------------------------
def _lstm_proj_kernel(tt_steps, c_pad, b_blk, mem_clip, proj_clip,
                      lens_smem,                       # (Bp,) int32, SMEM (scalar prefetch)
                      lengths_ref, x_ref, w_in_ref, ws_ref, b_ref, wp_ref,
                      out_ref, h_ref, c_ref,
                      gx_ref):
    """One grid step = one (batch_block, time_chunk) tile.

    lengths_ref: (B_BLK, 1) int32        per-row lengths (VMEM, for masking)
    x_ref:       (TT, B_BLK, D) bf16     time-major input chunk
    w_in_ref:    (D, 4*Cp)  bf16         W_in   (resident, single-buffered)
    ws_ref:      (Hp, 4*Cp) bf16         W_state
    b_ref:       (1, 4*Cp)  f32          bias
    wp_ref:      (Cp, Hp)   bf16         W_proj
    out_ref:     (B_BLK, TT, Hp) f32     batch-major per-step outputs
    h_ref/c_ref: (B_BLK, Hp)/(B_BLK, Cp) carried recurrent state (resident
                 across the inner time-chunk grid axis)
    gx_ref:      (TT*B_BLK, 4*Cp) f32    VMEM scratch: per-chunk x @ W_in + bias
    """
    b_idx = pl.program_id(0)
    t_chunk = pl.program_id(1)
    t_base = t_chunk * tt_steps

    # initial_state = None  ->  zeros at the first time chunk of each batch block
    @pl.when(t_chunk == 0)
    def _init_state():
        h_ref[...] = jnp.zeros_like(h_ref)
        c_ref[...] = jnp.zeros_like(c_ref)

    # Whole-tile skip: lengths are non-increasing (PyTorch module contract), so
    # row 0 of this batch block has the longest sequence in the block.
    block_max_len = lens_smem[b_idx * b_blk]

    @pl.when(block_max_len <= t_base)
    def _inactive_tile():
        # Everything in this chunk is past end-of-sequence: emit zeros, keep state.
        out_ref[...] = jnp.zeros_like(out_ref)

    @pl.when(block_max_len > t_base)
    def _active_tile():
        C = c_pad
        bf16 = jnp.bfloat16

        # --- time-parallel input projection for the whole chunk --------------
        # M = TT*B_BLK rows keeps the MXU well fed; bias folded in here in f32
        # (once per gate element), so the serial loop only adds h @ W_state.
        x2d = x_ref[...].reshape(tt_steps * b_blk, x_ref.shape[-1])   # bf16
        gx_ref[...] = (jnp.dot(x2d, w_in_ref[...],
                               preferred_element_type=jnp.float32)
                       + b_ref[...])                                  # f32

        ws = ws_ref[...]                 # bf16, resident across the time axis
        wp = wp_ref[...]                 # bf16
        lengths = lengths_ref[...]       # (B_BLK, 1) int32

        h = h_ref[...]                   # (B_BLK, Hp) f32
        c = c_ref[...]                   # (B_BLK, Cp) f32

        # Static unroll over the time chunk: all-static slicing (gate chunks are
        # 128-lane aligned, per-step gx rows / output rows are static views).
        # TODO(synk): for production-size cells (Cp ~ 4096) switch this to a
        # lax.fori_loop carrying (h, c) to bound vreg live ranges / code size.
        for tt in range(tt_steps):
            gates = (gx_ref[tt * b_blk:(tt + 1) * b_blk, :]
                     + jnp.dot(h.astype(bf16), ws,
                               preferred_element_type=jnp.float32))   # (B, 4Cp)

            # TODO(synk): on v6e/v7x the nonlinearities could run in bf16 (EUP
            # bf16 path) once B_BLK is large; kept f32 here for portability (v5e).
            input_gate = jax.nn.sigmoid(gates[:, 0 * C:1 * C])
            forget_gate = jax.nn.sigmoid(gates[:, 1 * C:2 * C])
            memory_init = jnp.tanh(gates[:, 2 * C:3 * C])
            output_gate = jax.nn.sigmoid(gates[:, 3 * C:4 * C])

            memory = input_gate * memory_init + forget_gate * c
            if mem_clip is not None:
                memory = jnp.clip(memory, -mem_clip, mem_clip)

            pre_proj = output_gate * jnp.tanh(memory)                 # (B, Cp) f32
            out_t = jnp.dot(pre_proj.astype(bf16), wp,
                            preferred_element_type=jnp.float32)       # (B, Hp) f32
            if proj_clip is not None:
                out_t = jnp.clip(out_t, -proj_clip, proj_clip)

            # TODO(synk): recurrent (variational) dropout applies only in
            # training mode; not implemented here (inference semantics).

            # Rows whose sequence already ended keep previous state, emit zeros.
            active = lengths > (t_base + tt)                          # (B, 1) bool
            c = jnp.where(active, memory, c)
            h = jnp.where(active, out_t, h)
            out_ref[:, tt:tt + 1, :] = (
                jnp.where(active, out_t, 0.0)[:, None, :].astype(out_ref.dtype))

        h_ref[...] = h
        c_ref[...] = c


# ----------------------------------------------------------------------------
# Wrapper
# ----------------------------------------------------------------------------
def _round_up(x, m):
    return (x + m - 1) // m * m


def _pad_to(a, shape):
    pads = [(0, s - d) for d, s in zip(a.shape, shape)]
    return jnp.pad(a, pads)


def _pad_gatewise(w, c, c_pad):
    """Pad the trailing 4*c axis to 4*c_pad, padding each gate chunk separately
    so each gate stays contiguous and 128-lane aligned."""
    lead = w.shape[:-1]
    w4 = w.reshape(lead + (4, c))
    w4 = jnp.pad(w4, [(0, 0)] * len(lead) + [(0, 0), (0, c_pad - c)])
    return w4.reshape(lead + (4 * c_pad,))


def lstm_cell_with_projection(x_btd, lengths, w_in, w_state, bias, w_proj,
                              memory_cell_clip_value=3.0,
                              state_projection_clip_value=3.0,
                              batch_block=128, time_chunk=8,
                              vmem_limit_bytes=56 * 1024 * 1024):
    """x_btd: (B, T, D) float32; lengths: (B,) int32, NON-INCREASING (same
    contract as the PyTorch module; the whole-tile skip relies on it).

    Weights stored transposed relative to nn.Linear:
        w_in (D, 4C), w_state (H, 4C), bias (4C,), w_proj (C, H).
    Returns (output (B, T, H), (h_final (1, B, H), c_final (1, B, C))).
    """
    B, T, D = x_btd.shape
    four_c = w_in.shape[1]
    C = four_c // 4
    H = w_proj.shape[1]

    # --- padded (TPU-friendly) sizes ----------------------------------------
    Cp = _round_up(C, 128)                              # lane-aligned gate chunks
    Hp = _round_up(H, 128)                              # lane-dense output stores
    B_BLK = max(16, min(_round_up(batch_block, 16), _round_up(B, 16)))
    Bp = _round_up(B, B_BLK)
    TT = _round_up(max(time_chunk, 1), 8)               # (TT, Hp) out tiles need TT % 8 == 0
    Tp = _round_up(T, TT)
    bf16 = jnp.bfloat16

    # Time-major bf16 input chunking (the only wrapper-side data movement; the
    # old (T, B, 4C) gx intermediate is gone — x @ W_in now runs in-kernel).
    x_pad = _pad_to(x_btd.astype(jnp.float32), (Bp, Tp, D))
    x_tbd = jnp.transpose(x_pad, (1, 0, 2)).astype(bf16)            # (Tp, Bp, D)

    lengths_i32 = _pad_to(lengths.astype(jnp.int32), (Bp,))          # padded rows -> len 0
    lengths_smem = lengths_i32                                       # scalar prefetch (SMEM)
    lengths_vmem = lengths_i32.reshape(Bp, 1)                        # per-row mask (VMEM)

    # Zero-padded weights/bias (padded lanes/rows are provably zero-propagating).
    w_in_p = _pad_gatewise(w_in.astype(jnp.float32), C, Cp).astype(bf16)          # (D, 4Cp)
    w_state_p = _pad_to(_pad_gatewise(w_state.astype(jnp.float32), C, Cp),
                        (Hp, 4 * Cp)).astype(bf16)                                # (Hp, 4Cp)
    bias_p = _pad_gatewise(bias.astype(jnp.float32).reshape(1, four_c), C, Cp)    # (1, 4Cp) f32
    w_proj_p = _pad_to(w_proj.astype(jnp.float32), (Cp, Hp)).astype(bf16)         # (Cp, Hp)

    kernel = functools.partial(_lstm_proj_kernel, TT, Cp, B_BLK,
                               memory_cell_clip_value,
                               state_projection_clip_value)

    grid = (Bp // B_BLK, Tp // TT)          # (batch blocks [parallel], time chunks [serial])

    def _call(buffered_const):
        # Constant-index operands only need one VMEM buffer; double-buffering
        # them just wastes VMEM (decisive at ELMo scale on v7x's 64 MiB).
        const_kw = dict(pipeline_mode=pl.Buffered(1)) if buffered_const else {}
        in_specs = [
            pl.BlockSpec((B_BLK, 1), lambda b, t, lens: (b, 0), **const_kw),        # lengths
            pl.BlockSpec((TT, B_BLK, D), lambda b, t, lens: (t, b, 0)),              # x chunk
            pl.BlockSpec((D, 4 * Cp), lambda b, t, lens: (0, 0), **const_kw),        # W_in
            pl.BlockSpec((Hp, 4 * Cp), lambda b, t, lens: (0, 0), **const_kw),       # W_state
            pl.BlockSpec((1, 4 * Cp), lambda b, t, lens: (0, 0), **const_kw),        # bias
            pl.BlockSpec((Cp, Hp), lambda b, t, lens: (0, 0), **const_kw),           # W_proj
        ]
        out_specs = [
            pl.BlockSpec((B_BLK, TT, Hp), lambda b, t, lens: (b, t, 0)),             # outputs
            pl.BlockSpec((B_BLK, Hp), lambda b, t, lens: (b, 0)),                    # carried h
            pl.BlockSpec((B_BLK, Cp), lambda b, t, lens: (b, 0)),                    # carried c
        ]
        call = pl.pallas_call(
            kernel,
            out_shape=(
                jax.ShapeDtypeStruct((Bp, Tp, Hp), jnp.float32),
                jax.ShapeDtypeStruct((Bp, Hp), jnp.float32),
                jax.ShapeDtypeStruct((Bp, Cp), jnp.float32),
            ),
            grid_spec=pltpu.PrefetchScalarGridSpec(
                num_scalar_prefetch=1,                 # lengths -> SMEM, drives tile skip
                grid=grid,
                in_specs=in_specs,
                out_specs=out_specs,
                scratch_shapes=[pltpu.VMEM((TT * B_BLK, 4 * Cp), jnp.float32)],
            ),
            compiler_params=pltpu.CompilerParams(
                # TODO(synk): on v7x consider pltpu.CORE_PARALLEL on the batch
                # axis if the profile shows one TensorCore idle.
                dimension_semantics=("parallel", "arbitrary"),
                vmem_limit_bytes=vmem_limit_bytes),
        )
        return call(lengths_smem, lengths_vmem, x_tbd, w_in_p, w_state_p,
                    bias_p, w_proj_p)

    try:
        out_bth, h_fin, c_fin = _call(True)
    except Exception:   # older jax without BlockSpec pipeline_mode / Buffered(1)
        out_bth, h_fin, c_fin = _call(False)

    # Output is already batch-major (no wrapper transpose of the large output).
    out = out_bth[:B, :T, :H]
    return out, (h_fin[:B, :H][None], c_fin[:B, :C][None])

    # TODO(synk): go_forward=False (backward direction) and a user-supplied
    # initial_state are not implemented (forward, zero init only).
    # TODO(synk): bf16 per-step outputs would halve the writeback but require
    # TT % 16 == 0 output tiles (bf16 sublane packing); kept f32 for robustness.


# ----------------------------------------------------------------------------
# References
# ----------------------------------------------------------------------------
def _reference_f32(x_btd, lengths, w_in, w_state, bias, w_proj, mem_clip, proj_clip):
    """Pure-f32 JAX replica of the PyTorch forward (go_forward=True, no dropout)."""
    B, T, _ = x_btd.shape
    C = w_in.shape[1] // 4
    H = w_proj.shape[1]
    h = jnp.zeros((B, H), jnp.float32)
    c = jnp.zeros((B, C), jnp.float32)
    outs = jnp.zeros((B, T, H), jnp.float32)
    for t in range(T):
        g = x_btd[:, t] @ w_in + h @ w_state + bias[None, :]
        i = jax.nn.sigmoid(g[:, 0 * C:1 * C])
        f = jax.nn.sigmoid(g[:, 1 * C:2 * C])
        z = jnp.tanh(g[:, 2 * C:3 * C])
        o = jax.nn.sigmoid(g[:, 3 * C:4 * C])
        mem = jnp.clip(i * z + f * c, -mem_clip, mem_clip)
        out = jnp.clip((o * jnp.tanh(mem)) @ w_proj, -proj_clip, proj_clip)
        active = (lengths > t)[:, None]
        c = jnp.where(active, mem, c)
        h = jnp.where(active, out, h)
        outs = outs.at[:, t].set(jnp.where(active, out, 0.0))
    return outs, (h[None], c[None])


def _reference_bf16(x_btd, lengths, w_in, w_state, bias, w_proj, mem_clip, proj_clip):
    """Replicates the kernel's numerics: bf16 matmul operands, f32 accumulation,
    f32 gate sum (x@W_in is NOT rounded to bf16), bias folded into gx."""
    B, T, _ = x_btd.shape
    C = w_in.shape[1] // 4
    H = w_proj.shape[1]
    bf = jnp.bfloat16
    gx_all = (jnp.einsum('btd,dg->btg', x_btd.astype(bf), w_in.astype(bf),
                         preferred_element_type=jnp.float32)
              + bias[None, None, :])
    ws = w_state.astype(bf)
    wp = w_proj.astype(bf)
    h = jnp.zeros((B, H), jnp.float32)
    c = jnp.zeros((B, C), jnp.float32)
    outs = jnp.zeros((B, T, H), jnp.float32)
    for t in range(T):
        g = gx_all[:, t] + jnp.dot(h.astype(bf), ws, preferred_element_type=jnp.float32)
        i = jax.nn.sigmoid(g[:, 0 * C:1 * C])
        f = jax.nn.sigmoid(g[:, 1 * C:2 * C])
        z = jnp.tanh(g[:, 2 * C:3 * C])
        o = jax.nn.sigmoid(g[:, 3 * C:4 * C])
        mem = jnp.clip(i * z + f * c, -mem_clip, mem_clip)
        out = jnp.clip(jnp.dot((o * jnp.tanh(mem)).astype(bf), wp,
                               preferred_element_type=jnp.float32),
                       -proj_clip, proj_clip)
        active = (lengths > t)[:, None]
        c = jnp.where(active, mem, c)
        h = jnp.where(active, out, h)
        outs = outs.at[:, t].set(jnp.where(active, out, 0.0))
    return outs, (h[None], c[None])


# ----------------------------------------------------------------------------
# Test
# ----------------------------------------------------------------------------
if __name__ == "__main__":
    # Small shapes consistent with the module's forward.
    B, T, D, H, C = 4, 8, 16, 32, 64
    MEM_CLIP, PROJ_CLIP = 3.0, 3.0

    key = jax.random.PRNGKey(0)
    kx, k1, k2, k3 = jax.random.split(key, 4)

    x = jax.random.normal(kx, (B, T, D), jnp.float32)
    # Sequence lengths, non-increasing (as required by the PyTorch module).
    lengths = jnp.array([8, 6, 3, 1], jnp.int32)

    # Deterministic parameter init (module uses block_orthogonal; synthetic here).
    # Stored already transposed relative to nn.Linear: (in, out).
    w_in = jax.random.normal(k1, (D, 4 * C), jnp.float32) * 0.1
    w_state = jax.random.normal(k2, (H, 4 * C), jnp.float32) * 0.1
    w_proj = jax.random.normal(k3, (C, H), jnp.float32) * 0.1
    # bias = 0 everywhere, forget-gate chunk = 1.0 (reset_parameters()).
    bias = jnp.zeros((4 * C,), jnp.float32).at[C:2 * C].set(1.0)

    out, (h_fin, c_fin) = lstm_cell_with_projection(
        x, lengths, w_in, w_state, bias, w_proj, MEM_CLIP, PROJ_CLIP)
    jax.block_until_ready(out)

    assert out.shape == (B, T, H)
    assert h_fin.shape == (1, B, H) and c_fin.shape == (1, B, C)

    # Primary check: against a reference with identical bf16-matmul numerics.
    ref_out, (ref_h, ref_c) = _reference_bf16(
        x, lengths, w_in, w_state, bias, w_proj, MEM_CLIP, PROJ_CLIP)
    assert jnp.allclose(out, ref_out, atol=2e-3, rtol=0), \
        float(jnp.max(jnp.abs(out - ref_out)))
    assert jnp.allclose(h_fin, ref_h, atol=2e-3, rtol=0)
    assert jnp.allclose(c_fin, ref_c, atol=2e-3, rtol=0)

    # Sanity check of semantics against the full-f32 PyTorch-equivalent
    # reference (loose tolerance accounts for bf16 matmul operands).
    f32_out, (f32_h, f32_c) = _reference_f32(
        x, lengths, w_in, w_state, bias, w_proj, MEM_CLIP, PROJ_CLIP)
    assert jnp.allclose(out, f32_out, atol=1e-1, rtol=0)
    assert jnp.allclose(h_fin, f32_h, atol=1e-1, rtol=0)
    assert jnp.allclose(c_fin, f32_c, atol=1e-1, rtol=0)

    print("KERNEL_OK")
</pallas_src>

<mosaic_0001>
module attributes {stable_mosaic.version = 11 : i64} {
  func.func @_lstm_proj_kernel(%arg0: i32, %arg1: i32, %arg2: memref<16xi32, #tpu.memory_space<smem>>, %arg3: memref<16x1xi32, #tpu.memory_space<vmem>>, %arg4: memref<8x16x16xbf16, #tpu.memory_space<vmem>>, %arg5: memref<16x512xbf16, #tpu.memory_space<vmem>>, %arg6: memref<128x512xbf16, #tpu.memory_space<vmem>>, %arg7: memref<1x512xf32, #tpu.memory_space<vmem>>, %arg8: memref<128x128xbf16, #tpu.memory_space<vmem>>, %arg9: memref<16x8x128xf32, #tpu.memory_space<vmem>>, %arg10: memref<16x128xf32, #tpu.memory_space<vmem>>, %arg11: memref<16x128xf32, #tpu.memory_space<vmem>>, %arg12: memref<128x512xf32, #tpu.memory_space<vmem>>) attributes {dimension_semantics = [#tpu.dimension_semantics<parallel>, #tpu.dimension_semantics<arbitrary>], iteration_bounds = array<i64: 1, 1>, scalar_prefetch = 1 : i64, scratch_operands = 1 : i64, tpu.core_type = #tpu.core_type<tc>, window_params = [{pipeline_mode = #tpu.pipeline_mode<synchronous>, transform_indices = @transform_0, window_bounds = array<i64: 16, 1>}, {transform_indices = @transform_1, window_bounds = array<i64: 8, 16, 16>}, {pipeline_mode = #tpu.pipeline_mode<synchronous>, transform_indices = @transform_2, window_bounds = array<i64: 16, 512>}, {pipeline_mode = #tpu.pipeline_mode<synchronous>, transform_indices = @transform_3, window_bounds = array<i64: 128, 512>}, {pipeline_mode = #tpu.pipeline_mode<synchronous>, transform_indices = @transform_4, window_bounds = array<i64: 1, 512>}, {pipeline_mode = #tpu.pipeline_mode<synchronous>, transform_indices = @transform_5, window_bounds = array<i64: 128, 128>}, {transform_indices = @transform_6, window_bounds = array<i64: 16, 8, 128>}, {transform_indices = @transform_7, window_bounds = array<i64: 16, 128>}, {transform_indices = @transform_8, window_bounds = array<i64: 16, 128>}]} {
    %c8_i32 = arith.constant 8 : i32
    %0 = arith.muli %arg1, %c8_i32 : i32
    %c0_i32 = arith.constant 0 : i32
    %1 = arith.cmpi eq, %arg1, %c0_i32 : i32
    %2 = arith.extui %1 : i1 to i32
    %c0_i32_0 = arith.constant 0 : i32
    %3 = arith.cmpi ne, %2, %c0_i32_0 : i32
    scf.if %3 {
      %cst = arith.constant 0.000000e+00 : f32
      %13 = vector.broadcast %cst : f32 to vector<16x128xf32>
      %c0 = arith.constant 0 : index
      %c0_3 = arith.constant 0 : index
      %14 = vector.load %arg10[%c0, %c0_3] : memref<16x128xf32, #tpu.memory_space<vmem>>, vector<16x128xf32>
      tpu.vector_store %arg10[%c0, %c0_3], %13 {strides = array<i32>} : memref<16x128xf32, #tpu.memory_space<vmem>>, vector<16x128xf32>,
      %cst_4 = arith.constant 0.000000e+00 : f32
      %15 = vector.broadcast %cst_4 : f32 to vector<16x128xf32>
      %c0_5 = arith.constant 0 : index
      %c0_6 = arith.constant 0 : index
      %16 = vector.load %arg11[%c0_5, %c0_6] : memref<16x128xf32, #tpu.memory_space<vmem>>, vector<16x128xf32>
      tpu.vector_store %arg11[%c0_5, %c0_6], %15 {strides = array<i32>} : memref<16x128xf32, #tpu.memory_space<vmem>>, vector<16x128xf32>,
    } else {
    }
    %c16_i32 = arith.constant 16 : i32
    %4 = arith.muli %arg0, %c16_i32 : i32
    %5 = arith.index_cast %4 : i32 to index
    %6 = memref.load %arg2[%5] : memref<16xi32, #tpu.memory_space<smem>>
    %7 = arith.cmpi sle, %6, %0 : i32
    %8 = arith.extui %7 : i1 to i32
    %c0_i32_1 = arith.constant 0 : i32
    %9 = arith.cmpi ne, %8, %c0_i32_1 : i32
    scf.if %9 {
      %cst = arith.constant 0.000000e+00 : f32
      %13 = vector.broadcast %cst : f32 to vector<16x8x128xf32>
      %c0 = arith.constant 0 : index
      %c0_3 = arith.constant 0 : index
      %c0_4 = arith.constant 0 : index
      %14 = vector.load %arg9[%c0, %c0_3, %c0_4] : memref<16x8x128xf32, #tpu.memory_space<vmem>>, vector<16x8x128xf32>
      tpu.vector_store %arg9[%c0, %c0_3, %c0_4], %13 {strides = array<i32>} : memref<16x8x128xf32, #tpu.memory_space<vmem>>, vector<16x8x128xf32>,
    } else {
    }
    %10 = arith.cmpi sgt, %6, %0 : i32
    %11 = arith.extui %10 : i1 to i32
    %c0_i32_2 = arith.constant 0 : i32
    %12 = arith.cmpi ne, %11, %c0_i32_2 : i32
    scf.if %12 {
      %c0 = arith.constant 0 : index
      %c0_3 = arith.constant 0 : index
      %c0_4 = arith.constant 0 : index
      %13 = vector.load %arg4[%c0, %c0_3, %c0_4] : memref<8x16x16xbf16, #tpu.memory_space<vmem>>, vector<8x16x16xbf16>
      %14 = vector.shape_cast %13 : vector<8x16x16xbf16> to vector<128x16xbf16>
      %c0_5 = arith.constant 0 : index
      %c0_6 = arith.constant 0 : index
      %15 = vector.load %arg5[%c0_5, %c0_6] : memref<16x512xbf16, #tpu.memory_space<vmem>>, vector<16x512xbf16>
      %cst = arith.constant dense<0.000000e+00> : vector<128x512xf32>
      %16 = tpu.matmul %14, %15, %cst {dimension_numbers = #tpu.dot_dimension_numbers<[1], [0], [0], [1], [0, 0, 1, 1], [], []>} : vector<128x16xbf16>, vector<16x512xbf16>, vector<128x512xf32> -> vector<128x512xf32>
      %c0_7 = arith.constant 0 : index
      %c0_8 = arith.constant 0 : index
      %17 = vector.load %arg7[%c0_7, %c0_8] : memref<1x512xf32, #tpu.memory_space<vmem>>, vector<1x512xf32>
      %18 = vector.broadcast %17 : vector<1x512xf32> to vector<128x512xf32>
      %19 = arith.addf %16, %18 : vector<128x512xf32>
      %c0_9 = arith.constant 0 : index
      %c0_10 = arith.constant 0 : index
      %20 = vector.load %arg12[%c0_9, %c0_10] : memref<128x512xf32, #tpu.memory_space<vmem>>, vector<128x512xf32>
      tpu.vector_store %arg12[%c0_9, %c0_10], %19 {strides = array<i32>} : memref<128x512xf32, #tpu.memory_space<vmem>>, vector<128x512xf32>,
      %c0_11 = arith.constant 0 : index
      %c0_12 = arith.constant 0 : index
      %21 = vector.load %arg6[%c0_11, %c0_12] : memref<128x512xbf16, #tpu.memory_space<vmem>>, vector<128x512xbf16>
      %c0_13 = arith.constant 0 : index
      %c0_14 = arith.constant 0 : index
      %22 = vector.load %arg8[%c0_13, %c0_14] : memref<128x128xbf16, #tpu.memory_space<vmem>>, vector<128x128xbf16>
      %c0_15 = arith.constant 0 : index
      %c0_16 = arith.constant 0 : index
      %23 = vector.load %arg3[%c0_15, %c0_16] : memref<16x1xi32, #tpu.memory_space<vmem>>, vector<16x1xi32>
      %c0_17 = arith.constant 0 : index
      %c0_18 = arith.constant 0 : index
      %24 = vector.load %arg10[%c0_17, %c0_18] : memref<16x128xf32, #tpu.memory_space<vmem>>, vector<16x128xf32>
      %c0_19 = arith.constant 0 : index
      %c0_20 = arith.constant 0 : index
      %25 = vector.load %arg11[%c0_19, %c0_20] : memref<16x128xf32, #tpu.memory_space<vmem>>, vector<16x128xf32>
      %c0_21 = arith.constant 0 : index
      %c0_22 = arith.constant 0 : index
      %26 = vector.load %arg12[%c0_21, %c0_22] : memref<128x512xf32, #tpu.memory_space<vmem>>, vector<16x512xf32>
      %27 = arith.truncf %24 : vector<16x128xf32> to vector<16x128xbf16>
      %cst_23 = arith.constant dense<0.000000e+00> : vector<16x512xf32>
      %28 = tpu.matmul %27, %21, %cst_23 {dimension_numbers = #tpu.dot_dimension_numbers<[1], [0], [0], [1], [0, 0, 1, 1], [], []>} : vector<16x128xbf16>, vector<128x512xbf16>, vector<16x512xf32> -> vector<16x512xf32>
      %29 = arith.addf %26, %28 : vector<16x512xf32>
      %30 = vector.extract_strided_slice %29 {offsets = [0, 0], sizes = [16, 128], strides = [1, 1]} : vector<16x512xf32> to vector<16x128xf32>
      %31 = arith.negf %30 : vector<16x128xf32>
      %32 = math.exp %31 : vector<16x128xf32>
      %cst_24 = arith.constant 1.000000e+00 : f32
      %33 = vector.broadcast %cst_24 : f32 to vector<16x128xf32>
      %34 = arith.addf %33, %32 : vector<16x128xf32>
      %35 = arith.divf %33, %34 : vector<16x128xf32>
      %36 = vector.extract_strided_slice %29 {offsets = [0, 128], sizes = [16, 128], strides = [1, 1]} : vector<16x512xf32> to vector<16x128xf32>
      %37 = arith.negf %36 : vector<16x128xf32>
      %38 = math.exp %37 : vector<16x128xf32>
      %cst_25 = arith.constant 1.000000e+00 : f32
      %39 = vector.broadcast %cst_25 : f32 to vector<16x128xf32>
      %40 = arith.addf %39, %38 : vector<16x128xf32>
      %41 = arith.divf %39, %40 : vector<16x128xf32>
      %42 = vector.extract_strided_slice %29 {offsets = [0, 256], sizes = [16, 128], strides = [1, 1]} : vector<16x512xf32> to vector<16x128xf32>
      %43 = math.tanh %42 : vector<16x128xf32>
      %44 = vector.extract_strided_slice %29 {offsets = [0, 384], sizes = [16, 128], strides = [1, 1]} : vector<16x512xf32> to vector<16x128xf32>
      %45 = arith.negf %44 : vector<16x128xf32>
      %46 = math.exp %45 : vector<16x128xf32>
      %cst_26 = arith.constant 1.000000e+00 : f32
      %47 = vector.broadcast %cst_26 : f32 to vector<16x128xf32>
      %48 = arith.addf %47, %46 : vector<16x128xf32>
      %49 = arith.divf %47, %48 : vector<16x128xf32>
      %50 = arith.mulf %35, %43 : vector<16x128xf32>
      %51 = arith.mulf %41, %25 : vector<16x128xf32>
      %52 = arith.addf %50, %51 : vector<16x128xf32>
      %cst_27 = arith.constant -3.000000e+00 : f32
      %cst_28 = arith.constant 3.000000e+00 : f32
      %53 = vector.broadcast %cst_27 : f32 to vector<16x128xf32>
      %54 = arith.maximumf %53, %52 : vector<16x128xf32>
      %55 = vector.broadcast %cst_28 : f32 to vector<16x128xf32>
      %56 = arith.minimumf %55, %54 : vector<16x128xf32>
      %57 = math.tanh %56 : vector<16x128xf32>
      %58 = arith.mulf %49, %57 : vector<16x128xf32>
      %59 = arith.truncf %58 : vector<16x128xf32> to vector<16x128xbf16>
      %cst_29 = arith.constant dense<0.000000e+00> : vector<16x128xf32>
      %60 = tpu.matmul %59, %22, %cst_29 {dimension_numbers = #tpu.dot_dimension_numbers<[1], [0], [0], [1], [0, 0, 1, 1], [], []>} : vector<16x128xbf16>, vector<128x128xbf16>, vector<16x128xf32> -> vector<16x128xf32>
      %cst_30 = arith.constant -3.000000e+00 : f32
      %cst_31 = arith.constant 3.000000e+00 : f32
      %61 = vector.broadcast %cst_30 : f32 to vector<16x128xf32>
      %62 = arith.maximumf %61, %60 : vector<16x128xf32>
      %63 = vector.broadcast %cst_31 : f32 to vector<16x128xf32>
      %64 = arith.minimumf %63, %62 : vector<16x128xf32>
      %c0_i32_32 = arith.constant 0 : i32
      %65 = arith.addi %0, %c0_i32_32 : i32
      %66 = vector.broadcast %65 : i32 to vector<16x1xi32>
      %67 = arith.cmpi sgt, %23, %66 : vector<16x1xi32>
      %68 = vector.shape_cast %67 : vector<16x1xi1> to vector<16x1xi1>
      %69 = vector.broadcast %68 : vector<16x1xi1> to vector<16x128xi1>
      %70 = arith.select %69, %56, %25 : vector<16x128xi1>, vector<16x128xf32>
      %71 = vector.shape_cast %67 : vector<16x1xi1> to vector<16x1xi1>
      %72 = vector.broadcast %71 : vector<16x1xi1> to vector<16x128xi1>
      %73 = arith.select %72, %64, %24 : vector<16x128xi1>, vector<16x128xf32>
      %cst_33 = arith.constant 0.000000e+00 : f32
      %74 = vector.shape_cast %67 : vector<16x1xi1> to vector<16x1xi1>
      %75 = vector.broadcast %74 : vector<16x1xi1> to vector<16x128xi1>
      %76 = vector.broadcast %cst_33 : f32 to vector<16x128xf32>
      %77 = arith.select %75, %64, %76 : vector<16x128xi1>, vector<16x128xf32>
      %78 = vector.shape_cast %77 : vector<16x128xf32> to vector<16x1x128xf32>
      %c0_34 = arith.constant 0 : index
      %c0_35 = arith.constant 0 : index
      %c0_36 = arith.constant 0 : index
      %79 = vector.load %arg9[%c0_34, %c0_35, %c0_36] : memref<16x8x128xf32, #tpu.memory_space<vmem>>, vector<16x1x128xf32>
      tpu.vector_store %arg9[%c0_34, %c0_35, %c0_36], %78 {strides = array<i32>} : memref<16x8x128xf32, #tpu.memory_space<vmem>>, vector<16x1x128xf32>,
      %c16 = arith.constant 16 : index
      %c0_37 = arith.constant 0 : index
      %80 = vector.load %arg12[%c16, %c0_37] : memref<128x512xf32, #tpu.memory_space<vmem>>, vector<16x512xf32>
      %81 = arith.truncf %73 : vector<16x128xf32> to vector<16x128xbf16>
      %cst_38 = arith.constant dense<0.000000e+00> : vector<16x512xf32>
      %82 = tpu.matmul %81, %21, %cst_38 {dimension_numbers = #tpu.dot_dimension_numbers<[1], [0], [0], [1], [0, 0, 1, 1], [], []>} : vector<16x128xbf16>, vector<128x512xbf16>, vector<16x512xf32> -> vector<16x512xf32>
      %83 = arith.addf %80, %82 : vector<16x512xf32>
      %84 = vector.extract_strided_slice %83 {offsets = [0, 0], sizes = [16, 128], strides = [1, 1]} : vector<16x512xf32> to vector<16x128xf32>
      %85 = arith.negf %84 : vector<16x128xf32>
      %86 = math.exp %85 : vector<16x128xf32>
      %cst_39 = arith.constant 1.000000e+00 : f32
      %87 = vector.broadcast %cst_39 : f32 to vector<16x128xf32>
      %88 = arith.addf %87, %86 : vector<16x128xf32>
      %89 = arith.divf %87, %88 : vector<16x128xf32>
      %90 = vector.extract_strided_slice %83 {offsets = [0, 128], sizes = [16, 128], strides = [1, 1]} : vector<16x512xf32> to vector<16x128xf32>
      %91 = arith.negf %90 : vector<16x128xf32>
      %92 = math.exp %91 : vector<16x128xf32>
      %cst_40 = arith.constant 1.000000e+00 : f32
      %93 = vector.broadcast %cst_40 : f32 to vector<16x128xf32>
      %94 = arith.addf %93, %92 : vector<16x128xf32>
      %95 = arith.divf %93, %94 : vector<16x128xf32>
      %96 = vector.extract_strided_slice %83 {offsets = [0, 256], sizes = [16, 128], strides = [1, 1]} : vector<16x512xf32> to vector<16x128xf32>
      %97 = math.tanh %96 : vector<16x128xf32>
      %98 = vector.extract_strided_slice %83 {offsets = [0, 384], sizes = [16, 128], strides = [1, 1]} : vector<16x512xf32> to vector<16x128xf32>
      %99 = arith.negf %98 : vector<16x128xf32>
      %100 = math.exp %99 : vector<16x128xf32>
      %cst_41 = arith.constant 1.000000e+00 : f32
      %101 = vector.broadcast %cst_41 : f32 to vector<16x128xf32>
      %102 = arith.addf %101, %100 : vector<16x128xf32>
      %103 = arith.divf %101, %102 : vector<16x128xf32>
      %104 = arith.mulf %89, %97 : vector<16x128xf32>
      %105 = arith.mulf %95, %70 : vector<16x128xf32>
      %106 = arith.addf %104, %105 : vector<16x128xf32>
      %cst_42 = arith.constant -3.000000e+00 : f32
      %cst_43 = arith.constant 3.000000e+00 : f32
      %107 = vector.broadcast %cst_42 : f32 to vector<16x128xf32>
      %108 = arith.maximumf %107, %106 : vector<16x128xf32>
      %109 = vector.broadcast %cst_43 : f32 to vector<16x128xf32>
      %110 = arith.minimumf %109, %108 : vector<16x128xf32>
      %111 = math.tanh %110 : vector<16x128xf32>
      %112 = arith.mulf %103, %111 : vector<16x128xf32>
      %113 = arith.truncf %112 : vector<16x128xf32> to vector<16x128xbf16>
      %cst_44 = arith.constant dense<0.000000e+00> : vector<16x128xf32>
      %114 = tpu.matmul %113, %22, %cst_44 {dimension_numbers = #tpu.dot_dimension_numbers<[1], [0], [0], [1], [0, 0, 1, 1], [], []>} : vector<16x128xbf16>, vector<128x128xbf16>, vector<16x128xf32> -> vector<16x128xf32>
      %cst_45 = arith.constant -3.000000e+00 : f32
      %cst_46 = arith.constant 3.000000e+00 : f32
      %115 = vector.broadcast %cst_45 : f32 to vector<16x128xf32>
      %116 = arith.maximumf %115, %114 : vector<16x128xf32>
      %117 = vector.broadcast %cst_46 : f32 to vector<16x128xf32>
      %118 = arith.minimumf %117, %116 : vector<16x128xf32>
      %c1_i32 = arith.constant 1 : i32
      %119 = arith.addi %0, %c1_i32 : i32
      %120 = vector.broadcast %119 : i32 to vector<16x1xi32>
      %121 = arith.cmpi sgt, %23, %120 : vector<16x1xi32>
      %122 = vector.shape_cast %121 : vector<16x1xi1> to vector<16x1xi1>
      %123 = vector.broadcast %122 : vector<16x1xi1> to vector<16x128xi1>
      %124 = arith.select %123, %110, %70 : vector<16x128xi1>, vector<16x128xf32>
      %125 = vector.shape_cast %121 : vector<16x1xi1> to vector<16x1xi1>
      %126 = vector.broadcast %125 : vector<16x1xi1> to vector<16x128xi1>
      %127 = arith.select %126, %118, %73 : vector<16x128xi1>, vector<16x128xf32>
      %cst_47 = arith.constant 0.000000e+00 : f32
      %128 = vector.shape_cast %121 : vector<16x1xi1> to vector<16x1xi1>
      %129 = vector.broadcast %128 : vector<16x1xi1> to vector<16x128xi1>
      %130 = vector.broadcast %cst_47 : f32 to vector<16x128xf32>
      %131 = arith.select %129, %118, %130 : vector<16x128xi1>, vector<16x128xf32>
      %132 = vector.shape_cast %131 : vector<16x128xf32> to vector<16x1x128xf32>
      %c0_48 = arith.constant 0 : index
      %c1 = arith.constant 1 : index
      %c0_49 = arith.constant 0 : index
      %133 = vector.load %arg9[%c0_48, %c1, %c0_49] : memref<16x8x128xf32, #tpu.memory_space<vmem>>, vector<16x1x128xf32>
      tpu.vector_store %arg9[%c0_48, %c1, %c0_49], %132 {strides = array<i32>} : memref<16x8x128xf32, #tpu.memory_space<vmem>>, vector<16x1x128xf32>,
      %c32 = arith.constant 32 : index
      %c0_50 = arith.constant 0 : index
      %134 = vector.load %arg12[%c32, %c0_50] : memref<128x512xf32, #tpu.memory_space<vmem>>, vector<16x512xf32>
      %135 = arith.truncf %127 : vector<16x128xf32> to vector<16x128xbf16>
      %cst_51 = arith.constant dense<0.000000e+00> : vector<16x512xf32>
      %136 = tpu.matmul %135, %21, %cst_51 {dimension_numbers = #tpu.dot_dimension_numbers<[1], [0], [0], [1], [0, 0, 1, 1], [], []>} : vector<16x128xbf16>, vector<128x512xbf16>, vector<16x512xf32> -> vector<16x512xf32>
      %137 = arith.addf %134, %136 : vector<16x512xf32>
      %138 = vector.extract_strided_slice %137 {offsets = [0, 0], sizes = [16, 128], strides = [1, 1]} : vector<16x512xf32> to vector<16x128xf32>
      %139 = arith.negf %138 : vector<16x128xf32>
      %140 = math.exp %139 : vector<16x128xf32>
      %cst_52 = arith.constant 1.000000e+00 : f32
      %141 = vector.broadcast %cst_52 : f32 to vector<16x128xf32>
      %142 = arith.addf %141, %140 : vector<16x128xf32>
      %143 = arith.divf %141, %142 : vector<16x128xf32>
      %144 = vector.extract_strided_slice %137 {offsets = [0, 128], sizes = [16, 128], strides = [1, 1]} : vector<16x512xf32> to vector<16x128xf32>
      %145 = arith.negf %144 : vector<16x128xf32>
      %146 = math.exp %145 : vector<16x128xf32>
      %cst_53 = arith.constant 1.000000e+00 : f32
      %147 = vector.broadcast %cst_53 : f32 to vector<16x128xf32>
      %148 = arith.addf %147, %146 : vector<16x128xf32>
      %149 = arith.divf %147, %148 : vector<16x128xf32>
      %150 = vector.extract_strided_slice %137 {offsets = [0, 256], sizes = [16, 128], strides = [1, 1]} : vector<16x512xf32> to vector<16x128xf32>
      %151 = math.tanh %150 : vector<16x128xf32>
      %152 = vector.extract_strided_slice %137 {offsets = [0, 384], sizes = [16, 128], strides = [1, 1]} : vector<16x512xf32> to vector<16x128xf32>
      %153 = arith.negf %152 : vector<16x128xf32>
      %154 = math.exp %153 : vector<16x128xf32>
      %cst_54 = arith.constant 1.000000e+00 : f32
      %155 = vector.broadcast %cst_54 : f32 to vector<16x128xf32>
      %156 = arith.addf %155, %154 : vector<16x128xf32>
      %157 = arith.divf %155, %156 : vector<16x128xf32>
      %158 = arith.mulf %143, %151 : vector<16x128xf32>
      %159 = arith.mulf %149, %124 : vector<16x128xf32>
      %160 = arith.addf %158, %159 : vector<16x128xf32>
      %cst_55 = arith.constant -3.000000e+00 : f32
      %cst_56 = arith.constant 3.000000e+00 : f32
      %161 = vector.broadcast %cst_55 : f32 to vector<16x128xf32>
      %162 = arith.maximumf %161, %160 : vector<16x128xf32>
      %163 = vector.broadcast %cst_56 : f32 to vector<16x128xf32>
      %164 = arith.minimumf %163, %162 : vector<16x128xf32>
      %165 = math.tanh %164 : vector<16x128xf32>
      %166 = arith.mulf %157, %165 : vector<16x128xf32>
      %167 = arith.truncf %166 : vector<16x128xf32> to vector<16x128xbf16>
      %cst_57 = arith.constant dense<0.000000e+00> : vector<16x128xf32>
      %168 = tpu.matmul %167, %22, %cst_57 {dimension_numbers = #tpu.dot_dimension_numbers<[1], [0], [0], [1], [0, 0, 1, 1], [], []>} : vector<16x128xbf16>, vector<128x128xbf16>, vector<16x128xf32> -> vector<16x128xf32>
      %cst_58 = arith.constant -3.000000e+00 : f32
      %cst_59 = arith.constant 3.000000e+00 : f32
      %169 = vector.broadcast %cst_58 : f32 to vector<16x128xf32>
      %170 = arith.maximumf %169, %168 : vector<16x128xf32>
      %171 = vector.broadcast %cst_59 : f32 to vector<16x128xf32>
      %172 = arith.minimumf %171, %170 : vector<16x128xf32>
      %c2_i32 = arith.constant 2 : i32
      %173 = arith.addi %0, %c2_i32 : i32
      %174 = vector.broadcast %173 : i32 to vector<16x1xi32>
      %175 = arith.cmpi sgt, %23, %174 : vector<16x1xi32>
      %176 = vector.shape_cast %175 : vector<16x1xi1> to vector<16x1xi1>
      %177 = vector.broadcast %176 : vector<16x1xi1> to vector<16x128xi1>
      %178 = arith.select %177, %164, %124 : vector<16x128xi1>, vector<16x128xf32>
      %179 = vector.shape_cast %175 : vector<16x1xi1> to vector<16x1xi1>
      %180 = vector.broadcast %179 : vector<16x1xi1> to vector<16x128xi1>
      %181 = arith.select %180, %172, %127 : vector<16x128xi1>, vector<16x128xf32>
      %cst_60 = arith.constant 0.000000e+00 : f32
      %182 = vector.shape_cast %175 : vector<16x1xi1> to vector<16x1xi1>
      %183 = vector.broadcast %182 : vector<16x1xi1> to vector<16x128xi1>
      %184 = vector.broadcast %cst_60 : f32 to vector<16x128xf32>
      %185 = arith.select %183, %172, %184 : vector<16x128xi1>, vector<16x128xf32>
      %186 = vector.shape_cast %185 : vector<16x128xf32> to vector<16x1x128xf32>
      %c0_61 = arith.constant 0 : index
      %c2 = arith.constant 2 : index
      %c0_62 = arith.constant 0 : index
      %187 = vector.load %arg9[%c0_61, %c2, %c0_62] : memref<16x8x128xf32, #tpu.memory_space<vmem>>, vector<16x1x128xf32>
      tpu.vector_store %arg9[%c0_61, %c2, %c0_62], %186 {strides = array<i32>} : memref<16x8x128xf32, #tpu.memory_space<vmem>>, vector<16x1x128xf32>,
      %c48 = arith.constant 48 : index
      %c0_63 = arith.constant 0 : index
      %188 = vector.load %arg12[%c48, %c0_63] : memref<128x512xf32, #tpu.memory_space<vmem>>, vector<16x512xf32>
      %189 = arith.truncf %181 : vector<16x128xf32> to vector<16x128xbf16>
      %cst_64 = arith.constant dense<0.000000e+00> : vector<16x512xf32>
      %190 = tpu.matmul %189, %21, %cst_64 {dimension_numbers = #tpu.dot_dimension_numbers<[1], [0], [0], [1], [0, 0, 1, 1], [], []>} : vector<16x128xbf16>, vector<128x512xbf16>, vector<16x512xf32> -> vector<16x512xf32>
      %191 = arith.addf %188, %190 : vector<16x512xf32>
      %192 = vector.extract_strided_slice %191 {offsets = [0, 0], sizes = [16, 128], strides = [1, 1]} : vector<16x512xf32> to vector<16x128xf32>
      %193 = arith.negf %192 : vector<16x128xf32>
      %194 = math.exp %193 : vector<16x128xf32>
      %cst_65 = arith.constant 1.000000e+00 : f32
      %195 = vector.broadcast %cst_65 : f32 to vector<16x128xf32>
      %196 = arith.addf %195, %194 : vector<16x128xf32>
      %197 = arith.divf %195, %196 : vector<16x128xf32>
      %198 = vector.extract_strided_slice %191 {offsets = [0, 128], sizes = [16, 128], strides = [1, 1]} : vector<16x512xf32> to vector<16x128xf32>
      %199 = arith.negf %198 : vector<16x128xf32>
      %200 = math.exp %199 : vector<16x128xf32>
      %cst_66 = arith.constant 1.000000e+00 : f32
      %201 = vector.broadcast %cst_66 : f32 to vector<16x128xf32>
      %202 = arith.addf %201, %200 : vector<16x128xf32>
      %203 = arith.divf %201, %202 : vector<16x128xf32>
      %204 = vector.extract_strided_slice %191 {offsets = [0, 256], sizes = [16, 128], strides = [1, 1]} : vector<16x512xf32> to vector<16x128xf32>
      %205 = math.tanh %204 : vector<16x128xf32>
      %206 = vector.extract_strided_slice %191 {offsets = [0, 384], sizes = [16, 128], strides = [1, 1]} : vector<16x512xf32> to vector<16x128xf32>
      %207 = arith.negf %206 : vector<16x128xf32>
      %208 = math.exp %207 : vector<16x128xf32>
      %cst_67 = arith.constant 1.000000e+00 : f32
      %209 = vector.broadcast %cst_67 : f32 to vector<16x128xf32>
      %210 = arith.addf %209, %208 : vector<16x128xf32>
      %211 = arith.divf %209, %210 : vector<16x128xf32>
      %212 = arith.mulf %197, %205 : vector<16x128xf32>
      %213 = arith.mulf %203, %178 : vector<16x128xf32>
      %214 = arith.addf %212, %213 : vector<16x128xf32>
      %cst_68 = arith.constant -3.000000e+00 : f32
      %cst_69 = arith.constant 3.000000e+00 : f32
      %215 = vector.broadcast %cst_68 : f32 to vector<16x128xf32>
      %216 = arith.maximumf %215, %214 : vector<16x128xf32>
      %217 = vector.broadcast %cst_69 : f32 to vector<16x128xf32>
      %218 = arith.minimumf %217, %216 : vector<16x128xf32>
      %219 = math.tanh %218 : vector<16x128xf32>
      %220 = arith.mulf %211, %219 : vector<16x128xf32>
      %221 = arith.truncf %220 : vector<16x128xf32> to vector<16x128xbf16>
      %cst_70 = arith.constant dense<0.000000e+00> : vector<16x128xf32>
      %222 = tpu.matmul %221, %22, %cst_70 {dimension_numbers = #tpu.dot_dimension_numbers<[1], [0], [0], [1], [0, 0, 1, 1], [], []>} : vector<16x128xbf16>, vector<128x128xbf16>, vector<16x128xf32> -> vector<16x128xf32>
      %cst_71 = arith.constant -3.000000e+00 : f32
      %cst_72 = arith.constant 3.000000e+00 : f32
      %223 = vector.broadcast %cst_71 : f32 to vector<16x128xf32>
      %224 = arith.maximumf %223, %222 : vector<16x128xf32>
      %225 = vector.broadcast %cst_72 : f32 to vector<16x128xf32>
      %226 = arith.minimumf %225, %224 : vector<16x128xf32>
      %c3_i32 = arith.constant 3 : i32
      %227 = arith.addi %0, %c3_i32 : i32
      %228 = vector.broadcast %227 : i32 to vector<16x1xi32>
      %229 = arith.cmpi sgt, %23, %228 : vector<16x1xi32>
      %230 = vector.shape_cast %229 : vector<16x1xi1> to vector<16x1xi1>
      %231 = vector.broadcast %230 : vector<16x1xi1> to vector<16x128xi1>
      %232 = arith.select %231, %218, %178 : vector<16x128xi1>, vector<16x128xf32>
      %233 = vector.shape_cast %229 : vector<16x1xi1> to vector<16x1xi1>
      %234 = vector.broadcast %233 : vector<16x1xi1> to vector<16x128xi1>
      %235 = arith.select %234, %226, %181 : vector<16x128xi1>, vector<16x128xf32>
      %cst_73 = arith.constant 0.000000e+00 : f32
      %236 = vector.shape_cast %229 : vector<16x1xi1> to vector<16x1xi1>
      %237 = vector.broadcast %236 : vector<16x1xi1> to vector<16x128xi1>
      %238 = vector.broadcast %cst_73 : f32 to vector<16x128xf32>
      %239 = arith.select %237, %226, %238 : vector<16x128xi1>, vector<16x128xf32>
      %240 = vector.shape_cast %239 : vector<16x128xf32> to vector<16x1x128xf32>
      %c0_74 = arith.constant 0 : index
      %c3 = arith.constant 3 : index
      %c0_75 = arith.constant 0 : index
      %241 = vector.load %arg9[%c0_74, %c3, %c0_75] : memref<16x8x128xf32, #tpu.memory_space<vmem>>, vector<16x1x128xf32>
      tpu.vector_store %arg9[%c0_74, %c3, %c0_75], %240 {strides = array<i32>} : memref<16x8x128xf32, #tpu.memory_space<vmem>>, vector<16x1x128xf32>,
      %c64 = arith.constant 64 : index
      %c0_76 = arith.constant 0 : index
      %242 = vector.load %arg12[%c64, %c0_76] : memref<128x512xf32, #tpu.memory_space<vmem>>, vector<16x512xf32>
      %243 = arith.truncf %235 : vector<16x128xf32> to vector<16x128xbf16>
      %cst_77 = arith.constant dense<0.000000e+00> : vector<16x512xf32>
      %244 = tpu.matmul %243, %21, %cst_77 {dimension_numbers = #tpu.dot_dimension_numbers<[1], [0], [0], [1], [0, 0, 1, 1], [], []>} : vector<16x128xbf16>, vector<128x512xbf16>, vector<16x512xf32> -> vector<16x512xf32>
      %245 = arith.addf %242, %244 : vector<16x512xf32>
      %246 = vector.extract_strided_slice %245 {offsets = [0, 0], sizes = [16, 128], strides = [1, 1]} : vector<16x512xf32> to vector<16x128xf32>
      %247 = arith.negf %246 : vector<16x128xf32>
      %248 = math.exp %247 : vector<16x128xf32>
      %cst_78 = arith.constant 1.000000e+00 : f32
      %249 = vector.broadcast %cst_78 : f32 to vector<16x128xf32>
      %250 = arith.addf %249, %248 : vector<16x128xf32>
      %251 = arith.divf %249, %250 : vector<16x128xf32>
      %252 = vector.extract_strided_slice %245 {offsets = [0, 128], sizes = [16, 128], strides = [1, 1]} : vector<16x512xf32> to vector<16x128xf32>
      %253 = arith.negf %252 : vector<16x128xf32>
      %254 = math.exp %253 : vector<16x128xf32>
      %cst_79 = arith.constant 1.000000e+00 : f32
      %255 = vector.broadcast %cst_79 : f32 to vector<16x128xf32>
      %256 = arith.addf %255, %254 : vector<16x128xf32>
      %257 = arith.divf %255, %256 : vector<16x128xf32>
      %258 = vector.extract_strided_slice %245 {offsets = [0, 256], sizes = [16, 128], strides = [1, 1]} : vector<16x512xf32> to vector<16x128xf32>
      %259 = math.tanh %258 : vector<16x128xf32>
      %260 = vector.extract_strided_slice %245 {offsets = [0, 384], sizes = [16, 128], strides = [1, 1]} : vector<16x512xf32> to vector<16x128xf32>
      %261 = arith.negf %260 : vector<16x128xf32>
      %262 = math.exp %261 : vector<16x128xf32>
      %cst_80 = arith.constant 1.000000e+00 : f32
      %263 = vector.broadcast %cst_80 : f32 to vector<16x128xf32>
      %264 = arith.addf %263, %262 : vector<16x128xf32>
      %265 = arith.divf %263, %264 : vector<16x128xf32>
      %266 = arith.mulf %251, %259 : vector<16x128xf32>
      %267 = arith.mulf %257, %232 : vector<16x128xf32>
      %268 = arith.addf %266, %267 : vector<16x128xf32>
      %cst_81 = arith.constant -3.000000e+00 : f32
      %cst_82 = arith.constant 3.000000e+00 : f32
      %269 = vector.broadcast %cst_81 : f32 to vector<16x128xf32>
      %270 = arith.maximumf %269, %268 : vector<16x128xf32>
      %271 = vector.broadcast %cst_82 : f32 to vector<16x128xf32>
      %272 = arith.minimumf %271, %270 : vector<16x128xf32>
      %273 = math.tanh %272 : vector<16x128xf32>
      %274 = arith.mulf %265, %273 : vector<16x128xf32>
      %275 = arith.truncf %274 : vector<16x128xf32> to vector<16x128xbf16>
      %cst_83 = arith.constant dense<0.000000e+00> : vector<16x128xf32>
      %276 = tpu.matmul %275, %22, %cst_83 {dimension_numbers = #tpu.dot_dimension_numbers<[1], [0], [0], [1], [0, 0, 1, 1], [], []>} : vector<16x128xbf16>, vector<128x128xbf16>, vector<16x128xf32> -> vector<16x128xf32>
      %cst_84 = arith.constant -3.000000e+00 : f32
      %cst_85 = arith.constant 3.000000e+00 : f32
      %277 = vector.broadcast %cst_84 : f32 to vector<16x128xf32>
      %278 = arith.maximumf %277, %276 : vector<16x128xf32>
      %279 = vector.broadcast %cst_85 : f32 to vector<16x128xf32>
      %280 = arith.minimumf %279, %278 : vector<16x128xf32>
      %c4_i32 = arith.constant 4 : i32
      %281 = arith.addi %0, %c4_i32 : i32
      %282 = vector.broadcast %281 : i32 to vector<16x1xi32>
      %283 = arith.cmpi sgt, %23, %282 : vector<16x1xi32>
      %284 = vector.shape_cast %283 : vector<16x1xi1> to vector<16x1xi1>
      %285 = vector.broadcast %284 : vector<16x1xi1> to vector<16x128xi1>
      %286 = arith.select %285, %272, %232 : vector<16x128xi1>, vector<16x128xf32>
      %287 = vector.shape_cast %283 : vector<16x1xi1> to vector<16x1xi1>
      %288 = vector.broadcast %287 : vector<16x1xi1> to vector<16x128xi1>
      %289 = arith.select %288, %280, %235 : vector<16x128xi1>, vector<16x128xf32>
      %cst_86 = arith.constant 0.000000e+00 : f32
      %290 = vector.shape_cast %283 : vector<16x1xi1> to vector<16x1xi1>
      %291 = vector.broadcast %290 : vector<16x1xi1> to vector<16x128xi1>
      %292 = vector.broadcast %cst_86 : f32 to vector<16x128xf32>
      %293 = arith.select %291, %280, %292 : vector<16x128xi1>, vector<16x128xf32>
      %294 = vector.shape_cast %293 : vector<16x128xf32> to vector<16x1x128xf32>
      %c0_87 = arith.constant 0 : index
      %c4 = arith.constant 4 : index
      %c0_88 = arith.constant 0 : index
      %295 = vector.load %arg9[%c0_87, %c4, %c0_88] : memref<16x8x128xf32, #tpu.memory_space<vmem>>, vector<16x1x128xf32>
      tpu.vector_store %arg9[%c0_87, %c4, %c0_88], %294 {strides = array<i32>} : memref<16x8x128xf32, #tpu.memory_space<vmem>>, vector<16x1x128xf32>,
      %c80 = arith.constant 80 : index
      %c0_89 = arith.constant 0 : index
      %296 = vector.load %arg12[%c80, %c0_89] : memref<128x512xf32, #tpu.memory_space<vmem>>, vector<16x512xf32>
      %297 = arith.truncf %289 : vector<16x128xf32> to vector<16x128xbf16>
      %cst_90 = arith.constant dense<0.000000e+00> : vector<16x512xf32>
      %298 = tpu.matmul %297, %21, %cst_90 {dimension_numbers = #tpu.dot_dimension_numbers<[1], [0], [0], [1], [0, 0, 1, 1], [], []>} : vector<16x128xbf16>, vector<128x512xbf16>, vector<16x512xf32> -> vector<16x512xf32>
      %299 = arith.addf %296, %298 : vector<16x512xf32>
      %300 = vector.extract_strided_slice %299 {offsets = [0, 0], sizes = [16, 128], strides = [1, 1]} : vector<16x512xf32> to vector<16x128xf32>
      %301 = arith.negf %300 : vector<16x128xf32>
      %302 = math.exp %301 : vector<16x128xf32>
      %cst_91 = arith.constant 1.000000e+00 : f32
      %303 = vector.broadcast %cst_91 : f32 to vector<16x128xf32>
      %304 = arith.addf %303, %302 : vector<16x128xf32>
      %305 = arith.divf %303, %304 : vector<16x128xf32>
      %306 = vector.extract_strided_slice %299 {offsets = [0, 128], sizes = [16, 128], strides = [1, 1]} : vector<16x512xf32> to vector<16x128xf32>
      %307 = arith.negf %306 : vector<16x128xf32>
      %308 = math.exp %307 : vector<16x128xf32>
      %cst_92 = arith.constant 1.000000e+00 : f32
      %309 = vector.broadcast %cst_92 : f32 to vector<16x128xf32>
      %310 = arith.addf %309, %308 : vector<16x128xf32>
      %311 = arith.divf %309, %310 : vector<16x128xf32>
      %312 = vector.extract_strided_slice %299 {offsets = [0, 256], sizes = [16, 128], strides = [1, 1]} : vector<16x512xf32> to vector<16x128xf32>
      %313 = math.tanh %312 : vector<16x128xf32>
      %314 = vector.extract_strided_slice %299 {offsets = [0, 384], sizes = [16, 128], strides = [1, 1]} : vector<16x512xf32> to vector<16x128xf32>
      %315 = arith.negf %314 : vector<16x128xf32>
      %316 = math.exp %315 : vector<16x128xf32>
      %cst_93 = arith.constant 1.000000e+00 : f32
      %317 = vector.broadcast %cst_93 : f32 to vector<16x128xf32>
      %318 = arith.addf %317, %316 : vector<16x128xf32>
      %319 = arith.divf %317, %318 : vector<16x128xf32>
      %320 = arith.mulf %305, %313 : vector<16x128xf32>
      %321 = arith.mulf %311, %286 : vector<16x128xf32>
      %322 = arith.addf %320, %321 : vector<16x128xf32>
      %cst_94 = arith.constant -3.000000e+00 : f32
      %cst_95 = arith.constant 3.000000e+00 : f32
      %323 = vector.broadcast %cst_94 : f32 to vector<16x128xf32>
      %324 = arith.maximumf %323, %322 : vector<16x128xf32>
      %325 = vector.broadcast %cst_95 : f32 to vector<16x128xf32>
      %326 = arith.minimumf %325, %324 : vector<16x128xf32>
      %327 = math.tanh %326 : vector<16x128xf32>
      %328 = arith.mulf %319, %327 : vector<16x128xf32>
      %329 = arith.truncf %328 : vector<16x128xf32> to vector<16x128xbf16>
      %cst_96 = arith.constant dense<0.000000e+00> : vector<16x128xf32>
      %330 = tpu.matmul %329, %22, %cst_96 {dimension_numbers = #tpu.dot_dimension_numbers<[1], [0], [0], [1], [0, 0, 1, 1], [], []>} : vector<16x128xbf16>, vector<128x128xbf16>, vector<16x128xf32> -> vector<16x128xf32>
      %cst_97 = arith.constant -3.000000e+00 : f32
      %cst_98 = arith.constant 3.000000e+00 : f32
      %331 = vector.broadcast %cst_97 : f32 to vector<16x128xf32>
      %332 = arith.maximumf %331, %330 : vector<16x128xf32>
      %333 = vector.broadcast %cst_98 : f32 to vector<16x128xf32>
      %334 = arith.minimumf %333, %332 : vector<16x128xf32>
      %c5_i32 = arith.constant 5 : i32
      %335 = arith.addi %0, %c5_i32 : i32
      %336 = vector.broadcast %335 : i32 to vector<16x1xi32>
      %337 = arith.cmpi sgt, %23, %336 : vector<16x1xi32>
      %338 = vector.shape_cast %337 : vector<16x1xi1> to vector<16x1xi1>
      %339 = vector.broadcast %338 : vector<16x1xi1> to vector<16x128xi1>
      %340 = arith.select %339, %326, %286 : vector<16x128xi1>, vector<16x128xf32>
      %341 = vector.shape_cast %337 : vector<16x1xi1> to vector<16x1xi1>
      %342 = vector.broadcast %341 : vector<16x1xi1> to vector<16x128xi1>
      %343 = arith.select %342, %334, %289 : vector<16x128xi1>, vector<16x128xf32>
      %cst_99 = arith.constant 0.000000e+00 : f32
      %344 = vector.shape_cast %337 : vector<16x1xi1> to vector<16x1xi1>
      %345 = vector.broadcast %344 : vector<16x1xi1> to vector<16x128xi1>
      %346 = vector.broadcast %cst_99 : f32 to vector<16x128xf32>
      %347 = arith.select %345, %334, %346 : vector<16x128xi1>, vector<16x128xf32>
      %348 = vector.shape_cast %347 : vector<16x128xf32> to vector<16x1x128xf32>
      %c0_100 = arith.constant 0 : index
      %c5 = arith.constant 5 : index
      %c0_101 = arith.constant 0 : index
      %349 = vector.load %arg9[%c0_100, %c5, %c0_101] : memref<16x8x128xf32, #tpu.memory_space<vmem>>, vector<16x1x128xf32>
      tpu.vector_store %arg9[%c0_100, %c5, %c0_101], %348 {strides = array<i32>} : memref<16x8x128xf32, #tpu.memory_space<vmem>>, vector<16x1x128xf32>,
      %c96 = arith.constant 96 : index
      %c0_102 = arith.constant 0 : index
      %350 = vector.load %arg12[%c96, %c0_102] : memref<128x512xf32, #tpu.memory_space<vmem>>, vector<16x512xf32>
      %351 = arith.truncf %343 : vector<16x128xf32> to vector<16x128xbf16>
      %cst_103 = arith.constant dense<0.000000e+00> : vector<16x512xf32>
      %352 = tpu.matmul %351, %21, %cst_103 {dimension_numbers = #tpu.dot_dimension_numbers<[1], [0], [0], [1], [0, 0, 1, 1], [], []>} : vector<16x128xbf16>, vector<128x512xbf16>, vector<16x512xf32> -> vector<16x512xf32>
      %353 = arith.addf %350, %352 : vector<16x512xf32>
      %354 = vector.extract_strided_slice %353 {offsets = [0, 0], sizes = [16, 128], strides = [1, 1]} : vector<16x512xf32> to vector<16x128xf32>
      %355 = arith.negf %354 : vector<16x128xf32>
      %356 = math.exp %355 : vector<16x128xf32>
      %cst_104 = arith.constant 1.000000e+00 : f32
      %357 = vector.broadcast %cst_104 : f32 to vector<16x128xf32>
      %358 = arith.addf %357, %356 : vector<16x128xf32>
      %359 = arith.divf %357, %358 : vector<16x128xf32>
      %360 = vector.extract_strided_slice %353 {offsets = [0, 128], sizes = [16, 128], strides = [1, 1]} : vector<16x512xf32> to vector<16x128xf32>
      %361 = arith.negf %360 : vector<16x128xf32>
      %362 = math.exp %361 : vector<16x128xf32>
      %cst_105 = arith.constant 1.000000e+00 : f32
      %363 = vector.broadcast %cst_105 : f32 to vector<16x128xf32>
      %364 = arith.addf %363, %362 : vector<16x128xf32>
      %365 = arith.divf %363, %364 : vector<16x128xf32>
      %366 = vector.extract_strided_slice %353 {offsets = [0, 256], sizes = [16, 128], strides = [1, 1]} : vector<16x512xf32> to vector<16x128xf32>
      %367 = math.tanh %366 : vector<16x128xf32>
      %368 = vector.extract_strided_slice %353 {offsets = [0, 384], sizes = [16, 128], strides = [1, 1]} : vector<16x512xf32> to vector<16x128xf32>
      %369 = arith.negf %368 : vector<16x128xf32>
      %370 = math.exp %369 : vector<16x128xf32>
      %cst_106 = arith.constant 1.000000e+00 : f32
      %371 = vector.broadcast %cst_106 : f32 to vector<16x128xf32>
      %372 = arith.addf %371, %370 : vector<16x128xf32>
      %373 = arith.divf %371, %372 : vector<16x128xf32>
      %374 = arith.mulf %359, %367 : vector<16x128xf32>
      %375 = arith.mulf %365, %340 : vector<16x128xf32>
      %376 = arith.addf %374, %375 : vector<16x128xf32>
      %cst_107 = arith.constant -3.000000e+00 : f32
      %cst_108 = arith.constant 3.000000e+00 : f32
      %377 = vector.broadcast %cst_107 : f32 to vector<16x128xf32>
      %378 = arith.maximumf %377, %376 : vector<16x128xf32>
      %379 = vector.broadcast %cst_108 : f32 to vector<16x128xf32>
      %380 = arith.minimumf %379, %378 : vector<16x128xf32>
      %381 = math.tanh %380 : vector<16x128xf32>
      %382 = arith.mulf %373, %381 : vector<16x128xf32>
      %383 = arith.truncf %382 : vector<16x128xf32> to vector<16x128xbf16>
      %cst_109 = arith.constant dense<0.000000e+00> : vector<16x128xf32>
      %384 = tpu.matmul %383, %22, %cst_109 {dimension_numbers = #tpu.dot_dimension_numbers<[1], [0], [0], [1], [0, 0, 1, 1], [], []>} : vector<16x128xbf16>, vector<128x128xbf16>, vector<16x128xf32> -> vector<16x128xf32>
      %cst_110 = arith.constant -3.000000e+00 : f32
      %cst_111 = arith.constant 3.000000e+00 : f32
      %385 = vector.broadcast %cst_110 : f32 to vector<16x128xf32>
      %386 = arith.maximumf %385, %384 : vector<16x128xf32>
      %387 = vector.broadcast %cst_111 : f32 to vector<16x128xf32>
      %388 = arith.minimumf %387, %386 : vector<16x128xf32>
      %c6_i32 = arith.constant 6 : i32
      %389 = arith.addi %0, %c6_i32 : i32
      %390 = vector.broadcast %389 : i32 to vector<16x1xi32>
      %391 = arith.cmpi sgt, %23, %390 : vector<16x1xi32>
      %392 = vector.shape_cast %391 : vector<16x1xi1> to vector<16x1xi1>
      %393 = vector.broadcast %392 : vector<16x1xi1> to vector<16x128xi1>
      %394 = arith.select %393, %380, %340 : vector<16x128xi1>, vector<16x128xf32>
      %395 = vector.shape_cast %391 : vector<16x1xi1> to vector<16x1xi1>
      %396 = vector.broadcast %395 : vector<16x1xi1> to vector<16x128xi1>
      %397 = arith.select %396, %388, %343 : vector<16x128xi1>, vector<16x128xf32>
      %cst_112 = arith.constant 0.000000e+00 : f32
      %398 = vector.shape_cast %391 : vector<16x1xi1> to vector<16x1xi1>
      %399 = vector.broadcast %398 : vector<16x1xi1> to vector<16x128xi1>
      %400 = vector.broadcast %cst_112 : f32 to vector<16x128xf32>
      %401 = arith.select %399, %388, %400 : vector<16x128xi1>, vector<16x128xf32>
      %402 = vector.shape_cast %401 : vector<16x128xf32> to vector<16x1x128xf32>
      %c0_113 = arith.constant 0 : index
      %c6 = arith.constant 6 : index
      %c0_114 = arith.constant 0 : index
      %403 = vector.load %arg9[%c0_113, %c6, %c0_114] : memref<16x8x128xf32, #tpu.memory_space<vmem>>, vector<16x1x128xf32>
      tpu.vector_store %arg9[%c0_113, %c6, %c0_114], %402 {strides = array<i32>} : memref<16x8x128xf32, #tpu.memory_space<vmem>>, vector<16x1x128xf32>,
      %c112 = arith.constant 112 : index
      %c0_115 = arith.constant 0 : index
      %404 = vector.load %arg12[%c112, %c0_115] : memref<128x512xf32, #tpu.memory_space<vmem>>, vector<16x512xf32>
      %405 = arith.truncf %397 : vector<16x128xf32> to vector<16x128xbf16>
      %cst_116 = arith.constant dense<0.000000e+00> : vector<16x512xf32>
      %406 = tpu.matmul %405, %21, %cst_116 {dimension_numbers = #tpu.dot_dimension_numbers<[1], [0], [0], [1], [0, 0, 1, 1], [], []>} : vector<16x128xbf16>, vector<128x512xbf16>, vector<16x512xf32> -> vector<16x512xf32>
      %407 = arith.addf %404, %406 : vector<16x512xf32>
      %408 = vector.extract_strided_slice %407 {offsets = [0, 0], sizes = [16, 128], strides = [1, 1]} : vector<16x512xf32> to vector<16x128xf32>
      %409 = arith.negf %408 : vector<16x128xf32>
      %410 = math.exp %409 : vector<16x128xf32>
      %cst_117 = arith.constant 1.000000e+00 : f32
      %411 = vector.broadcast %cst_117 : f32 to vector<16x128xf32>
      %412 = arith.addf %411, %410 : vector<16x128xf32>
      %413 = arith.divf %411, %412 : vector<16x128xf32>
      %414 = vector.extract_strided_slice %407 {offsets = [0, 128], sizes = [16, 128], strides = [1, 1]} : vector<16x512xf32> to vector<16x128xf32>
      %415 = arith.negf %414 : vector<16x128xf32>
      %416 = math.exp %415 : vector<16x128xf32>
      %cst_118 = arith.constant 1.000000e+00 : f32
      %417 = vector.broadcast %cst_118 : f32 to vector<16x128xf32>
      %418 = arith.addf %417, %416 : vector<16x128xf32>
      %419 = arith.divf %417, %418 : vector<16x128xf32>
      %420 = vector.extract_strided_slice %407 {offsets = [0, 256], sizes = [16, 128], strides = [1, 1]} : vector<16x512xf32> to vector<16x128xf32>
      %421 = math.tanh %420 : vector<16x128xf32>
      %422 = vector.extract_strided_slice %407 {offsets = [0, 384], sizes = [16, 128], strides = [1, 1]} : vector<16x512xf32> to vector<16x128xf32>
      %423 = arith.negf %422 : vector<16x128xf32>
      %424 = math.exp %423 : vector<16x128xf32>
      %cst_119 = arith.constant 1.000000e+00 : f32
      %425 = vector.broadcast %cst_119 : f32 to vector<16x128xf32>
      %426 = arith.addf %425, %424 : vector<16x128xf32>
      %427 = arith.divf %425, %426 : vector<16x128xf32>
      %428 = arith.mulf %413, %421 : vector<16x128xf32>
      %429 = arith.mulf %419, %394 : vector<16x128xf32>
      %430 = arith.addf %428, %429 : vector<16x128xf32>
      %cst_120 = arith.constant -3.000000e+00 : f32
      %cst_121 = arith.constant 3.000000e+00 : f32
      %431 = vector.broadcast %cst_120 : f32 to vector<16x128xf32>
      %432 = arith.maximumf %431, %430 : vector<16x128xf32>
      %433 = vector.broadcast %cst_121 : f32 to vector<16x128xf32>
      %434 = arith.minimumf %433, %432 : vector<16x128xf32>
      %435 = math.tanh %434 : vector<16x128xf32>
      %436 = arith.mulf %427, %435 : vector<16x128xf32>
      %437 = arith.truncf %436 : vector<16x128xf32> to vector<16x128xbf16>
      %cst_122 = arith.constant dense<0.000000e+00> : vector<16x128xf32>
      %438 = tpu.matmul %437, %22, %cst_122 {dimension_numbers = #tpu.dot_dimension_numbers<[1], [0], [0], [1], [0, 0, 1, 1], [], []>} : vector<16x128xbf16>, vector<128x128xbf16>, vector<16x128xf32> -> vector<16x128xf32>
      %cst_123 = arith.constant -3.000000e+00 : f32
      %cst_124 = arith.constant 3.000000e+00 : f32
      %439 = vector.broadcast %cst_123 : f32 to vector<16x128xf32>
      %440 = arith.maximumf %439, %438 : vector<16x128xf32>
      %441 = vector.broadcast %cst_124 : f32 to vector<16x128xf32>
      %442 = arith.minimumf %441, %440 : vector<16x128xf32>
      %c7_i32 = arith.constant 7 : i32
      %443 = arith.addi %0, %c7_i32 : i32
      %444 = vector.broadcast %443 : i32 to vector<16x1xi32>
      %445 = arith.cmpi sgt, %23, %444 : vector<16x1xi32>
      %446 = vector.shape_cast %445 : vector<16x1xi1> to vector<16x1xi1>
      %447 = vector.broadcast %446 : vector<16x1xi1> to vector<16x128xi1>
      %448 = arith.select %447, %434, %394 : vector<16x128xi1>, vector<16x128xf32>
      %449 = vector.shape_cast %445 : vector<16x1xi1> to vector<16x1xi1>
      %450 = vector.broadcast %449 : vector<16x1xi1> to vector<16x128xi1>
      %451 = arith.select %450, %442, %397 : vector<16x128xi1>, vector<16x128xf32>
      %cst_125 = arith.constant 0.000000e+00 : f32
      %452 = vector.shape_cast %445 : vector<16x1xi1> to vector<16x1xi1>
      %453 = vector.broadcast %452 : vector<16x1xi1> to vector<16x128xi1>
      %454 = vector.broadcast %cst_125 : f32 to vector<16x128xf32>
      %455 = arith.select %453, %442, %454 : vector<16x128xi1>, vector<16x128xf32>
      %456 = vector.shape_cast %455 : vector<16x128xf32> to vector<16x1x128xf32>
      %c0_126 = arith.constant 0 : index
      %c7 = arith.constant 7 : index
      %c0_127 = arith.constant 0 : index
      %457 = vector.load %arg9[%c0_126, %c7, %c0_127] : memref<16x8x128xf32, #tpu.memory_space<vmem>>, vector<16x1x128xf32>
      tpu.vector_store %arg9[%c0_126, %c7, %c0_127], %456 {strides = array<i32>} : memref<16x8x128xf32, #tpu.memory_space<vmem>>, vector<16x1x128xf32>,
      %c0_128 = arith.constant 0 : index
      %c0_129 = arith.constant 0 : index
      %458 = vector.load %arg10[%c0_128, %c0_129] : memref<16x128xf32, #tpu.memory_space<vmem>>, vector<16x128xf32>
      tpu.vector_store %arg10[%c0_128, %c0_129], %451 {strides = array<i32>} : memref<16x128xf32, #tpu.memory_space<vmem>>, vector<16x128xf32>,
      %c0_130 = arith.constant 0 : index
      %c0_131 = arith.constant 0 : index
      %459 = vector.load %arg11[%c0_130, %c0_131] : memref<16x128xf32, #tpu.memory_space<vmem>>, vector<16x128xf32>
      tpu.vector_store %arg11[%c0_130, %c0_131], %448 {strides = array<i32>} : memref<16x128xf32, #tpu.memory_space<vmem>>, vector<16x128xf32>,
    } else {
    }
    return
  }
  func.func @transform_0(%arg0: i32, %arg1: i32, %arg2: memref<16xi32, #tpu.memory_space<smem>>) -> (i32, i32) {
    %c0_i32 = arith.constant 0 : i32
    %c0_i32_0 = arith.constant 0 : i32
    return %arg0, %c0_i32 : i32, i32
  }
  func.func @transform_1(%arg0: i32, %arg1: i32, %arg2: memref<16xi32, #tpu.memory_space<smem>>) -> (i32, i32, i32) {
    %c0_i32 = arith.constant 0 : i32
    %c0_i32_0 = arith.constant 0 : i32
    return %arg1, %arg0, %c0_i32 : i32, i32, i32
  }
  func.func @transform_2(%arg0: i32, %arg1: i32, %arg2: memref<16xi32, #tpu.memory_space<smem>>) -> (i32, i32) {
    %c0_i32 = arith.constant 0 : i32
    %c0_i32_0 = arith.constant 0 : i32
    %c0_i32_1 = arith.constant 0 : i32
    return %c0_i32, %c0_i32_0 : i32, i32
  }
  func.func @transform_3(%arg0: i32, %arg1: i32, %arg2: memref<16xi32, #tpu.memory_space<smem>>) -> (i32, i32) {
    %c0_i32 = arith.constant 0 : i32
    %c0_i32_0 = arith.constant 0 : i32
    %c0_i32_1 = arith.constant 0 : i32
    return %c0_i32, %c0_i32_0 : i32, i32
  }
  func.func @transform_4(%arg0: i32, %arg1: i32, %arg2: memref<16xi32, #tpu.memory_space<smem>>) -> (i32, i32) {
    %c0_i32 = arith.constant 0 : i32
    %c0_i32_0 = arith.constant 0 : i32
    %c0_i32_1 = arith.constant 0 : i32
    return %c0_i32, %c0_i32_0 : i32, i32
  }
  func.func @transform_5(%arg0: i32, %arg1: i32, %arg2: memref<16xi32, #tpu.memory_space<smem>>) -> (i32, i32) {
    %c0_i32 = arith.constant 0 : i32
    %c0_i32_0 = arith.constant 0 : i32
    %c0_i32_1 = arith.constant 0 : i32
    return %c0_i32, %c0_i32_0 : i32, i32
  }
  func.func @transform_6(%arg0: i32, %arg1: i32, %arg2: memref<16xi32, #tpu.memory_space<smem>>) -> (i32, i32, i32) {
    %c0_i32 = arith.constant 0 : i32
    %c0_i32_0 = arith.constant 0 : i32
    return %arg0, %arg1, %c0_i32 : i32, i32, i32
  }
  func.func @transform_7(%arg0: i32, %arg1: i32, %arg2: memref<16xi32, #tpu.memory_space<smem>>) -> (i32, i32) {
    %c0_i32 = arith.constant 0 : i32
    %c0_i32_0 = arith.constant 0 : i32
    return %arg0, %c0_i32 : i32, i32
  }
  func.func @transform_8(%arg0: i32, %arg1: i32, %arg2: memref<16xi32, #tpu.memory_space<smem>>) -> (i32, i32) {
    %c0_i32 = arith.constant 0 : i32
    %c0_i32_0 = arith.constant 0 : i32
    return %arg0, %c0_i32 : i32, i32
  }
}

module attributes {stable_mosaic.version = 11 : i64} {
  func.func @_lstm_proj_kernel(%arg0: i32, %arg1: i32, %arg2: memref<16xi32, #tpu.memory_space<smem>>, %arg3: memref<16x1xi32, #tpu.memory_space<vmem>>, %arg4: memref<8x16x16xbf16, #tpu.memory_space<vmem>>, %arg5: memref<16x512xbf16, #tpu.memory_space<vmem>>, %arg6: memref<128x512xbf16, #tpu.memory_space<vmem>>, %arg7: memref<1x512xf32, #tpu.memory_space<vmem>>, %arg8: memref<128x128xbf16, #tpu.memory_space<vmem>>, %arg9: memref<16x8x128xf32, #tpu.memory_space<vmem>>, %arg10: memref<16x128xf32, #tpu.memory_space<vmem>>, %arg11: memref<16x128xf32, #tpu.memory_space<vmem>>, %arg12: memref<128x512xf32, #tpu.memory_space<vmem>>) attributes {dimension_semantics = [#tpu.dimension_semantics<parallel>, #tpu.dimension_semantics<arbitrary>], iteration_bounds = array<i64: 1, 1>, scalar_prefetch = 1 : i64, scratch_operands = 1 : i64, tpu.core_type = #tpu.core_type<tc>, window_params = [{transform_indices = @transform_0, window_bounds = array<i64: 16, 1>}, {transform_indices = @transform_1, window_bounds = array<i64: 8, 16, 16>}, {pipeline_mode = #tpu.pipeline_mode<synchronous>, transform_indices = @transform_2, window_bounds = array<i64: 16, 512>}, {pipeline_mode = #tpu.pipeline_mode<synchronous>, transform_indices = @transform_3, window_bounds = array<i64: 128, 512>}, {pipeline_mode = #tpu.pipeline_mode<synchronous>, transform_indices = @transform_4, window_bounds = array<i64: 1, 512>}, {pipeline_mode = #tpu.pipeline_mode<synchronous>, transform_indices = @transform_5, window_bounds = array<i64: 128, 128>}, {transform_indices = @transform_6, window_bounds = array<i64: 16, 8, 128>}, {transform_indices = @transform_7, window_bounds = array<i64: 16, 128>}, {transform_indices = @transform_8, window_bounds = array<i64: 16, 128>}]} {
    %c8_i32 = arith.constant 8 : i32
    %0 = arith.muli %arg1, %c8_i32 : i32
    %c0_i32 = arith.constant 0 : i32
    %1 = arith.cmpi eq, %arg1, %c0_i32 : i32
    %2 = arith.extui %1 : i1 to i32
    %c0_i32_0 = arith.constant 0 : i32
    %3 = arith.cmpi ne, %2, %c0_i32_0 : i32
    scf.if %3 {
      %cst = arith.constant 0.000000e+00 : f32
      %13 = vector.broadcast %cst : f32 to vector<16x128xf32>
      %c0 = arith.constant 0 : index
      %c0_3 = arith.constant 0 : index
      %14 = vector.load %arg10[%c0, %c0_3] : memref<16x128xf32, #tpu.memory_space<vmem>>, vector<16x128xf32>
      tpu.vector_store %arg10[%c0, %c0_3], %13 {strides = array<i32>} : memref<16x128xf32, #tpu.memory_space<vmem>>, vector<16x128xf32>,
      %cst_4 = arith.constant 0.000000e+00 : f32
      %15 = vector.broadcast %cst_4 : f32 to vector<16x128xf32>
      %c0_5 = arith.constant 0 : index
      %c0_6 = arith.constant 0 : index
      %16 = vector.load %arg11[%c0_5, %c0_6] : memref<16x128xf32, #tpu.memory_space<vmem>>, vector<16x128xf32>
      tpu.vector_store %arg11[%c0_5, %c0_6], %15 {strides = array<i32>} : memref<16x128xf32, #tpu.memory_space<vmem>>, vector<16x128xf32>,
    } else {
    }
    %c16_i32 = arith.constant 16 : i32
    %4 = arith.muli %arg0, %c16_i32 : i32
    %5 = arith.index_cast %4 : i32 to index
    %6 = memref.load %arg2[%5] : memref<16xi32, #tpu.memory_space<smem>>
    %7 = arith.cmpi sle, %6, %0 : i32
    %8 = arith.extui %7 : i1 to i32
    %c0_i32_1 = arith.constant 0 : i32
    %9 = arith.cmpi ne, %8, %c0_i32_1 : i32
    scf.if %9 {
      %cst = arith.constant 0.000000e+00 : f32
      %13 = vector.broadcast %cst : f32 to vector<16x8x128xf32>
      %c0 = arith.constant 0 : index
      %c0_3 = arith.constant 0 : index
      %c0_4 = arith.constant 0 : index
      %14 = vector.load %arg9[%c0, %c0_3, %c0_4] : memref<16x8x128xf32, #tpu.memory_space<vmem>>, vector<16x8x128xf32>
      tpu.vector_store %arg9[%c0, %c0_3, %c0_4], %13 {strides = array<i32>} : memref<16x8x128xf32, #tpu.memory_space<vmem>>, vector<16x8x128xf32>,
    } else {
    }
    %10 = arith.cmpi sgt, %6, %0 : i32
    %11 = arith.extui %10 : i1 to i32
    %c0_i32_2 = arith.constant 0 : i32
    %12 = arith.cmpi ne, %11, %c0_i32_2 : i32
    scf.if %12 {
      %c0 = arith.constant 0 : index
      %c0_3 = arith.constant 0 : index
      %c0_4 = arith.constant 0 : index
      %13 = vector.load %arg4[%c0, %c0_3, %c0_4] : memref<8x16x16xbf16, #tpu.memory_space<vmem>>, vector<8x16x16xbf16>
      %14 = vector.shape_cast %13 : vector<8x16x16xbf16> to vector<128x16xbf16>
      %c0_5 = arith.constant 0 : index
      %c0_6 = arith.constant 0 : index
      %15 = vector.load %arg5[%c0_5, %c0_6] : memref<16x512xbf16, #tpu.memory_space<vmem>>, vector<16x512xbf16>
      %cst = arith.constant dense<0.000000e+00> : vector<128x512xf32>
      %16 = tpu.matmul %14, %15, %cst {dimension_numbers = #tpu.dot_dimension_numbers<[1], [0], [0], [1], [0, 0, 1, 1], [], []>} : vector<128x16xbf16>, vector<16x512xbf16>, vector<128x512xf32> -> vector<128x512xf32>
      %c0_7 = arith.constant 0 : index
      %c0_8 = arith.constant 0 : index
      %17 = vector.load %arg7[%c0_7, %c0_8] : memref<1x512xf32, #tpu.memory_space<vmem>>, vector<1x512xf32>
      %18 = vector.broadcast %17 : vector<1x512xf32> to vector<128x512xf32>
      %19 = arith.addf %16, %18 : vector<128x512xf32>
      %c0_9 = arith.constant 0 : index
      %c0_10 = arith.constant 0 : index
      %20 = vector.load %arg12[%c0_9, %c0_10] : memref<128x512xf32, #tpu.memory_space<vmem>>, vector<128x512xf32>
      tpu.vector_store %arg12[%c0_9, %c0_10], %19 {strides = array<i32>} : memref<128x512xf32, #tpu.memory_space<vmem>>, vector<128x512xf32>,
      %c0_11 = arith.constant 0 : index
      %c0_12 = arith.constant 0 : index
      %21 = vector.load %arg6[%c0_11, %c0_12] : memref<128x512xbf16, #tpu.memory_space<vmem>>, vector<128x512xbf16>
      %c0_13 = arith.constant 0 : index
      %c0_14 = arith.constant 0 : index
      %22 = vector.load %arg8[%c0_13, %c0_14] : memref<128x128xbf16, #tpu.memory_space<vmem>>, vector<128x128xbf16>
      %c0_15 = arith.constant 0 : index
      %c0_16 = arith.constant 0 : index
      %23 = vector.load %arg3[%c0_15, %c0_16] : memref<16x1xi32, #tpu.memory_space<vmem>>, vector<16x1xi32>
      %c0_17 = arith.constant 0 : index
      %c0_18 = arith.constant 0 : index
      %24 = vector.load %arg10[%c0_17, %c0_18] : memref<16x128xf32, #tpu.memory_space<vmem>>, vector<16x128xf32>
      %c0_19 = arith.constant 0 : index
      %c0_20 = arith.constant 0 : index
      %25 = vector.load %arg11[%c0_19, %c0_20] : memref<16x128xf32, #tpu.memory_space<vmem>>, vector<16x128xf32>
      %c0_21 = arith.constant 0 : index
      %c0_22 = arith.constant 0 : index
      %26 = vector.load %arg12[%c0_21, %c0_22] : memref<128x512xf32, #tpu.memory_space<vmem>>, vector<16x512xf32>
      %27 = arith.truncf %24 : vector<16x128xf32> to vector<16x128xbf16>
      %cst_23 = arith.constant dense<0.000000e+00> : vector<16x512xf32>
      %28 = tpu.matmul %27, %21, %cst_23 {dimension_numbers = #tpu.dot_dimension_numbers<[1], [0], [0], [1], [0, 0, 1, 1], [], []>} : vector<16x128xbf16>, vector<128x512xbf16>, vector<16x512xf32> -> vector<16x512xf32>
      %29 = arith.addf %26, %28 : vector<16x512xf32>
      %30 = vector.extract_strided_slice %29 {offsets = [0, 0], sizes = [16, 128], strides = [1, 1]} : vector<16x512xf32> to vector<16x128xf32>
      %31 = arith.negf %30 : vector<16x128xf32>
      %32 = math.exp %31 : vector<16x128xf32>
      %cst_24 = arith.constant 1.000000e+00 : f32
      %33 = vector.broadcast %cst_24 : f32 to vector<16x128xf32>
      %34 = arith.addf %33, %32 : vector<16x128xf32>
      %35 = arith.divf %33, %34 : vector<16x128xf32>
      %36 = vector.extract_strided_slice %29 {offsets = [0, 128], sizes = [16, 128], strides = [1, 1]} : vector<16x512xf32> to vector<16x128xf32>
      %37 = arith.negf %36 : vector<16x128xf32>
      %38 = math.exp %37 : vector<16x128xf32>
      %cst_25 = arith.constant 1.000000e+00 : f32
      %39 = vector.broadcast %cst_25 : f32 to vector<16x128xf32>
      %40 = arith.addf %39, %38 : vector<16x128xf32>
      %41 = arith.divf %39, %40 : vector<16x128xf32>
      %42 = vector.extract_strided_slice %29 {offsets = [0, 256], sizes = [16, 128], strides = [1, 1]} : vector<16x512xf32> to vector<16x128xf32>
      %43 = math.tanh %42 : vector<16x128xf32>
      %44 = vector.extract_strided_slice %29 {offsets = [0, 384], sizes = [16, 128], strides = [1, 1]} : vector<16x512xf32> to vector<16x128xf32>
      %45 = arith.negf %44 : vector<16x128xf32>
      %46 = math.exp %45 : vector<16x128xf32>
      %cst_26 = arith.constant 1.000000e+00 : f32
      %47 = vector.broadcast %cst_26 : f32 to vector<16x128xf32>
      %48 = arith.addf %47, %46 : vector<16x128xf32>
      %49 = arith.divf %47, %48 : vector<16x128xf32>
      %50 = arith.mulf %35, %43 : vector<16x128xf32>
      %51 = arith.mulf %41, %25 : vector<16x128xf32>
      %52 = arith.addf %50, %51 : vector<16x128xf32>
      %cst_27 = arith.constant -3.000000e+00 : f32
      %cst_28 = arith.constant 3.000000e+00 : f32
      %53 = vector.broadcast %cst_27 : f32 to vector<16x128xf32>
      %54 = arith.maximumf %53, %52 : vector<16x128xf32>
      %55 = vector.broadcast %cst_28 : f32 to vector<16x128xf32>
      %56 = arith.minimumf %55, %54 : vector<16x128xf32>
      %57 = math.tanh %56 : vector<16x128xf32>
      %58 = arith.mulf %49, %57 : vector<16x128xf32>
      %59 = arith.truncf %58 : vector<16x128xf32> to vector<16x128xbf16>
      %cst_29 = arith.constant dense<0.000000e+00> : vector<16x128xf32>
      %60 = tpu.matmul %59, %22, %cst_29 {dimension_numbers = #tpu.dot_dimension_numbers<[1], [0], [0], [1], [0, 0, 1, 1], [], []>} : vector<16x128xbf16>, vector<128x128xbf16>, vector<16x128xf32> -> vector<16x128xf32>
      %cst_30 = arith.constant -3.000000e+00 : f32
      %cst_31 = arith.constant 3.000000e+00 : f32
      %61 = vector.broadcast %cst_30 : f32 to vector<16x128xf32>
      %62 = arith.maximumf %61, %60 : vector<16x128xf32>
      %63 = vector.broadcast %cst_31 : f32 to vector<16x128xf32>
      %64 = arith.minimumf %63, %62 : vector<16x128xf32>
      %c0_i32_32 = arith.constant 0 : i32
      %65 = arith.addi %0, %c0_i32_32 : i32
      %66 = vector.broadcast %65 : i32 to vector<16x1xi32>
      %67 = arith.cmpi sgt, %23, %66 : vector<16x1xi32>
      %68 = vector.shape_cast %67 : vector<16x1xi1> to vector<16x1xi1>
      %69 = vector.broadcast %68 : vector<16x1xi1> to vector<16x128xi1>
      %70 = arith.select %69, %56, %25 : vector<16x128xi1>, vector<16x128xf32>
      %71 = vector.shape_cast %67 : vector<16x1xi1> to vector<16x1xi1>
      %72 = vector.broadcast %71 : vector<16x1xi1> to vector<16x128xi1>
      %73 = arith.select %72, %64, %24 : vector<16x128xi1>, vector<16x128xf32>
      %cst_33 = arith.constant 0.000000e+00 : f32
      %74 = vector.shape_cast %67 : vector<16x1xi1> to vector<16x1xi1>
      %75 = vector.broadcast %74 : vector<16x1xi1> to vector<16x128xi1>
      %76 = vector.broadcast %cst_33 : f32 to vector<16x128xf32>
      %77 = arith.select %75, %64, %76 : vector<16x128xi1>, vector<16x128xf32>
      %78 = vector.shape_cast %77 : vector<16x128xf32> to vector<16x1x128xf32>
      %c0_34 = arith.constant 0 : index
      %c0_35 = arith.constant 0 : index
      %c0_36 = arith.constant 0 : index
      %79 = vector.load %arg9[%c0_34, %c0_35, %c0_36] : memref<16x8x128xf32, #tpu.memory_space<vmem>>, vector<16x1x128xf32>
      tpu.vector_store %arg9[%c0_34, %c0_35, %c0_36], %78 {strides = array<i32>} : memref<16x8x128xf32, #tpu.memory_space<vmem>>, vector<16x1x128xf32>,
      %c16 = arith.constant 16 : index
      %c0_37 = arith.constant 0 : index
      %80 = vector.load %arg12[%c16, %c0_37] : memref<128x512xf32, #tpu.memory_space<vmem>>, vector<16x512xf32>
      %81 = arith.truncf %73 : vector<16x128xf32> to vector<16x128xbf16>
      %cst_38 = arith.constant dense<0.000000e+00> : vector<16x512xf32>
      %82 = tpu.matmul %81, %21, %cst_38 {dimension_numbers = #tpu.dot_dimension_numbers<[1], [0], [0], [1], [0, 0, 1, 1], [], []>} : vector<16x128xbf16>, vector<128x512xbf16>, vector<16x512xf32> -> vector<16x512xf32>
      %83 = arith.addf %80, %82 : vector<16x512xf32>
      %84 = vector.extract_strided_slice %83 {offsets = [0, 0], sizes = [16, 128], strides = [1, 1]} : vector<16x512xf32> to vector<16x128xf32>
      %85 = arith.negf %84 : vector<16x128xf32>
      %86 = math.exp %85 : vector<16x128xf32>
      %cst_39 = arith.constant 1.000000e+00 : f32
      %87 = vector.broadcast %cst_39 : f32 to vector<16x128xf32>
      %88 = arith.addf %87, %86 : vector<16x128xf32>
      %89 = arith.divf %87, %88 : vector<16x128xf32>
      %90 = vector.extract_strided_slice %83 {offsets = [0, 128], sizes = [16, 128], strides = [1, 1]} : vector<16x512xf32> to vector<16x128xf32>
      %91 = arith.negf %90 : vector<16x128xf32>
      %92 = math.exp %91 : vector<16x128xf32>
      %cst_40 = arith.constant 1.000000e+00 : f32
      %93 = vector.broadcast %cst_40 : f32 to vector<16x128xf32>
      %94 = arith.addf %93, %92 : vector<16x128xf32>
      %95 = arith.divf %93, %94 : vector<16x128xf32>
      %96 = vector.extract_strided_slice %83 {offsets = [0, 256], sizes = [16, 128], strides = [1, 1]} : vector<16x512xf32> to vector<16x128xf32>
      %97 = math.tanh %96 : vector<16x128xf32>
      %98 = vector.extract_strided_slice %83 {offsets = [0, 384], sizes = [16, 128], strides = [1, 1]} : vector<16x512xf32> to vector<16x128xf32>
      %99 = arith.negf %98 : vector<16x128xf32>
      %100 = math.exp %99 : vector<16x128xf32>
      %cst_41 = arith.constant 1.000000e+00 : f32
      %101 = vector.broadcast %cst_41 : f32 to vector<16x128xf32>
      %102 = arith.addf %101, %100 : vector<16x128xf32>
      %103 = arith.divf %101, %102 : vector<16x128xf32>
      %104 = arith.mulf %89, %97 : vector<16x128xf32>
      %105 = arith.mulf %95, %70 : vector<16x128xf32>
      %106 = arith.addf %104, %105 : vector<16x128xf32>
      %cst_42 = arith.constant -3.000000e+00 : f32
      %cst_43 = arith.constant 3.000000e+00 : f32
      %107 = vector.broadcast %cst_42 : f32 to vector<16x128xf32>
      %108 = arith.maximumf %107, %106 : vector<16x128xf32>
      %109 = vector.broadcast %cst_43 : f32 to vector<16x128xf32>
      %110 = arith.minimumf %109, %108 : vector<16x128xf32>
      %111 = math.tanh %110 : vector<16x128xf32>
      %112 = arith.mulf %103, %111 : vector<16x128xf32>
      %113 = arith.truncf %112 : vector<16x128xf32> to vector<16x128xbf16>
      %cst_44 = arith.constant dense<0.000000e+00> : vector<16x128xf32>
      %114 = tpu.matmul %113, %22, %cst_44 {dimension_numbers = #tpu.dot_dimension_numbers<[1], [0], [0], [1], [0, 0, 1, 1], [], []>} : vector<16x128xbf16>, vector<128x128xbf16>, vector<16x128xf32> -> vector<16x128xf32>
      %cst_45 = arith.constant -3.000000e+00 : f32
      %cst_46 = arith.constant 3.000000e+00 : f32
      %115 = vector.broadcast %cst_45 : f32 to vector<16x128xf32>
      %116 = arith.maximumf %115, %114 : vector<16x128xf32>
      %117 = vector.broadcast %cst_46 : f32 to vector<16x128xf32>
      %118 = arith.minimumf %117, %116 : vector<16x128xf32>
      %c1_i32 = arith.constant 1 : i32
      %119 = arith.addi %0, %c1_i32 : i32
      %120 = vector.broadcast %119 : i32 to vector<16x1xi32>
      %121 = arith.cmpi sgt, %23, %120 : vector<16x1xi32>
      %122 = vector.shape_cast %121 : vector<16x1xi1> to vector<16x1xi1>
      %123 = vector.broadcast %122 : vector<16x1xi1> to vector<16x128xi1>
      %124 = arith.select %123, %110, %70 : vector<16x128xi1>, vector<16x128xf32>
      %125 = vector.shape_cast %121 : vector<16x1xi1> to vector<16x1xi1>
      %126 = vector.broadcast %125 : vector<16x1xi1> to vector<16x128xi1>
      %127 = arith.select %126, %118, %73 : vector<16x128xi1>, vector<16x128xf32>
      %cst_47 = arith.constant 0.000000e+00 : f32
      %128 = vector.shape_cast %121 : vector<16x1xi1> to vector<16x1xi1>
      %129 = vector.broadcast %128 : vector<16x1xi1> to vector<16x128xi1>
      %130 = vector.broadcast %cst_47 : f32 to vector<16x128xf32>
      %131 = arith.select %129, %118, %130 : vector<16x128xi1>, vector<16x128xf32>
      %132 = vector.shape_cast %131 : vector<16x128xf32> to vector<16x1x128xf32>
      %c0_48 = arith.constant 0 : index
      %c1 = arith.constant 1 : index
      %c0_49 = arith.constant 0 : index
      %133 = vector.load %arg9[%c0_48, %c1, %c0_49] : memref<16x8x128xf32, #tpu.memory_space<vmem>>, vector<16x1x128xf32>
      tpu.vector_store %arg9[%c0_48, %c1, %c0_49], %132 {strides = array<i32>} : memref<16x8x128xf32, #tpu.memory_space<vmem>>, vector<16x1x128xf32>,
      %c32 = arith.constant 32 : index
      %c0_50 = arith.constant 0 : index
      %134 = vector.load %arg12[%c32, %c0_50] : memref<128x512xf32, #tpu.memory_space<vmem>>, vector<16x512xf32>
      %135 = arith.truncf %127 : vector<16x128xf32> to vector<16x128xbf16>
      %cst_51 = arith.constant dense<0.000000e+00> : vector<16x512xf32>
      %136 = tpu.matmul %135, %21, %cst_51 {dimension_numbers = #tpu.dot_dimension_numbers<[1], [0], [0], [1], [0, 0, 1, 1], [], []>} : vector<16x128xbf16>, vector<128x512xbf16>, vector<16x512xf32> -> vector<16x512xf32>
      %137 = arith.addf %134, %136 : vector<16x512xf32>
      %138 = vector.extract_strided_slice %137 {offsets = [0, 0], sizes = [16, 128], strides = [1, 1]} : vector<16x512xf32> to vector<16x128xf32>
      %139 = arith.negf %138 : vector<16x128xf32>
      %140 = math.exp %139 : vector<16x128xf32>
      %cst_52 = arith.constant 1.000000e+00 : f32
      %141 = vector.broadcast %cst_52 : f32 to vector<16x128xf32>
      %142 = arith.addf %141, %140 : vector<16x128xf32>
      %143 = arith.divf %141, %142 : vector<16x128xf32>
      %144 = vector.extract_strided_slice %137 {offsets = [0, 128], sizes = [16, 128], strides = [1, 1]} : vector<16x512xf32> to vector<16x128xf32>
      %145 = arith.negf %144 : vector<16x128xf32>
      %146 = math.exp %145 : vector<16x128xf32>
      %cst_53 = arith.constant 1.000000e+00 : f32
      %147 = vector.broadcast %cst_53 : f32 to vector<16x128xf32>
      %148 = arith.addf %147, %146 : vector<16x128xf32>
      %149 = arith.divf %147, %148 : vector<16x128xf32>
      %150 = vector.extract_strided_slice %137 {offsets = [0, 256], sizes = [16, 128], strides = [1, 1]} : vector<16x512xf32> to vector<16x128xf32>
      %151 = math.tanh %150 : vector<16x128xf32>
      %152 = vector.extract_strided_slice %137 {offsets = [0, 384], sizes = [16, 128], strides = [1, 1]} : vector<16x512xf32> to vector<16x128xf32>
      %153 = arith.negf %152 : vector<16x128xf32>
      %154 = math.exp %153 : vector<16x128xf32>
      %cst_54 = arith.constant 1.000000e+00 : f32
      %155 = vector.broadcast %cst_54 : f32 to vector<16x128xf32>
      %156 = arith.addf %155, %154 : vector<16x128xf32>
      %157 = arith.divf %155, %156 : vector<16x128xf32>
      %158 = arith.mulf %143, %151 : vector<16x128xf32>
      %159 = arith.mulf %149, %124 : vector<16x128xf32>
      %160 = arith.addf %158, %159 : vector<16x128xf32>
      %cst_55 = arith.constant -3.000000e+00 : f32
      %cst_56 = arith.constant 3.000000e+00 : f32
      %161 = vector.broadcast %cst_55 : f32 to vector<16x128xf32>
      %162 = arith.maximumf %161, %160 : vector<16x128xf32>
      %163 = vector.broadcast %cst_56 : f32 to vector<16x128xf32>
      %164 = arith.minimumf %163, %162 : vector<16x128xf32>
      %165 = math.tanh %164 : vector<16x128xf32>
      %166 = arith.mulf %157, %165 : vector<16x128xf32>
      %167 = arith.truncf %166 : vector<16x128xf32> to vector<16x128xbf16>
      %cst_57 = arith.constant dense<0.000000e+00> : vector<16x128xf32>
      %168 = tpu.matmul %167, %22, %cst_57 {dimension_numbers = #tpu.dot_dimension_numbers<[1], [0], [0], [1], [0, 0, 1, 1], [], []>} : vector<16x128xbf16>, vector<128x128xbf16>, vector<16x128xf32> -> vector<16x128xf32>
      %cst_58 = arith.constant -3.000000e+00 : f32
      %cst_59 = arith.constant 3.000000e+00 : f32
      %169 = vector.broadcast %cst_58 : f32 to vector<16x128xf32>
      %170 = arith.maximumf %169, %168 : vector<16x128xf32>
      %171 = vector.broadcast %cst_59 : f32 to vector<16x128xf32>
      %172 = arith.minimumf %171, %170 : vector<16x128xf32>
      %c2_i32 = arith.constant 2 : i32
      %173 = arith.addi %0, %c2_i32 : i32
      %174 = vector.broadcast %173 : i32 to vector<16x1xi32>
      %175 = arith.cmpi sgt, %23, %174 : vector<16x1xi32>
      %176 = vector.shape_cast %175 : vector<16x1xi1> to vector<16x1xi1>
      %177 = vector.broadcast %176 : vector<16x1xi1> to vector<16x128xi1>
      %178 = arith.select %177, %164, %124 : vector<16x128xi1>, vector<16x128xf32>
      %179 = vector.shape_cast %175 : vector<16x1xi1> to vector<16x1xi1>
      %180 = vector.broadcast %179 : vector<16x1xi1> to vector<16x128xi1>
      %181 = arith.select %180, %172, %127 : vector<16x128xi1>, vector<16x128xf32>
      %cst_60 = arith.constant 0.000000e+00 : f32
      %182 = vector.shape_cast %175 : vector<16x1xi1> to vector<16x1xi1>
      %183 = vector.broadcast %182 : vector<16x1xi1> to vector<16x128xi1>
      %184 = vector.broadcast %cst_60 : f32 to vector<16x128xf32>
      %185 = arith.select %183, %172, %184 : vector<16x128xi1>, vector<16x128xf32>
      %186 = vector.shape_cast %185 : vector<16x128xf32> to vector<16x1x128xf32>
      %c0_61 = arith.constant 0 : index
      %c2 = arith.constant 2 : index
      %c0_62 = arith.constant 0 : index
      %187 = vector.load %arg9[%c0_61, %c2, %c0_62] : memref<16x8x128xf32, #tpu.memory_space<vmem>>, vector<16x1x128xf32>
      tpu.vector_store %arg9[%c0_61, %c2, %c0_62], %186 {strides = array<i32>} : memref<16x8x128xf32, #tpu.memory_space<vmem>>, vector<16x1x128xf32>,
      %c48 = arith.constant 48 : index
      %c0_63 = arith.constant 0 : index
      %188 = vector.load %arg12[%c48, %c0_63] : memref<128x512xf32, #tpu.memory_space<vmem>>, vector<16x512xf32>
      %189 = arith.truncf %181 : vector<16x128xf32> to vector<16x128xbf16>
      %cst_64 = arith.constant dense<0.000000e+00> : vector<16x512xf32>
      %190 = tpu.matmul %189, %21, %cst_64 {dimension_numbers = #tpu.dot_dimension_numbers<[1], [0], [0], [1], [0, 0, 1, 1], [], []>} : vector<16x128xbf16>, vector<128x512xbf16>, vector<16x512xf32> -> vector<16x512xf32>
      %191 = arith.addf %188, %190 : vector<16x512xf32>
      %192 = vector.extract_strided_slice %191 {offsets = [0, 0], sizes = [16, 128], strides = [1, 1]} : vector<16x512xf32> to vector<16x128xf32>
      %193 = arith.negf %192 : vector<16x128xf32>
      %194 = math.exp %193 : vector<16x128xf32>
      %cst_65 = arith.constant 1.000000e+00 : f32
      %195 = vector.broadcast %cst_65 : f32 to vector<16x128xf32>
      %196 = arith.addf %195, %194 : vector<16x128xf32>
      %197 = arith.divf %195, %196 : vector<16x128xf32>
      %198 = vector.extract_strided_slice %191 {offsets = [0, 128], sizes = [16, 128], strides = [1, 1]} : vector<16x512xf32> to vector<16x128xf32>
      %199 = arith.negf %198 : vector<16x128xf32>
      %200 = math.exp %199 : vector<16x128xf32>
      %cst_66 = arith.constant 1.000000e+00 : f32
      %201 = vector.broadcast %cst_66 : f32 to vector<16x128xf32>
      %202 = arith.addf %201, %200 : vector<16x128xf32>
      %203 = arith.divf %201, %202 : vector<16x128xf32>
      %204 = vector.extract_strided_slice %191 {offsets = [0, 256], sizes = [16, 128], strides = [1, 1]} : vector<16x512xf32> to vector<16x128xf32>
      %205 = math.tanh %204 : vector<16x128xf32>
      %206 = vector.extract_strided_slice %191 {offsets = [0, 384], sizes = [16, 128], strides = [1, 1]} : vector<16x512xf32> to vector<16x128xf32>
      %207 = arith.negf %206 : vector<16x128xf32>
      %208 = math.exp %207 : vector<16x128xf32>
      %cst_67 = arith.constant 1.000000e+00 : f32
      %209 = vector.broadcast %cst_67 : f32 to vector<16x128xf32>
      %210 = arith.addf %209, %208 : vector<16x128xf32>
      %211 = arith.divf %209, %210 : vector<16x128xf32>
      %212 = arith.mulf %197, %205 : vector<16x128xf32>
      %213 = arith.mulf %203, %178 : vector<16x128xf32>
      %214 = arith.addf %212, %213 : vector<16x128xf32>
      %cst_68 = arith.constant -3.000000e+00 : f32
      %cst_69 = arith.constant 3.000000e+00 : f32
      %215 = vector.broadcast %cst_68 : f32 to vector<16x128xf32>
      %216 = arith.maximumf %215, %214 : vector<16x128xf32>
      %217 = vector.broadcast %cst_69 : f32 to vector<16x128xf32>
      %218 = arith.minimumf %217, %216 : vector<16x128xf32>
      %219 = math.tanh %218 : vector<16x128xf32>
      %220 = arith.mulf %211, %219 : vector<16x128xf32>
      %221 = arith.truncf %220 : vector<16x128xf32> to vector<16x128xbf16>
      %cst_70 = arith.constant dense<0.000000e+00> : vector<16x128xf32>
      %222 = tpu.matmul %221, %22, %cst_70 {dimension_numbers = #tpu.dot_dimension_numbers<[1], [0], [0], [1], [0, 0, 1, 1], [], []>} : vector<16x128xbf16>, vector<128x128xbf16>, vector<16x128xf32> -> vector<16x128xf32>
      %cst_71 = arith.constant -3.000000e+00 : f32
      %cst_72 = arith.constant 3.000000e+00 : f32
      %223 = vector.broadcast %cst_71 : f32 to vector<16x128xf32>
      %224 = arith.maximumf %223, %222 : vector<16x128xf32>
      %225 = vector.broadcast %cst_72 : f32 to vector<16x128xf32>
      %226 = arith.minimumf %225, %224 : vector<16x128xf32>
      %c3_i32 = arith.constant 3 : i32
      %227 = arith.addi %0, %c3_i32 : i32
      %228 = vector.broadcast %227 : i32 to vector<16x1xi32>
      %229 = arith.cmpi sgt, %23, %228 : vector<16x1xi32>
      %230 = vector.shape_cast %229 : vector<16x1xi1> to vector<16x1xi1>
      %231 = vector.broadcast %230 : vector<16x1xi1> to vector<16x128xi1>
      %232 = arith.select %231, %218, %178 : vector<16x128xi1>, vector<16x128xf32>
      %233 = vector.shape_cast %229 : vector<16x1xi1> to vector<16x1xi1>
      %234 = vector.broadcast %233 : vector<16x1xi1> to vector<16x128xi1>
      %235 = arith.select %234, %226, %181 : vector<16x128xi1>, vector<16x128xf32>
      %cst_73 = arith.constant 0.000000e+00 : f32
      %236 = vector.shape_cast %229 : vector<16x1xi1> to vector<16x1xi1>
      %237 = vector.broadcast %236 : vector<16x1xi1> to vector<16x128xi1>
      %238 = vector.broadcast %cst_73 : f32 to vector<16x128xf32>
      %239 = arith.select %237, %226, %238 : vector<16x128xi1>, vector<16x128xf32>
      %240 = vector.shape_cast %239 : vector<16x128xf32> to vector<16x1x128xf32>
      %c0_74 = arith.constant 0 : index
      %c3 = arith.constant 3 : index
      %c0_75 = arith.constant 0 : index
      %241 = vector.load %arg9[%c0_74, %c3, %c0_75] : memref<16x8x128xf32, #tpu.memory_space<vmem>>, vector<16x1x128xf32>
      tpu.vector_store %arg9[%c0_74, %c3, %c0_75], %240 {strides = array<i32>} : memref<16x8x128xf32, #tpu.memory_space<vmem>>, vector<16x1x128xf32>,
      %c64 = arith.constant 64 : index
      %c0_76 = arith.constant 0 : index
      %242 = vector.load %arg12[%c64, %c0_76] : memref<128x512xf32, #tpu.memory_space<vmem>>, vector<16x512xf32>
      %243 = arith.truncf %235 : vector<16x128xf32> to vector<16x128xbf16>
      %cst_77 = arith.constant dense<0.000000e+00> : vector<16x512xf32>
      %244 = tpu.matmul %243, %21, %cst_77 {dimension_numbers = #tpu.dot_dimension_numbers<[1], [0], [0], [1], [0, 0, 1, 1], [], []>} : vector<16x128xbf16>, vector<128x512xbf16>, vector<16x512xf32> -> vector<16x512xf32>
      %245 = arith.addf %242, %244 : vector<16x512xf32>
      %246 = vector.extract_strided_slice %245 {offsets = [0, 0], sizes = [16, 128], strides = [1, 1]} : vector<16x512xf32> to vector<16x128xf32>
      %247 = arith.negf %246 : vector<16x128xf32>
      %248 = math.exp %247 : vector<16x128xf32>
      %cst_78 = arith.constant 1.000000e+00 : f32
      %249 = vector.broadcast %cst_78 : f32 to vector<16x128xf32>
      %250 = arith.addf %249, %248 : vector<16x128xf32>
      %251 = arith.divf %249, %250 : vector<16x128xf32>
      %252 = vector.extract_strided_slice %245 {offsets = [0, 128], sizes = [16, 128], strides = [1, 1]} : vector<16x512xf32> to vector<16x128xf32>
      %253 = arith.negf %252 : vector<16x128xf32>
      %254 = math.exp %253 : vector<16x128xf32>
      %cst_79 = arith.constant 1.000000e+00 : f32
      %255 = vector.broadcast %cst_79 : f32 to vector<16x128xf32>
      %256 = arith.addf %255, %254 : vector<16x128xf32>
      %257 = arith.divf %255, %256 : vector<16x128xf32>
      %258 = vector.extract_strided_slice %245 {offsets = [0, 256], sizes = [16, 128], strides = [1, 1]} : vector<16x512xf32> to vector<16x128xf32>
      %259 = math.tanh %258 : vector<16x128xf32>
      %260 = vector.extract_strided_slice %245 {offsets = [0, 384], sizes = [16, 128], strides = [1, 1]} : vector<16x512xf32> to vector<16x128xf32>
      %261 = arith.negf %260 : vector<16x128xf32>
      %262 = math.exp %261 : vector<16x128xf32>
      %cst_80 = arith.constant 1.000000e+00 : f32
      %263 = vector.broadcast %cst_80 : f32 to vector<16x128xf32>
      %264 = arith.addf %263, %262 : vector<16x128xf32>
      %265 = arith.divf %263, %264 : vector<16x128xf32>
      %266 = arith.mulf %251, %259 : vector<16x128xf32>
      %267 = arith.mulf %257, %232 : vector<16x128xf32>
      %268 = arith.addf %266, %267 : vector<16x128xf32>
      %cst_81 = arith.constant -3.000000e+00 : f32
      %cst_82 = arith.constant 3.000000e+00 : f32
      %269 = vector.broadcast %cst_81 : f32 to vector<16x128xf32>
      %270 = arith.maximumf %269, %268 : vector<16x128xf32>
      %271 = vector.broadcast %cst_82 : f32 to vector<16x128xf32>
      %272 = arith.minimumf %271, %270 : vector<16x128xf32>
      %273 = math.tanh %272 : vector<16x128xf32>
      %274 = arith.mulf %265, %273 : vector<16x128xf32>
      %275 = arith.truncf %274 : vector<16x128xf32> to vector<16x128xbf16>
      %cst_83 = arith.constant dense<0.000000e+00> : vector<16x128xf32>
      %276 = tpu.matmul %275, %22, %cst_83 {dimension_numbers = #tpu.dot_dimension_numbers<[1], [0], [0], [1], [0, 0, 1, 1], [], []>} : vector<16x128xbf16>, vector<128x128xbf16>, vector<16x128xf32> -> vector<16x128xf32>
      %cst_84 = arith.constant -3.000000e+00 : f32
      %cst_85 = arith.constant 3.000000e+00 : f32
      %277 = vector.broadcast %cst_84 : f32 to vector<16x128xf32>
      %278 = arith.maximumf %277, %276 : vector<16x128xf32>
      %279 = vector.broadcast %cst_85 : f32 to vector<16x128xf32>
      %280 = arith.minimumf %279, %278 : vector<16x128xf32>
      %c4_i32 = arith.constant 4 : i32
      %281 = arith.addi %0, %c4_i32 : i32
      %282 = vector.broadcast %281 : i32 to vector<16x1xi32>
      %283 = arith.cmpi sgt, %23, %282 : vector<16x1xi32>
      %284 = vector.shape_cast %283 : vector<16x1xi1> to vector<16x1xi1>
      %285 = vector.broadcast %284 : vector<16x1xi1> to vector<16x128xi1>
      %286 = arith.select %285, %272, %232 : vector<16x128xi1>, vector<16x128xf32>
      %287 = vector.shape_cast %283 : vector<16x1xi1> to vector<16x1xi1>
      %288 = vector.broadcast %287 : vector<16x1xi1> to vector<16x128xi1>
      %289 = arith.select %288, %280, %235 : vector<16x128xi1>, vector<16x128xf32>
      %cst_86 = arith.constant 0.000000e+00 : f32
      %290 = vector.shape_cast %283 : vector<16x1xi1> to vector<16x1xi1>
      %291 = vector.broadcast %290 : vector<16x1xi1> to vector<16x128xi1>
      %292 = vector.broadcast %cst_86 : f32 to vector<16x128xf32>
      %293 = arith.select %291, %280, %292 : vector<16x128xi1>, vector<16x128xf32>
      %294 = vector.shape_cast %293 : vector<16x128xf32> to vector<16x1x128xf32>
      %c0_87 = arith.constant 0 : index
      %c4 = arith.constant 4 : index
      %c0_88 = arith.constant 0 : index
      %295 = vector.load %arg9[%c0_87, %c4, %c0_88] : memref<16x8x128xf32, #tpu.memory_space<vmem>>, vector<16x1x128xf32>
      tpu.vector_store %arg9[%c0_87, %c4, %c0_88], %294 {strides = array<i32>} : memref<16x8x128xf32, #tpu.memory_space<vmem>>, vector<16x1x128xf32>,
      %c80 = arith.constant 80 : index
      %c0_89 = arith.constant 0 : index
      %296 = vector.load %arg12[%c80, %c0_89] : memref<128x512xf32, #tpu.memory_space<vmem>>, vector<16x512xf32>
      %297 = arith.truncf %289 : vector<16x128xf32> to vector<16x128xbf16>
      %cst_90 = arith.constant dense<0.000000e+00> : vector<16x512xf32>
      %298 = tpu.matmul %297, %21, %cst_90 {dimension_numbers = #tpu.dot_dimension_numbers<[1], [0], [0], [1], [0, 0, 1, 1], [], []>} : vector<16x128xbf16>, vector<128x512xbf16>, vector<16x512xf32> -> vector<16x512xf32>
      %299 = arith.addf %296, %298 : vector<16x512xf32>
      %300 = vector.extract_strided_slice %299 {offsets = [0, 0], sizes = [16, 128], strides = [1, 1]} : vector<16x512xf32> to vector<16x128xf32>
      %301 = arith.negf %300 : vector<16x128xf32>
      %302 = math.exp %301 : vector<16x128xf32>
      %cst_91 = arith.constant 1.000000e+00 : f32
      %303 = vector.broadcast %cst_91 : f32 to vector<16x128xf32>
      %304 = arith.addf %303, %302 : vector<16x128xf32>
      %305 = arith.divf %303, %304 : vector<16x128xf32>
      %306 = vector.extract_strided_slice %299 {offsets = [0, 128], sizes = [16, 128], strides = [1, 1]} : vector<16x512xf32> to vector<16x128xf32>
      %307 = arith.negf %306 : vector<16x128xf32>
      %308 = math.exp %307 : vector<16x128xf32>
      %cst_92 = arith.constant 1.000000e+00 : f32
      %309 = vector.broadcast %cst_92 : f32 to vector<16x128xf32>
      %310 = arith.addf %309, %308 : vector<16x128xf32>
      %311 = arith.divf %309, %310 : vector<16x128xf32>
      %312 = vector.extract_strided_slice %299 {offsets = [0, 256], sizes = [16, 128], strides = [1, 1]} : vector<16x512xf32> to vector<16x128xf32>
      %313 = math.tanh %312 : vector<16x128xf32>
      %314 = vector.extract_strided_slice %299 {offsets = [0, 384], sizes = [16, 128], strides = [1, 1]} : vector<16x512xf32> to vector<16x128xf32>
      %315 = arith.negf %314 : vector<16x128xf32>
      %316 = math.exp %315 : vector<16x128xf32>
      %cst_93 = arith.constant 1.000000e+00 : f32
      %317 = vector.broadcast %cst_93 : f32 to vector<16x128xf32>
      %318 = arith.addf %317, %316 : vector<16x128xf32>
      %319 = arith.divf %317, %318 : vector<16x128xf32>
      %320 = arith.mulf %305, %313 : vector<16x128xf32>
      %321 = arith.mulf %311, %286 : vector<16x128xf32>
      %322 = arith.addf %320, %321 : vector<16x128xf32>
      %cst_94 = arith.constant -3.000000e+00 : f32
      %cst_95 = arith.constant 3.000000e+00 : f32
      %323 = vector.broadcast %cst_94 : f32 to vector<16x128xf32>
      %324 = arith.maximumf %323, %322 : vector<16x128xf32>
      %325 = vector.broadcast %cst_95 : f32 to vector<16x128xf32>
      %326 = arith.minimumf %325, %324 : vector<16x128xf32>
      %327 = math.tanh %326 : vector<16x128xf32>
      %328 = arith.mulf %319, %327 : vector<16x128xf32>
      %329 = arith.truncf %328 : vector<16x128xf32> to vector<16x128xbf16>
      %cst_96 = arith.constant dense<0.000000e+00> : vector<16x128xf32>
      %330 = tpu.matmul %329, %22, %cst_96 {dimension_numbers = #tpu.dot_dimension_numbers<[1], [0], [0], [1], [0, 0, 1, 1], [], []>} : vector<16x128xbf16>, vector<128x128xbf16>, vector<16x128xf32> -> vector<16x128xf32>
      %cst_97 = arith.constant -3.000000e+00 : f32
      %cst_98 = arith.constant 3.000000e+00 : f32
      %331 = vector.broadcast %cst_97 : f32 to vector<16x128xf32>
      %332 = arith.maximumf %331, %330 : vector<16x128xf32>
      %333 = vector.broadcast %cst_98 : f32 to vector<16x128xf32>
      %334 = arith.minimumf %333, %332 : vector<16x128xf32>
      %c5_i32 = arith.constant 5 : i32
      %335 = arith.addi %0, %c5_i32 : i32
      %336 = vector.broadcast %335 : i32 to vector<16x1xi32>
      %337 = arith.cmpi sgt, %23, %336 : vector<16x1xi32>
      %338 = vector.shape_cast %337 : vector<16x1xi1> to vector<16x1xi1>
      %339 = vector.broadcast %338 : vector<16x1xi1> to vector<16x128xi1>
      %340 = arith.select %339, %326, %286 : vector<16x128xi1>, vector<16x128xf32>
      %341 = vector.shape_cast %337 : vector<16x1xi1> to vector<16x1xi1>
      %342 = vector.broadcast %341 : vector<16x1xi1> to vector<16x128xi1>
      %343 = arith.select %342, %334, %289 : vector<16x128xi1>, vector<16x128xf32>
      %cst_99 = arith.constant 0.000000e+00 : f32
      %344 = vector.shape_cast %337 : vector<16x1xi1> to vector<16x1xi1>
      %345 = vector.broadcast %344 : vector<16x1xi1> to vector<16x128xi1>
      %346 = vector.broadcast %cst_99 : f32 to vector<16x128xf32>
      %347 = arith.select %345, %334, %346 : vector<16x128xi1>, vector<16x128xf32>
      %348 = vector.shape_cast %347 : vector<16x128xf32> to vector<16x1x128xf32>
      %c0_100 = arith.constant 0 : index
      %c5 = arith.constant 5 : index
      %c0_101 = arith.constant 0 : index
      %349 = vector.load %arg9[%c0_100, %c5, %c0_101] : memref<16x8x128xf32, #tpu.memory_space<vmem>>, vector<16x1x128xf32>
      tpu.vector_store %arg9[%c0_100, %c5, %c0_101], %348 {strides = array<i32>} : memref<16x8x128xf32, #tpu.memory_space<vmem>>, vector<16x1x128xf32>,
      %c96 = arith.constant 96 : index
      %c0_102 = arith.constant 0 : index
      %350 = vector.load %arg12[%c96, %c0_102] : memref<128x512xf32, #tpu.memory_space<vmem>>, vector<16x512xf32>
      %351 = arith.truncf %343 : vector<16x128xf32> to vector<16x128xbf16>
      %cst_103 = arith.constant dense<0.000000e+00> : vector<16x512xf32>
      %352 = tpu.matmul %351, %21, %cst_103 {dimension_numbers = #tpu.dot_dimension_numbers<[1], [0], [0], [1], [0, 0, 1, 1], [], []>} : vector<16x128xbf16>, vector<128x512xbf16>, vector<16x512xf32> -> vector<16x512xf32>
      %353 = arith.addf %350, %352 : vector<16x512xf32>
      %354 = vector.extract_strided_slice %353 {offsets = [0, 0], sizes = [16, 128], strides = [1, 1]} : vector<16x512xf32> to vector<16x128xf32>
      %355 = arith.negf %354 : vector<16x128xf32>
      %356 = math.exp %355 : vector<16x128xf32>
      %cst_104 = arith.constant 1.000000e+00 : f32
      %357 = vector.broadcast %cst_104 : f32 to vector<16x128xf32>
      %358 = arith.addf %357, %356 : vector<16x128xf32>
      %359 = arith.divf %357, %358 : vector<16x128xf32>
      %360 = vector.extract_strided_slice %353 {offsets = [0, 128], sizes = [16, 128], strides = [1, 1]} : vector<16x512xf32> to vector<16x128xf32>
      %361 = arith.negf %360 : vector<16x128xf32>
      %362 = math.exp %361 : vector<16x128xf32>
      %cst_105 = arith.constant 1.000000e+00 : f32
      %363 = vector.broadcast %cst_105 : f32 to vector<16x128xf32>
      %364 = arith.addf %363, %362 : vector<16x128xf32>
      %365 = arith.divf %363, %364 : vector<16x128xf32>
      %366 = vector.extract_strided_slice %353 {offsets = [0, 256], sizes = [16, 128], strides = [1, 1]} : vector<16x512xf32> to vector<16x128xf32>
      %367 = math.tanh %366 : vector<16x128xf32>
      %368 = vector.extract_strided_slice %353 {offsets = [0, 384], sizes = [16, 128], strides = [1, 1]} : vector<16x512xf32> to vector<16x128xf32>
      %369 = arith.negf %368 : vector<16x128xf32>
      %370 = math.exp %369 : vector<16x128xf32>
      %cst_106 = arith.constant 1.000000e+00 : f32
      %371 = vector.broadcast %cst_106 : f32 to vector<16x128xf32>
      %372 = arith.addf %371, %370 : vector<16x128xf32>
      %373 = arith.divf %371, %372 : vector<16x128xf32>
      %374 = arith.mulf %359, %367 : vector<16x128xf32>
      %375 = arith.mulf %365, %340 : vector<16x128xf32>
      %376 = arith.addf %374, %375 : vector<16x128xf32>
      %cst_107 = arith.constant -3.000000e+00 : f32
      %cst_108 = arith.constant 3.000000e+00 : f32
      %377 = vector.broadcast %cst_107 : f32 to vector<16x128xf32>
      %378 = arith.maximumf %377, %376 : vector<16x128xf32>
      %379 = vector.broadcast %cst_108 : f32 to vector<16x128xf32>
      %380 = arith.minimumf %379, %378 : vector<16x128xf32>
      %381 = math.tanh %380 : vector<16x128xf32>
      %382 = arith.mulf %373, %381 : vector<16x128xf32>
      %383 = arith.truncf %382 : vector<16x128xf32> to vector<16x128xbf16>
      %cst_109 = arith.constant dense<0.000000e+00> : vector<16x128xf32>
      %384 = tpu.matmul %383, %22, %cst_109 {dimension_numbers = #tpu.dot_dimension_numbers<[1], [0], [0], [1], [0, 0, 1, 1], [], []>} : vector<16x128xbf16>, vector<128x128xbf16>, vector<16x128xf32> -> vector<16x128xf32>
      %cst_110 = arith.constant -3.000000e+00 : f32
      %cst_111 = arith.constant 3.000000e+00 : f32
      %385 = vector.broadcast %cst_110 : f32 to vector<16x128xf32>
      %386 = arith.maximumf %385, %384 : vector<16x128xf32>
      %387 = vector.broadcast %cst_111 : f32 to vector<16x128xf32>
      %388 = arith.minimumf %387, %386 : vector<16x128xf32>
      %c6_i32 = arith.constant 6 : i32
      %389 = arith.addi %0, %c6_i32 : i32
      %390 = vector.broadcast %389 : i32 to vector<16x1xi32>
      %391 = arith.cmpi sgt, %23, %390 : vector<16x1xi32>
      %392 = vector.shape_cast %391 : vector<16x1xi1> to vector<16x1xi1>
      %393 = vector.broadcast %392 : vector<16x1xi1> to vector<16x128xi1>
      %394 = arith.select %393, %380, %340 : vector<16x128xi1>, vector<16x128xf32>
      %395 = vector.shape_cast %391 : vector<16x1xi1> to vector<16x1xi1>
      %396 = vector.broadcast %395 : vector<16x1xi1> to vector<16x128xi1>
      %397 = arith.select %396, %388, %343 : vector<16x128xi1>, vector<16x128xf32>
      %cst_112 = arith.constant 0.000000e+00 : f32
      %398 = vector.shape_cast %391 : vector<16x1xi1> to vector<16x1xi1>
      %399 = vector.broadcast %398 : vector<16x1xi1> to vector<16x128xi1>
      %400 = vector.broadcast %cst_112 : f32 to vector<16x128xf32>
      %401 = arith.select %399, %388, %400 : vector<16x128xi1>, vector<16x128xf32>
      %402 = vector.shape_cast %401 : vector<16x128xf32> to vector<16x1x128xf32>
      %c0_113 = arith.constant 0 : index
      %c6 = arith.constant 6 : index
      %c0_114 = arith.constant 0 : index
      %403 = vector.load %arg9[%c0_113, %c6, %c0_114] : memref<16x8x128xf32, #tpu.memory_space<vmem>>, vector<16x1x128xf32>
      tpu.vector_store %arg9[%c0_113, %c6, %c0_114], %402 {strides = array<i32>} : memref<16x8x128xf32, #tpu.memory_space<vmem>>, vector<16x1x128xf32>,
      %c112 = arith.constant 112 : index
      %c0_115 = arith.constant 0 : index
      %404 = vector.load %arg12[%c112, %c0_115] : memref<128x512xf32, #tpu.memory_space<vmem>>, vector<16x512xf32>
      %405 = arith.truncf %397 : vector<16x128xf32> to vector<16x128xbf16>
      %cst_116 = arith.constant dense<0.000000e+00> : vector<16x512xf32>
      %406 = tpu.matmul %405, %21, %cst_116 {dimension_numbers = #tpu.dot_dimension_numbers<[1], [0], [0], [1], [0, 0, 1, 1], [], []>} : vector<16x128xbf16>, vector<128x512xbf16>, vector<16x512xf32> -> vector<16x512xf32>
      %407 = arith.addf %404, %406 : vector<16x512xf32>
      %408 = vector.extract_strided_slice %407 {offsets = [0, 0], sizes = [16, 128], strides = [1, 1]} : vector<16x512xf32> to vector<16x128xf32>
      %409 = arith.negf %408 : vector<16x128xf32>
      %410 = math.exp %409 : vector<16x128xf32>
      %cst_117 = arith.constant 1.000000e+00 : f32
      %411 = vector.broadcast %cst_117 : f32 to vector<16x128xf32>
      %412 = arith.addf %411, %410 : vector<16x128xf32>
      %413 = arith.divf %411, %412 : vector<16x128xf32>
      %414 = vector.extract_strided_slice %407 {offsets = [0, 128], sizes = [16, 128], strides = [1, 1]} : vector<16x512xf32> to vector<16x128xf32>
      %415 = arith.negf %414 : vector<16x128xf32>
      %416 = math.exp %415 : vector<16x128xf32>
      %cst_118 = arith.constant 1.000000e+00 : f32
      %417 = vector.broadcast %cst_118 : f32 to vector<16x128xf32>
      %418 = arith.addf %417, %416 : vector<16x128xf32>
      %419 = arith.divf %417, %418 : vector<16x128xf32>
      %420 = vector.extract_strided_slice %407 {offsets = [0, 256], sizes = [16, 128], strides = [1, 1]} : vector<16x512xf32> to vector<16x128xf32>
      %421 = math.tanh %420 : vector<16x128xf32>
      %422 = vector.extract_strided_slice %407 {offsets = [0, 384], sizes = [16, 128], strides = [1, 1]} : vector<16x512xf32> to vector<16x128xf32>
      %423 = arith.negf %422 : vector<16x128xf32>
      %424 = math.exp %423 : vector<16x128xf32>
      %cst_119 = arith.constant 1.000000e+00 : f32
      %425 = vector.broadcast %cst_119 : f32 to vector<16x128xf32>
      %426 = arith.addf %425, %424 : vector<16x128xf32>
      %427 = arith.divf %425, %426 : vector<16x128xf32>
      %428 = arith.mulf %413, %421 : vector<16x128xf32>
      %429 = arith.mulf %419, %394 : vector<16x128xf32>
      %430 = arith.addf %428, %429 : vector<16x128xf32>
      %cst_120 = arith.constant -3.000000e+00 : f32
      %cst_121 = arith.constant 3.000000e+00 : f32
      %431 = vector.broadcast %cst_120 : f32 to vector<16x128xf32>
      %432 = arith.maximumf %431, %430 : vector<16x128xf32>
      %433 = vector.broadcast %cst_121 : f32 to vector<16x128xf32>
      %434 = arith.minimumf %433, %432 : vector<16x128xf32>
      %435 = math.tanh %434 : vector<16x128xf32>
      %436 = arith.mulf %427, %435 : vector<16x128xf32>
      %437 = arith.truncf %436 : vector<16x128xf32> to vector<16x128xbf16>
      %cst_122 = arith.constant dense<0.000000e+00> : vector<16x128xf32>
      %438 = tpu.matmul %437, %22, %cst_122 {dimension_numbers = #tpu.dot_dimension_numbers<[1], [0], [0], [1], [0, 0, 1, 1], [], []>} : vector<16x128xbf16>, vector<128x128xbf16>, vector<16x128xf32> -> vector<16x128xf32>
      %cst_123 = arith.constant -3.000000e+00 : f32
      %cst_124 = arith.constant 3.000000e+00 : f32
      %439 = vector.broadcast %cst_123 : f32 to vector<16x128xf32>
      %440 = arith.maximumf %439, %438 : vector<16x128xf32>
      %441 = vector.broadcast %cst_124 : f32 to vector<16x128xf32>
      %442 = arith.minimumf %441, %440 : vector<16x128xf32>
      %c7_i32 = arith.constant 7 : i32
      %443 = arith.addi %0, %c7_i32 : i32
      %444 = vector.broadcast %443 : i32 to vector<16x1xi32>
      %445 = arith.cmpi sgt, %23, %444 : vector<16x1xi32>
      %446 = vector.shape_cast %445 : vector<16x1xi1> to vector<16x1xi1>
      %447 = vector.broadcast %446 : vector<16x1xi1> to vector<16x128xi1>
      %448 = arith.select %447, %434, %394 : vector<16x128xi1>, vector<16x128xf32>
      %449 = vector.shape_cast %445 : vector<16x1xi1> to vector<16x1xi1>
      %450 = vector.broadcast %449 : vector<16x1xi1> to vector<16x128xi1>
      %451 = arith.select %450, %442, %397 : vector<16x128xi1>, vector<16x128xf32>
      %cst_125 = arith.constant 0.000000e+00 : f32
      %452 = vector.shape_cast %445 : vector<16x1xi1> to vector<16x1xi1>
      %453 = vector.broadcast %452 : vector<16x1xi1> to vector<16x128xi1>
      %454 = vector.broadcast %cst_125 : f32 to vector<16x128xf32>
      %455 = arith.select %453, %442, %454 : vector<16x128xi1>, vector<16x128xf32>
      %456 = vector.shape_cast %455 : vector<16x128xf32> to vector<16x1x128xf32>
      %c0_126 = arith.constant 0 : index
      %c7 = arith.constant 7 : index
      %c0_127 = arith.constant 0 : index
      %457 = vector.load %arg9[%c0_126, %c7, %c0_127] : memref<16x8x128xf32, #tpu.memory_space<vmem>>, vector<16x1x128xf32>
      tpu.vector_store %arg9[%c0_126, %c7, %c0_127], %456 {strides = array<i32>} : memref<16x8x128xf32, #tpu.memory_space<vmem>>, vector<16x1x128xf32>,
      %c0_128 = arith.constant 0 : index
      %c0_129 = arith.constant 0 : index
      %458 = vector.load %arg10[%c0_128, %c0_129] : memref<16x128xf32, #tpu.memory_space<vmem>>, vector<16x128xf32>
      tpu.vector_store %arg10[%c0_128, %c0_129], %451 {strides = array<i32>} : memref<16x128xf32, #tpu.memory_space<vmem>>, vector<16x128xf32>,
      %c0_130 = arith.constant 0 : index
      %c0_131 = arith.constant 0 : index
      %459 = vector.load %arg11[%c0_130, %c0_131] : memref<16x128xf32, #tpu.memory_space<vmem>>, vector<16x128xf32>
      tpu.vector_store %arg11[%c0_130, %c0_131], %448 {strides = array<i32>} : memref<16x128xf32, #tpu.memory_space<vmem>>, vector<16x128xf32>,
    } else {
    }
    return
  }
  func.func @transform_0(%arg0: i32, %arg1: i32, %arg2: memref<16xi32, #tpu.memory_space<smem>>) -> (i32, i32) {
    %c0_i32 = arith.constant 0 : i32
    %c0_i32_0 = arith.constant 0 : i32
    return %arg0, %c0_i32 : i32, i32
  }
  func.func @transform_1(%arg0: i32, %arg1: i32, %arg2: memref<16xi32, #tpu.memory_space<smem>>) -> (i32, i32, i32) {
    %c0_i32 = arith.constant 0 : i32
    %c0_i32_0 = arith.constant 0 : i32
    return %arg1, %arg0, %c0_i32 : i32, i32, i32
  }
  func.func @transform_2(%arg0: i32, %arg1: i32, %arg2: memref<16xi32, #tpu.memory_space<smem>>) -> (i32, i32) {
    %c0_i32 = arith.constant 0 : i32
    %c0_i32_0 = arith.constant 0 : i32
    %c0_i32_1 = arith.constant 0 : i32
    return %c0_i32, %c0_i32_0 : i32, i32
  }
  func.func @transform_3(%arg0: i32, %arg1: i32, %arg2: memref<16xi32, #tpu.memory_space<smem>>) -> (i32, i32) {
    %c0_i32 = arith.constant 0 : i32
    %c0_i32_0 = arith.constant 0 : i32
    %c0_i32_1 = arith.constant 0 : i32
    return %c0_i32, %c0_i32_0 : i32, i32
  }
  func.func @transform_4(%arg0: i32, %arg1: i32, %arg2: memref<16xi32, #tpu.memory_space<smem>>) -> (i32, i32) {
    %c0_i32 = arith.constant 0 : i32
    %c0_i32_0 = arith.constant 0 : i32
    %c0_i32_1 = arith.constant 0 : i32
    return %c0_i32, %c0_i32_0 : i32, i32
  }
  func.func @transform_5(%arg0: i32, %arg1: i32, %arg2: memref<16xi32, #tpu.memory_space<smem>>) -> (i32, i32) {
    %c0_i32 = arith.constant 0 : i32
    %c0_i32_0 = arith.constant 0 : i32
    %c0_i32_1 = arith.constant 0 : i32
    return %c0_i32, %c0_i32_0 : i32, i32
  }
  func.func @transform_6(%arg0: i32, %arg1: i32, %arg2: memref<16xi32, #tpu.memory_space<smem>>) -> (i32, i32, i32) {
    %c0_i32 = arith.constant 0 : i32
    %c0_i32_0 = arith.constant 0 : i32
    return %arg0, %arg1, %c0_i32 : i32, i32, i32
  }
  func.func @transform_7(%arg0: i32, %arg1: i32, %arg2: memref<16xi32, #tpu.memory_space<smem>>) -> (i32, i32) {
    %c0_i32 = arith.constant 0 : i32
    %c0_i32_0 = arith.constant 0 : i32
    return %arg0, %c0_i32 : i32, i32
  }
  func.func @transform_8(%arg0: i32, %arg1: i32, %arg2: memref<16xi32, #tpu.memory_space<smem>>) -> (i32, i32) {
    %c0_i32 = arith.constant 0 : i32
    %c0_i32_0 = arith.constant 0 : i32
    return %arg0, %c0_i32 : i32, i32
  }
}

</mosaic_0001>

<bundles_post_ra>
// kernel: tpu_custom_call.1
= control target key start
LH: loop header
LB: loop body
LE: loop exit
PB: predicated region body
PF: predicated region fallthrough
CT: control target
= control target key end

     0   :  { %s6142_s0 = inlined_call_operand.vmem [shape: s32[16], index: 0, kind: input, shape index: {}]   ;;  %s6143_s1 = inlined_call_operand.vmem [shape: s32[16,1], index: 1, kind: input, shape index: {}]   ;;  %s6144_s2 = inlined_call_operand.hbm [shape: bf16[8,16,16], index: 2, kind: input, shape index: {}]   ;;  %s6145_s3 = inlined_call_operand.hbm [shape: bf16[16,512], index: 3, kind: input, shape index: {}]   ;;  %s6146_s4 = inlined_call_operand.hbm [shape: bf16[128,512], index: 4, kind: input, shape index: {}]   ;;  %s6147_s5 = inlined_call_operand.vmem [shape: f32[1,512], index: 5, kind: input, shape index: {}]   ;;  %s6148_s6 = inlined_call_operand.hbm [shape: bf16[128,128], index: 6, kind: input, shape index: {}]   ;;  %s6149_s7 = inlined_call_operand.hbm [shape: f32[16,8,128], index: 7, kind: output, shape index: {0}]   ;;  %s6150_s8 = inlined_call_operand.hbm [shape: f32[16,128], index: 8, kind: output, shape index: {1}]   ;;  %s6151_s9 = inlined_call_operand.hbm [shape: f32[16,128], index: 9, kind: output, shape index: {2}]  }
   0x1   :  { %s15_s11 = sshll.u32 %s6142_s0, 4  ;;  %s16_s11 = int_to_ptr.vmem [resolvable:$true] %s15_s11 }
   0x2   :  { %s4556_s12 = scalar_lea.vmem %s16_s11, 16  ;;  %p4561_p1 = scmp.lt.s32.totalorder %s16_s11, %s16_s11 }
   0x3   :  { %p4557_p0 = scmp.ne.s32.totalorder %s16_s11, %s4556_s12  ;;  %p4562_p2 = scmp.lt.s32.totalorder %s4556_s12, %s4556_s12 }
   0x5   :  { %p4563_p3 = por %p4562_p2, %p4561_p1 }
   0x7   :  { %p4564_p4 = pnand %p4563_p3, %p4557_p0 }
   0x9   :  { %4567 = shalt.err (!%p4564_p4)  }
   0xa   :  { %s4720_s13 = smov [#allocation4]  }
   0xb   :  { %18 = dma.vmem_to_smem %s16_s11, 16, %s4720_s13, [#allocation3] }
   0xc   :  { %4708 = dma.done.wait [#allocation3], 16 }
   0xd   :  { %4709 = vsyncadd [#allocation3], 4294967280 }
   0xe   :  { %20 = sfence }
   0xf   :  { %21 = vsyncpa [#allocation6], 0 }
  0x10   :  { %22 = vsyncpa [#allocation9], 0 }
  0x11   :  { %23 = vsyncpa [#allocation12], 0 }
  0x12   :  { %24 = vsyncpa [#allocation7], 0 }
  0x13   :  { %25 = vsyncpa [#allocation15], 0  ;;  %s4721_s14 = smov [#allocation8]  }
  0x14   :  { %s45_s0 = sshll.u32 %s4721_s14, 4  ;;  %s46_s0 = int_to_ptr.vmem [resolvable:$true] %s45_s0 }
  0x15   :  { %s4576_s15 = scalar_lea.vmem %s46_s0, 512  ;;  %p4581_p6 = scmp.lt.s32.totalorder %s46_s0, %s46_s0 }
  0x16   :  { %p4577_p5 = scmp.ne.s32.totalorder %s46_s0, %s4576_s15  ;;  %p4582_p7 = scmp.lt.s32.totalorder %s4576_s15, %s4576_s15 }
  0x18   :  { %p4583_p8 = por %p4582_p7, %p4581_p6 }
  0x1a   :  { %p4584_p9 = pnand %p4583_p8, %p4577_p5 }
  0x1c   :  { %4587 = shalt.err (!%p4584_p9)
}
  0x1d   :  { %s4722_s16 = smov 256   ;;  %s4723_s17 = smov 16  }
  0x1e   :  { %51 = dma.hbm_to_vmem [thread:$0]  %s6145_s3, 512, %s46_s0, [#allocation9], %s4722_s16, %s4722_s16, %s4723_s17  }
  0x1f   :  { %s4724_s20 = smov [#allocation5]  }
  0x20   :  { %s33_s21 = sshll.u32 %s4724_s20, 4  ;;  %s34_s21 = int_to_ptr.vmem [resolvable:$true] %s33_s21 }
  0x21   :  { %s4596_s22 = scalar_lea.vmem %s34_s21, 1024  ;;  %p4601_p11 = scmp.lt.s32.totalorder %s34_s21, %s34_s21 }
  0x22   :  { %p4597_p10 = scmp.ne.s32.totalorder %s34_s21, %s4596_s22  ;;  %p4602_p12 = scmp.lt.s32.totalorder %s4596_s22, %s4596_s22 }
  0x24   :  { %p4603_p13 = por %p4602_p12, %p4601_p11 }
  0x26   :  { %p4604_p0 = pnand %p4603_p13, %p4597_p10 }
  0x28   :  { %4607 = shalt.err (!%p4604_p0)
}
  0x29   :  { %s4725_s23 = smov 64   ;;  %s4726_s24 = smov 4  }
  0x2a   :  { %39 = dma.hbm_to_vmem [thread:$0]  %s6144_s2, 1024, %s34_s21, [#allocation6], %s4725_s23, %s4725_s23, %s4726_s24  }
  0x2b   :  { %s4727_s27 = smov [#allocation10]   ;;  %s4728_s29 = smov [#allocation11]  }
  0x2c   :  { %s57_s28 = sshll.u32 %s4727_s27, 4  ;;  %s71_s3 = sshll.u32 %s4728_s29, 4  ;;  %s58_s28 = int_to_ptr.vmem [resolvable:$true] %s57_s28  ;;  %s72_s3 = int_to_ptr.vmem [resolvable:$true] %s71_s3 }
  0x2d   :  { %s4616_s30 = scalar_lea.vmem %s58_s28, 4096  ;;  %p4621_p2 = scmp.lt.s32.totalorder %s58_s28, %s58_s28 }
  0x2e   :  { %p4617_p1 = scmp.ne.s32.totalorder %s58_s28, %s4616_s30  ;;  %p4622_p3 = scmp.lt.s32.totalorder %s4616_s30, %s4616_s30 }
  0x30   :  { %p4623_p4 = por %p4622_p3, %p4621_p2 }
  0x32   :  { %p4624_p5 = pnand %p4623_p4, %p4617_p1 }
  0x34   :  { %4627 = shalt.err (!%p4624_p5)
}
  0x35   :  { %63 = dma.hbm_to_vmem [thread:$0]  %s6146_s4, 4096, %s58_s28, [#allocation9], %s4722_s16, %s4722_s16, %s4723_s17  }
  0x36   :  { %s4636_s2 = scalar_lea.vmem %s72_s3, 1024  ;;  %p4641_p7 = scmp.lt.s32.totalorder %s72_s3, %s72_s3 }
  0x37   :  { %p4637_p6 = scmp.ne.s32.totalorder %s72_s3, %s4636_s2  ;;  %p4642_p8 = scmp.lt.s32.totalorder %s4636_s2, %s4636_s2 }
  0x39   :  { %p4643_p9 = por %p4642_p8, %p4641_p7 }
  0x3b   :  { %p4644_p10 = pnand %p4643_p9, %p4637_p6 }
  0x3d   :  { %4647 = shalt.err (!%p4644_p10)
}
  0x3e   :  { %77 = dma.hbm_to_vmem [thread:$0]  %s6148_s6, 1024, %s72_s3, [#allocation12], %s4725_s23, %s4725_s23, %s4726_s24  }
  0x3f   :  { %4710 = dma.done.wait [#allocation6], 1024  }
  0x40   :  { %4711 = vsyncadd [#allocation6], 4294966272 }
  0x41   :  { %4712 = dma.done.wait [#allocation9], 4608  }
  0x42   :  { %4713 = vsyncadd [#allocation9], 4294962688 }
  0x43   :  { %4714 = dma.done.wait [#allocation12], 1024  }
  0x44   :  { %4715 = vsyncadd [#allocation12], 4294966272  ;;  %s101_s14 = sld [smem:[#allocation4]]  ;;  %v4729_v0 = vmov 0.0  }
  0x45   :  { %96 = vst [vmem:[#allocation14] sm:$0xff] %v4729_v0  ;;  %97 = vst [vmem:[#allocation14 + $0x8] sm:$0xff] %v4729_v0 }
  0x46   :  { %98 = vst [vmem:[#allocation16] sm:$0xff] %v4729_v0  ;;  %99 = vst [vmem:[#allocation16 + $0x8] sm:$0xff] %v4729_v0 }
  0x4a   :  { %p3682_p11 = scmp.gt.s32.totalorder %s101_s14, 0 }
  0x4c   :  { %105 = sbr.rel (%p3682_p11) target bundleno = 90 (0x5a), region = 49 }
  0x51   :  { %v4730_v1 = vmov 0.0  }
  0x52   :  { %106 = vst [vmem:[#allocation13] sm:$0xff] %v4730_v1  ;;  %107 = vst [vmem:[#allocation13 + $0x8] sm:$0xff] %v4730_v1 }
  0x53   :  { %108 = vst [vmem:[#allocation13 + $0x10] sm:$0xff] %v4730_v1  ;;  %109 = vst [vmem:[#allocation13 + $0x18] sm:$0xff] %v4730_v1 }
  0x54   :  { %110 = vst [vmem:[#allocation13 + $0x20] sm:$0xff] %v4730_v1  ;;  %111 = vst [vmem:[#allocation13 + $0x28] sm:$0xff] %v4730_v1 }
  0x55   :  { %112 = vst [vmem:[#allocation13 + $0x30] sm:$0xff] %v4730_v1  ;;  %113 = vst [vmem:[#allocation13 + $0x38] sm:$0xff] %v4730_v1 }
  0x56   :  { %114 = vst [vmem:[#allocation13 + $0x40] sm:$0xff] %v4730_v1  ;;  %115 = vst [vmem:[#allocation13 + $0x48] sm:$0xff] %v4730_v1 }
  0x57   :  { %116 = vst [vmem:[#allocation13 + $0x50] sm:$0xff] %v4730_v1  ;;  %117 = vst [vmem:[#allocation13 + $0x58] sm:$0xff] %v4730_v1 }
  0x58   :  { %118 = vst [vmem:[#allocation13 + $0x60] sm:$0xff] %v4730_v1  ;;  %119 = vst [vmem:[#allocation13 + $0x68] sm:$0xff] %v4730_v1 }
  0x59   :  { %120 = vst [vmem:[#allocation13 + $0x70] sm:$0xff] %v4730_v1  ;;  %121 = vst [vmem:[#allocation13 + $0x78] sm:$0xff] %v4730_v1 }
  0x5a PF:  { %p3683_p12 = scmp.le.s32.totalorder %s101_s14, 0 }
  0x5c   :  { %125 = sbr.rel (%p3683_p12) target bundleno = 3857 (0xf11), region = 53 }
  0x61   :  { %v4150_v2 = vld [vmem:[#allocation8 + $0x4] ss:$16 sps:$4 sm:$0xff]   ;;  %v4152_v3 = vld [vmem:[#allocation8 + $0xc] ss:$16 sps:$4 sm:$0xff]   ;;  %v6154_v4 = vmov 0   ;;  %vm228_vm0 = vcmask 130048   ;;  %v148_v62 = vlaneseq }
  0x62   :  { %285 = vmatprep.mubr.bf16.mxu0 %v6154_v4  ;;  %398 = vmatprep.mubr.bf16.mxu1 %v6154_v4  ;;  %v4154_v5 = vld [vmem:[#allocation8] ss:$16 sps:$4 sm:$0xff]   ;;  %v4155_v6 = vld [vmem:[#allocation8 + $0x8] ss:$16 sps:$4 sm:$0xff]   ;;  %v4815_v8 = vld [vmem:[#allocation10 + $0xe4] ss:$16 sps:$4 sm:$0xff]  }
  0x63   :  { %267 = vmatprep.subr.bf16.mxu0 %v4150_v2  ;;  %4148 = vset.pattern.permute.xlu0 %v6154_v4  ;;  %v4156_v7 = vld [vmem:[#allocation5] sm:$0xff]   ;;  %v4832_v13 = vld [vmem:[#allocation10 + $0xec] ss:$16 sps:$4 sm:$0xff]   ;;  %v4834_v14 = vld [vmem:[#allocation10 + $0xe8] ss:$16 sps:$4 sm:$0xff]   ;;  %v6152_v55 = vmov 0.0  }
  0x64   :  { %380 = vmatprep.subr.bf16.mxu1 %v4152_v3  ;;  %4149 = vset.pattern.permute.xlu1 %v6154_v4  ;;  %v4817_v9 = vld [vmem:[#allocation10 + $0xe0] ss:$16 sps:$4 sm:$0xff]   ;;  %v4820_v10 = vld [vmem:[#allocation10 + $0xc4] ss:$16 sps:$4 sm:$0xff]   ;;  %v4160_v15 = vld [vmem:[#allocation5 + $0x8] sm:$0xff]   ;;  %vm4733_vm3 = vmmov 0  }
  0x65   :  { %268 = vmatpush1.bf16.msra.mxu0 %v4154_v5  ;;  %381 = vmatpush1.bf16.msra.mxu1 %v4155_v6  ;;  %v4826_v11 = vld [vmem:[#allocation10 + $0xc0] ss:$16 sps:$4 sm:$0xff]   ;;  %v4830_v12 = vld [vmem:[#allocation10 + $0xa4] ss:$16 sps:$4 sm:$0xff]   ;;  %v4844_v18 = vld [vmem:[#allocation10 + $0xcc] ss:$16 sps:$4 sm:$0xff]  }
  0x66   :  { %766 = vmatprep.subr.bf16.mxu0 %v4815_v8  ;;  %v4837_v16 = vld [vmem:[#allocation10 + $0xa0] ss:$16 sps:$4 sm:$0xff]   ;;  %809 = vmatprep.subr.bf16.mxu1 %v4832_v13  ;;  %v4842_v17 = vld [vmem:[#allocation10 + $0x84] ss:$16 sps:$4 sm:$0xff]   ;;  %v4846_v19 = vld [vmem:[#allocation10 + $0xc8] ss:$16 sps:$4 sm:$0xff]  }
  0x67   :  { %v4852_v20 = vld [vmem:[#allocation10 + $0x80] ss:$16 sps:$4 sm:$0xff]   ;;  %v4854_v21 = vld [vmem:[#allocation10 + $0x64] ss:$16 sps:$4 sm:$0xff]   ;;  %v4858_v22 = vld [vmem:[#allocation10 + $0xac] ss:$16 sps:$4 sm:$0xff]  }
  0x68   :  { %3696 = vmatmul.mubr.msk.bf16.vlgmr.msra.gmra.mxu0 %vm228_vm0, %v4156_v7  ;;  %3704 = vmatmul.mubr.msk.bf16.vlgmr.msra.gmra.mxu1 %vm228_vm0, %v4156_v7  ;;  %v4862_v23 = vld [vmem:[#allocation10 + $0xa8] ss:$16 sps:$4 sm:$0xff]   ;;  %v4164_v24 = vld [vmem:[#allocation5 + $0x10] sm:$0xff]   ;;  %v4870_v27 = vld [vmem:[#allocation10 + $0x8c] ss:$16 sps:$4 sm:$0xff]   ;;  %v5014_v0 = vshrl.u32 %v148_v62, 7 }
  0x69   :  { %767 = vmatpush1.bf16.msra.mxu0 %v4817_v9  ;;  %295 = vmatprep.mubr.bf16.mxu0 %v6154_v4  ;;  %v4865_v25 = vld [vmem:[#allocation10 + $0x60] ss:$16 sps:$4 sm:$0xff]   ;;  %v4868_v26 = vld [vmem:[#allocation10 + $0x44] ss:$16 sps:$4 sm:$0xff]   ;;  %v4874_v28 = vld [vmem:[#allocation10 + $0x88] ss:$16 sps:$4 sm:$0xff]  }
  0x6a   :  { %408 = vmatprep.mubr.bf16.mxu1 %v6154_v4  ;;  %768 = vmatprep.subr.bf16.mxu0 %v4820_v10  ;;  %v4880_v29 = vld [vmem:[#allocation10 + $0x6c] ss:$16 sps:$4 sm:$0xff]   ;;  %v4883_v30 = vld [vmem:[#allocation10 + $0x40] ss:$16 sps:$4 sm:$0xff]   ;;  %v4888_v31 = vld [vmem:[#allocation10 + $0x24] ss:$16 sps:$4 sm:$0xff]  }
  0x6b   :  { %810 = vmatpush1.bf16.msra.mxu1 %v4834_v14  ;;  %v4890_v32 = vld [vmem:[#allocation10 + $0x68] ss:$16 sps:$4 sm:$0xff]   ;;  %v4893_v34 = vld [vmem:[#allocation10 + $0x20] ss:$16 sps:$4 sm:$0xff]   ;;  %v4896_v35 = vld [vmem:[#allocation10 + $0x4c] ss:$16 sps:$4 sm:$0xff]  }
  0x6c   :  { %811 = vmatprep.subr.bf16.mxu1 %v4844_v18  ;;  %v4171_v33 = vld [vmem:[#allocation5 + $0x18] sm:$0xff]   ;;  %v4902_v37 = vld [vmem:[#allocation10 + $0x4] ss:$16 sps:$4 sm:$0xff]   ;;  %v4910_v39 = vld [vmem:[#allocation10] ss:$16 sps:$4 sm:$0xff]   ;;  %v150_v7 = vsub.s32 0, %v5014_v0 }
  0x6d   :  { %769 = vmatpush1.bf16.msra.mxu0 %v4826_v11  ;;  %v4900_v36 = vld [vmem:[#allocation10 + $0x48] ss:$16 sps:$4 sm:$0xff]   ;;  %v4906_v38 = vld [vmem:[#allocation10 + $0x2c] ss:$16 sps:$4 sm:$0xff]   ;;  %6169 = vst [vmem:[#allocation23_spill] sm:$0xff] %v4910_v39  ;;  %v4915_v40 = vld [vmem:[%s6143_s1] sm:$0xff] }
  0x6e   :  { %770 = vmatprep.subr.bf16.mxu0 %v4830_v12  ;;  %v4919_v41 = vld [vmem:[#allocation10 + $0x28] ss:$16 sps:$4 sm:$0xff]   ;;  %vm1007_vm1 = vcmp.gt.s32.totalorder %v4915_v40, 0  ;;  %v4178_v44 = vld [vmem:[#allocation5 + $0x20] sm:$0xff]   ;;  %v4932_v45 = vld [vmem:[#allocation10 + $0xc] ss:$16 sps:$4 sm:$0xff]  }
  0x6f   :  { %812 = vmatpush1.bf16.msra.mxu1 %v4846_v19  ;;  %v4925_v42 = vld [vmem:[%s6143_s1 + $0x8] sm:$0xff]  ;;  %v1009_v43 = vsel %vm1007_vm1, 1, %v6154_v4  ;;  %v4192_v49 = vld [vmem:[#allocation5 + $0x30] sm:$0xff]   ;;  %v4202_v50 = vld [vmem:[#allocation5 + $0x38] sm:$0xff]   ;;  %vm1713_vm4 = vcmp.gt.s32.totalorder %v4915_v40, 2  ;;  %vm2066_vm5 = vcmp.gt.s32.totalorder %v4915_v40, 3 }
  0x70   :  { %3697 = vmatmul.mubr.msk.bf16.gmra.mxu0 %vm228_vm0, %v4160_v15  ;;  %3705 = vmatmul.mubr.msk.bf16.gmra.mxu1 %vm228_vm0, %v4160_v15  ;;  %vm1008_vm2 = vcmp.gt.s32.totalorder %v4925_v42, 0  ;;  %v4935_v47 = vld [vmem:[#allocation10 + $0x8] ss:$16 sps:$4 sm:$0xff]   ;;  %v4958_v51 = vld [vmem:[#allocation14] sm:$0xff]  ;;  %v4985_v56 = vld [vmem:[#allocation11 + $0x30] sm:$0xff]   ;;  %v1715_v6 = vsel %vm1713_vm4, 1, %v6154_v4 }
  0x71   :  { %305 = vmatprep.mubr.bf16.mxu0 %v6154_v4  ;;  %418 = vmatprep.mubr.bf16.mxu1 %v6154_v4  ;;  %v1010_v46 = vsel %vm1008_vm2, 1, %v6154_v4  ;;  %v4185_v48 = vld [vmem:[#allocation5 + $0x28] sm:$0xff]   ;;  %v4980_v54 = vld [vmem:[#allocation11 + $0x38] sm:$0xff]   ;;  %v4994_v58 = vld [vmem:[#allocation11 + $0x20] sm:$0xff]   ;;  %vm2419_vm6 = vcmp.gt.s32.totalorder %v4915_v40, 4  ;;  %vm2772_vm7 = vcmp.gt.s32.totalorder %v4915_v40, 5 }
  0x72   :  { %771 = vmatpush1.bf16.msra.mxu0 %v4837_v16  ;;  %813 = vmatprep.subr.bf16.mxu1 %v4858_v22  ;;  %v4960_v52 = vld [vmem:[#allocation14 + $0x8] sm:$0xff]  ;;  %v4999_v59 = vld [vmem:[#allocation11 + $0x18] sm:$0xff]   ;;  %v5003_v60 = vld [vmem:[#allocation11 + $0x10] sm:$0xff]   ;;  %vm3125_vm8 = vcmp.gt.s32.totalorder %v4915_v40, 6  ;;  %vm3478_vm9 = vcmp.gt.s32.totalorder %v4915_v40, 7  ;;  %vm1360_vm10 = vcmp.gt.s32.totalorder %v4915_v40, 1 }
  0x73   :  { %772 = vmatprep.subr.bf16.mxu0 %v4842_v17  ;;  %814 = vmatpush1.bf16.msra.mxu1 %v4862_v23  ;;  %v605_v53 = vpack.c.bf16 %v4960_v52, %v4958_v51  ;;  %v4990_v57 = vld [vmem:[#allocation11 + $0x28] sm:$0xff]   ;;  %v5011_v63 = vld [vmem:[#allocation11] sm:$0xff]   ;;  %vm1361_vm11 = vcmp.gt.s32.totalorder %v4925_v42, 1  ;;  %vm1714_vm14 = vcmp.gt.s32.totalorder %v4925_v42, 2  ;;  %vm2067_vm15 = vcmp.gt.s32.totalorder %v4925_v42, 3 }
  0x74   :  { %815 = vmatprep.subr.bf16.mxu1 %v4870_v27  ;;  %1012 = vperm.xlu0 %4148, %v1009_v43   ;;  %v5007_v61 = vld [vmem:[#allocation11 + $0x8] sm:$0xff]   ;;  %vm2773_vm1 = vcmp.gt.s32.totalorder %v4925_v42, 5  ;;  %vm3126_vm2 = vcmp.gt.s32.totalorder %v4925_v42, 6  ;;  %vm3479_vm4 = vcmp.gt.s32.totalorder %v4925_v42, 7 }
  0x76   :  { %773 = vmatpush1.bf16.msra.mxu0 %v4852_v20 }
  0x77   :  { %774 = vmatprep.subr.bf16.mxu0 %v4854_v21  ;;  %816 = vmatpush1.bf16.msra.mxu1 %v4874_v28 }
  0x78   :  { %3698 = vmatmul.mubr.msk.bf16.gmra.mxu0 %vm228_vm0, %v4164_v24  ;;  %3706 = vmatmul.mubr.msk.bf16.gmra.mxu1 %vm228_vm0, %v4164_v24 }
  0x79   :  { %315 = vmatprep.mubr.bf16.mxu0 %v6154_v4  ;;  %428 = vmatprep.mubr.bf16.mxu1 %v6154_v4 }
  0x7a   :  { %775 = vmatpush1.bf16.msra.mxu0 %v4865_v25  ;;  %817 = vmatprep.subr.bf16.mxu1 %v4880_v29 }
  0x7b   :  { %776 = vmatprep.subr.bf16.mxu0 %v4868_v26  ;;  %818 = vmatpush1.bf16.msra.mxu1 %v4890_v32 }
  0x7c   :  { %819 = vmatprep.subr.bf16.mxu1 %v4896_v35  ;;  %1015 = vperm.xlu0 %4148, %v1010_v46  }
  0x7e   :  { %777 = vmatpush1.bf16.msra.mxu0 %v4883_v30 }
  0x7f   :  { %778 = vmatprep.subr.bf16.mxu0 %v4888_v31  ;;  %820 = vmatpush1.bf16.msra.mxu1 %v4900_v36 }
  0x80   :  { %3699 = vmatmul.mubr.msk.bf16.gmra.mxu0 %vm228_vm0, %v4171_v33  ;;  %3707 = vmatmul.mubr.msk.bf16.gmra.mxu1 %vm228_vm0, %v4171_v33 }
  0x81   :  { %325 = vmatprep.mubr.bf16.mxu0 %v6154_v4  ;;  %438 = vmatprep.mubr.bf16.mxu1 %v6154_v4 }
  0x82   :  { %779 = vmatpush1.bf16.msra.mxu0 %v4893_v34  ;;  %821 = vmatprep.subr.bf16.mxu1 %v4906_v38 }
  0x83   :  { %780 = vmatprep.subr.bf16.mxu0 %v4902_v37  ;;  %822 = vmatpush1.bf16.msra.mxu1 %v4919_v41 }
  0x84   :  { %823 = vmatprep.subr.bf16.mxu1 %v4932_v45  ;;  %1718 = vperm.xlu0 %4148, %v1715_v6  }
  0x86   :  { %781 = vmatpush1.bf16.msra.mxu0 %v4910_v39 }
  0x87   :  { %824 = vmatpush1.bf16.msra.mxu1 %v4935_v47  ;;  %3968 = vmatprep.subr.bf16.mxu0 %v6152_v55 }
  0x88   :  { %3700 = vmatmul.mubr.msk.bf16.gmra.mxu0 %vm228_vm0, %v4178_v44  ;;  %3708 = vmatmul.mubr.msk.bf16.gmra.mxu1 %vm228_vm0, %v4178_v44 }
  0x89   :  { %335 = vmatprep.mubr.bf16.mxu0 %v6154_v4  ;;  %448 = vmatprep.mubr.bf16.mxu1 %v6154_v4 }
  0x8a   :  { %1166 = vmatprep.subr.bf16.mxu1 %v4815_v8 }
  0x90   :  { %3701 = vmatmul.mubr.msk.bf16.gmra.mxu0 %vm228_vm0, %v4185_v48  ;;  %3709 = vmatmul.mubr.msk.bf16.gmra.mxu1 %vm228_vm0, %v4185_v48 }
  0x91   :  { %345 = vmatprep.mubr.bf16.mxu0 %v6154_v4  ;;  %458 = vmatprep.mubr.bf16.mxu1 %v6154_v4 }
  0x98   :  { %3702 = vmatmul.mubr.msk.bf16.gmra.mxu0 %vm228_vm0, %v4192_v49  ;;  %3710 = vmatmul.mubr.msk.bf16.gmra.mxu1 %vm228_vm0, %v4192_v49  ;;  %v2421_v49 = vsel %vm2419_vm6, 1, %v6154_v4 }
  0x99   :  { %355 = vmatprep.mubr.bf16.mxu0 %v6154_v4  ;;  %468 = vmatprep.mubr.bf16.mxu1 %v6154_v4 }
  0xa0   :  { %3703 = vmatmul.mubr.msk.bf16.gmra.mxu0 %vm228_vm0, %v4202_v50  ;;  %3711 = vmatmul.mubr.msk.bf16.gmra.mxu1 %vm228_vm0, %v4202_v50  ;;  %vm2420_vm0 = vcmp.gt.s32.totalorder %v4925_v42, 4 }
  0xa1   :  { %798 = vmatprep.mubr.bf16.mxu0 %v6154_v4  ;;  %841 = vmatprep.mubr.bf16.mxu1 %v6154_v4 }
  0xa8   :  { %799 = vmatmul.mubr.bf16.vlgmr.msra.gmra.mxu0 %v605_v53  ;;  %842 = vmatmul.mubr.bf16.vlgmr.msra.gmra.mxu1 %v605_v53 }
  0xa9   :  { %1167 = vmatpush1.bf16.msra.mxu1 %v4817_v9  ;;  %1198 = vmatprep.mubr.bf16.mxu1 %v6154_v4  ;;  %v158_v9 = vsub.s32 2, %v5014_v0 }
  0xaa   :  { %1168 = vmatprep.subr.bf16.mxu1 %v4820_v10  ;;  %3969 = vmatpush3.bf16.msra.mxu0 %v4980_v54  ;;  %v146_v10 = vld [vmem:[%s6147_s5] sm:$0xf] }
  0xab   :  { %3970 = vmatprep.subr.bf16.mxu0 %v6152_v55  ;;  %3984 = vmatprep.mubr.msk.bf16.mxu0 %vm4733_vm3, %v6152_v55  ;;  %v5046_v33 = vrot.slane %v146_v10, %v150_v7  ;;  %v5048_v43 = vrot.slane %v146_v10, %v158_v9 }
  0xad   :  { %1169 = vmatpush1.bf16.msra.mxu1 %v4826_v11  ;;  %v154_v11 = vsub.s32 1, %v5014_v0 }
  0xae   :  { %1170 = vmatprep.subr.bf16.mxu1 %v4830_v12  ;;  %3971 = vmatpush3.bf16.msra.mxu0 %v4985_v56 }
  0xaf   :  { %3972 = vmatprep.subr.bf16.mxu0 %v6152_v55  ;;  %v5050_v44 = vrot.slane %v146_v10, %v154_v11 }
  0xb1   :  { %1171 = vmatpush1.bf16.msra.mxu1 %v4837_v16  ;;  %v2068_v16 = vsel %vm2066_vm5, 1, %v6154_v4 }
  0xb2   :  { %1172 = vmatprep.subr.bf16.mxu1 %v4842_v17  ;;  %3973 = vmatpush3.bf16.msra.mxu0 %v4990_v57  ;;  %v162_v17 = vsub.s32 3, %v5014_v0 }
  0xb3   :  { %3974 = vmatprep.subr.bf16.mxu0 %v6152_v55  ;;  %2071 = vperm.xlu0 %4148, %v2068_v16  }
  0xb4   :  { %v5053_v50 = vrot.slane %v146_v10, %v162_v17  ;;  %v2774_v17 = vsel %vm2772_vm7, 1, %v6154_v4 }
  0xb5   :  { %1173 = vmatpush1.bf16.msra.mxu1 %v4852_v20 }
  0xb6   :  { %1174 = vmatprep.subr.bf16.mxu1 %v4854_v21  ;;  %3975 = vmatpush3.bf16.msra.mxu0 %v4994_v58 }
  0xb7   :  { %3976 = vmatprep.subr.bf16.mxu0 %v6152_v55  ;;  %2424 = vperm.xlu0 %4148, %v2421_v49  }
  0xb9   :  { %1175 = vmatpush1.bf16.msra.mxu1 %v4865_v25 }
  0xba   :  { %1176 = vmatprep.subr.bf16.mxu1 %v4868_v26  ;;  %3977 = vmatpush3.bf16.msra.mxu0 %v4999_v59 }
  0xbb   :  { %3978 = vmatprep.subr.bf16.mxu0 %v6152_v55  ;;  %2777 = vperm.xlu0 %4148, %v2774_v17  }
  0xbd   :  { %1177 = vmatpush1.bf16.msra.mxu1 %v4883_v30 }
  0xbe   :  { %1178 = vmatprep.subr.bf16.mxu1 %v4888_v31  ;;  %3979 = vmatpush3.bf16.msra.mxu0 %v5003_v60 }
  0xbf   :  { %3980 = vmatprep.subr.bf16.mxu0 %v6152_v55 }
  0xc1   :  { %1179 = vmatpush1.bf16.msra.mxu1 %v4893_v34 }
  0xc2   :  { %1180 = vmatprep.subr.bf16.mxu1 %v4902_v37  ;;  %3981 = vmatpush3.bf16.msra.mxu0 %v5007_v61 }
  0xc3   :  { %3982 = vmatprep.subr.bf16.mxu0 %v6152_v55 }
  0xc5   :  { %1181 = vmatpush1.bf16.msra.mxu1 %v4910_v39 }
  0xc6   :  { %3988 = vmatprep.subr.bf16.mxu1 %v6152_v55  ;;  %3983 = vmatpush3.bf16.msra.mxu0 %v5011_v63 }
  0xc7   :  { %1209 = vmatprep.subr.bf16.mxu0 %v4832_v13 }
 0x128   :  { %v5016_v1 = vpop.f32.mrf.mxu0  ;;  %v5018_v2 = vpop.f32.mrf.mxu1 }
 0x12a   :  { %v5023_v3 = vpop.f32.mrf.mxu0  ;;  %v5025_v5 = vpop.f32.mrf.mxu1 }
 0x12c   :  { %v5035_v12 = vpop.f32.mrf.mxu0  ;;  %v5037_v15 = vpop.f32.mrf.mxu1 }
 0x12e   :  { %v5042_v13 = vpop.f32.mrf.mxu0  ;;  %v5044_v24 = vpop.f32.mrf.mxu1 }
 0x130   :  { %v297_v46 = vpop.f32.mrf.mxu0  ;;  %v410_v48 = vpop.f32.mrf.mxu1 }
 0x131   :  { %v5056_v53 = vadd.f32 %v297_v46, %v5046_v33  ;;  %v5059_v62 = vadd.f32 %v410_v48, %v5048_v43 }
 0x132   :  { %v299_v6 = vpop.f32.mrf.mxu0  ;;  %v412_v7 = vpop.f32.mrf.mxu1 }
 0x133   :  { %6170 = vst [vmem:[#allocation24_spill] sm:$0xff] %v5056_v53  ;;  %6171 = vst [vmem:[#allocation25_spill] sm:$0xff] %v5059_v62  ;;  %v5063_v9 = vadd.f32 %v299_v6, %v5050_v44  ;;  %v5066_v11 = vadd.f32 %v412_v7, %v5053_v50 }
 0x134   :  { %v301_v16 = vpop.f32.mrf.mxu0  ;;  %v414_v10 = vpop.f32.mrf.mxu1 }
 0x135   :  { %6172 = vst [vmem:[#allocation26_spill] sm:$0xff] %v5063_v9  ;;  %6173 = vst [vmem:[#allocation27_spill] sm:$0xff] %v5066_v11  ;;  %v5070_v46 = vadd.f32 %v301_v16, %v5046_v33  ;;  %v5073_v48 = vadd.f32 %v414_v10, %v5048_v43  ;;  %v3127_v9 = vsel %vm3125_vm8, 1, %v6154_v4 }
 0x136   :  { %v303_v55 = vpop.f32.mrf.mxu0  ;;  %v416_v62 = vpop.f32.mrf.mxu1  ;;  %3130 = vperm.xlu0 %4148, %v3127_v9  }
 0x137   :  { %6174 = vst [vmem:[#allocation28_spill] sm:$0xff] %v5070_v46  ;;  %6175 = vst [vmem:[#allocation29_spill] sm:$0xff] %v5073_v48  ;;  %v5077_v6 = vadd.f32 %v303_v55, %v5050_v44  ;;  %v5080_v7 = vadd.f32 %v416_v62, %v5053_v50 }
 0x138   :  { %v307_v49 = vpop.f32.mrf.mxu0  ;;  %v420_v11 = vpop.f32.mrf.mxu1 }
 0x139   :  { %6176 = vst [vmem:[#allocation30_spill] sm:$0xff] %v5077_v6  ;;  %6177 = vst [vmem:[#allocation31_spill] sm:$0xff] %v5080_v7  ;;  %v5084_v16 = vadd.f32 %v307_v49, %v5046_v33  ;;  %v5087_v10 = vadd.f32 %v420_v11, %v5048_v43  ;;  %v3480_v6 = vsel %vm3478_vm9, 1, %v6154_v4 }
 0x13a   :  { %v309_v48 = vpop.f32.mrf.mxu0  ;;  %v422_v46 = vpop.f32.mrf.mxu1  ;;  %3483 = vperm.xlu0 %4148, %v3480_v6  }
 0x13b   :  { %6178 = vst [vmem:[#allocation32_spill] sm:$0xff] %v5084_v16  ;;  %6179 = vst [vmem:[#allocation33_spill] sm:$0xff] %v5087_v10  ;;  %v5091_v55 = vadd.f32 %v309_v48, %v5050_v44  ;;  %v5094_v62 = vadd.f32 %v422_v46, %v5053_v50 }
 0x13c   :  { %v311_v17 = vpop.f32.mrf.mxu0  ;;  %v424_v7 = vpop.f32.mrf.mxu1 }
 0x13d   :  { %6180 = vst [vmem:[#allocation34_spill] sm:$0xff] %v5091_v55  ;;  %6181 = vst [vmem:[#allocation35_spill] sm:$0xff] %v5094_v62  ;;  %v5098_v49 = vadd.f32 %v311_v17, %v5046_v33  ;;  %v5101_v11 = vadd.f32 %v424_v7, %v5048_v43 }
 0x13e   :  { %v313_v10 = vpop.f32.mrf.mxu0  ;;  %v426_v16 = vpop.f32.mrf.mxu1 }
 0x13f   :  { %6182 = vst [vmem:[#allocation36_spill] sm:$0xff] %v5098_v49  ;;  %6183 = vst [vmem:[#allocation37_spill] sm:$0xff] %v5101_v11  ;;  %v5104_v53 = vadd.f32 %v313_v10, %v5050_v44  ;;  %v5107_v48 = vadd.f32 %v426_v16, %v5053_v50 }
 0x140   :  { %v317_v9 = vpop.f32.mrf.mxu0  ;;  %v430_v46 = vpop.f32.mrf.mxu1 }
 0x141   :  { %6184 = vst [vmem:[#allocation38_spill] sm:$0xff] %v5104_v53  ;;  %6185 = vst [vmem:[#allocation39_spill] sm:$0xff] %v5107_v48  ;;  %v5110_v62 = vadd.f32 %v317_v9, %v5046_v33  ;;  %v5113_v17 = vadd.f32 %v430_v46, %v5048_v43 }
 0x142   :  { %v319_v4 = vpop.f32.mrf.mxu0  ;;  %v432_v7 = vpop.f32.mrf.mxu1 }
 0x143   :  { %6186 = vst [vmem:[#allocation40_spill] sm:$0xff] %v5110_v62  ;;  %6187 = vst [vmem:[#allocation41_spill] sm:$0xff] %v5113_v17  ;;  %v5116_v11 = vadd.f32 %v319_v4, %v5050_v44  ;;  %v5119_v10 = vadd.f32 %v432_v7, %v5053_v50 }
 0x144   :  { %v321_v53 = vpop.f32.mrf.mxu0  ;;  %v434_v16 = vpop.f32.mrf.mxu1 }
 0x145   :  { %6188 = vst [vmem:[#allocation42_spill] sm:$0xff] %v5116_v11  ;;  %6189 = vst [vmem:[#allocation43_spill] sm:$0xff] %v5119_v10  ;;  %v5122_v6 = vadd.f32 %v321_v53, %v5046_v33  ;;  %v5125_v48 = vadd.f32 %v434_v16, %v5048_v43 }
 0x146   :  { %v323_v9 = vpop.f32.mrf.mxu0  ;;  %v436_v62 = vpop.f32.mrf.mxu1 }
 0x147   :  { %6190 = vst [vmem:[#allocation44_spill] sm:$0xff] %v5122_v6  ;;  %6191 = vst [vmem:[#allocation45_spill] sm:$0xff] %v5125_v48  ;;  %v5128_v46 = vadd.f32 %v323_v9, %v5050_v44  ;;  %v5131_v17 = vadd.f32 %v436_v62, %v5053_v50 }
 0x148   :  { %v327_v4 = vpop.f32.mrf.mxu0  ;;  %v440_v11 = vpop.f32.mrf.mxu1 }
 0x149   :  { %6192 = vst [vmem:[#allocation46_spill] sm:$0xff] %v5128_v46  ;;  %6193 = vst [vmem:[#allocation47_spill] sm:$0xff] %v5131_v17  ;;  %v5134_v7 = vadd.f32 %v327_v4, %v5046_v33  ;;  %v5137_v10 = vadd.f32 %v440_v11, %v5048_v43 }
 0x14a   :  { %v329_v53 = vpop.f32.mrf.mxu0  ;;  %v442_v6 = vpop.f32.mrf.mxu1 }
 0x14b   :  { %6194 = vst [vmem:[#allocation48_spill] sm:$0xff] %v5134_v7  ;;  %6195 = vst [vmem:[#allocation49_spill] sm:$0xff] %v5137_v10  ;;  %v5140_v16 = vadd.f32 %v329_v53, %v5050_v44  ;;  %v5143_v48 = vadd.f32 %v442_v6, %v5053_v50 }
 0x14c   :  { %v331_v9 = vpop.f32.mrf.mxu0  ;;  %v444_v46 = vpop.f32.mrf.mxu1 }
 0x14d   :  { %6196 = vst [vmem:[#allocation50_spill] sm:$0xff] %v5140_v16  ;;  %6197 = vst [vmem:[#allocation51_spill] sm:$0xff] %v5143_v48  ;;  %v5146_v62 = vadd.f32 %v331_v9, %v5046_v33  ;;  %v5149_v17 = vadd.f32 %v444_v46, %v5048_v43 }
 0x14e   :  { %v333_v4 = vpop.f32.mrf.mxu0  ;;  %v446_v7 = vpop.f32.mrf.mxu1 }
 0x14f   :  { %6198 = vst [vmem:[#allocation52_spill] sm:$0xff] %v5146_v62  ;;  %6199 = vst [vmem:[#allocation53_spill] sm:$0xff] %v5149_v17  ;;  %v5152_v11 = vadd.f32 %v333_v4, %v5050_v44  ;;  %v5155_v10 = vadd.f32 %v446_v7, %v5053_v50 }
 0x150   :  { %v337_v53 = vpop.f32.mrf.mxu0  ;;  %v450_v16 = vpop.f32.mrf.mxu1 }
 0x151   :  { %6200 = vst [vmem:[#allocation54_spill] sm:$0xff] %v5152_v11  ;;  %6201 = vst [vmem:[#allocation55_spill] sm:$0xff] %v5155_v10  ;;  %v5158_v6 = vadd.f32 %v337_v53, %v5046_v33  ;;  %v5161_v48 = vadd.f32 %v450_v16, %v5048_v43 }
 0x152   :  { %v339_v9 = vpop.f32.mrf.mxu0  ;;  %v452_v62 = vpop.f32.mrf.mxu1 }
 0x153   :  { %6202 = vst [vmem:[#allocation56_spill] sm:$0xff] %v5158_v6  ;;  %6203 = vst [vmem:[#allocation57_spill] sm:$0xff] %v5161_v48  ;;  %v5164_v46 = vadd.f32 %v339_v9, %v5050_v44  ;;  %v5167_v17 = vadd.f32 %v452_v62, %v5053_v50 }
 0x154   :  { %v341_v4 = vpop.f32.mrf.mxu0  ;;  %v454_v11 = vpop.f32.mrf.mxu1 }
 0x155   :  { %6204 = vst [vmem:[#allocation58_spill] sm:$0xff] %v5164_v46  ;;  %6205 = vst [vmem:[#allocation59_spill] sm:$0xff] %v5167_v17  ;;  %v5170_v7 = vadd.f32 %v341_v4, %v5046_v33  ;;  %v5173_v10 = vadd.f32 %v454_v11, %v5048_v43 }
 0x156   :  { %v343_v53 = vpop.f32.mrf.mxu0  ;;  %v456_v6 = vpop.f32.mrf.mxu1 }
 0x157   :  { %6206 = vst [vmem:[#allocation60_spill] sm:$0xff] %v5170_v7  ;;  %6207 = vst [vmem:[#allocation61_spill] sm:$0xff] %v5173_v10  ;;  %v5176_v16 = vadd.f32 %v343_v53, %v5050_v44  ;;  %v5179_v48 = vadd.f32 %v456_v6, %v5053_v50 }
 0x158   :  { %v347_v9 = vpop.f32.mrf.mxu0  ;;  %v460_v46 = vpop.f32.mrf.mxu1 }
 0x159   :  { %6208 = vst [vmem:[#allocation62_spill] sm:$0xff] %v5176_v16  ;;  %6209 = vst [vmem:[#allocation63_spill] sm:$0xff] %v5179_v48  ;;  %v5182_v62 = vadd.f32 %v347_v9, %v5046_v33  ;;  %v5185_v17 = vadd.f32 %v460_v46, %v5048_v43 }
 0x15a   :  { %v349_v4 = vpop.f32.mrf.mxu0  ;;  %v462_v7 = vpop.f32.mrf.mxu1 }
 0x15b   :  { %6210 = vst [vmem:[#allocation64_spill] sm:$0xff] %v5182_v62  ;;  %6211 = vst [vmem:[#allocation65_spill] sm:$0xff] %v5185_v17  ;;  %v5188_v11 = vadd.f32 %v349_v4, %v5050_v44  ;;  %v5191_v10 = vadd.f32 %v462_v7, %v5053_v50 }
 0x15c   :  { %v351_v53 = vpop.f32.mrf.mxu0  ;;  %v464_v16 = vpop.f32.mrf.mxu1 }
 0x15d   :  { %6212 = vst [vmem:[#allocation66_spill] sm:$0xff] %v5188_v11  ;;  %6213 = vst [vmem:[#allocation67_spill] sm:$0xff] %v5191_v10  ;;  %v5194_v6 = vadd.f32 %v351_v53, %v5046_v33  ;;  %v5197_v48 = vadd.f32 %v464_v16, %v5048_v43 }
 0x15e   :  { %v353_v9 = vpop.f32.mrf.mxu0  ;;  %v466_v62 = vpop.f32.mrf.mxu1 }
 0x15f   :  { %6214 = vst [vmem:[#allocation68_spill] sm:$0xff] %v5194_v6  ;;  %6215 = vst [vmem:[#allocation69_spill] sm:$0xff] %v5197_v48  ;;  %v5200_v46 = vadd.f32 %v353_v9, %v5050_v44  ;;  %v5203_v17 = vadd.f32 %v466_v62, %v5053_v50 }
 0x160   :  { %v357_v4 = vpop.f32.mrf.mxu0  ;;  %v470_v11 = vpop.f32.mrf.mxu1 }
 0x161   :  { %6216 = vst [vmem:[#allocation70_spill] sm:$0xff] %v5200_v46  ;;  %6217 = vst [vmem:[#allocation71_spill] sm:$0xff] %v5203_v17  ;;  %v5206_v7 = vadd.f32 %v357_v4, %v5046_v33  ;;  %v5209_v10 = vadd.f32 %v470_v11, %v5048_v43  ;;  %v288_v11 = vadd.f32 %v5016_v1, %v5046_v33 }
 0x162   :  { %v359_v53 = vpop.f32.mrf.mxu0  ;;  %v472_v6 = vpop.f32.mrf.mxu1  ;;  %v294_v1 = vadd.f32 %v5042_v13, %v5050_v44 }
 0x163   :  { %6218 = vst [vmem:[#allocation72_spill] sm:$0xff] %v5206_v7  ;;  %6219 = vst [vmem:[#allocation73_spill] sm:$0xff] %v5209_v10  ;;  %v5212_v16 = vadd.f32 %v359_v53, %v5050_v44  ;;  %v5215_v48 = vadd.f32 %v472_v6, %v5053_v50 }
 0x164   :  { %v361_v9 = vpop.f32.mrf.mxu0  ;;  %v474_v46 = vpop.f32.mrf.mxu1 }
 0x165   :  { %6220 = vst [vmem:[#allocation74_spill] sm:$0xff] %v5212_v16  ;;  %6221 = vst [vmem:[#allocation75_spill] sm:$0xff] %v5215_v48  ;;  %v5218_v62 = vadd.f32 %v361_v9, %v5046_v33  ;;  %v5221_v17 = vadd.f32 %v474_v46, %v5048_v43  ;;  %v290_v48 = vadd.f32 %v5023_v3, %v5050_v44 }
 0x166   :  { %v363_v4 = vpop.f32.mrf.mxu0  ;;  %v476_v7 = vpop.f32.mrf.mxu1  ;;  %v292_v46 = vadd.f32 %v5035_v12, %v5046_v33  ;;  %v403_v12 = vadd.f32 %v5025_v5, %v5053_v50  ;;  %v401_v33 = vadd.f32 %v5018_v2, %v5048_v43 }
 0x167   :  { %6222 = vst [vmem:[#allocation76_spill] sm:$0xff] %v5218_v62  ;;  %6223 = vst [vmem:[#allocation77_spill] sm:$0xff] %v5221_v17  ;;  %v5226_v10 = vadd.f32 %v363_v4, %v5050_v44  ;;  %v5229_v53 = vadd.f32 %v476_v7, %v5053_v50  ;;  %v407_v44 = vadd.f32 %v5044_v24, %v5053_v50  ;;  %v5245_v50 = vld [vmem:[#allocation16] sm:$0xff] }
 0x168   :  { %v800_v6 = vpop.f32.mrf.mxu0  ;;  %v843_v16 = vpop.f32.mrf.mxu1 }
 0x169   :  { %6224 = vst [vmem:[#allocation78_spill] sm:$0xff] %v5226_v10  ;;  %6225 = vst [vmem:[#allocation79_spill] sm:$0xff] %v5229_v53  ;;  %v852_v9 = vadd.f32 %v800_v6, %v288_v11 }
 0x16a   :  { %v802_v62 = vpop.f32.mrf.mxu0  ;;  %v845_v10 = vpop.f32.mrf.mxu1 }
 0x16b   :  { %v3744_v17 = vmul.f32 -1.442695, %v852_v9  ;;  %v853_v49 = vadd.f32 %v802_v62, %v290_v48  ;;  %v855_v48 = vadd.f32 %v845_v10, %v403_v12 }
 0x16c   :  { %v804_v55 = vpop.f32.mrf.mxu0  ;;  %v847_v6 = vpop.f32.mrf.mxu1 }
 0x16d   :  { %4220 = vpow2.f32 %v3744_v17  ;;  %v3746_v4 = vmul.f32 -1.442695, %v853_v49  ;;  %v856_v7 = vadd.f32 %v804_v55, %v292_v46  ;;  %v854_v55 = vadd.f32 %v843_v16, %v401_v33 }
 0x16e   :  { %v806_v53 = vpop.f32.mrf.mxu0  ;;  %v849_v13 = vpop.f32.mrf.mxu1  ;;  %v405_v17 = vadd.f32 %v5037_v15, %v5048_v43 }
 0x16f   :  { %4222 = vpow2.f32 %v3746_v4  ;;  %v3745_v39 = vmul.f32 -1.442695, %v856_v7  ;;  %v857_v3 = vadd.f32 %v806_v53, %v294_v1  ;;  %v859_v62 = vadd.f32 %v849_v13, %v407_v44 }
 0x170   :  { %v858_v46 = vadd.f32 %v847_v6, %v405_v17 }
 0x171   :  { %4224 = vpow2.f32 %v3745_v39  ;;  %v3747_v11 = vmul.f32 -1.442695, %v857_v3  ;;  %v3748_v39 = vmul.f32 -1.442695, %v855_v48  ;;  %v3749_v2 = vmul.f32 -1.442695, %v859_v62 }
 0x172   :  { %v5248_v48 = vld [vmem:[#allocation16 + $0x8] sm:$0xff] }
 0x173   :  { %4226 = vpow2.f32 %v3747_v11 }
 0x174   :  { %4228 = vtanh.f32 %v854_v55 }
 0x17a   :  { %v4221_v49 = vpop.eup %4220 }
 0x17b   :  { %v866_v53 = vadd.f32 1.0, %v4221_v49 }
 0x17c   :  { %v4223_v9 = vpop.eup %4222 }
 0x17d   :  { %4230 = vrcp.f32 %v866_v53  ;;  %v878_v5 = vadd.f32 1.0, %v4223_v9 }
 0x17e   :  { %v4225_v1 = vpop.eup %4224  ;;  %4232 = vpow2.f32 %v3748_v39 }
 0x17f   :  { %4234 = vrcp.f32 %v878_v5  ;;  %v867_v10 = vadd.f32 1.0, %v4225_v1 }
 0x180   :  { %v4227_v4 = vpop.eup %4226  ;;  %4236 = vtanh.f32 %v858_v46 }
 0x181   :  { %4238 = vrcp.f32 %v867_v10  ;;  %v879_v24 = vadd.f32 1.0, %v4227_v4  ;;  %v4229_v15 = vpop.eup %4228 }
 0x182   :  { %4240 = vpow2.f32 %v3749_v2 }
 0x183   :  { %4242 = vrcp.f32 %v879_v24 }
 0x18a   :  { %v4231_v43 = vpop.eup %4230 }
 0x18b   :  { %v4233_v16 = vpop.eup %4232  ;;  %v898_v7 = vmul.f32 %v4231_v43, %v4229_v15  ;;  %v6226_v15 = vmov 0  }
 0x18c   :  { %v4235_v3 = vpop.eup %4234  ;;  %v892_v33 = vadd.f32 1.0, %v4233_v16 }
 0x18d   :  { %v4237_v11 = vpop.eup %4236  ;;  %v900_v6 = vmul.f32 %v4235_v3, %v5245_v50 }
 0x18e   :  { %v4239_v12 = vpop.eup %4238  ;;  %4244 = vrcp.f32 %v892_v33 }
 0x18f   :  { %v4241_v13 = vpop.eup %4240  ;;  %v5250_v44 = vadd.f32 %v900_v6, %v898_v7  ;;  %v899_v17 = vmul.f32 %v4239_v12, %v4237_v11 }
 0x190   :  { %v4243_v55 = vpop.eup %4242  ;;  %v893_v62 = vadd.f32 1.0, %v4241_v13 }
 0x191   :  { %v3750_v49 = vclamps-f32 %v5250_v44, 3.0  ;;  %v901_v39 = vmul.f32 %v4243_v55, %v5248_v48 }
 0x193   :  { %4246 = vtanh.f32 %v3750_v49  ;;  %v5256_v53 = vadd.f32 %v901_v39, %v899_v17 }
 0x194   :  { %4248 = vrcp.f32 %v893_v62 }
 0x195   :  { %v3751_v9 = vclamps-f32 %v5256_v53, 3.0 }
 0x197   :  { %4250 = vtanh.f32 %v3751_v9 }
 0x19b   :  { %v4245_v46 = vpop.eup %4244 }
 0x1a0   :  { %v4247_v5 = vpop.eup %4246 }
 0x1a1   :  { %v910_v1 = vmul.f32 %v4247_v5, %v4245_v46  ;;  %v4249_v2 = vpop.eup %4248 }
 0x1a4   :  { %v4251_v10 = vpop.eup %4250 }
 0x1a5   :  { %v911_v4 = vmul.f32 %v4251_v10, %v4249_v2  ;;  %v6227_v10 = vmov 0.0  }
 0x1a7   :  { %v912_v24 = vpack.c.bf16 %v911_v4, %v910_v1 }
 0x1a9   :  { %3985 = vmatmul.mubr.bf16.vlgmr.msra.gmra.mxu0 %v912_v24 }
 0x1aa   :  { %1210 = vmatpush1.bf16.msra.mxu0 %v4834_v14  ;;  %1241 = vmatprep.mubr.bf16.mxu0 %v6226_v15  ;;  %v1362_v14 = vsel %vm1360_vm10, 1, %v6226_v15 }
 0x1ab   :  { %1211 = vmatprep.subr.bf16.mxu0 %v4844_v18  ;;  %1365 = vperm.xlu1 %4149, %v1362_v14   ;;  %v1363_v18 = vsel %vm1361_vm11, 1, %v6226_v15 }
 0x1ae   :  { %1212 = vmatpush1.bf16.msra.mxu0 %v4846_v19  ;;  %v4734_v19 = vmov 1966171168  }
 0x1af   :  { %1213 = vmatprep.subr.bf16.mxu0 %v4858_v22  ;;  %1368 = vperm.xlu1 %4149, %v1363_v18   ;;  %v1029_v22 = vunpack.c.l.s4 %v4734_v19  ;;  %v5322_v19 = vld [vmem:[#allocation10 + $0xe0] ss:$16 sps:$4 sm:$0xff]  }
 0x1b2   :  { %1214 = vmatpush1.bf16.msra.mxu0 %v4862_v23  ;;  %v1030_v23 = vunpack.c.0.s8 %v1029_v22 }
 0x1b3   :  { %1215 = vmatprep.subr.bf16.mxu0 %v4870_v27  ;;  %v5282_v27 = vpop.permute.xlu0 %1012 }
 0x1b4   :  { %vm1017_vm12 = vcmp.eq.s32.totalorder %v5282_v27, 1 }
 0x1b6   :  { %1216 = vmatpush1.bf16.msra.mxu0 %v4874_v28  ;;  %v5285_v28 = vsub.s32 %v1030_v23, %v5014_v0 }
 0x1b7   :  { %1217 = vmatprep.subr.bf16.mxu0 %v4880_v29 }
 0x1ba   :  { %1218 = vmatpush1.bf16.msra.mxu0 %v4890_v32 }
 0x1bb   :  { %1219 = vmatprep.subr.bf16.mxu0 %v4896_v35  ;;  %v5288_v35 = vpop.permute.xlu0 %1015 }
 0x1bc   :  { %vm1018_vm13 = vcmp.eq.s32.totalorder %v5288_v35, 1 }
 0x1be   :  { %1220 = vmatpush1.bf16.msra.mxu0 %v4900_v36 }
 0x1bf   :  { %1221 = vmatprep.subr.bf16.mxu0 %v4906_v38 }
 0x1c2   :  { %1222 = vmatpush1.bf16.msra.mxu0 %v4919_v41 }
 0x1c3   :  { %1223 = vmatprep.subr.bf16.mxu0 %v4932_v45 }
 0x1c6   :  { %1224 = vmatpush1.bf16.msra.mxu0 %v4935_v47 }
 0x1c7   :  { %1519 = vmatprep.subr.bf16.mxu0 %v4815_v8 }
 0x269   :  { %v995_v29 = vpop.f32.mrf.mxu0 }
 0x26a   :  { %v3760_v8 = vclamps-f32 %v995_v29, 3.0  ;;  %v5327_v29 = vld [vmem:[#allocation10 + $0xc4] ss:$16 sps:$4 sm:$0xff]  }
 0x26b   :  { %v3986_v32 = vpop.f32.mrf.mxu0 }
 0x26c   :  { %v1023_v36 = vsel %vm1017_vm12, %v3760_v8, 0.0  ;;  %v5299_v7 = vsel %vm1017_vm12, %v3760_v8, %v4958_v51  ;;  %v5332_v32 = vld [vmem:[#allocation10 + $0xc0] ss:$16 sps:$4 sm:$0xff]  }
 0x26d   :  { %v1027_v38 = vcombine.high %v1023_v36, %v1023_v36  ;;  %v1034_v40 = vrot.slane %v1023_v36, %v5285_v28  ;;  %v998_v41 = vpop.f32.mrf.mxu0  ;;  %v5335_v36 = vld [vmem:[#allocation10 + $0xa4] ss:$16 sps:$4 sm:$0xff]  }
 0x26e   :  { %v3761_v45 = vclamps-f32 %v998_v41, 3.0 }
 0x26f   :  { %v1041_v47 = vrot.slane %v1027_v38, %v5285_v28  ;;  %v1042_v0 = vcombine.high %v1034_v40, %v1034_v40  ;;  %v1050_v43 = vrot.slane %v1034_v40, %v5285_v28  ;;  %3762 = vst.sshfl [vmem:[#allocation13] sm:$0x1 pattern:$0x73625140] %v1034_v40  ;;  %v3987_v16 = vpop.f32.mrf.mxu0  ;;  %v5340_v38 = vld [vmem:[#allocation10 + $0xa0] ss:$16 sps:$4 sm:$0xff]  }
 0x270   :  { %v5304_v3 = vsel %vm1018_vm13, %v3761_v45, %v4960_v52  ;;  %v1024_v11 = vsel %vm1018_vm13, %v3761_v45, 0.0  ;;  %v6231_v40 = vld [vmem:[#allocation26_spill] sm:$0xff] }
 0x271   :  { %v1043_v6 = vcombine.high %v1041_v47, %v1041_v47  ;;  %v1057_v12 = vrot.slane %v1041_v47, %v5285_v28  ;;  %v1064_v33 = vrot.slane %v1042_v0, %v5285_v28  ;;  %v1072_v13 = vcombine.high %v1050_v43, %v1050_v43  ;;  %3763 = vst.sshfl [vmem:[#allocation13 + $0x8] sm:$0x1 pattern:$0x73625140] %v1042_v0  ;;  %v6232_v0 = vld [vmem:[#allocation28_spill] sm:$0xff] }
 0x272   :  { %3764 = vst.sshfl [vmem:[#allocation13 + $0x20] sm:$0x1 pattern:$0x73625140] %v1041_v47  ;;  %v1076_v55 = vcombine.high %v1024_v11, %v1024_v11  ;;  %v1083_v51 = vrot.slane %v1024_v11, %v5285_v28  ;;  %v1165_v17 = vpack.c.bf16 %v5304_v3, %v5299_v7 }
 0x273   :  { %v1071_v52 = vrot.slane %v1043_v6, %v5285_v28  ;;  %v1073_v39 = vcombine.high %v1057_v12, %v1057_v12  ;;  %v1074_v62 = vcombine.high %v1064_v33, %v1064_v33  ;;  %1143 = vst [vmem:[#allocation13 + $0x10] sm:$0x1] %v1072_v13  ;;  %3765 = vst.sshfl [vmem:[#allocation13 + $0x28] sm:$0x1 pattern:$0x73625140] %v1043_v6 }
 0x274   :  { %v1090_v46 = vrot.slane %v1076_v55, %v5285_v28  ;;  %v1091_v5 = vcombine.high %v1083_v51, %v1083_v51  ;;  %v1099_v1 = vrot.slane %v1083_v51, %v5285_v28  ;;  %3766 = vst.sshfl [vmem:[#allocation13 + $0x40] sm:$0x1 pattern:$0x73625140] %v1083_v51  ;;  %1199 = vmatmul.mubr.bf16.vlgmr.msra.gmra.mxu1 %v1165_v17  ;;  %v6233_v6 = vld [vmem:[#allocation30_spill] sm:$0xff]  ;;  %v6234_v55 = vld [vmem:[#allocation27_spill] sm:$0xff] }
 0x275   :  { %1242 = vmatmul.mubr.bf16.vlgmr.msra.gmra.mxu0 %v1165_v17  ;;  %v1075_v2 = vcombine.high %v1071_v52, %v1071_v52  ;;  %1144 = vst [vmem:[#allocation13 + $0x18] sm:$0x1] %v1074_v62  ;;  %1147 = vst [vmem:[#allocation13 + $0x30] sm:$0x1] %v1073_v39  ;;  %3989 = vmatpush3.bf16.msra.mxu1 %v4980_v54  ;;  %v6235_v52 = vld [vmem:[#allocation25_spill] sm:$0xff] }
 0x276   :  { %4004 = vmatprep.mubr.msk.bf16.mxu1 %vm4733_vm3, %v6227_v10  ;;  %v1092_v4 = vcombine.high %v1090_v46, %v1090_v46  ;;  %v1106_v24 = vrot.slane %v1090_v46, %v5285_v28  ;;  %v1113_v14 = vrot.slane %v1091_v5, %v5285_v28  ;;  %v1121_v18 = vcombine.high %v1099_v1, %v1099_v1 }
 0x277   :  { %3767 = vst.sshfl [vmem:[#allocation13 + $0x48] sm:$0x1 pattern:$0x73625140] %v1091_v5  ;;  %3990 = vmatprep.subr.bf16.mxu1 %v6227_v10  ;;  %1148 = vst [vmem:[#allocation13 + $0x38] sm:$0x1] %v1075_v2  ;;  %1520 = vmatpush1.bf16.msra.mxu0 %v5322_v19 }
 0x278   :  { %3768 = vst.sshfl [vmem:[#allocation13 + $0x60] sm:$0x1 pattern:$0x73625140] %v1090_v46  ;;  %1551 = vmatprep.mubr.bf16.mxu0 %v6226_v15  ;;  %v1120_v54 = vrot.slane %v1092_v4, %v5285_v28  ;;  %v1122_v22 = vcombine.high %v1106_v24, %v1106_v24  ;;  %v1123_v23 = vcombine.high %v1113_v14, %v1113_v14  ;;  %1151 = vst [vmem:[#allocation13 + $0x50] sm:$0x1] %v1121_v18 }
 0x279   :  { %3769 = vst.sshfl [vmem:[#allocation13 + $0x68] sm:$0x1 pattern:$0x73625140] %v1092_v4  ;;  %1521 = vmatprep.subr.bf16.mxu0 %v5327_v29  ;;  %3991 = vmatpush3.bf16.msra.mxu1 %v4985_v56  ;;  %v5343_v56 = vld [vmem:[#allocation10 + $0x84] ss:$16 sps:$4 sm:$0xff]  }
 0x27a   :  { %v1124_v8 = vcombine.high %v1120_v54, %v1120_v54  ;;  %1152 = vst [vmem:[#allocation13 + $0x58] sm:$0x1] %v1123_v23  ;;  %1155 = vst [vmem:[#allocation13 + $0x70] sm:$0x1] %v1122_v22  ;;  %3992 = vmatprep.subr.bf16.mxu1 %v6227_v10  ;;  %v6236_v5 = vld [vmem:[#allocation31_spill] sm:$0xff]  ;;  %v6237_v24 = vld [vmem:[#allocation29_spill] sm:$0xff] }
 0x27b   :  { %1522 = vmatpush1.bf16.msra.mxu0 %v5332_v32 }
 0x27c   :  { %1156 = vst [vmem:[#allocation13 + $0x78] sm:$0x1] %v1124_v8  ;;  %1523 = vmatprep.subr.bf16.mxu0 %v5335_v36 }
 0x27d   :  { %3993 = vmatpush3.bf16.msra.mxu1 %v4990_v57 }
 0x27e   :  { %3994 = vmatprep.subr.bf16.mxu1 %v6227_v10 }
 0x27f   :  { %1524 = vmatpush1.bf16.msra.mxu0 %v5340_v38 }
 0x280   :  { %1525 = vmatprep.subr.bf16.mxu0 %v5343_v56 }
 0x281   :  { %3995 = vmatpush3.bf16.msra.mxu1 %v4994_v58  ;;  %v6230_v58 = vld [vmem:[#allocation24_spill] sm:$0xff] }
 0x282   :  { %3996 = vmatprep.subr.bf16.mxu1 %v6227_v10 }
 0x283   :  { %1526 = vmatpush1.bf16.msra.mxu0 %v4852_v20  ;;  %v5363_v20 = vld [vmem:[#allocation10 + $0xec] ss:$16 sps:$4 sm:$0xff]  }
 0x284   :  { %1527 = vmatprep.subr.bf16.mxu0 %v4854_v21  ;;  %6228 = vst [vmem:[#allocation80_spill] sm:$0xff] %v5363_v20  ;;  %v6229_v21 = vld [vmem:[#allocation23_spill] sm:$0xff] }
 0x285   :  { %3997 = vmatpush3.bf16.msra.mxu1 %v4999_v59 }
 0x286   :  { %3998 = vmatprep.subr.bf16.mxu1 %v6227_v10 }
 0x287   :  { %1528 = vmatpush1.bf16.msra.mxu0 %v4865_v25  ;;  %v1716_v25 = vsel %vm1714_vm14, 1, %v6226_v15 }
 0x288   :  { %1529 = vmatprep.subr.bf16.mxu0 %v4868_v26  ;;  %1721 = vperm.xlu1 %4149, %v1716_v25   ;;  %v2069_v26 = vsel %vm2067_vm15, 1, %v6226_v15 }
 0x289   :  { %3999 = vmatpush3.bf16.msra.mxu1 %v5003_v60 }
 0x28a   :  { %4000 = vmatprep.subr.bf16.mxu1 %v6227_v10 }
 0x28b   :  { %1530 = vmatpush1.bf16.msra.mxu0 %v4883_v30  ;;  %v2422_v30 = vsel %vm2420_vm0, 1, %v6226_v15 }
 0x28c   :  { %1531 = vmatprep.subr.bf16.mxu0 %v4888_v31  ;;  %2074 = vperm.xlu1 %4149, %v2069_v26   ;;  %v2775_v31 = vsel %vm2773_vm1, 1, %v6226_v15 }
 0x28d   :  { %4001 = vmatpush3.bf16.msra.mxu1 %v5007_v61 }
 0x28e   :  { %4002 = vmatprep.subr.bf16.mxu1 %v6227_v10 }
 0x28f   :  { %1532 = vmatpush1.bf16.msra.mxu0 %v4893_v34  ;;  %v3128_v34 = vsel %vm3126_vm2, 1, %v6226_v15 }
 0x290   :  { %1533 = vmatprep.subr.bf16.mxu0 %v4902_v37  ;;  %2427 = vperm.xlu1 %4149, %v2422_v30   ;;  %v3481_v37 = vsel %vm3479_vm4, 1, %v6226_v15 }
 0x291   :  { %4003 = vmatpush3.bf16.msra.mxu1 %v5011_v63 }
 0x292   :  { %1562 = vmatprep.subr.bf16.mxu1 %v5363_v20 }
 0x293   :  { %1534 = vmatpush1.bf16.msra.mxu0 %v6229_v21 }
 0x294   :  { %4008 = vmatprep.subr.bf16.mxu0 %v6227_v10  ;;  %2780 = vperm.xlu1 %4149, %v2775_v31   ;;  %v5388_v31 = vpop.permute.xlu1 %1365 }
 0x295   :  { %vm1370_vm5 = vcmp.eq.s32.totalorder %v5388_v31, 1 }
 0x298   :  { %3133 = vperm.xlu1 %4149, %v3128_v34  }
 0x29c   :  { %3486 = vperm.xlu1 %4149, %v3481_v37  }
 0x334   :  { %v1200_v57 = vpop.f32.mrf.mxu1 }
 0x335   :  { %v1252_v59 = vadd.f32 %v1200_v57, %v6230_v58  ;;  %v1243_v63 = vpop.f32.mrf.mxu0  ;;  %v1019_v57 = vsel %vm1017_vm12, %v3750_v49, %v5245_v50 }
 0x336   :  { %v1202_v60 = vpop.f32.mrf.mxu1  ;;  %v1254_v39 = vadd.f32 %v1243_v63, %v6235_v52  ;;  %v5428_v52 = vld [vmem:[#allocation10 + $0x8c] ss:$16 sps:$4 sm:$0xff]  }
 0x337   :  { %v3770_v61 = vmul.f32 -1.442695, %v1252_v59  ;;  %v1253_v41 = vadd.f32 %v1202_v60, %v6231_v40  ;;  %v1245_v42 = vpop.f32.mrf.mxu0 }
 0x338   :  { %v1204_v45 = vpop.f32.mrf.mxu1  ;;  %v1255_v51 = vadd.f32 %v1245_v42, %v6234_v55  ;;  %v5419_v55 = vld [vmem:[#allocation10 + $0xc8] ss:$16 sps:$4 sm:$0xff]  }
 0x339   :  { %4252 = vpow2.f32 %v3770_v61  ;;  %v3772_v47 = vmul.f32 -1.442695, %v1253_v41  ;;  %v1256_v43 = vadd.f32 %v1204_v45, %v6232_v0  ;;  %v1247_v13 = vpop.f32.mrf.mxu0  ;;  %v5401_v0 = vpop.permute.xlu1 %1368 }
 0x33a   :  { %v1206_v16 = vpop.f32.mrf.mxu1  ;;  %v3774_v46 = vmul.f32 -1.442695, %v1255_v51  ;;  %v1258_v14 = vadd.f32 %v1247_v13, %v6237_v24  ;;  %vm1371_vm6 = vcmp.eq.s32.totalorder %v5401_v0, 1  ;;  %v5416_v13 = vld [vmem:[#allocation10 + $0xcc] ss:$16 sps:$4 sm:$0xff]  }
 0x33b   :  { %4254 = vpow2.f32 %v3772_v47  ;;  %v3771_v11 = vmul.f32 -1.442695, %v1256_v43  ;;  %v1257_v12 = vadd.f32 %v1206_v16, %v6233_v6  ;;  %v1249_v17 = vpop.f32.mrf.mxu0  ;;  %v1020_v47 = vsel %vm1018_vm13, %v3751_v9, %v5248_v48  ;;  %v5422_v51 = vld [vmem:[#allocation10 + $0xac] ss:$16 sps:$4 sm:$0xff]  }
 0x33c   :  { %v1259_v1 = vadd.f32 %v1249_v17, %v6236_v5  ;;  %v5425_v17 = vld [vmem:[#allocation10 + $0xa8] ss:$16 sps:$4 sm:$0xff]   ;;  %v5440_v5 = vld [vmem:[#allocation10 + $0x4c] ss:$16 sps:$4 sm:$0xff]  }
 0x33d   :  { %4256 = vpow2.f32 %v3771_v11  ;;  %v3773_v33 = vmul.f32 -1.442695, %v1257_v12  ;;  %v5452_v24 = vld [vmem:[#allocation10 + $0xc] ss:$16 sps:$4 sm:$0xff]  }
 0x33e   :  { %v3775_v22 = vmul.f32 -1.442695, %v1259_v1  ;;  %v5443_v1 = vld [vmem:[#allocation10 + $0x48] ss:$16 sps:$4 sm:$0xff]  }
 0x33f   :  { %4258 = vpow2.f32 %v3773_v33  ;;  %v5412_v33 = vld [vmem:[#allocation10 + $0xe8] ss:$16 sps:$4 sm:$0xff]  }
 0x340   :  { %4260 = vtanh.f32 %v1254_v39  ;;  %v5431_v39 = vld [vmem:[#allocation10 + $0x88] ss:$16 sps:$4 sm:$0xff]  }
 0x346   :  { %v4253_v62 = vpop.eup %4252 }
 0x347   :  { %v1266_v2 = vadd.f32 1.0, %v4253_v62  ;;  %v5434_v62 = vld [vmem:[#allocation10 + $0x6c] ss:$16 sps:$4 sm:$0xff]  }
 0x348   :  { %v4255_v4 = vpop.eup %4254 }
 0x349   :  { %4262 = vrcp.f32 %v1266_v2  ;;  %v1278_v18 = vadd.f32 1.0, %v4255_v4  ;;  %v5446_v2 = vld [vmem:[#allocation10 + $0x2c] ss:$16 sps:$4 sm:$0xff]   ;;  %v5449_v4 = vld [vmem:[#allocation10 + $0x28] ss:$16 sps:$4 sm:$0xff]  }
 0x34a   :  { %v4257_v54 = vpop.eup %4256  ;;  %4264 = vpow2.f32 %v3774_v46  ;;  %v5437_v46 = vld [vmem:[#allocation10 + $0x68] ss:$16 sps:$4 sm:$0xff]  }
 0x34b   :  { %4266 = vrcp.f32 %v1278_v18  ;;  %v1267_v23 = vadd.f32 1.0, %v4257_v54  ;;  %v5458_v18 = vld [vmem:[#allocation10 + $0xe4] ss:$16 sps:$4 sm:$0xff]  }
 0x34c   :  { %v4259_v8 = vpop.eup %4258  ;;  %4268 = vtanh.f32 %v1258_v14  ;;  %v5455_v14 = vld [vmem:[#allocation10 + $0x8] ss:$16 sps:$4 sm:$0xff]  }
 0x34d   :  { %4270 = vrcp.f32 %v1267_v23  ;;  %v1279_v21 = vadd.f32 1.0, %v4259_v8  ;;  %v4261_v25 = vpop.eup %4260 }
 0x34e   :  { %4272 = vpow2.f32 %v3775_v22 }
 0x34f   :  { %4274 = vrcp.f32 %v1279_v21 }
 0x356   :  { %v4263_v26 = vpop.eup %4262 }
 0x357   :  { %v4265_v30 = vpop.eup %4264  ;;  %v1298_v34 = vmul.f32 %v4263_v26, %v4261_v25 }
 0x358   :  { %v4267_v37 = vpop.eup %4266  ;;  %v1292_v61 = vadd.f32 1.0, %v4265_v30 }
 0x359   :  { %v4269_v58 = vpop.eup %4268  ;;  %v1300_v59 = vmul.f32 %v4267_v37, %v1019_v57 }
 0x35a   :  { %v4271_v60 = vpop.eup %4270  ;;  %4276 = vrcp.f32 %v1292_v61 }
 0x35b   :  { %v4273_v63 = vpop.eup %4272  ;;  %v1302_v40 = vadd.f32 %v1300_v59, %v1298_v34  ;;  %v1299_v41 = vmul.f32 %v4271_v60, %v4269_v58 }
 0x35c   :  { %v4275_v45 = vpop.eup %4274  ;;  %v1293_v49 = vadd.f32 1.0, %v4273_v63 }
 0x35d   :  { %v3776_v44 = vclamps-f32 %v1302_v40, 3.0  ;;  %v1301_v50 = vmul.f32 %v4275_v45, %v1020_v47 }
 0x35f   :  { %4278 = vtanh.f32 %v3776_v44  ;;  %v5405_v27 = vsel %vm1370_vm5, %v3776_v44, %v1019_v57  ;;  %v1303_v43 = vadd.f32 %v1301_v50, %v1299_v41 }
 0x360   :  { %4280 = vrcp.f32 %v1293_v49 }
 0x361   :  { %v3777_v53 = vclamps-f32 %v1303_v43, 3.0 }
 0x363   :  { %4282 = vtanh.f32 %v3777_v53  ;;  %v5410_v48 = vsel %vm1371_vm6, %v3777_v53, %v1020_v47 }
 0x367   :  { %v4277_v9 = vpop.eup %4276 }
 0x36c   :  { %v4279_v35 = vpop.eup %4278 }
 0x36d   :  { %v1310_v16 = vmul.f32 %v4279_v35, %v4277_v9  ;;  %v4281_v42 = vpop.eup %4280  ;;  %v5486_v9 = vld [vmem:[#allocation11 + $0x38] sm:$0xff]  }
 0x370   :  { %v4283_v11 = vpop.eup %4282 }
 0x371   :  { %v1311_v6 = vmul.f32 %v4283_v11, %v4281_v42 }
 0x373   :  { %v1312_v12 = vpack.c.bf16 %v1311_v6, %v1310_v16 }
 0x375   :  { %4005 = vmatmul.mubr.bf16.vlgmr.msra.gmra.mxu1 %v1312_v12 }
 0x376   :  { %1563 = vmatpush1.bf16.msra.mxu1 %v5412_v33  ;;  %1594 = vmatprep.mubr.bf16.mxu1 %v6226_v15 }
 0x377   :  { %1564 = vmatprep.subr.bf16.mxu1 %v5416_v13 }
 0x37a   :  { %1565 = vmatpush1.bf16.msra.mxu1 %v5419_v55 }
 0x37b   :  { %1566 = vmatprep.subr.bf16.mxu1 %v5422_v51 }
 0x37e   :  { %1567 = vmatpush1.bf16.msra.mxu1 %v5425_v17 }
 0x37f   :  { %1568 = vmatprep.subr.bf16.mxu1 %v5428_v52 }
 0x382   :  { %1569 = vmatpush1.bf16.msra.mxu1 %v5431_v39 }
 0x383   :  { %1570 = vmatprep.subr.bf16.mxu1 %v5434_v62 }
 0x386   :  { %1571 = vmatpush1.bf16.msra.mxu1 %v5437_v46 }
 0x387   :  { %1572 = vmatprep.subr.bf16.mxu1 %v5440_v5 }
 0x38a   :  { %1573 = vmatpush1.bf16.msra.mxu1 %v5443_v1 }
 0x38b   :  { %1574 = vmatprep.subr.bf16.mxu1 %v5446_v2 }
 0x38e   :  { %1575 = vmatpush1.bf16.msra.mxu1 %v5449_v4 }
 0x38f   :  { %1576 = vmatprep.subr.bf16.mxu1 %v5452_v24 }
 0x392   :  { %1577 = vmatpush1.bf16.msra.mxu1 %v5455_v14 }
 0x393   :  { %1872 = vmatprep.subr.bf16.mxu1 %v5458_v18 }
 0x435   :  { %v1347_v54 = vpop.f32.mrf.mxu1 }
 0x436   :  { %v3778_v22 = vclamps-f32 %v1347_v54, 3.0 }
 0x437   :  { %v4006_v23 = vpop.f32.mrf.mxu1 }
 0x438   :  { %v1376_v8 = vsel %vm1370_vm5, %v3778_v22, 0.0  ;;  %v5469_v59 = vsel %vm1370_vm5, %v3778_v22, %v5299_v7  ;;  %v5498_v22 = vld [vmem:[#allocation11 + $0x30] sm:$0xff]  }
 0x439   :  { %v1380_v21 = vcombine.high %v1376_v8, %v1376_v8  ;;  %v1387_v25 = vrot.slane %v1376_v8, %v5285_v28  ;;  %v1350_v26 = vpop.f32.mrf.mxu1  ;;  %v5504_v8 = vld [vmem:[#allocation11 + $0x28] sm:$0xff]  }
 0x43a   :  { %v3779_v30 = vclamps-f32 %v1350_v26, 3.0  ;;  %v5517_v26 = vld [vmem:[#allocation10 + $0x64] ss:$16 sps:$4 sm:$0xff]  }
 0x43b   :  { %v1394_v34 = vrot.slane %v1380_v21, %v5285_v28  ;;  %v1395_v37 = vcombine.high %v1387_v25, %v1387_v25  ;;  %v1403_v57 = vrot.slane %v1387_v25, %v5285_v28  ;;  %3780 = vst.sshfl [vmem:[#allocation13 + $0x1] sm:$0x1 pattern:$0x73625140] %v1387_v25  ;;  %v4007_v58 = vpop.f32.mrf.mxu1  ;;  %v5510_v21 = vld [vmem:[#allocation11 + $0x20] sm:$0xff]  }
 0x43c   :  { %v5474_v60 = vsel %vm1371_vm6, %v3779_v30, %v5304_v3  ;;  %v1377_v61 = vsel %vm1371_vm6, %v3779_v30, 0.0  ;;  %v5514_v25 = vld [vmem:[#allocation10 + $0x80] ss:$16 sps:$4 sm:$0xff]   ;;  %v5520_v30 = vld [vmem:[#allocation11 + $0x18] sm:$0xff]  }
 0x43d   :  { %v1396_v63 = vcombine.high %v1394_v34, %v1394_v34  ;;  %v1410_v40 = vrot.slane %v1394_v34, %v5285_v28  ;;  %v1417_v41 = vrot.slane %v1395_v37, %v5285_v28  ;;  %v1425_v45 = vcombine.high %v1403_v57, %v1403_v57  ;;  %3781 = vst.sshfl [vmem:[#allocation13 + $0x9] sm:$0x1 pattern:$0x73625140] %v1395_v37  ;;  %v5527_v37 = vld [vmem:[#allocation10 + $0x44] ss:$16 sps:$4 sm:$0xff]  }
 0x43e   :  { %3782 = vst.sshfl [vmem:[#allocation13 + $0x21] sm:$0x1 pattern:$0x73625140] %v1394_v34  ;;  %v1429_v47 = vcombine.high %v1377_v61, %v1377_v61  ;;  %v1436_v7 = vrot.slane %v1377_v61, %v5285_v28  ;;  %v1518_v31 = vpack.c.bf16 %v5474_v60, %v5469_v59  ;;  %v5524_v34 = vld [vmem:[#allocation10 + $0x60] ss:$16 sps:$4 sm:$0xff]  }
 0x43f   :  { %v1424_v3 = vrot.slane %v1396_v63, %v5285_v28  ;;  %v1426_v44 = vcombine.high %v1410_v40, %v1410_v40  ;;  %v1427_v50 = vcombine.high %v1417_v41, %v1417_v41  ;;  %1496 = vst [vmem:[#allocation13 + $0x11] sm:$0x1] %v1425_v45  ;;  %3783 = vst.sshfl [vmem:[#allocation13 + $0x29] sm:$0x1 pattern:$0x73625140] %v1396_v63 }
 0x440   :  { %v1443_v0 = vrot.slane %v1429_v47, %v5285_v28  ;;  %v1444_v49 = vcombine.high %v1436_v7, %v1436_v7  ;;  %v1452_v43 = vrot.slane %v1436_v7, %v5285_v28  ;;  %3784 = vst.sshfl [vmem:[#allocation13 + $0x41] sm:$0x1 pattern:$0x73625140] %v1436_v7  ;;  %1552 = vmatmul.mubr.bf16.vlgmr.msra.gmra.mxu0 %v1518_v31  ;;  %v5530_v57 = vld [vmem:[#allocation11 + $0x10] sm:$0xff]   ;;  %v5540_v63 = vld [vmem:[#allocation11 + $0x8] sm:$0xff]  }
 0x441   :  { %1595 = vmatmul.mubr.bf16.vlgmr.msra.gmra.mxu1 %v1518_v31  ;;  %v1428_v53 = vcombine.high %v1424_v3, %v1424_v3  ;;  %1497 = vst [vmem:[#allocation13 + $0x19] sm:$0x1] %v1427_v50  ;;  %1500 = vst [vmem:[#allocation13 + $0x31] sm:$0x1] %v1426_v44  ;;  %4009 = vmatpush3.bf16.msra.mxu0 %v5486_v9  ;;  %v5534_v58 = vld [vmem:[#allocation10 + $0x40] ss:$16 sps:$4 sm:$0xff]  }
 0x442   :  { %4024 = vmatprep.mubr.msk.bf16.mxu0 %vm4733_vm3, %v6227_v10  ;;  %v1445_v35 = vcombine.high %v1443_v0, %v1443_v0  ;;  %v1459_v16 = vrot.slane %v1443_v0, %v5285_v28  ;;  %v1466_v42 = vrot.slane %v1444_v49, %v5285_v28  ;;  %v1474_v11 = vcombine.high %v1452_v43, %v1452_v43  ;;  %v5537_v61 = vld [vmem:[#allocation10 + $0x24] ss:$16 sps:$4 sm:$0xff]   ;;  %v5544_v40 = vld [vmem:[#allocation10 + $0x20] ss:$16 sps:$4 sm:$0xff]   ;;  %v6241_v31 = vld [vmem:[#allocation32_spill] sm:$0xff] }
 0x443   :  { %3785 = vst.sshfl [vmem:[#allocation13 + $0x49] sm:$0x1 pattern:$0x73625140] %v1444_v49  ;;  %4010 = vmatprep.subr.bf16.mxu0 %v6227_v10  ;;  %1501 = vst [vmem:[#allocation13 + $0x39] sm:$0x1] %v1428_v53  ;;  %1873 = vmatpush1.bf16.msra.mxu1 %v5322_v19 }
 0x444   :  { %3786 = vst.sshfl [vmem:[#allocation13 + $0x61] sm:$0x1 pattern:$0x73625140] %v1443_v0  ;;  %1904 = vmatprep.mubr.bf16.mxu1 %v6226_v15  ;;  %v1473_v6 = vrot.slane %v1445_v35, %v5285_v28  ;;  %v1475_v12 = vcombine.high %v1459_v16, %v1459_v16  ;;  %v1476_v54 = vcombine.high %v1466_v42, %v1466_v42  ;;  %1504 = vst [vmem:[#allocation13 + $0x51] sm:$0x1] %v1474_v11 }
 0x445   :  { %3787 = vst.sshfl [vmem:[#allocation13 + $0x69] sm:$0x1 pattern:$0x73625140] %v1445_v35  ;;  %1874 = vmatprep.subr.bf16.mxu1 %v5327_v29  ;;  %4011 = vmatpush3.bf16.msra.mxu0 %v5498_v22  ;;  %v5547_v41 = vld [vmem:[#allocation10 + $0x4] ss:$16 sps:$4 sm:$0xff]  }
 0x446   :  { %v1477_v23 = vcombine.high %v1473_v6, %v1473_v6  ;;  %1505 = vst [vmem:[#allocation13 + $0x59] sm:$0x1] %v1476_v54  ;;  %1508 = vst [vmem:[#allocation13 + $0x71] sm:$0x1] %v1475_v12  ;;  %4012 = vmatprep.subr.bf16.mxu0 %v6227_v10  ;;  %v5550_v45 = vld [vmem:[#allocation11] sm:$0xff]   ;;  %v6242_v49 = vld [vmem:[#allocation34_spill] sm:$0xff] }
 0x447   :  { %1875 = vmatpush1.bf16.msra.mxu1 %v5332_v32  ;;  %6238 = vst [vmem:[#allocation23_spill] sm:$0xff] %v5547_v41  ;;  %6239 = vst [vmem:[#allocation24_spill] sm:$0xff] %v5550_v45  ;;  %v5554_v47 = vld [vmem:[#allocation10] ss:$16 sps:$4 sm:$0xff]   ;;  %v6243_v16 = vld [vmem:[#allocation36_spill] sm:$0xff] }
 0x448   :  { %1509 = vst [vmem:[#allocation13 + $0x79] sm:$0x1] %v1477_v23  ;;  %1876 = vmatprep.subr.bf16.mxu1 %v5335_v36  ;;  %6240 = vst [vmem:[#allocation26_spill] sm:$0xff] %v5554_v47  ;;  %v6244_v54 = vld [vmem:[#allocation38_spill] sm:$0xff] }
 0x449   :  { %4013 = vmatpush3.bf16.msra.mxu0 %v5504_v8 }
 0x44a   :  { %4014 = vmatprep.subr.bf16.mxu0 %v6227_v10 }
 0x44b   :  { %1877 = vmatpush1.bf16.msra.mxu1 %v5340_v38 }
 0x44c   :  { %1878 = vmatprep.subr.bf16.mxu1 %v5343_v56 }
 0x44d   :  { %4015 = vmatpush3.bf16.msra.mxu0 %v5510_v21 }
 0x44e   :  { %4016 = vmatprep.subr.bf16.mxu0 %v6227_v10 }
 0x44f   :  { %1879 = vmatpush1.bf16.msra.mxu1 %v5514_v25 }
 0x450   :  { %1880 = vmatprep.subr.bf16.mxu1 %v5517_v26 }
 0x451   :  { %4017 = vmatpush3.bf16.msra.mxu0 %v5520_v30 }
 0x452   :  { %4018 = vmatprep.subr.bf16.mxu0 %v6227_v10 }
 0x453   :  { %1881 = vmatpush1.bf16.msra.mxu1 %v5524_v34 }
 0x454   :  { %1882 = vmatprep.subr.bf16.mxu1 %v5527_v37 }
 0x455   :  { %4019 = vmatpush3.bf16.msra.mxu0 %v5530_v57 }
 0x456   :  { %4020 = vmatprep.subr.bf16.mxu0 %v6227_v10 }
 0x457   :  { %1883 = vmatpush1.bf16.msra.mxu1 %v5534_v58 }
 0x458   :  { %1884 = vmatprep.subr.bf16.mxu1 %v5537_v61 }
 0x459   :  { %4021 = vmatpush3.bf16.msra.mxu0 %v5540_v63 }
 0x45a   :  { %4022 = vmatprep.subr.bf16.mxu0 %v6227_v10 }
 0x45b   :  { %1885 = vmatpush1.bf16.msra.mxu1 %v5544_v40 }
 0x45c   :  { %1886 = vmatprep.subr.bf16.mxu1 %v5547_v41 }
 0x45d   :  { %4023 = vmatpush3.bf16.msra.mxu0 %v5550_v45  ;;  %v6246_v45 = vld [vmem:[#allocation33_spill] sm:$0xff] }
 0x45e   :  { %1915 = vmatprep.subr.bf16.mxu0 %v5363_v20 }
 0x45f   :  { %1887 = vmatpush1.bf16.msra.mxu1 %v5554_v47 }
 0x460   :  { %4028 = vmatprep.subr.bf16.mxu1 %v6227_v10 }
 0x500   :  { %v1553_v7 = vpop.f32.mrf.mxu0 }
 0x501   :  { %v1605_v3 = vadd.f32 %v1553_v7, %v6241_v31  ;;  %v1596_v0 = vpop.f32.mrf.mxu1  ;;  %v6245_v7 = vld [vmem:[#allocation35_spill] sm:$0xff] }
 0x502   :  { %v1555_v44 = vpop.f32.mrf.mxu0 }
 0x503   :  { %v3788_v50 = vmul.f32 -1.442695, %v1605_v3  ;;  %v1606_v43 = vadd.f32 %v1555_v44, %v6242_v49  ;;  %v1598_v6 = vpop.f32.mrf.mxu1  ;;  %v1607_v44 = vadd.f32 %v1596_v0, %v6246_v45 }
 0x504   :  { %v1557_v53 = vpop.f32.mrf.mxu0  ;;  %v1608_v31 = vadd.f32 %v1598_v6, %v6245_v7 }
 0x505   :  { %4284 = vpow2.f32 %v3788_v50  ;;  %v3790_v35 = vmul.f32 -1.442695, %v1606_v43  ;;  %v1609_v42 = vadd.f32 %v1557_v53, %v6243_v16  ;;  %v1600_v20 = vpop.f32.mrf.mxu1  ;;  %v6247_v43 = vld [vmem:[#allocation39_spill] sm:$0xff] }
 0x506   :  { %v1559_v11 = vpop.f32.mrf.mxu0  ;;  %v3792_v50 = vmul.f32 -1.442695, %v1608_v31 }
 0x507   :  { %4286 = vpow2.f32 %v3790_v35  ;;  %v3789_v12 = vmul.f32 -1.442695, %v1609_v42  ;;  %v1610_v23 = vadd.f32 %v1559_v11, %v6244_v54  ;;  %v1602_v3 = vpop.f32.mrf.mxu1  ;;  %v6248_v35 = vld [vmem:[#allocation37_spill] sm:$0xff] }
 0x508   :  { %v1612_v41 = vadd.f32 %v1602_v3, %v6247_v43  ;;  %v1611_v42 = vadd.f32 %v1600_v20, %v6248_v35  ;;  %v1719_v35 = vpop.permute.xlu0 %1718 }
 0x509   :  { %4288 = vpow2.f32 %v3789_v12  ;;  %v3791_v47 = vmul.f32 -1.442695, %v1610_v23  ;;  %vm1723_vm7 = vcmp.eq.s32.totalorder %v1719_v35, 1 }
 0x50a   :  { %v3793_v54 = vmul.f32 -1.442695, %v1612_v41 }
 0x50b   :  { %4290 = vpow2.f32 %v3791_v47 }
 0x50c   :  { %4292 = vtanh.f32 %v1607_v44 }
 0x512   :  { %v4285_v49 = vpop.eup %4284 }
 0x513   :  { %v1619_v53 = vadd.f32 1.0, %v4285_v49 }
 0x514   :  { %v4287_v16 = vpop.eup %4286 }
 0x515   :  { %4294 = vrcp.f32 %v1619_v53  ;;  %v1631_v11 = vadd.f32 1.0, %v4287_v16 }
 0x516   :  { %v4289_v12 = vpop.eup %4288  ;;  %4296 = vpow2.f32 %v3792_v50 }
 0x517   :  { %4298 = vrcp.f32 %v1631_v11  ;;  %v1620_v47 = vadd.f32 1.0, %v4289_v12 }
 0x518   :  { %v4291_v6 = vpop.eup %4290  ;;  %4300 = vtanh.f32 %v1611_v42 }
 0x519   :  { %4302 = vrcp.f32 %v1620_v47  ;;  %v1632_v45 = vadd.f32 1.0, %v4291_v6  ;;  %v4293_v0 = vpop.eup %4292  ;;  %v1722_v6 = vpop.permute.xlu1 %1721 }
 0x51a   :  { %4304 = vpow2.f32 %v3793_v54  ;;  %vm1724_vm8 = vcmp.eq.s32.totalorder %v1722_v6, 1 }
 0x51b   :  { %4306 = vrcp.f32 %v1632_v45 }
 0x522   :  { %v4295_v23 = vpop.eup %4294 }
 0x523   :  { %v4297_v7 = vpop.eup %4296  ;;  %v1651_v31 = vmul.f32 %v4295_v23, %v4293_v0 }
 0x524   :  { %v4299_v3 = vpop.eup %4298  ;;  %v1645_v43 = vadd.f32 1.0, %v4297_v7 }
 0x525   :  { %v4301_v44 = vpop.eup %4300  ;;  %v1653_v20 = vmul.f32 %v4299_v3, %v5405_v27 }
 0x526   :  { %v4303_v49 = vpop.eup %4302  ;;  %4308 = vrcp.f32 %v1645_v43 }
 0x527   :  { %v4305_v50 = vpop.eup %4304  ;;  %v1655_v41 = vadd.f32 %v1653_v20, %v1651_v31  ;;  %v1652_v53 = vmul.f32 %v4303_v49, %v4301_v44 }
 0x528   :  { %v4307_v16 = vpop.eup %4306  ;;  %v1646_v12 = vadd.f32 1.0, %v4305_v50 }
 0x529   :  { %v3794_v42 = vclamps-f32 %v1655_v41, 3.0  ;;  %v1654_v11 = vmul.f32 %v4307_v16, %v5410_v48 }
 0x52b   :  { %v1656_v54 = vadd.f32 %v1654_v11, %v1652_v53  ;;  %4310 = vtanh.f32 %v3794_v42  ;;  %v5570_v47 = vsel %vm1723_vm7, %v3794_v42, %v5405_v27 }
 0x52c   :  { %4312 = vrcp.f32 %v1646_v12 }
 0x52d   :  { %v3795_v45 = vclamps-f32 %v1656_v54, 3.0 }
 0x52f   :  { %4314 = vtanh.f32 %v3795_v45  ;;  %v5574_v0 = vsel %vm1724_vm8, %v3795_v45, %v5410_v48 }
 0x533   :  { %v4309_v23 = vpop.eup %4308 }
 0x538   :  { %v4311_v7 = vpop.eup %4310 }
 0x539   :  { %v1663_v31 = vmul.f32 %v4311_v7, %v4309_v23  ;;  %v4313_v3 = vpop.eup %4312 }
 0x53c   :  { %v4315_v44 = vpop.eup %4314 }
 0x53d   :  { %v1664_v20 = vmul.f32 %v4315_v44, %v4313_v3 }
 0x53f   :  { %v1665_v49 = vpack.c.bf16 %v1664_v20, %v1663_v31 }
 0x541   :  { %4025 = vmatmul.mubr.bf16.vlgmr.msra.gmra.mxu0 %v1665_v49 }
 0x542   :  { %1916 = vmatpush1.bf16.msra.mxu0 %v5412_v33  ;;  %1947 = vmatprep.mubr.bf16.mxu0 %v6226_v15 }
 0x543   :  { %1917 = vmatprep.subr.bf16.mxu0 %v5416_v13 }
 0x546   :  { %1918 = vmatpush1.bf16.msra.mxu0 %v5419_v55 }
 0x547   :  { %1919 = vmatprep.subr.bf16.mxu0 %v5422_v51 }
 0x54a   :  { %1920 = vmatpush1.bf16.msra.mxu0 %v5425_v17 }
 0x54b   :  { %1921 = vmatprep.subr.bf16.mxu0 %v5428_v52 }
 0x54e   :  { %1922 = vmatpush1.bf16.msra.mxu0 %v5431_v39 }
 0x54f   :  { %1923 = vmatprep.subr.bf16.mxu0 %v5434_v62 }
 0x552   :  { %1924 = vmatpush1.bf16.msra.mxu0 %v5437_v46 }
 0x553   :  { %1925 = vmatprep.subr.bf16.mxu0 %v5440_v5 }
 0x556   :  { %1926 = vmatpush1.bf16.msra.mxu0 %v5443_v1 }
 0x557   :  { %1927 = vmatprep.subr.bf16.mxu0 %v5446_v2 }
 0x55a   :  { %1928 = vmatpush1.bf16.msra.mxu0 %v5449_v4 }
 0x55b   :  { %1929 = vmatprep.subr.bf16.mxu0 %v5452_v24 }
 0x55e   :  { %1930 = vmatpush1.bf16.msra.mxu0 %v5455_v14 }
 0x55f   :  { %2225 = vmatprep.subr.bf16.mxu0 %v5458_v18 }
 0x601   :  { %v1700_v27 = vpop.f32.mrf.mxu0 }
 0x602   :  { %v3796_v48 = vclamps-f32 %v1700_v27, 3.0 }
 0x603   :  { %v4026_v43 = vpop.f32.mrf.mxu0 }
 0x604   :  { %v1729_v50 = vsel %vm1723_vm7, %v3796_v48, 0.0  ;;  %v5599_v23 = vsel %vm1723_vm7, %v3796_v48, %v5469_v59 }
 0x605   :  { %v1733_v41 = vcombine.high %v1729_v50, %v1729_v50  ;;  %v1740_v53 = vrot.slane %v1729_v50, %v5285_v28  ;;  %v1703_v16 = vpop.f32.mrf.mxu0 }
 0x606   :  { %v3797_v42 = vclamps-f32 %v1703_v16, 3.0 }
 0x607   :  { %v1747_v11 = vrot.slane %v1733_v41, %v5285_v28  ;;  %v1748_v12 = vcombine.high %v1740_v53, %v1740_v53  ;;  %v1756_v54 = vrot.slane %v1740_v53, %v5285_v28  ;;  %3798 = vst.sshfl [vmem:[#allocation13 + $0x2] sm:$0x1 pattern:$0x73625140] %v1740_v53  ;;  %v4027_v45 = vpop.f32.mrf.mxu0 }
 0x608   :  { %v5603_v7 = vsel %vm1724_vm8, %v3797_v42, %v5474_v60  ;;  %v1730_v31 = vsel %vm1724_vm8, %v3797_v42, 0.0 }
 0x609   :  { %v1749_v3 = vcombine.high %v1747_v11, %v1747_v11  ;;  %v1763_v44 = vrot.slane %v1747_v11, %v5285_v28  ;;  %v1770_v20 = vrot.slane %v1748_v12, %v5285_v28  ;;  %v1778_v49 = vcombine.high %v1756_v54, %v1756_v54  ;;  %3799 = vst.sshfl [vmem:[#allocation13 + $0xa] sm:$0x1 pattern:$0x73625140] %v1748_v12 }
 0x60a   :  { %3800 = vst.sshfl [vmem:[#allocation13 + $0x22] sm:$0x1 pattern:$0x73625140] %v1747_v11  ;;  %v1782_v27 = vcombine.high %v1730_v31, %v1730_v31  ;;  %v1789_v43 = vrot.slane %v1730_v31, %v5285_v28  ;;  %v1871_v59 = vpack.c.bf16 %v5603_v7, %v5599_v23 }
 0x60b   :  { %v1777_v35 = vrot.slane %v1749_v3, %v5285_v28  ;;  %v1779_v60 = vcombine.high %v1763_v44, %v1763_v44  ;;  %v1780_v48 = vcombine.high %v1770_v20, %v1770_v20  ;;  %1849 = vst [vmem:[#allocation13 + $0x12] sm:$0x1] %v1778_v49  ;;  %3801 = vst.sshfl [vmem:[#allocation13 + $0x2a] sm:$0x1 pattern:$0x73625140] %v1749_v3 }
 0x60c   :  { %v1796_v6 = vrot.slane %v1782_v27, %v5285_v28  ;;  %v1797_v50 = vcombine.high %v1789_v43, %v1789_v43  ;;  %v1805_v41 = vrot.slane %v1789_v43, %v5285_v28  ;;  %3802 = vst.sshfl [vmem:[#allocation13 + $0x42] sm:$0x1 pattern:$0x73625140] %v1789_v43  ;;  %1905 = vmatmul.mubr.bf16.vlgmr.msra.gmra.mxu1 %v1871_v59  ;;  %v6254_v43 = vld [vmem:[#allocation42_spill] sm:$0xff] }
 0x60d   :  { %1948 = vmatmul.mubr.bf16.vlgmr.msra.gmra.mxu0 %v1871_v59  ;;  %v1781_v53 = vcombine.high %v1777_v35, %v1777_v35  ;;  %1850 = vst [vmem:[#allocation13 + $0x1a] sm:$0x1] %v1780_v48  ;;  %1853 = vst [vmem:[#allocation13 + $0x32] sm:$0x1] %v1779_v60  ;;  %4029 = vmatpush3.bf16.msra.mxu1 %v5486_v9  ;;  %v6255_v48 = vld [vmem:[#allocation44_spill] sm:$0xff] }
 0x60e   :  { %4044 = vmatprep.mubr.msk.bf16.mxu1 %vm4733_vm3, %v6227_v10  ;;  %v1798_v16 = vcombine.high %v1796_v6, %v1796_v6  ;;  %v1812_v42 = vrot.slane %v1796_v6, %v5285_v28  ;;  %v1819_v11 = vrot.slane %v1797_v50, %v5285_v28  ;;  %v1827_v12 = vcombine.high %v1805_v41, %v1805_v41 }
 0x60f   :  { %3803 = vst.sshfl [vmem:[#allocation13 + $0x4a] sm:$0x1 pattern:$0x73625140] %v1797_v50  ;;  %4030 = vmatprep.subr.bf16.mxu1 %v6227_v10  ;;  %1854 = vst [vmem:[#allocation13 + $0x3a] sm:$0x1] %v1781_v53  ;;  %2226 = vmatpush1.bf16.msra.mxu0 %v5322_v19 }
 0x610   :  { %3804 = vst.sshfl [vmem:[#allocation13 + $0x62] sm:$0x1 pattern:$0x73625140] %v1796_v6  ;;  %2257 = vmatprep.mubr.bf16.mxu0 %v6226_v15  ;;  %v1826_v54 = vrot.slane %v1798_v16, %v5285_v28  ;;  %v1828_v45 = vcombine.high %v1812_v42, %v1812_v42  ;;  %v1829_v31 = vcombine.high %v1819_v11, %v1819_v11  ;;  %1857 = vst [vmem:[#allocation13 + $0x52] sm:$0x1] %v1827_v12 }
 0x611   :  { %3805 = vst.sshfl [vmem:[#allocation13 + $0x6a] sm:$0x1 pattern:$0x73625140] %v1798_v16  ;;  %2227 = vmatprep.subr.bf16.mxu0 %v5327_v29  ;;  %4031 = vmatpush3.bf16.msra.mxu1 %v5498_v22  ;;  %v6249_v19 = vld [vmem:[#allocation23_spill] sm:$0xff]  ;;  %v6250_v29 = vld [vmem:[#allocation24_spill] sm:$0xff] }
 0x612   :  { %v1830_v3 = vcombine.high %v1826_v54, %v1826_v54  ;;  %1858 = vst [vmem:[#allocation13 + $0x5a] sm:$0x1] %v1829_v31  ;;  %1861 = vst [vmem:[#allocation13 + $0x72] sm:$0x1] %v1828_v45  ;;  %4032 = vmatprep.subr.bf16.mxu1 %v6227_v10  ;;  %v6256_v16 = vld [vmem:[#allocation46_spill] sm:$0xff]  ;;  %v6257_v54 = vld [vmem:[#allocation43_spill] sm:$0xff] }
 0x613   :  { %2228 = vmatpush1.bf16.msra.mxu0 %v5332_v32  ;;  %v6251_v32 = vld [vmem:[#allocation80_spill] sm:$0xff] }
 0x614   :  { %1862 = vst [vmem:[#allocation13 + $0x7a] sm:$0x1] %v1830_v3  ;;  %2229 = vmatprep.subr.bf16.mxu0 %v5335_v36  ;;  %v6252_v36 = vld [vmem:[#allocation26_spill] sm:$0xff]  ;;  %v6258_v3 = vld [vmem:[#allocation41_spill] sm:$0xff] }
 0x615   :  { %4033 = vmatpush3.bf16.msra.mxu1 %v5504_v8 }
 0x616   :  { %4034 = vmatprep.subr.bf16.mxu1 %v6227_v10 }
 0x617   :  { %2230 = vmatpush1.bf16.msra.mxu0 %v5340_v38 }
 0x618   :  { %2231 = vmatprep.subr.bf16.mxu0 %v5343_v56  ;;  %v6253_v56 = vld [vmem:[#allocation40_spill] sm:$0xff] }
 0x619   :  { %4035 = vmatpush3.bf16.msra.mxu1 %v5510_v21 }
 0x61a   :  { %4036 = vmatprep.subr.bf16.mxu1 %v6227_v10 }
 0x61b   :  { %2232 = vmatpush1.bf16.msra.mxu0 %v5514_v25 }
 0x61c   :  { %2233 = vmatprep.subr.bf16.mxu0 %v5517_v26 }
 0x61d   :  { %4037 = vmatpush3.bf16.msra.mxu1 %v5520_v30 }
 0x61e   :  { %4038 = vmatprep.subr.bf16.mxu1 %v6227_v10 }
 0x61f   :  { %2234 = vmatpush1.bf16.msra.mxu0 %v5524_v34 }
 0x620   :  { %2235 = vmatprep.subr.bf16.mxu0 %v5527_v37 }
 0x621   :  { %4039 = vmatpush3.bf16.msra.mxu1 %v5530_v57 }
 0x622   :  { %4040 = vmatprep.subr.bf16.mxu1 %v6227_v10 }
 0x623   :  { %2236 = vmatpush1.bf16.msra.mxu0 %v5534_v58 }
 0x624   :  { %2237 = vmatprep.subr.bf16.mxu0 %v5537_v61 }
 0x625   :  { %4041 = vmatpush3.bf16.msra.mxu1 %v5540_v63 }
 0x626   :  { %4042 = vmatprep.subr.bf16.mxu1 %v6227_v10 }
 0x627   :  { %2238 = vmatpush1.bf16.msra.mxu0 %v5544_v40 }
 0x628   :  { %2239 = vmatprep.subr.bf16.mxu0 %v6249_v19 }
 0x629   :  { %4043 = vmatpush3.bf16.msra.mxu1 %v6250_v29 }
 0x62a   :  { %2268 = vmatprep.subr.bf16.mxu1 %v6251_v32 }
 0x62b   :  { %2240 = vmatpush1.bf16.msra.mxu0 %v6252_v36 }
 0x62c   :  { %4048 = vmatprep.subr.bf16.mxu0 %v6227_v10 }
 0x6cc   :  { %v1906_v38 = vpop.f32.mrf.mxu1 }
 0x6cd   :  { %v1958_v44 = vadd.f32 %v1906_v38, %v6253_v56  ;;  %v1949_v27 = vpop.f32.mrf.mxu0 }
 0x6ce   :  { %v1908_v20 = vpop.f32.mrf.mxu1  ;;  %v1960_v32 = vadd.f32 %v1949_v27, %v6258_v3 }
 0x6cf   :  { %v3806_v49 = vmul.f32 -1.442695, %v1958_v44  ;;  %v1959_v59 = vadd.f32 %v1908_v20, %v6254_v43  ;;  %v1951_v41 = vpop.f32.mrf.mxu0  ;;  %v6259_v44 = vld [vmem:[#allocation47_spill] sm:$0xff] }
 0x6d0   :  { %v1910_v35 = vpop.f32.mrf.mxu1  ;;  %v1961_v45 = vadd.f32 %v1951_v41, %v6257_v54 }
 0x6d1   :  { %4316 = vpow2.f32 %v3806_v49  ;;  %v3808_v60 = vmul.f32 -1.442695, %v1959_v59  ;;  %v1962_v6 = vadd.f32 %v1910_v35, %v6255_v48  ;;  %v1953_v12 = vpop.f32.mrf.mxu0  ;;  %v6260_v59 = vld [vmem:[#allocation45_spill] sm:$0xff] }
 0x6d2   :  { %v1912_v50 = vpop.f32.mrf.mxu1  ;;  %v3810_v56 = vmul.f32 -1.442695, %v1961_v45  ;;  %v1964_v35 = vadd.f32 %v1953_v12, %v6260_v59 }
 0x6d3   :  { %4318 = vpow2.f32 %v3808_v60  ;;  %v3807_v53 = vmul.f32 -1.442695, %v1962_v6  ;;  %v1963_v42 = vadd.f32 %v1912_v50, %v6256_v16  ;;  %v1955_v31 = vpop.f32.mrf.mxu0 }
 0x6d4   :  { %v1965_v20 = vadd.f32 %v1955_v31, %v6259_v44 }
 0x6d5   :  { %4320 = vpow2.f32 %v3807_v53  ;;  %v3809_v11 = vmul.f32 -1.442695, %v1963_v42 }
 0x6d6   :  { %v3811_v6 = vmul.f32 -1.442695, %v1965_v20  ;;  %v2072_v20 = vpop.permute.xlu0 %2071 }
 0x6d7   :  { %4322 = vpow2.f32 %v3809_v11  ;;  %vm2076_vm9 = vcmp.eq.s32.totalorder %v2072_v20, 1 }
 0x6d8   :  { %4324 = vtanh.f32 %v1960_v32 }
 0x6de   :  { %v4317_v38 = vpop.eup %4316 }
 0x6df   :  { %v1972_v49 = vadd.f32 1.0, %v4317_v38 }
 0x6e0   :  { %v4319_v43 = vpop.eup %4318 }
 0x6e1   :  { %4326 = vrcp.f32 %v1972_v49  ;;  %v1984_v60 = vadd.f32 1.0, %v4319_v43 }
 0x6e2   :  { %v4321_v48 = vpop.eup %4320  ;;  %4328 = vpow2.f32 %v3810_v56 }
 0x6e3   :  { %4330 = vrcp.f32 %v1984_v60  ;;  %v1973_v50 = vadd.f32 1.0, %v4321_v48  ;;  %v2075_v48 = vpop.permute.xlu1 %2074 }
 0x6e4   :  { %v4323_v41 = vpop.eup %4322  ;;  %4332 = vtanh.f32 %v1964_v35  ;;  %vm2077_vm10 = vcmp.eq.s32.totalorder %v2075_v48, 1  ;;  %v5714_v48 = vld [vmem:[#allocation10 + $0xe0] ss:$16 sps:$4 sm:$0xff]  }
 0x6e5   :  { %4334 = vrcp.f32 %v1973_v50  ;;  %v1985_v27 = vadd.f32 1.0, %v4323_v41  ;;  %v4325_v53 = vpop.eup %4324 }
 0x6e6   :  { %4336 = vpow2.f32 %v3811_v6 }
 0x6e7   :  { %4338 = vrcp.f32 %v1985_v27 }
 0x6ee   :  { %v4327_v16 = vpop.eup %4326 }
 0x6ef   :  { %v4329_v42 = vpop.eup %4328  ;;  %v2004_v11 = vmul.f32 %v4327_v16, %v4325_v53 }
 0x6f0   :  { %v4331_v54 = vpop.eup %4330  ;;  %v1998_v3 = vadd.f32 1.0, %v4329_v42 }
 0x6f1   :  { %v4333_v45 = vpop.eup %4332  ;;  %v2006_v12 = vmul.f32 %v4331_v54, %v5570_v47 }
 0x6f2   :  { %v4335_v31 = vpop.eup %4334  ;;  %4340 = vrcp.f32 %v1998_v3 }
 0x6f3   :  { %v4337_v32 = vpop.eup %4336  ;;  %v2008_v38 = vadd.f32 %v2006_v12, %v2004_v11  ;;  %v2005_v56 = vmul.f32 %v4335_v31, %v4333_v45 }
 0x6f4   :  { %v4339_v44 = vpop.eup %4338  ;;  %v1999_v59 = vadd.f32 1.0, %v4337_v32 }
 0x6f5   :  { %v3812_v49 = vclamps-f32 %v2008_v38, 3.0  ;;  %v2007_v43 = vmul.f32 %v4339_v44, %v5574_v0 }
 0x6f7   :  { %v2009_v35 = vadd.f32 %v2007_v43, %v2005_v56  ;;  %4342 = vtanh.f32 %v3812_v49  ;;  %v5664_v60 = vsel %vm2076_vm9, %v3812_v49, %v5570_v47 }
 0x6f8   :  { %4344 = vrcp.f32 %v1999_v59 }
 0x6f9   :  { %v3813_v6 = vclamps-f32 %v2009_v35, 3.0 }
 0x6fb   :  { %4346 = vtanh.f32 %v3813_v6  ;;  %v5668_v50 = vsel %vm2077_vm10, %v3813_v6, %v5574_v0 }
 0x6ff   :  { %v4341_v41 = vpop.eup %4340 }
 0x704   :  { %v4343_v27 = vpop.eup %4342 }
 0x705   :  { %v2016_v53 = vmul.f32 %v4343_v27, %v4341_v41  ;;  %v4345_v16 = vpop.eup %4344  ;;  %v5719_v27 = vld [vmem:[#allocation10 + $0xc4] ss:$16 sps:$4 sm:$0xff]  }
 0x708   :  { %v4347_v42 = vpop.eup %4346 }
 0x709   :  { %v2017_v11 = vmul.f32 %v4347_v42, %v4345_v16  ;;  %v5724_v16 = vld [vmem:[#allocation10 + $0xc0] ss:$16 sps:$4 sm:$0xff]   ;;  %v5727_v42 = vld [vmem:[#allocation10 + $0xa4] ss:$16 sps:$4 sm:$0xff]  }
 0x70b   :  { %v2018_v54 = vpack.c.bf16 %v2017_v11, %v2016_v53  ;;  %v5732_v11 = vld [vmem:[#allocation10 + $0xa0] ss:$16 sps:$4 sm:$0xff]  }
 0x70d   :  { %4045 = vmatmul.mubr.bf16.vlgmr.msra.gmra.mxu1 %v2018_v54 }
 0x70e   :  { %2269 = vmatpush1.bf16.msra.mxu1 %v5412_v33  ;;  %2300 = vmatprep.mubr.bf16.mxu1 %v6226_v15 }
 0x70f   :  { %2270 = vmatprep.subr.bf16.mxu1 %v5416_v13 }
 0x712   :  { %2271 = vmatpush1.bf16.msra.mxu1 %v5419_v55 }
 0x713   :  { %2272 = vmatprep.subr.bf16.mxu1 %v5422_v51 }
 0x716   :  { %2273 = vmatpush1.bf16.msra.mxu1 %v5425_v17 }
 0x717   :  { %2274 = vmatprep.subr.bf16.mxu1 %v5428_v52 }
 0x71a   :  { %2275 = vmatpush1.bf16.msra.mxu1 %v5431_v39 }
 0x71b   :  { %2276 = vmatprep.subr.bf16.mxu1 %v5434_v62 }
 0x71e   :  { %2277 = vmatpush1.bf16.msra.mxu1 %v5437_v46 }
 0x71f   :  { %2278 = vmatprep.subr.bf16.mxu1 %v5440_v5 }
 0x722   :  { %2279 = vmatpush1.bf16.msra.mxu1 %v5443_v1 }
 0x723   :  { %2280 = vmatprep.subr.bf16.mxu1 %v5446_v2 }
 0x726   :  { %2281 = vmatpush1.bf16.msra.mxu1 %v5449_v4 }
 0x727   :  { %2282 = vmatprep.subr.bf16.mxu1 %v5452_v24 }
 0x72a   :  { %2283 = vmatpush1.bf16.msra.mxu1 %v5455_v14 }
 0x72b   :  { %2578 = vmatprep.subr.bf16.mxu1 %v5458_v18 }
 0x7cd   :  { %v2053_v33 = vpop.f32.mrf.mxu1 }
 0x7ce   :  { %v3814_v13 = vclamps-f32 %v2053_v33, 3.0 }
 0x7cf   :  { %v4046_v55 = vpop.f32.mrf.mxu1 }
 0x7d0   :  { %v2082_v51 = vsel %vm2076_vm9, %v3814_v13, 0.0  ;;  %v5693_v4 = vsel %vm2076_vm9, %v3814_v13, %v5599_v23 }
 0x7d1   :  { %v2086_v17 = vcombine.high %v2082_v51, %v2082_v51  ;;  %v2093_v52 = vrot.slane %v2082_v51, %v5285_v28  ;;  %v2056_v39 = vpop.f32.mrf.mxu1 }
 0x7d2   :  { %v3815_v62 = vclamps-f32 %v2056_v39, 3.0 }
 0x7d3   :  { %v2100_v46 = vrot.slane %v2086_v17, %v5285_v28  ;;  %v2101_v5 = vcombine.high %v2093_v52, %v2093_v52  ;;  %v2109_v1 = vrot.slane %v2093_v52, %v5285_v28  ;;  %3816 = vst.sshfl [vmem:[#allocation13 + $0x3] sm:$0x1 pattern:$0x73625140] %v2093_v52  ;;  %v4047_v2 = vpop.f32.mrf.mxu1  ;;  %v6266_v17 = vld [vmem:[#allocation51_spill] sm:$0xff] }
 0x7d4   :  { %v5697_v24 = vsel %vm2077_vm10, %v3815_v62, %v5603_v7  ;;  %v2083_v14 = vsel %vm2077_vm10, %v3815_v62, 0.0  ;;  %v6267_v62 = vld [vmem:[#allocation49_spill] sm:$0xff]  ;;  %v6268_v2 = vld [vmem:[#allocation55_spill] sm:$0xff] }
 0x7d5   :  { %v2102_v18 = vcombine.high %v2100_v46, %v2100_v46  ;;  %v2116_v47 = vrot.slane %v2100_v46, %v5285_v28  ;;  %v2123_v0 = vrot.slane %v2101_v5, %v5285_v28  ;;  %v2131_v45 = vcombine.high %v2109_v1, %v2109_v1  ;;  %3817 = vst.sshfl [vmem:[#allocation13 + $0xb] sm:$0x1 pattern:$0x73625140] %v2101_v5 }
 0x7d6   :  { %3818 = vst.sshfl [vmem:[#allocation13 + $0x23] sm:$0x1 pattern:$0x73625140] %v2100_v46  ;;  %v2135_v12 = vcombine.high %v2083_v14, %v2083_v14  ;;  %v2142_v31 = vrot.slane %v2083_v14, %v5285_v28  ;;  %v2224_v23 = vpack.c.bf16 %v5697_v24, %v5693_v4 }
 0x7d7   :  { %v2130_v3 = vrot.slane %v2102_v18, %v5285_v28  ;;  %v2132_v7 = vcombine.high %v2116_v47, %v2116_v47  ;;  %v2133_v32 = vcombine.high %v2123_v0, %v2123_v0  ;;  %2202 = vst [vmem:[#allocation13 + $0x13] sm:$0x1] %v2131_v45  ;;  %3819 = vst.sshfl [vmem:[#allocation13 + $0x2b] sm:$0x1 pattern:$0x73625140] %v2102_v18 }
 0x7d8   :  { %v2149_v38 = vrot.slane %v2135_v12, %v5285_v28  ;;  %v2150_v56 = vcombine.high %v2142_v31, %v2142_v31  ;;  %v2158_v44 = vrot.slane %v2142_v31, %v5285_v28  ;;  %3820 = vst.sshfl [vmem:[#allocation13 + $0x43] sm:$0x1 pattern:$0x73625140] %v2142_v31  ;;  %2258 = vmatmul.mubr.bf16.vlgmr.msra.gmra.mxu0 %v2224_v23  ;;  %v6269_v0 = vld [vmem:[#allocation53_spill] sm:$0xff] }
 0x7d9   :  { %2301 = vmatmul.mubr.bf16.vlgmr.msra.gmra.mxu1 %v2224_v23  ;;  %v2134_v20 = vcombine.high %v2130_v3, %v2130_v3  ;;  %2203 = vst [vmem:[#allocation13 + $0x1b] sm:$0x1] %v2133_v32  ;;  %2206 = vst [vmem:[#allocation13 + $0x33] sm:$0x1] %v2132_v7  ;;  %4049 = vmatpush3.bf16.msra.mxu0 %v5486_v9 }
 0x7da   :  { %4064 = vmatprep.mubr.msk.bf16.mxu0 %vm4733_vm3, %v6227_v10  ;;  %v2151_v49 = vcombine.high %v2149_v38, %v2149_v38  ;;  %v2165_v43 = vrot.slane %v2149_v38, %v5285_v28  ;;  %v2172_v59 = vrot.slane %v2150_v56, %v5285_v28  ;;  %v2180_v35 = vcombine.high %v2158_v44, %v2158_v44 }
 0x7db   :  { %3821 = vst.sshfl [vmem:[#allocation13 + $0x4b] sm:$0x1 pattern:$0x73625140] %v2150_v56  ;;  %4050 = vmatprep.subr.bf16.mxu0 %v6227_v10  ;;  %2207 = vst [vmem:[#allocation13 + $0x3b] sm:$0x1] %v2134_v20  ;;  %2579 = vmatpush1.bf16.msra.mxu1 %v5714_v48 }
 0x7dc   :  { %3822 = vst.sshfl [vmem:[#allocation13 + $0x63] sm:$0x1 pattern:$0x73625140] %v2149_v38  ;;  %2610 = vmatprep.mubr.bf16.mxu1 %v6226_v15  ;;  %v2179_v9 = vrot.slane %v2151_v49, %v5285_v28  ;;  %v2181_v6 = vcombine.high %v2165_v43, %v2165_v43  ;;  %v2182_v41 = vcombine.high %v2172_v59, %v2172_v59  ;;  %2210 = vst [vmem:[#allocation13 + $0x53] sm:$0x1] %v2180_v35 }
 0x7dd   :  { %3823 = vst.sshfl [vmem:[#allocation13 + $0x6b] sm:$0x1 pattern:$0x73625140] %v2151_v49  ;;  %2580 = vmatprep.subr.bf16.mxu1 %v5719_v27  ;;  %4051 = vmatpush3.bf16.msra.mxu0 %v5498_v22  ;;  %v5735_v22 = vld [vmem:[#allocation10 + $0x84] ss:$16 sps:$4 sm:$0xff]  }
 0x7de   :  { %v2183_v53 = vcombine.high %v2179_v9, %v2179_v9  ;;  %2211 = vst [vmem:[#allocation13 + $0x5b] sm:$0x1] %v2182_v41  ;;  %2214 = vst [vmem:[#allocation13 + $0x73] sm:$0x1] %v2181_v6  ;;  %4052 = vmatprep.subr.bf16.mxu0 %v6227_v10 }
 0x7df   :  { %2581 = vmatpush1.bf16.msra.mxu1 %v5724_v16 }
 0x7e0   :  { %2215 = vst [vmem:[#allocation13 + $0x7b] sm:$0x1] %v2183_v53  ;;  %2582 = vmatprep.subr.bf16.mxu1 %v5727_v42 }
 0x7e1   :  { %4053 = vmatpush3.bf16.msra.mxu0 %v5504_v8  ;;  %v5755_v8 = vld [vmem:[#allocation10 + $0xec] ss:$16 sps:$4 sm:$0xff]  }
 0x7e2   :  { %4054 = vmatprep.subr.bf16.mxu0 %v6227_v10  ;;  %6261 = vst [vmem:[#allocation28_spill] sm:$0xff] %v5755_v8 }
 0x7e3   :  { %2583 = vmatpush1.bf16.msra.mxu1 %v5732_v11 }
 0x7e4   :  { %2584 = vmatprep.subr.bf16.mxu1 %v5735_v22 }
 0x7e5   :  { %4055 = vmatpush3.bf16.msra.mxu0 %v5510_v21 }
 0x7e6   :  { %4056 = vmatprep.subr.bf16.mxu0 %v6227_v10 }
 0x7e7   :  { %2585 = vmatpush1.bf16.msra.mxu1 %v5514_v25  ;;  %v6262_v25 = vld [vmem:[#allocation48_spill] sm:$0xff] }
 0x7e8   :  { %2586 = vmatprep.subr.bf16.mxu1 %v5517_v26 }
 0x7e9   :  { %4057 = vmatpush3.bf16.msra.mxu0 %v5520_v30 }
 0x7ea   :  { %4058 = vmatprep.subr.bf16.mxu0 %v6227_v10 }
 0x7eb   :  { %2587 = vmatpush1.bf16.msra.mxu1 %v5524_v34 }
 0x7ec   :  { %2588 = vmatprep.subr.bf16.mxu1 %v5527_v37 }
 0x7ed   :  { %4059 = vmatpush3.bf16.msra.mxu0 %v5530_v57  ;;  %v6263_v57 = vld [vmem:[#allocation50_spill] sm:$0xff] }
 0x7ee   :  { %4060 = vmatprep.subr.bf16.mxu0 %v6227_v10 }
 0x7ef   :  { %2589 = vmatpush1.bf16.msra.mxu1 %v5534_v58 }
 0x7f0   :  { %2590 = vmatprep.subr.bf16.mxu1 %v5537_v61 }
 0x7f1   :  { %4061 = vmatpush3.bf16.msra.mxu0 %v5540_v63 }
 0x7f2   :  { %4062 = vmatprep.subr.bf16.mxu0 %v6227_v10 }
 0x7f3   :  { %2591 = vmatpush1.bf16.msra.mxu1 %v5544_v40  ;;  %v6264_v40 = vld [vmem:[#allocation52_spill] sm:$0xff] }
 0x7f4   :  { %2592 = vmatprep.subr.bf16.mxu1 %v6249_v19 }
 0x7f5   :  { %4063 = vmatpush3.bf16.msra.mxu0 %v6250_v29 }
 0x7f6   :  { %2621 = vmatprep.subr.bf16.mxu0 %v5755_v8 }
 0x7f7   :  { %2593 = vmatpush1.bf16.msra.mxu1 %v6252_v36  ;;  %v6265_v36 = vld [vmem:[#allocation54_spill] sm:$0xff] }
 0x7f8   :  { %4068 = vmatprep.subr.bf16.mxu1 %v6227_v10 }
 0x898   :  { %v2259_v21 = vpop.f32.mrf.mxu0 }
 0x899   :  { %v2311_v26 = vadd.f32 %v2259_v21, %v6262_v25  ;;  %v2302_v37 = vpop.f32.mrf.mxu1  ;;  %v5769_v25 = vpop.permute.xlu0 %2424 }
 0x89a   :  { %v2261_v30 = vpop.f32.mrf.mxu0  ;;  %v2313_v46 = vadd.f32 %v2302_v37, %v6267_v62  ;;  %vm2429_vm11 = vcmp.eq.s32.totalorder %v5769_v25, 1  ;;  %v5808_v62 = vld [vmem:[#allocation10 + $0x6c] ss:$16 sps:$4 sm:$0xff]  }
 0x89b   :  { %v3824_v34 = vmul.f32 -1.442695, %v2311_v26  ;;  %v2312_v58 = vadd.f32 %v2261_v30, %v6263_v57  ;;  %v2304_v54 = vpop.f32.mrf.mxu1 }
 0x89c   :  { %v2263_v61 = vpop.f32.mrf.mxu0  ;;  %v2314_v52 = vadd.f32 %v2304_v54, %v6266_v17  ;;  %v5799_v17 = vld [vmem:[#allocation10 + $0xa8] ss:$16 sps:$4 sm:$0xff]  }
 0x89d   :  { %4348 = vpow2.f32 %v3824_v34  ;;  %v3826_v63 = vmul.f32 -1.442695, %v2312_v58  ;;  %v2315_v19 = vadd.f32 %v2263_v61, %v6264_v40  ;;  %v2306_v51 = vpop.f32.mrf.mxu1  ;;  %v5778_v58 = vpop.permute.xlu1 %2427 }
 0x89e   :  { %v2265_v29 = vpop.f32.mrf.mxu0  ;;  %v3828_v1 = vmul.f32 -1.442695, %v2314_v52  ;;  %v2317_v45 = vadd.f32 %v2306_v51, %v6269_v0  ;;  %vm2430_vm12 = vcmp.eq.s32.totalorder %v5778_v58, 1  ;;  %v5796_v51 = vld [vmem:[#allocation10 + $0xac] ss:$16 sps:$4 sm:$0xff]  }
 0x89f   :  { %4350 = vpow2.f32 %v3826_v63  ;;  %v3825_v33 = vmul.f32 -1.442695, %v2315_v19  ;;  %v2316_v13 = vadd.f32 %v2265_v29, %v6265_v36  ;;  %v2308_v39 = vpop.f32.mrf.mxu1  ;;  %v5802_v52 = vld [vmem:[#allocation10 + $0x8c] ss:$16 sps:$4 sm:$0xff]   ;;  %v5832_v0 = vld [vmem:[#allocation10 + $0xe4] ss:$16 sps:$4 sm:$0xff]  }
 0x8a0   :  { %v2318_v14 = vadd.f32 %v2308_v39, %v6268_v2  ;;  %v5805_v39 = vld [vmem:[#allocation10 + $0x88] ss:$16 sps:$4 sm:$0xff]   ;;  %v5820_v2 = vld [vmem:[#allocation10 + $0x2c] ss:$16 sps:$4 sm:$0xff]  }
 0x8a1   :  { %4352 = vpow2.f32 %v3825_v33  ;;  %v3827_v55 = vmul.f32 -1.442695, %v2316_v13  ;;  %v5786_v13 = vld [vmem:[#allocation10 + $0xe8] ss:$16 sps:$4 sm:$0xff]  }
 0x8a2   :  { %v3829_v23 = vmul.f32 -1.442695, %v2318_v14  ;;  %v5823_v14 = vld [vmem:[#allocation10 + $0x28] ss:$16 sps:$4 sm:$0xff]  }
 0x8a3   :  { %4354 = vpow2.f32 %v3827_v55  ;;  %v5790_v55 = vld [vmem:[#allocation10 + $0xcc] ss:$16 sps:$4 sm:$0xff]  }
 0x8a4   :  { %4356 = vtanh.f32 %v2313_v46  ;;  %v5811_v46 = vld [vmem:[#allocation10 + $0x68] ss:$16 sps:$4 sm:$0xff]  }
 0x8aa   :  { %v4349_v5 = vpop.eup %4348 }
 0x8ab   :  { %v2325_v18 = vadd.f32 1.0, %v4349_v5  ;;  %v5814_v5 = vld [vmem:[#allocation10 + $0x4c] ss:$16 sps:$4 sm:$0xff]  }
 0x8ac   :  { %v4351_v47 = vpop.eup %4350 }
 0x8ad   :  { %4358 = vrcp.f32 %v2325_v18  ;;  %v2337_v12 = vadd.f32 1.0, %v4351_v47  ;;  %v5826_v18 = vld [vmem:[#allocation10 + $0xc] ss:$16 sps:$4 sm:$0xff]   ;;  %v5829_v47 = vld [vmem:[#allocation10 + $0x8] ss:$16 sps:$4 sm:$0xff]  }
 0x8ae   :  { %v4353_v31 = vpop.eup %4352  ;;  %4360 = vpow2.f32 %v3828_v1  ;;  %v5817_v1 = vld [vmem:[#allocation10 + $0x48] ss:$16 sps:$4 sm:$0xff]  }
 0x8af   :  { %4362 = vrcp.f32 %v2337_v12  ;;  %v2326_v3 = vadd.f32 1.0, %v4353_v31 }
 0x8b0   :  { %v4355_v7 = vpop.eup %4354  ;;  %4364 = vtanh.f32 %v2317_v45 }
 0x8b1   :  { %4366 = vrcp.f32 %v2326_v3  ;;  %v2338_v32 = vadd.f32 1.0, %v4355_v7  ;;  %v4357_v38 = vpop.eup %4356 }
 0x8b2   :  { %4368 = vpow2.f32 %v3829_v23 }
 0x8b3   :  { %4370 = vrcp.f32 %v2338_v32 }
 0x8ba   :  { %v4359_v56 = vpop.eup %4358 }
 0x8bb   :  { %v4361_v44 = vpop.eup %4360  ;;  %v2357_v20 = vmul.f32 %v4359_v56, %v4357_v38 }
 0x8bc   :  { %v4363_v49 = vpop.eup %4362  ;;  %v2351_v9 = vadd.f32 1.0, %v4361_v44 }
 0x8bd   :  { %v4365_v43 = vpop.eup %4364  ;;  %v2359_v59 = vmul.f32 %v4363_v49, %v5664_v60 }
 0x8be   :  { %v4367_v35 = vpop.eup %4366  ;;  %4372 = vrcp.f32 %v2351_v9 }
 0x8bf   :  { %v4369_v6 = vpop.eup %4368  ;;  %v2361_v41 = vadd.f32 %v2359_v59, %v2357_v20  ;;  %v2358_v53 = vmul.f32 %v4367_v35, %v4365_v43 }
 0x8c0   :  { %v4371_v21 = vpop.eup %4370  ;;  %v2352_v34 = vadd.f32 1.0, %v4369_v6 }
 0x8c1   :  { %v3830_v26 = vclamps-f32 %v2361_v41, 3.0  ;;  %v2360_v30 = vmul.f32 %v4371_v21, %v5668_v50 }
 0x8c3   :  { %v2362_v37 = vadd.f32 %v2360_v30, %v2358_v53  ;;  %4374 = vtanh.f32 %v3830_v26  ;;  %v5776_v57 = vsel %vm2429_vm11, %v3830_v26, %v5664_v60 }
 0x8c4   :  { %4376 = vrcp.f32 %v2352_v34 }
 0x8c5   :  { %v3831_v61 = vclamps-f32 %v2362_v37, 3.0 }
 0x8c7   :  { %4378 = vtanh.f32 %v3831_v61  ;;  %v5784_v63 = vsel %vm2430_vm12, %v3831_v61, %v5668_v50  ;;  %v5793_v50 = vld [vmem:[#allocation10 + $0xc8] ss:$16 sps:$4 sm:$0xff]  }
 0x8cb   :  { %v4373_v40 = vpop.eup %4372 }
 0x8d0   :  { %v4375_v19 = vpop.eup %4374 }
 0x8d1   :  { %v2369_v29 = vmul.f32 %v4375_v19, %v4373_v40  ;;  %v4377_v54 = vpop.eup %4376  ;;  %v5860_v40 = vld [vmem:[#allocation11 + $0x38] sm:$0xff]  }
 0x8d4   :  { %v4379_v33 = vpop.eup %4378 }
 0x8d5   :  { %v2370_v36 = vmul.f32 %v4379_v33, %v4377_v54 }
 0x8d7   :  { %v2371_v60 = vpack.c.bf16 %v2370_v36, %v2369_v29 }
 0x8d9   :  { %4065 = vmatmul.mubr.bf16.vlgmr.msra.gmra.mxu0 %v2371_v60 }
 0x8da   :  { %2622 = vmatpush1.bf16.msra.mxu0 %v5786_v13  ;;  %2653 = vmatprep.mubr.bf16.mxu0 %v6226_v15 }
 0x8db   :  { %2623 = vmatprep.subr.bf16.mxu0 %v5790_v55 }
 0x8de   :  { %2624 = vmatpush1.bf16.msra.mxu0 %v5793_v50 }
 0x8df   :  { %2625 = vmatprep.subr.bf16.mxu0 %v5796_v51 }
 0x8e2   :  { %2626 = vmatpush1.bf16.msra.mxu0 %v5799_v17 }
 0x8e3   :  { %2627 = vmatprep.subr.bf16.mxu0 %v5802_v52 }
 0x8e6   :  { %2628 = vmatpush1.bf16.msra.mxu0 %v5805_v39 }
 0x8e7   :  { %2629 = vmatprep.subr.bf16.mxu0 %v5808_v62 }
 0x8ea   :  { %2630 = vmatpush1.bf16.msra.mxu0 %v5811_v46 }
 0x8eb   :  { %2631 = vmatprep.subr.bf16.mxu0 %v5814_v5 }
 0x8ee   :  { %2632 = vmatpush1.bf16.msra.mxu0 %v5817_v1 }
 0x8ef   :  { %2633 = vmatprep.subr.bf16.mxu0 %v5820_v2 }
 0x8f2   :  { %2634 = vmatpush1.bf16.msra.mxu0 %v5823_v14 }
 0x8f3   :  { %2635 = vmatprep.subr.bf16.mxu0 %v5826_v18 }
 0x8f6   :  { %2636 = vmatpush1.bf16.msra.mxu0 %v5829_v47 }
 0x8f7   :  { %2931 = vmatprep.subr.bf16.mxu0 %v5832_v0 }
 0x999   :  { %v2406_v45 = vpop.f32.mrf.mxu0 }
 0x99a   :  { %v3832_v12 = vclamps-f32 %v2406_v45, 3.0 }
 0x99b   :  { %v4066_v31 = vpop.f32.mrf.mxu0 }
 0x99c   :  { %v2435_v23 = vsel %vm2429_vm11, %v3832_v12, 0.0  ;;  %v5843_v43 = vsel %vm2429_vm11, %v3832_v12, %v5693_v4  ;;  %v5872_v12 = vld [vmem:[#allocation11 + $0x30] sm:$0xff]  }
 0x99d   :  { %v2439_v3 = vcombine.high %v2435_v23, %v2435_v23  ;;  %v2446_v7 = vrot.slane %v2435_v23, %v5285_v28  ;;  %v2409_v32 = vpop.f32.mrf.mxu0  ;;  %v5878_v23 = vld [vmem:[#allocation11 + $0x28] sm:$0xff]  }
 0x99e   :  { %v3833_v38 = vclamps-f32 %v2409_v32, 3.0  ;;  %v5891_v32 = vld [vmem:[#allocation10 + $0x64] ss:$16 sps:$4 sm:$0xff]  }
 0x99f   :  { %v2453_v56 = vrot.slane %v2439_v3, %v5285_v28  ;;  %v2454_v44 = vcombine.high %v2446_v7, %v2446_v7  ;;  %v2462_v20 = vrot.slane %v2446_v7, %v5285_v28  ;;  %3834 = vst.sshfl [vmem:[#allocation13 + $0x4] sm:$0x1 pattern:$0x73625140] %v2446_v7  ;;  %v4067_v49 = vpop.f32.mrf.mxu0  ;;  %v5884_v3 = vld [vmem:[#allocation11 + $0x20] sm:$0xff]  }
 0x9a0   :  { %v5848_v59 = vsel %vm2430_vm12, %v3833_v38, %v5697_v24  ;;  %v2436_v35 = vsel %vm2430_vm12, %v3833_v38, 0.0  ;;  %v5888_v7 = vld [vmem:[#allocation10 + $0x80] ss:$16 sps:$4 sm:$0xff]   ;;  %v5894_v38 = vld [vmem:[#allocation11 + $0x18] sm:$0xff]  }
 0x9a1   :  { %v2455_v9 = vcombine.high %v2453_v56, %v2453_v56  ;;  %v2469_v6 = vrot.slane %v2453_v56, %v5285_v28  ;;  %v2476_v41 = vrot.slane %v2454_v44, %v5285_v28  ;;  %v2484_v53 = vcombine.high %v2462_v20, %v2462_v20  ;;  %3835 = vst.sshfl [vmem:[#allocation13 + $0xc] sm:$0x1 pattern:$0x73625140] %v2454_v44  ;;  %v5901_v44 = vld [vmem:[#allocation10 + $0x44] ss:$16 sps:$4 sm:$0xff]  }
 0x9a2   :  { %3836 = vst.sshfl [vmem:[#allocation13 + $0x24] sm:$0x1 pattern:$0x73625140] %v2453_v56  ;;  %v2488_v21 = vcombine.high %v2436_v35, %v2436_v35  ;;  %v2495_v4 = vrot.slane %v2436_v35, %v5285_v28  ;;  %v2577_v25 = vpack.c.bf16 %v5848_v59, %v5843_v43  ;;  %v5898_v56 = vld [vmem:[#allocation10 + $0x60] ss:$16 sps:$4 sm:$0xff]  }
 0x9a3   :  { %v2483_v24 = vrot.slane %v2455_v9, %v5285_v28  ;;  %v2485_v26 = vcombine.high %v2469_v6, %v2469_v6  ;;  %v2486_v30 = vcombine.high %v2476_v41, %v2476_v41  ;;  %2555 = vst [vmem:[#allocation13 + $0x14] sm:$0x1] %v2484_v53  ;;  %3837 = vst.sshfl [vmem:[#allocation13 + $0x2c] sm:$0x1 pattern:$0x73625140] %v2455_v9 }
 0x9a4   :  { %v2502_v34 = vrot.slane %v2488_v21, %v5285_v28  ;;  %v2503_v37 = vcombine.high %v2495_v4, %v2495_v4  ;;  %v2511_v58 = vrot.slane %v2495_v4, %v5285_v28  ;;  %3838 = vst.sshfl [vmem:[#allocation13 + $0x44] sm:$0x1 pattern:$0x73625140] %v2495_v4  ;;  %2611 = vmatmul.mubr.bf16.vlgmr.msra.gmra.mxu1 %v2577_v25  ;;  %v5904_v20 = vld [vmem:[#allocation11 + $0x10] sm:$0xff]   ;;  %v5914_v9 = vld [vmem:[#allocation11 + $0x8] sm:$0xff]  }
 0x9a5   :  { %2654 = vmatmul.mubr.bf16.vlgmr.msra.gmra.mxu0 %v2577_v25  ;;  %v2487_v61 = vcombine.high %v2483_v24, %v2483_v24  ;;  %2556 = vst [vmem:[#allocation13 + $0x1c] sm:$0x1] %v2486_v30  ;;  %2559 = vst [vmem:[#allocation13 + $0x34] sm:$0x1] %v2485_v26  ;;  %4069 = vmatpush3.bf16.msra.mxu1 %v5860_v40  ;;  %v5908_v49 = vld [vmem:[#allocation10 + $0x40] ss:$16 sps:$4 sm:$0xff]  }
 0x9a6   :  { %4084 = vmatprep.mubr.msk.bf16.mxu1 %vm4733_vm3, %v6227_v10  ;;  %v2504_v19 = vcombine.high %v2502_v34, %v2502_v34  ;;  %v2518_v29 = vrot.slane %v2502_v34, %v5285_v28  ;;  %v2525_v54 = vrot.slane %v2503_v37, %v5285_v28  ;;  %v2533_v33 = vcombine.high %v2511_v58, %v2511_v58  ;;  %v5911_v35 = vld [vmem:[#allocation10 + $0x24] ss:$16 sps:$4 sm:$0xff]   ;;  %v5918_v6 = vld [vmem:[#allocation10 + $0x20] ss:$16 sps:$4 sm:$0xff]   ;;  %v6273_v25 = vld [vmem:[#allocation56_spill] sm:$0xff] }
 0x9a7   :  { %3839 = vst.sshfl [vmem:[#allocation13 + $0x4c] sm:$0x1 pattern:$0x73625140] %v2503_v37  ;;  %4070 = vmatprep.subr.bf16.mxu1 %v6227_v10  ;;  %2560 = vst [vmem:[#allocation13 + $0x3c] sm:$0x1] %v2487_v61  ;;  %2932 = vmatpush1.bf16.msra.mxu0 %v5714_v48 }
 0x9a8   :  { %3840 = vst.sshfl [vmem:[#allocation13 + $0x64] sm:$0x1 pattern:$0x73625140] %v2502_v34  ;;  %2963 = vmatprep.mubr.bf16.mxu0 %v6226_v15  ;;  %v2532_v36 = vrot.slane %v2504_v19, %v5285_v28  ;;  %v2534_v60 = vcombine.high %v2518_v29, %v2518_v29  ;;  %v2535_v45 = vcombine.high %v2525_v54, %v2525_v54  ;;  %2563 = vst [vmem:[#allocation13 + $0x54] sm:$0x1] %v2533_v33 }
 0x9a9   :  { %3841 = vst.sshfl [vmem:[#allocation13 + $0x6c] sm:$0x1 pattern:$0x73625140] %v2504_v19  ;;  %2933 = vmatprep.subr.bf16.mxu0 %v5719_v27  ;;  %4071 = vmatpush3.bf16.msra.mxu1 %v5872_v12  ;;  %v5921_v41 = vld [vmem:[#allocation10 + $0x4] ss:$16 sps:$4 sm:$0xff]  }
 0x9aa   :  { %v2536_v31 = vcombine.high %v2532_v36, %v2532_v36  ;;  %2564 = vst [vmem:[#allocation13 + $0x5c] sm:$0x1] %v2535_v45  ;;  %2567 = vst [vmem:[#allocation13 + $0x74] sm:$0x1] %v2534_v60  ;;  %4072 = vmatprep.subr.bf16.mxu1 %v6227_v10  ;;  %v5924_v53 = vld [vmem:[#allocation11] sm:$0xff]   ;;  %v6274_v37 = vld [vmem:[#allocation58_spill] sm:$0xff] }
 0x9ab   :  { %2934 = vmatpush1.bf16.msra.mxu0 %v5724_v16  ;;  %6270 = vst [vmem:[#allocation30_spill] sm:$0xff] %v5921_v41  ;;  %6271 = vst [vmem:[#allocation27_spill] sm:$0xff] %v5924_v53  ;;  %v5928_v21 = vld [vmem:[#allocation10] ss:$16 sps:$4 sm:$0xff]   ;;  %v6275_v29 = vld [vmem:[#allocation60_spill] sm:$0xff] }
 0x9ac   :  { %2568 = vst [vmem:[#allocation13 + $0x7c] sm:$0x1] %v2536_v31  ;;  %2935 = vmatprep.subr.bf16.mxu0 %v5727_v42  ;;  %6272 = vst [vmem:[#allocation25_spill] sm:$0xff] %v5928_v21  ;;  %v6276_v45 = vld [vmem:[#allocation62_spill] sm:$0xff] }
 0x9ad   :  { %4073 = vmatpush3.bf16.msra.mxu1 %v5878_v23 }
 0x9ae   :  { %4074 = vmatprep.subr.bf16.mxu1 %v6227_v10 }
 0x9af   :  { %2936 = vmatpush1.bf16.msra.mxu0 %v5732_v11 }
 0x9b0   :  { %2937 = vmatprep.subr.bf16.mxu0 %v5735_v22 }
 0x9b1   :  { %4075 = vmatpush3.bf16.msra.mxu1 %v5884_v3 }
 0x9b2   :  { %4076 = vmatprep.subr.bf16.mxu1 %v6227_v10 }
 0x9b3   :  { %2938 = vmatpush1.bf16.msra.mxu0 %v5888_v7 }
 0x9b4   :  { %2939 = vmatprep.subr.bf16.mxu0 %v5891_v32 }
 0x9b5   :  { %4077 = vmatpush3.bf16.msra.mxu1 %v5894_v38 }
 0x9b6   :  { %4078 = vmatprep.subr.bf16.mxu1 %v6227_v10 }
 0x9b7   :  { %2940 = vmatpush1.bf16.msra.mxu0 %v5898_v56 }
 0x9b8   :  { %2941 = vmatprep.subr.bf16.mxu0 %v5901_v44 }
 0x9b9   :  { %4079 = vmatpush3.bf16.msra.mxu1 %v5904_v20 }
 0x9ba   :  { %4080 = vmatprep.subr.bf16.mxu1 %v6227_v10 }
 0x9bb   :  { %2942 = vmatpush1.bf16.msra.mxu0 %v5908_v49 }
 0x9bc   :  { %2943 = vmatprep.subr.bf16.mxu0 %v5911_v35 }
 0x9bd   :  { %4081 = vmatpush3.bf16.msra.mxu1 %v5914_v9 }
 0x9be   :  { %4082 = vmatprep.subr.bf16.mxu1 %v6227_v10 }
 0x9bf   :  { %2944 = vmatpush1.bf16.msra.mxu0 %v5918_v6 }
 0x9c0   :  { %2945 = vmatprep.subr.bf16.mxu0 %v5921_v41 }
 0x9c1   :  { %4083 = vmatpush3.bf16.msra.mxu1 %v5924_v53  ;;  %v6278_v53 = vld [vmem:[#allocation57_spill] sm:$0xff] }
 0x9c2   :  { %2974 = vmatprep.subr.bf16.mxu1 %v5755_v8 }
 0x9c3   :  { %2946 = vmatpush1.bf16.msra.mxu0 %v5928_v21 }
 0x9c4   :  { %4088 = vmatprep.subr.bf16.mxu0 %v6227_v10 }
 0xa64   :  { %v2612_v4 = vpop.f32.mrf.mxu1 }
 0xa65   :  { %v2664_v24 = vadd.f32 %v2612_v4, %v6273_v25  ;;  %v2655_v34 = vpop.f32.mrf.mxu0  ;;  %v6277_v4 = vld [vmem:[#allocation59_spill] sm:$0xff] }
 0xa66   :  { %v2614_v26 = vpop.f32.mrf.mxu1 }
 0xa67   :  { %v3842_v30 = vmul.f32 -1.442695, %v2664_v24  ;;  %v2665_v58 = vadd.f32 %v2614_v26, %v6274_v37  ;;  %v2657_v36 = vpop.f32.mrf.mxu0  ;;  %v2666_v26 = vadd.f32 %v2655_v34, %v6278_v53 }
 0xa68   :  { %v2616_v61 = vpop.f32.mrf.mxu1  ;;  %v2667_v25 = vadd.f32 %v2657_v36, %v6277_v4 }
 0xa69   :  { %4380 = vpow2.f32 %v3842_v30  ;;  %v3844_v19 = vmul.f32 -1.442695, %v2665_v58  ;;  %v2668_v54 = vadd.f32 %v2616_v61, %v6275_v29  ;;  %v2659_v8 = vpop.f32.mrf.mxu0  ;;  %v6279_v58 = vld [vmem:[#allocation63_spill] sm:$0xff] }
 0xa6a   :  { %v2618_v33 = vpop.f32.mrf.mxu1  ;;  %v3846_v30 = vmul.f32 -1.442695, %v2667_v25 }
 0xa6b   :  { %4382 = vpow2.f32 %v3844_v19  ;;  %v3843_v60 = vmul.f32 -1.442695, %v2668_v54  ;;  %v2669_v31 = vadd.f32 %v2618_v33, %v6276_v45  ;;  %v2661_v24 = vpop.f32.mrf.mxu0  ;;  %v6280_v19 = vld [vmem:[#allocation61_spill] sm:$0xff] }
 0xa6c   :  { %v2671_v41 = vadd.f32 %v2661_v24, %v6279_v58  ;;  %v2670_v54 = vadd.f32 %v2659_v8, %v6280_v19  ;;  %v2778_v19 = vpop.permute.xlu0 %2777 }
 0xa6d   :  { %4384 = vpow2.f32 %v3843_v60  ;;  %v3845_v21 = vmul.f32 -1.442695, %v2669_v31  ;;  %vm2782_vm13 = vcmp.eq.s32.totalorder %v2778_v19, 1 }
 0xa6e   :  { %v3847_v45 = vmul.f32 -1.442695, %v2671_v41 }
 0xa6f   :  { %4386 = vpow2.f32 %v3845_v21 }
 0xa70   :  { %4388 = vtanh.f32 %v2666_v26 }
 0xa76   :  { %v4381_v37 = vpop.eup %4380 }
 0xa77   :  { %v2678_v61 = vadd.f32 1.0, %v4381_v37 }
 0xa78   :  { %v4383_v29 = vpop.eup %4382 }
 0xa79   :  { %4390 = vrcp.f32 %v2678_v61  ;;  %v2690_v33 = vadd.f32 1.0, %v4383_v29 }
 0xa7a   :  { %v4385_v60 = vpop.eup %4384  ;;  %4392 = vpow2.f32 %v3846_v30 }
 0xa7b   :  { %4394 = vrcp.f32 %v2690_v33  ;;  %v2679_v21 = vadd.f32 1.0, %v4385_v60 }
 0xa7c   :  { %v4387_v36 = vpop.eup %4386  ;;  %4396 = vtanh.f32 %v2670_v54 }
 0xa7d   :  { %4398 = vrcp.f32 %v2679_v21  ;;  %v2691_v53 = vadd.f32 1.0, %v4387_v36  ;;  %v4389_v34 = vpop.eup %4388  ;;  %v2781_v36 = vpop.permute.xlu1 %2780 }
 0xa7e   :  { %4400 = vpow2.f32 %v3847_v45  ;;  %vm2783_vm14 = vcmp.eq.s32.totalorder %v2781_v36, 1 }
 0xa7f   :  { %4402 = vrcp.f32 %v2691_v53 }
 0xa86   :  { %v4391_v31 = vpop.eup %4390 }
 0xa87   :  { %v4393_v4 = vpop.eup %4392  ;;  %v2710_v25 = vmul.f32 %v4391_v31, %v4389_v34 }
 0xa88   :  { %v4395_v24 = vpop.eup %4394  ;;  %v2704_v58 = vadd.f32 1.0, %v4393_v4 }
 0xa89   :  { %v4397_v26 = vpop.eup %4396  ;;  %v2712_v8 = vmul.f32 %v4395_v24, %v5776_v57 }
 0xa8a   :  { %v4399_v37 = vpop.eup %4398  ;;  %4404 = vrcp.f32 %v2704_v58 }
 0xa8b   :  { %v4401_v30 = vpop.eup %4400  ;;  %v2714_v41 = vadd.f32 %v2712_v8, %v2710_v25  ;;  %v2711_v61 = vmul.f32 %v4399_v37, %v4397_v26 }
 0xa8c   :  { %v4403_v29 = vpop.eup %4402  ;;  %v2705_v60 = vadd.f32 1.0, %v4401_v30 }
 0xa8d   :  { %v3848_v54 = vclamps-f32 %v2714_v41, 3.0  ;;  %v2713_v33 = vmul.f32 %v4403_v29, %v5784_v63 }
 0xa8f   :  { %v2715_v45 = vadd.f32 %v2713_v33, %v2711_v61  ;;  %4406 = vtanh.f32 %v3848_v54  ;;  %v5944_v21 = vsel %vm2782_vm13, %v3848_v54, %v5776_v57 }
 0xa90   :  { %4408 = vrcp.f32 %v2705_v60 }
 0xa91   :  { %v3849_v53 = vclamps-f32 %v2715_v45, 3.0 }
 0xa93   :  { %4410 = vtanh.f32 %v3849_v53  ;;  %v5948_v34 = vsel %vm2783_vm14, %v3849_v53, %v5784_v63 }
 0xa97   :  { %v4405_v31 = vpop.eup %4404 }
 0xa9c   :  { %v4407_v4 = vpop.eup %4406 }
 0xa9d   :  { %v2722_v25 = vmul.f32 %v4407_v4, %v4405_v31  ;;  %v4409_v24 = vpop.eup %4408 }
 0xaa0   :  { %v4411_v26 = vpop.eup %4410 }
 0xaa1   :  { %v2723_v8 = vmul.f32 %v4411_v26, %v4409_v24 }
 0xaa3   :  { %v2724_v37 = vpack.c.bf16 %v2723_v8, %v2722_v25 }
 0xaa5   :  { %4085 = vmatmul.mubr.bf16.vlgmr.msra.gmra.mxu1 %v2724_v37 }
 0xaa6   :  { %2975 = vmatpush1.bf16.msra.mxu1 %v5786_v13  ;;  %3006 = vmatprep.mubr.bf16.mxu1 %v6226_v15 }
 0xaa7   :  { %2976 = vmatprep.subr.bf16.mxu1 %v5790_v55 }
 0xaaa   :  { %2977 = vmatpush1.bf16.msra.mxu1 %v5793_v50 }
 0xaab   :  { %2978 = vmatprep.subr.bf16.mxu1 %v5796_v51 }
 0xaae   :  { %2979 = vmatpush1.bf16.msra.mxu1 %v5799_v17 }
 0xaaf   :  { %2980 = vmatprep.subr.bf16.mxu1 %v5802_v52 }
 0xab2   :  { %2981 = vmatpush1.bf16.msra.mxu1 %v5805_v39 }
 0xab3   :  { %2982 = vmatprep.subr.bf16.mxu1 %v5808_v62 }
 0xab6   :  { %2983 = vmatpush1.bf16.msra.mxu1 %v5811_v46 }
 0xab7   :  { %2984 = vmatprep.subr.bf16.mxu1 %v5814_v5 }
 0xaba   :  { %2985 = vmatpush1.bf16.msra.mxu1 %v5817_v1 }
 0xabb   :  { %2986 = vmatprep.subr.bf16.mxu1 %v5820_v2 }
 0xabe   :  { %2987 = vmatpush1.bf16.msra.mxu1 %v5823_v14 }
 0xabf   :  { %2988 = vmatprep.subr.bf16.mxu1 %v5826_v18 }
 0xac2   :  { %2989 = vmatpush1.bf16.msra.mxu1 %v5829_v47 }
 0xac3   :  { %3284 = vmatprep.subr.bf16.mxu1 %v5832_v0 }
 0xb65   :  { %v2759_v57 = vpop.f32.mrf.mxu1 }
 0xb66   :  { %v3850_v63 = vclamps-f32 %v2759_v57, 3.0 }
 0xb67   :  { %v4086_v58 = vpop.f32.mrf.mxu1 }
 0xb68   :  { %v2788_v30 = vsel %vm2782_vm13, %v3850_v63, 0.0  ;;  %v5973_v0 = vsel %vm2782_vm13, %v3850_v63, %v5843_v43 }
 0xb69   :  { %v2792_v41 = vcombine.high %v2788_v30, %v2788_v30  ;;  %v2799_v61 = vrot.slane %v2788_v30, %v5285_v28  ;;  %v2762_v29 = vpop.f32.mrf.mxu1 }
 0xb6a   :  { %v3851_v54 = vclamps-f32 %v2762_v29, 3.0 }
 0xb6b   :  { %v2806_v33 = vrot.slane %v2792_v41, %v5285_v28  ;;  %v2807_v60 = vcombine.high %v2799_v61, %v2799_v61  ;;  %v2815_v45 = vrot.slane %v2799_v61, %v5285_v28  ;;  %3852 = vst.sshfl [vmem:[#allocation13 + $0x5] sm:$0x1 pattern:$0x73625140] %v2799_v61  ;;  %v4087_v53 = vpop.f32.mrf.mxu1 }
 0xb6c   :  { %v5977_v31 = vsel %vm2783_vm14, %v3851_v54, %v5848_v59  ;;  %v2789_v4 = vsel %vm2783_vm14, %v3851_v54, 0.0 }
 0xb6d   :  { %v2808_v25 = vcombine.high %v2806_v33, %v2806_v33  ;;  %v2822_v24 = vrot.slane %v2806_v33, %v5285_v28  ;;  %v2829_v26 = vrot.slane %v2807_v60, %v5285_v28  ;;  %v2837_v8 = vcombine.high %v2815_v45, %v2815_v45  ;;  %3853 = vst.sshfl [vmem:[#allocation13 + $0xd] sm:$0x1 pattern:$0x73625140] %v2807_v60 }
 0xb6e   :  { %3854 = vst.sshfl [vmem:[#allocation13 + $0x25] sm:$0x1 pattern:$0x73625140] %v2806_v33  ;;  %v2841_v37 = vcombine.high %v2789_v4, %v2789_v4  ;;  %v2848_v57 = vrot.slane %v2789_v4, %v5285_v28  ;;  %v2930_v43 = vpack.c.bf16 %v5977_v31, %v5973_v0 }
 0xb6f   :  { %v2836_v19 = vrot.slane %v2808_v25, %v5285_v28  ;;  %v2838_v59 = vcombine.high %v2822_v24, %v2822_v24  ;;  %v2839_v63 = vcombine.high %v2829_v26, %v2829_v26  ;;  %2908 = vst [vmem:[#allocation13 + $0x15] sm:$0x1] %v2837_v8  ;;  %3855 = vst.sshfl [vmem:[#allocation13 + $0x2d] sm:$0x1 pattern:$0x73625140] %v2808_v25 }
 0xb70   :  { %v2855_v36 = vrot.slane %v2841_v37, %v5285_v28  ;;  %v2856_v58 = vcombine.high %v2848_v57, %v2848_v57  ;;  %v2864_v30 = vrot.slane %v2848_v57, %v5285_v28  ;;  %3856 = vst.sshfl [vmem:[#allocation13 + $0x45] sm:$0x1 pattern:$0x73625140] %v2848_v57  ;;  %2964 = vmatmul.mubr.bf16.vlgmr.msra.gmra.mxu0 %v2930_v43  ;;  %v6287_v24 = vld [vmem:[#allocation68_spill] sm:$0xff] }
 0xb71   :  { %3007 = vmatmul.mubr.bf16.vlgmr.msra.gmra.mxu1 %v2930_v43  ;;  %v2840_v41 = vcombine.high %v2836_v19, %v2836_v19  ;;  %2909 = vst [vmem:[#allocation13 + $0x1d] sm:$0x1] %v2839_v63  ;;  %2912 = vst [vmem:[#allocation13 + $0x35] sm:$0x1] %v2838_v59  ;;  %4089 = vmatpush3.bf16.msra.mxu0 %v5860_v40  ;;  %v6288_v43 = vld [vmem:[#allocation70_spill] sm:$0xff] }
 0xb72   :  { %4104 = vmatprep.mubr.msk.bf16.mxu0 %vm4733_vm3, %v6227_v10  ;;  %v2857_v61 = vcombine.high %v2855_v36, %v2855_v36  ;;  %v2871_v29 = vrot.slane %v2855_v36, %v5285_v28  ;;  %v2878_v54 = vrot.slane %v2856_v58, %v5285_v28  ;;  %v2886_v33 = vcombine.high %v2864_v30, %v2864_v30 }
 0xb73   :  { %3857 = vst.sshfl [vmem:[#allocation13 + $0x4d] sm:$0x1 pattern:$0x73625140] %v2856_v58  ;;  %4090 = vmatprep.subr.bf16.mxu0 %v6227_v10  ;;  %2913 = vst [vmem:[#allocation13 + $0x3d] sm:$0x1] %v2840_v41  ;;  %3285 = vmatpush1.bf16.msra.mxu1 %v5714_v48 }
 0xb74   :  { %3858 = vst.sshfl [vmem:[#allocation13 + $0x65] sm:$0x1 pattern:$0x73625140] %v2855_v36  ;;  %3316 = vmatprep.mubr.bf16.mxu1 %v6226_v15  ;;  %v2885_v60 = vrot.slane %v2857_v61, %v5285_v28  ;;  %v2887_v45 = vcombine.high %v2871_v29, %v2871_v29  ;;  %v2888_v53 = vcombine.high %v2878_v54, %v2878_v54  ;;  %2916 = vst [vmem:[#allocation13 + $0x55] sm:$0x1] %v2886_v33 }
 0xb75   :  { %3859 = vst.sshfl [vmem:[#allocation13 + $0x6d] sm:$0x1 pattern:$0x73625140] %v2857_v61  ;;  %3286 = vmatprep.subr.bf16.mxu1 %v5719_v27  ;;  %4091 = vmatpush3.bf16.msra.mxu0 %v5872_v12  ;;  %v6281_v48 = vld [vmem:[#allocation30_spill] sm:$0xff]  ;;  %v6282_v27 = vld [vmem:[#allocation27_spill] sm:$0xff] }
 0xb76   :  { %v2889_v4 = vcombine.high %v2885_v60, %v2885_v60  ;;  %2917 = vst [vmem:[#allocation13 + $0x5d] sm:$0x1] %v2888_v53  ;;  %2920 = vst [vmem:[#allocation13 + $0x75] sm:$0x1] %v2887_v45  ;;  %4092 = vmatprep.subr.bf16.mxu0 %v6227_v10  ;;  %v6289_v36 = vld [vmem:[#allocation67_spill] sm:$0xff]  ;;  %v6290_v41 = vld [vmem:[#allocation65_spill] sm:$0xff] }
 0xb77   :  { %3287 = vmatpush1.bf16.msra.mxu1 %v5724_v16  ;;  %v6283_v16 = vld [vmem:[#allocation28_spill] sm:$0xff]  ;;  %v6291_v33 = vld [vmem:[#allocation71_spill] sm:$0xff] }
 0xb78   :  { %2921 = vst [vmem:[#allocation13 + $0x7d] sm:$0x1] %v2889_v4  ;;  %3288 = vmatprep.subr.bf16.mxu1 %v5727_v42  ;;  %v6284_v42 = vld [vmem:[#allocation25_spill] sm:$0xff] }
 0xb79   :  { %4093 = vmatpush3.bf16.msra.mxu0 %v5878_v23  ;;  %v6292_v4 = vld [vmem:[#allocation69_spill] sm:$0xff] }
 0xb7a   :  { %4094 = vmatprep.subr.bf16.mxu0 %v6227_v10 }
 0xb7b   :  { %3289 = vmatpush1.bf16.msra.mxu1 %v5732_v11 }
 0xb7c   :  { %3290 = vmatprep.subr.bf16.mxu1 %v5735_v22  ;;  %v6285_v22 = vld [vmem:[#allocation64_spill] sm:$0xff] }
 0xb7d   :  { %4095 = vmatpush3.bf16.msra.mxu0 %v5884_v3 }
 0xb7e   :  { %4096 = vmatprep.subr.bf16.mxu0 %v6227_v10 }
 0xb7f   :  { %3291 = vmatpush1.bf16.msra.mxu1 %v5888_v7 }
 0xb80   :  { %3292 = vmatprep.subr.bf16.mxu1 %v5891_v32 }
 0xb81   :  { %4097 = vmatpush3.bf16.msra.mxu0 %v5894_v38 }
 0xb82   :  { %4098 = vmatprep.subr.bf16.mxu0 %v6227_v10 }
 0xb83   :  { %3293 = vmatpush1.bf16.msra.mxu1 %v5898_v56 }
 0xb84   :  { %3294 = vmatprep.subr.bf16.mxu1 %v5901_v44 }
 0xb85   :  { %4099 = vmatpush3.bf16.msra.mxu0 %v5904_v20 }
 0xb86   :  { %4100 = vmatprep.subr.bf16.mxu0 %v6227_v10 }
 0xb87   :  { %3295 = vmatpush1.bf16.msra.mxu1 %v5908_v49  ;;  %v6286_v49 = vld [vmem:[#allocation66_spill] sm:$0xff] }
 0xb88   :  { %3296 = vmatprep.subr.bf16.mxu1 %v5911_v35 }
 0xb89   :  { %4101 = vmatpush3.bf16.msra.mxu0 %v5914_v9 }
 0xb8a   :  { %4102 = vmatprep.subr.bf16.mxu0 %v6227_v10 }
 0xb8b   :  { %3297 = vmatpush1.bf16.msra.mxu1 %v5918_v6 }
 0xb8c   :  { %3298 = vmatprep.subr.bf16.mxu1 %v6281_v48 }
 0xb8d   :  { %4103 = vmatpush3.bf16.msra.mxu0 %v6282_v27 }
 0xb8e   :  { %3327 = vmatprep.subr.bf16.mxu0 %v6283_v16 }
 0xb8f   :  { %3299 = vmatpush1.bf16.msra.mxu1 %v6284_v42 }
 0xb90   :  { %4108 = vmatprep.subr.bf16.mxu1 %v6227_v10 }
 0xc30   :  { %v2965_v11 = vpop.f32.mrf.mxu0 }
 0xc31   :  { %v3017_v7 = vadd.f32 %v2965_v11, %v6285_v22  ;;  %v3008_v44 = vpop.f32.mrf.mxu1 }
 0xc32   :  { %v2967_v32 = vpop.f32.mrf.mxu0  ;;  %v3019_v61 = vadd.f32 %v3008_v44, %v6290_v41 }
 0xc33   :  { %v3860_v56 = vmul.f32 -1.442695, %v3017_v7  ;;  %v3018_v35 = vadd.f32 %v2967_v32, %v6286_v49  ;;  %v3010_v37 = vpop.f32.mrf.mxu1 }
 0xc34   :  { %v2969_v25 = vpop.f32.mrf.mxu0  ;;  %v3020_v58 = vadd.f32 %v3010_v37, %v6289_v36 }
 0xc35   :  { %4412 = vpow2.f32 %v3860_v56  ;;  %v3862_v6 = vmul.f32 -1.442695, %v3018_v35  ;;  %v3021_v26 = vadd.f32 %v2969_v25, %v6287_v24  ;;  %v3012_v63 = vpop.f32.mrf.mxu1 }
 0xc36   :  { %v2971_v8 = vpop.f32.mrf.mxu0  ;;  %v3864_v54 = vmul.f32 -1.442695, %v3020_v58  ;;  %v3023_v48 = vadd.f32 %v3012_v63, %v6292_v4 }
 0xc37   :  { %4414 = vpow2.f32 %v3862_v6  ;;  %v3861_v57 = vmul.f32 -1.442695, %v3021_v26  ;;  %v3022_v19 = vadd.f32 %v2971_v8, %v6288_v43  ;;  %v3014_v30 = vpop.f32.mrf.mxu1 }
 0xc38   :  { %v3024_v60 = vadd.f32 %v3014_v30, %v6291_v33 }
 0xc39   :  { %4416 = vpow2.f32 %v3861_v57  ;;  %v3863_v59 = vmul.f32 -1.442695, %v3022_v19 }
 0xc3a   :  { %v3865_v11 = vmul.f32 -1.442695, %v3024_v60 }
 0xc3b   :  { %4418 = vpow2.f32 %v3863_v59  ;;  %v3131_v59 = vpop.permute.xlu0 %3130 }
 0xc3c   :  { %4420 = vtanh.f32 %v3019_v61  ;;  %vm3135_vm15 = vcmp.eq.s32.totalorder %v3131_v59, 1  ;;  %v3134_v61 = vpop.permute.xlu1 %3133 }
 0xc3d   :  { %vm3136_vm0 = vcmp.eq.s32.totalorder %v3134_v61, 1 }
 0xc42   :  { %v4413_v29 = vpop.eup %4412 }
 0xc43   :  { %v3031_v45 = vadd.f32 1.0, %v4413_v29 }
 0xc44   :  { %v4415_v53 = vpop.eup %4414 }
 0xc45   :  { %4422 = vrcp.f32 %v3031_v45  ;;  %v3043_v16 = vadd.f32 1.0, %v4415_v53 }
 0xc46   :  { %v4417_v42 = vpop.eup %4416  ;;  %4424 = vpow2.f32 %v3864_v54 }
 0xc47   :  { %4426 = vrcp.f32 %v3043_v16  ;;  %v3032_v22 = vadd.f32 1.0, %v4417_v42 }
 0xc48   :  { %v4419_v7 = vpop.eup %4418  ;;  %4428 = vtanh.f32 %v3023_v48 }
 0xc49   :  { %4430 = vrcp.f32 %v3032_v22  ;;  %v3044_v32 = vadd.f32 1.0, %v4419_v7  ;;  %v4421_v56 = vpop.eup %4420 }
 0xc4a   :  { %4432 = vpow2.f32 %v3865_v11 }
 0xc4b   :  { %4434 = vrcp.f32 %v3044_v32 }
 0xc52   :  { %v4423_v44 = vpop.eup %4422 }
 0xc53   :  { %v4425_v49 = vpop.eup %4424  ;;  %v3063_v35 = vmul.f32 %v4423_v44, %v4421_v56 }
 0xc54   :  { %v4427_v25 = vpop.eup %4426  ;;  %v3057_v8 = vadd.f32 1.0, %v4425_v49 }
 0xc55   :  { %v4429_v6 = vpop.eup %4428  ;;  %v3065_v24 = vmul.f32 %v4427_v25, %v5944_v21 }
 0xc56   :  { %v4431_v26 = vpop.eup %4430  ;;  %4436 = vrcp.f32 %v3057_v8 }
 0xc57   :  { %v4433_v37 = vpop.eup %4432  ;;  %v3067_v57 = vadd.f32 %v3065_v24, %v3063_v35  ;;  %v3064_v43 = vmul.f32 %v4431_v26, %v4429_v6 }
 0xc58   :  { %v4435_v19 = vpop.eup %4434  ;;  %v3058_v58 = vadd.f32 1.0, %v4433_v37 }
 0xc59   :  { %v3866_v63 = vclamps-f32 %v3067_v57, 3.0  ;;  %v3066_v36 = vmul.f32 %v4435_v19, %v5948_v34 }
 0xc5b   :  { %v3068_v30 = vadd.f32 %v3066_v36, %v3064_v43  ;;  %4438 = vtanh.f32 %v3866_v63  ;;  %v6038_v41 = vsel %vm3135_vm15, %v3866_v63, %v5944_v21  ;;  %v6294_v63 = vld [vmem:[#allocation74_spill] sm:$0xff] }
 0xc5c   :  { %4440 = vrcp.f32 %v3058_v58 }
 0xc5d   :  { %v3867_v29 = vclamps-f32 %v3068_v30, 3.0 }
 0xc5f   :  { %4442 = vtanh.f32 %v3867_v29  ;;  %v6042_v54 = vsel %vm3136_vm0, %v3867_v29, %v5948_v34 }
 0xc63   :  { %v4437_v33 = vpop.eup %4436 }
 0xc68   :  { %v4439_v60 = vpop.eup %4438 }
 0xc69   :  { %v3075_v45 = vmul.f32 %v4439_v60, %v4437_v33  ;;  %v4441_v53 = vpop.eup %4440 }
 0xc6c   :  { %v4443_v4 = vpop.eup %4442 }
 0xc6d   :  { %v3076_v48 = vmul.f32 %v4443_v4, %v4441_v53 }
 0xc6f   :  { %v3077_v16 = vpack.c.bf16 %v3076_v48, %v3075_v45  ;;  %v6297_v45 = vld [vmem:[#allocation75_spill] sm:$0xff]  ;;  %v6298_v48 = vld [vmem:[#allocation73_spill] sm:$0xff] }
 0xc71   :  { %4105 = vmatmul.mubr.bf16.vlgmr.msra.gmra.mxu0 %v3077_v16 }
 0xc72   :  { %3328 = vmatpush1.bf16.msra.mxu0 %v5786_v13  ;;  %3359 = vmatprep.mubr.bf16.mxu0 %v6226_v15 }
 0xc73   :  { %3329 = vmatprep.subr.bf16.mxu0 %v5790_v55 }
 0xc76   :  { %3330 = vmatpush1.bf16.msra.mxu0 %v5793_v50 }
 0xc77   :  { %3331 = vmatprep.subr.bf16.mxu0 %v5796_v51 }
 0xc7a   :  { %3332 = vmatpush1.bf16.msra.mxu0 %v5799_v17 }
 0xc7b   :  { %3333 = vmatprep.subr.bf16.mxu0 %v5802_v52 }
 0xc7e   :  { %3334 = vmatpush1.bf16.msra.mxu0 %v5805_v39 }
 0xc7f   :  { %3335 = vmatprep.subr.bf16.mxu0 %v5808_v62 }
 0xc82   :  { %3336 = vmatpush1.bf16.msra.mxu0 %v5811_v46 }
 0xc83   :  { %3337 = vmatprep.subr.bf16.mxu0 %v5814_v5 }
 0xc86   :  { %3338 = vmatpush1.bf16.msra.mxu0 %v5817_v1 }
 0xc87   :  { %3339 = vmatprep.subr.bf16.mxu0 %v5820_v2 }
 0xc8a   :  { %3340 = vmatpush1.bf16.msra.mxu0 %v5823_v14 }
 0xc8b   :  { %3341 = vmatprep.subr.bf16.mxu0 %v5826_v18 }
 0xc8e   :  { %3342 = vmatpush1.bf16.msra.mxu0 %v5829_v47 }
 0xd31   :  { %v3112_v15 = vpop.f32.mrf.mxu0 }
 0xd32   :  { %v3868_v13 = vclamps-f32 %v3112_v15, 3.0 }
 0xd33   :  { %v4106_v55 = vpop.f32.mrf.mxu0 }
 0xd34   :  { %v3141_v50 = vsel %vm3135_vm15, %v3868_v13, 0.0  ;;  %v6066_v2 = vsel %vm3135_vm15, %v3868_v13, %v5973_v0  ;;  %v6299_v55 = vld [vmem:[#allocation79_spill] sm:$0xff] }
 0xd35   :  { %v3145_v51 = vcombine.high %v3141_v50, %v3141_v50  ;;  %v3152_v17 = vrot.slane %v3141_v50, %v5285_v28  ;;  %v3115_v52 = vpop.f32.mrf.mxu0 }
 0xd36   :  { %v3869_v39 = vclamps-f32 %v3115_v52, 3.0  ;;  %v6300_v52 = vld [vmem:[#allocation77_spill] sm:$0xff] }
 0xd37   :  { %v3159_v62 = vrot.slane %v3145_v51, %v5285_v28  ;;  %v3160_v46 = vcombine.high %v3152_v17, %v3152_v17  ;;  %v3168_v5 = vrot.slane %v3152_v17, %v5285_v28  ;;  %3870 = vst.sshfl [vmem:[#allocation13 + $0x6] sm:$0x1 pattern:$0x73625140] %v3152_v17  ;;  %v4107_v1 = vpop.f32.mrf.mxu0 }
 0xd38   :  { %v6070_v14 = vsel %vm3136_vm0, %v3869_v39, %v5977_v31  ;;  %v3142_v18 = vsel %vm3136_vm0, %v3869_v39, 0.0 }
 0xd39   :  { %v3161_v47 = vcombine.high %v3159_v62, %v3159_v62  ;;  %v3175_v21 = vrot.slane %v3159_v62, %v5285_v28  ;;  %v3182_v34 = vrot.slane %v3160_v46, %v5285_v28  ;;  %v3190_v42 = vcombine.high %v3168_v5, %v3168_v5  ;;  %3871 = vst.sshfl [vmem:[#allocation13 + $0xe] sm:$0x1 pattern:$0x73625140] %v3160_v46 }
 0xd3a   :  { %3872 = vst.sshfl [vmem:[#allocation13 + $0x26] sm:$0x1 pattern:$0x73625140] %v3159_v62  ;;  %v3194_v11 = vcombine.high %v3142_v18, %v3142_v18  ;;  %v3201_v22 = vrot.slane %v3142_v18, %v5285_v28  ;;  %v3283_v0 = vpack.c.bf16 %v6070_v14, %v6066_v2 }
 0xd3b   :  { %v3189_v7 = vrot.slane %v3161_v47, %v5285_v28  ;;  %v3191_v31 = vcombine.high %v3175_v21, %v3175_v21  ;;  %v3192_v32 = vcombine.high %v3182_v34, %v3182_v34  ;;  %3261 = vst [vmem:[#allocation13 + $0x16] sm:$0x1] %v3190_v42  ;;  %3873 = vst.sshfl [vmem:[#allocation13 + $0x2e] sm:$0x1 pattern:$0x73625140] %v3161_v47 }
 0xd3c   :  { %v3208_v56 = vrot.slane %v3194_v11, %v5285_v28  ;;  %v3209_v44 = vcombine.high %v3201_v22, %v3201_v22  ;;  %v3217_v49 = vrot.slane %v3201_v22, %v5285_v28  ;;  %3874 = vst.sshfl [vmem:[#allocation13 + $0x46] sm:$0x1 pattern:$0x73625140] %v3201_v22  ;;  %3317 = vmatmul.mubr.bf16.vlgmr.msra.gmra.mxu1 %v3283_v0 }
 0xd3d   :  { %3360 = vmatmul.mubr.bf16.vlgmr.msra.gmra.mxu0 %v3283_v0  ;;  %v3193_v35 = vcombine.high %v3189_v7, %v3189_v7  ;;  %3262 = vst [vmem:[#allocation13 + $0x1e] sm:$0x1] %v3192_v32  ;;  %3265 = vst [vmem:[#allocation13 + $0x36] sm:$0x1] %v3191_v31  ;;  %4109 = vmatpush3.bf16.msra.mxu1 %v5860_v40 }
 0xd3e   :  { %4124 = vmatprep.mubr.msk.bf16.mxu1 %vm4733_vm3, %v6227_v10  ;;  %v3210_v25 = vcombine.high %v3208_v56, %v3208_v56  ;;  %v3224_v6 = vrot.slane %v3208_v56, %v5285_v28  ;;  %v3231_v24 = vrot.slane %v3209_v44, %v5285_v28  ;;  %v3239_v26 = vcombine.high %v3217_v49, %v3217_v49 }
 0xd3f   :  { %3875 = vst.sshfl [vmem:[#allocation13 + $0x4e] sm:$0x1 pattern:$0x73625140] %v3209_v44  ;;  %4110 = vmatprep.subr.bf16.mxu1 %v6227_v10  ;;  %3266 = vst [vmem:[#allocation13 + $0x3e] sm:$0x1] %v3193_v35  ;;  %v3484_v44 = vpop.permute.xlu0 %3483 }
 0xd40   :  { %3876 = vst.sshfl [vmem:[#allocation13 + $0x66] sm:$0x1 pattern:$0x73625140] %v3208_v56  ;;  %v3238_v8 = vrot.slane %v3210_v25, %v5285_v28  ;;  %v3240_v37 = vcombine.high %v3224_v6, %v3224_v6  ;;  %v3241_v57 = vcombine.high %v3231_v24, %v3231_v24  ;;  %3269 = vst [vmem:[#allocation13 + $0x56] sm:$0x1] %v3239_v26 }
 0xd41   :  { %3877 = vst.sshfl [vmem:[#allocation13 + $0x6e] sm:$0x1 pattern:$0x73625140] %v3210_v25  ;;  %4111 = vmatpush3.bf16.msra.mxu1 %v5872_v12  ;;  %vm3488_vm3 = vcmp.eq.s32.totalorder %v3484_v44, 1 }
 0xd42   :  { %v3242_v40 = vcombine.high %v3238_v8, %v3238_v8  ;;  %3270 = vst [vmem:[#allocation13 + $0x5e] sm:$0x1] %v3241_v57  ;;  %3273 = vst [vmem:[#allocation13 + $0x76] sm:$0x1] %v3240_v37  ;;  %4112 = vmatprep.subr.bf16.mxu1 %v6227_v10  ;;  %v3487_v8 = vpop.permute.xlu1 %3486 }
 0xd43   :  { %vm3489_vm1 = vcmp.eq.s32.totalorder %v3487_v8, 1 }
 0xd44   :  { %3274 = vst [vmem:[#allocation13 + $0x7e] sm:$0x1] %v3242_v40 }
 0xd45   :  { %4113 = vmatpush3.bf16.msra.mxu1 %v5878_v23  ;;  %v6293_v23 = vld [vmem:[#allocation72_spill] sm:$0xff] }
 0xd46   :  { %4114 = vmatprep.subr.bf16.mxu1 %v6227_v10 }
 0xd49   :  { %4115 = vmatpush3.bf16.msra.mxu1 %v5884_v3 }
 0xd4a   :  { %4116 = vmatprep.subr.bf16.mxu1 %v6227_v10 }
 0xd4d   :  { %4117 = vmatpush3.bf16.msra.mxu1 %v5894_v38 }
 0xd4e   :  { %4118 = vmatprep.subr.bf16.mxu1 %v6227_v10 }
 0xd51   :  { %4119 = vmatpush3.bf16.msra.mxu1 %v5904_v20  ;;  %v6295_v20 = vld [vmem:[#allocation76_spill] sm:$0xff] }
 0xd52   :  { %4120 = vmatprep.subr.bf16.mxu1 %v6227_v10 }
 0xd55   :  { %4121 = vmatpush3.bf16.msra.mxu1 %v5914_v9 }
 0xd56   :  { %4122 = vmatprep.subr.bf16.mxu1 %v6227_v10  ;;  %v6296_v10 = vld [vmem:[#allocation78_spill] sm:$0xff] }
 0xd59   :  { %4123 = vmatpush3.bf16.msra.mxu1 %v6282_v27 }
 0xdfc   :  { %v3318_v12 = vpop.f32.mrf.mxu1 }
 0xdfd   :  { %v3370_v43 = vadd.f32 %v3318_v12, %v6293_v23  ;;  %v3361_v59 = vpop.f32.mrf.mxu0 }
 0xdfe   :  { %v3320_v3 = vpop.f32.mrf.mxu1  ;;  %v3372_v16 = vadd.f32 %v3361_v59, %v6298_v48 }
 0xdff   :  { %v3878_v19 = vmul.f32 -1.442695, %v3370_v43  ;;  %v3371_v38 = vadd.f32 %v3320_v3, %v6294_v63  ;;  %v3363_v9 = vpop.f32.mrf.mxu0 }
 0xe00   :  { %v3322_v36 = vpop.f32.mrf.mxu1  ;;  %v3373_v53 = vadd.f32 %v3363_v9, %v6297_v45 }
 0xe01   :  { %4444 = vpow2.f32 %v3878_v19  ;;  %v3880_v58 = vmul.f32 -1.442695, %v3371_v38  ;;  %v3374_v30 = vadd.f32 %v3322_v36, %v6295_v20  ;;  %v3365_v60 = vpop.f32.mrf.mxu0 }
 0xe02   :  { %v3324_v61 = vpop.f32.mrf.mxu1  ;;  %v3882_v13 = vmul.f32 -1.442695, %v3373_v53  ;;  %v3376_v39 = vadd.f32 %v3365_v60, %v6300_v52 }
 0xe03   :  { %4446 = vpow2.f32 %v3880_v58  ;;  %v3879_v29 = vmul.f32 -1.442695, %v3374_v30  ;;  %v3375_v33 = vadd.f32 %v3324_v61, %v6296_v10  ;;  %v3367_v4 = vpop.f32.mrf.mxu0 }
 0xe04   :  { %v3377_v50 = vadd.f32 %v3367_v4, %v6299_v55 }
 0xe05   :  { %4448 = vpow2.f32 %v3879_v29  ;;  %v3881_v27 = vmul.f32 -1.442695, %v3375_v33 }
 0xe06   :  { %v3883_v5 = vmul.f32 -1.442695, %v3377_v50 }
 0xe07   :  { %4450 = vpow2.f32 %v3881_v27 }
 0xe08   :  { %4452 = vtanh.f32 %v3372_v16 }
 0xe0e   :  { %v4445_v15 = vpop.eup %4444 }
 0xe0f   :  { %v3384_v51 = vadd.f32 1.0, %v4445_v15 }
 0xe10   :  { %v4447_v17 = vpop.eup %4446 }
 0xe11   :  { %4454 = vrcp.f32 %v3384_v51  ;;  %v3396_v62 = vadd.f32 1.0, %v4447_v17 }
 0xe12   :  { %v4449_v46 = vpop.eup %4448  ;;  %4456 = vpow2.f32 %v3882_v13 }
 0xe13   :  { %4458 = vrcp.f32 %v3396_v62  ;;  %v3385_v1 = vadd.f32 1.0, %v4449_v46 }
 0xe14   :  { %v4451_v18 = vpop.eup %4450  ;;  %4460 = vtanh.f32 %v3376_v39 }
 0xe15   :  { %4462 = vrcp.f32 %v3385_v1  ;;  %v3397_v47 = vadd.f32 1.0, %v4451_v18  ;;  %v4453_v21 = vpop.eup %4452 }
 0xe16   :  { %4464 = vpow2.f32 %v3883_v5 }
 0xe17   :  { %4466 = vrcp.f32 %v3397_v47 }
 0xe1e   :  { %v4455_v34 = vpop.eup %4454 }
 0xe1f   :  { %v4457_v42 = vpop.eup %4456  ;;  %v3416_v11 = vmul.f32 %v4455_v34, %v4453_v21 }
 0xe20   :  { %v4459_v22 = vpop.eup %4458  ;;  %v3410_v32 = vadd.f32 1.0, %v4457_v42 }
 0xe21   :  { %v4461_v0 = vpop.eup %4460  ;;  %v3418_v7 = vmul.f32 %v4459_v22, %v6038_v41 }
 0xe22   :  { %v4463_v31 = vpop.eup %4462  ;;  %4468 = vrcp.f32 %v3410_v32 }
 0xe23   :  { %v4465_v56 = vpop.eup %4464  ;;  %v3420_v49 = vadd.f32 %v3418_v7, %v3416_v11  ;;  %v3417_v35 = vmul.f32 %v4463_v31, %v4461_v0 }
 0xe24   :  { %v4467_v25 = vpop.eup %4466  ;;  %v3411_v26 = vadd.f32 1.0, %v4465_v56 }
 0xe25   :  { %v3884_v6 = vclamps-f32 %v3420_v49, 3.0  ;;  %v3419_v24 = vmul.f32 %v4467_v25, %v6042_v54 }
 0xe27   :  { %v3490_v37 = vsel %vm3488_vm3, %v3884_v6, %v6038_v41  ;;  %v3421_v57 = vadd.f32 %v3419_v24, %v3417_v35  ;;  %4470 = vtanh.f32 %v3884_v6 }
 0xe28   :  { %3630 = vst [vmem:[#allocation16] sm:$0xff] %v3490_v37  ;;  %4472 = vrcp.f32 %v3411_v26 }
 0xe29   :  { %v3885_v40 = vclamps-f32 %v3421_v57, 3.0 }
 0xe2b   :  { %v3491_v12 = vsel %vm3489_vm1, %v3885_v40, %v6042_v54  ;;  %4474 = vtanh.f32 %v3885_v40 }
 0xe2c   :  { %3631 = vst [vmem:[#allocation16 + $0x8] sm:$0xff] %v3491_v12 }
 0xe2f   :  { %v4469_v23 = vpop.eup %4468 }
 0xe34   :  { %v4471_v43 = vpop.eup %4470 }
 0xe35   :  { %v3428_v3 = vmul.f32 %v4471_v43, %v4469_v23  ;;  %v4473_v19 = vpop.eup %4472 }
 0xe38   :  { %v4475_v59 = vpop.eup %4474 }
 0xe39   :  { %v3429_v63 = vmul.f32 %v4475_v59, %v4473_v19 }
 0xe3b   :  { %v3430_v38 = vpack.c.bf16 %v3429_v63, %v3428_v3 }
 0xe3d   :  { %4125 = vmatmul.mubr.bf16.vlgmr.msra.gmra.mxu1 %v3430_v38 }
 0xefd   :  { %v3465_v41 = vpop.f32.mrf.mxu1 }
 0xefe   :  { %v3886_v36 = vclamps-f32 %v3465_v41, 3.0 }
 0xeff   :  { %v4126_v58 = vpop.f32.mrf.mxu1 }
 0xf00   :  { %v3492_v20 = vsel %vm3488_vm3, %v3886_v36, %v6066_v2  ;;  %v3494_v30 = vsel %vm3488_vm3, %v3886_v36, 0.0 }
 0xf01   :  { %v3498_v61 = vcombine.high %v3494_v30, %v3494_v30  ;;  %v3505_v54 = vrot.slane %v3494_v30, %v5285_v28  ;;  %3628 = vst [vmem:[#allocation14] sm:$0xff] %v3492_v20  ;;  %v3468_v9 = vpop.f32.mrf.mxu1 }
 0xf02   :  { %v3887_v29 = vclamps-f32 %v3468_v9, 3.0 }
 0xf03   :  { %v3512_v10 = vrot.slane %v3498_v61, %v5285_v28  ;;  %v3513_v33 = vcombine.high %v3505_v54, %v3505_v54  ;;  %v3521_v27 = vrot.slane %v3505_v54, %v5285_v28  ;;  %3888 = vst.sshfl [vmem:[#allocation13 + $0x7] sm:$0x1 pattern:$0x73625140] %v3505_v54  ;;  %v4127_v60 = vpop.f32.mrf.mxu1 }
 0xf04   :  { %v3493_v45 = vsel %vm3489_vm1, %v3887_v29, %v6070_v14  ;;  %v3495_v2 = vsel %vm3489_vm1, %v3887_v29, 0.0 }
 0xf05   :  { %v3514_v53 = vcombine.high %v3512_v10, %v3512_v10  ;;  %v3528_v4 = vrot.slane %v3512_v10, %v5285_v28  ;;  %v3535_v48 = vrot.slane %v3513_v33, %v5285_v28  ;;  %v3543_v16 = vcombine.high %v3521_v27, %v3521_v27  ;;  %3889 = vst.sshfl [vmem:[#allocation13 + $0xf] sm:$0x1 pattern:$0x73625140] %v3513_v33 }
 0xf06   :  { %3890 = vst.sshfl [vmem:[#allocation13 + $0x27] sm:$0x1 pattern:$0x73625140] %v3512_v10  ;;  %3629 = vst [vmem:[#allocation14 + $0x8] sm:$0xff] %v3493_v45  ;;  %v3547_v15 = vcombine.high %v3495_v2, %v3495_v2  ;;  %v3554_v13 = vrot.slane %v3495_v2, %v5285_v28 }
 0xf07   :  { %v3542_v55 = vrot.slane %v3514_v53, %v5285_v28  ;;  %v3544_v50 = vcombine.high %v3528_v4, %v3528_v4  ;;  %v3545_v51 = vcombine.high %v3535_v48, %v3535_v48  ;;  %3614 = vst [vmem:[#allocation13 + $0x17] sm:$0x1] %v3543_v16  ;;  %3891 = vst.sshfl [vmem:[#allocation13 + $0x2f] sm:$0x1 pattern:$0x73625140] %v3514_v53 }
 0xf08   :  { %v3561_v14 = vrot.slane %v3547_v15, %v5285_v28  ;;  %v3562_v17 = vcombine.high %v3554_v13, %v3554_v13  ;;  %v3570_v52 = vrot.slane %v3554_v13, %v5285_v28  ;;  %3892 = vst.sshfl [vmem:[#allocation13 + $0x47] sm:$0x1 pattern:$0x73625140] %v3554_v13 }
 0xf09   :  { %v3546_v39 = vcombine.high %v3542_v55, %v3542_v55  ;;  %3615 = vst [vmem:[#allocation13 + $0x1f] sm:$0x1] %v3545_v51  ;;  %3618 = vst [vmem:[#allocation13 + $0x37] sm:$0x1] %v3544_v50 }
 0xf0a   :  { %v3563_v62 = vcombine.high %v3561_v14, %v3561_v14  ;;  %v3577_v46 = vrot.slane %v3561_v14, %v5285_v28  ;;  %v3584_v5 = vrot.slane %v3562_v17, %v5285_v28  ;;  %v3592_v1 = vcombine.high %v3570_v52, %v3570_v52  ;;  %3893 = vst.sshfl [vmem:[#allocation13 + $0x4f] sm:$0x1 pattern:$0x73625140] %v3562_v17 }
 0xf0b   :  { %3894 = vst.sshfl [vmem:[#allocation13 + $0x67] sm:$0x1 pattern:$0x73625140] %v3561_v14  ;;  %3619 = vst [vmem:[#allocation13 + $0x3f] sm:$0x1] %v3546_v39 }
 0xf0c   :  { %v3591_v18 = vrot.slane %v3563_v62, %v5285_v28  ;;  %v3593_v47 = vcombine.high %v3577_v46, %v3577_v46  ;;  %v3594_v21 = vcombine.high %v3584_v5, %v3584_v5  ;;  %3622 = vst [vmem:[#allocation13 + $0x57] sm:$0x1] %v3592_v1  ;;  %3895 = vst.sshfl [vmem:[#allocation13 + $0x6f] sm:$0x1 pattern:$0x73625140] %v3563_v62 }
 0xf0e   :  { %v3595_v34 = vcombine.high %v3591_v18, %v3591_v18  ;;  %3623 = vst [vmem:[#allocation13 + $0x5f] sm:$0x1] %v3594_v21  ;;  %3626 = vst [vmem:[#allocation13 + $0x77] sm:$0x1] %v3593_v47 }
 0xf10   :  { %3627 = vst [vmem:[#allocation13 + $0x7f] sm:$0x1] %v3595_v34 }
 0xf11 PF:  { %s4735_s5 = smov [#allocation14]   ;;  %s4736_s18 = smov [#allocation13]  }
 0xf12   :  { %s3649_s17 = sshll.u32 %s4735_s5, 4  ;;  %s3637_s19 = sshll.u32 %s4736_s18, 4  ;;  %s3650_s17 = int_to_ptr.vmem [resolvable:$true] %s3649_s17  ;;  %s3638_s19 = int_to_ptr.vmem [resolvable:$true] %s3637_s19 }
 0xf13   :  { %s4648_s20 = scalar_lea.vmem %s3650_s17, 256  ;;  %p4653_p0 = scmp.lt.s32.totalorder %s3650_s17, %s3650_s17 }
 0xf14   :  { %p4649_p13 = scmp.ne.s32.totalorder %s3650_s17, %s4648_s20  ;;  %p4654_p1 = scmp.lt.s32.totalorder %s4648_s20, %s4648_s20 }
 0xf16   :  { %p4655_p2 = por %p4654_p1, %p4653_p0 }
 0xf18   :  { %p4656_p3 = pnand %p4655_p2, %p4649_p13 }
 0xf1a   :  { %4659 = shalt.err (!%p4656_p3)
}
 0xf1b   :  { %s4737_s21 = smov 128   ;;  %s4738_s22 = smov 8  }
 0xf1c   :  { %3655 = dma.vmem_to_hbm [thread:$0]  %s3650_s17, 256, %s6150_s8, [#allocation15], %s4737_s21, %s4737_s21, %s4738_s22  }
 0xf1d   :  { %s4668_s25 = scalar_lea.vmem %s3638_s19, 2048  ;;  %p4673_p5 = scmp.lt.s32.totalorder %s3638_s19, %s3638_s19 }
 0xf1e   :  { %p4669_p4 = scmp.ne.s32.totalorder %s3638_s19, %s4668_s25  ;;  %p4674_p6 = scmp.lt.s32.totalorder %s4668_s25, %s4668_s25 }
 0xf20   :  { %p4675_p7 = por %p4674_p6, %p4673_p5 }
 0xf22   :  { %p4676_p8 = pnand %p4675_p7, %p4669_p4 }
 0xf24   :  { %4679 = shalt.err (!%p4676_p8)
}
 0xf25   :  { %3643 = dma.vmem_to_hbm [thread:$0]  %s3638_s19, 2048, %s6149_s7, [#allocation7], %s4737_s21, %s4737_s21, %s4738_s22  }
 0xf26   :  { %s4739_s28 = smov [#allocation16]  }
 0xf27   :  { %s3661_s29 = sshll.u32 %s4739_s28, 4  ;;  %s3662_s29 = int_to_ptr.vmem [resolvable:$true] %s3661_s29 }
 0xf28   :  { %s4688_s3 = scalar_lea.vmem %s3662_s29, 256  ;;  %p4693_p10 = scmp.lt.s32.totalorder %s3662_s29, %s3662_s29 }
 0xf29   :  { %p4689_p9 = scmp.ne.s32.totalorder %s3662_s29, %s4688_s3  ;;  %p4694_p11 = scmp.lt.s32.totalorder %s4688_s3, %s4688_s3 }
 0xf2b   :  { %p4695_p12 = por %p4694_p11, %p4693_p10 }
 0xf2d   :  { %p4696_p13 = pnand %p4695_p12, %p4689_p9 }
 0xf2f   :  { %4699 = shalt.err (!%p4696_p13)
}
 0xf30   :  { %3667 = dma.vmem_to_hbm [thread:$0]  %s3662_s29, 256, %s6151_s9, [#allocation15], %s4737_s21, %s4737_s21, %s4738_s22  }
 0xf31   :  { %4716 = dma.done.wait [#allocation7], 2048  }
 0xf32   :  { %4717 = vsyncadd [#allocation7], 4294965248 }
 0xf33   :  { %4718 = dma.done.wait [#allocation15], 512  }
 0xf34   :  { %4719 = vsyncadd [#allocation15], 4294966784 }
 0xf35   :  { %3677 = vsyncpa [#allocation6], 1 }
 0xf36   :  { %3678 = vsyncpa [#allocation9], 1 }
 0xf37   :  { %3679 = vsyncpa [#allocation12], 1 }
 0xf38   :  { %3680 = vsyncpa [#allocation7], 1 }
 0xf39   :  { %3681 = vsyncpa [#allocation15], 1 }

// kernel: tpu_custom_call.1
= control target key start
LH: loop header
LB: loop body
LE: loop exit
PB: predicated region body
PF: predicated region fallthrough
CT: control target
= control target key end

     0   :  { %s6142_s0 = inlined_call_operand.vmem [shape: s32[16], index: 0, kind: input, shape index: {}]   ;;  %s6143_s1 = inlined_call_operand.vmem [shape: s32[16,1], index: 1, kind: input, shape index: {}]   ;;  %s6144_s2 = inlined_call_operand.hbm [shape: bf16[8,16,16], index: 2, kind: input, shape index: {}]   ;;  %s6145_s3 = inlined_call_operand.hbm [shape: bf16[16,512], index: 3, kind: input, shape index: {}]   ;;  %s6146_s4 = inlined_call_operand.hbm [shape: bf16[128,512], index: 4, kind: input, shape index: {}]   ;;  %s6147_s5 = inlined_call_operand.vmem [shape: f32[1,512], index: 5, kind: input, shape index: {}]   ;;  %s6148_s6 = inlined_call_operand.hbm [shape: bf16[128,128], index: 6, kind: input, shape index: {}]   ;;  %s6149_s7 = inlined_call_operand.hbm [shape: f32[16,8,128], index: 7, kind: output, shape index: {0}]   ;;  %s6150_s8 = inlined_call_operand.hbm [shape: f32[16,128], index: 8, kind: output, shape index: {1}]   ;;  %s6151_s9 = inlined_call_operand.hbm [shape: f32[16,128], index: 9, kind: output, shape index: {2}]  }
   0x1   :  { %s15_s11 = sshll.u32 %s6142_s0, 4  ;;  %s16_s11 = int_to_ptr.vmem [resolvable:$true] %s15_s11 }
   0x2   :  { %s4556_s12 = scalar_lea.vmem %s16_s11, 16  ;;  %p4561_p1 = scmp.lt.s32.totalorder %s16_s11, %s16_s11 }
   0x3   :  { %p4557_p0 = scmp.ne.s32.totalorder %s16_s11, %s4556_s12  ;;  %p4562_p2 = scmp.lt.s32.totalorder %s4556_s12, %s4556_s12 }
   0x5   :  { %p4563_p3 = por %p4562_p2, %p4561_p1 }
   0x7   :  { %p4564_p4 = pnand %p4563_p3, %p4557_p0 }
   0x9   :  { %4567 = shalt.err (!%p4564_p4)  }
   0xa   :  { %s4720_s13 = smov [#allocation4]  }
   0xb   :  { %18 = dma.vmem_to_smem %s16_s11, 16, %s4720_s13, [#allocation3] }
   0xc   :  { %4708 = dma.done.wait [#allocation3], 16 }
   0xd   :  { %4709 = vsyncadd [#allocation3], 4294967280 }
   0xe   :  { %20 = sfence }
   0xf   :  { %21 = vsyncpa [#allocation6], 0 }
  0x10   :  { %22 = vsyncpa [#allocation9], 0 }
  0x11   :  { %23 = vsyncpa [#allocation12], 0 }
  0x12   :  { %24 = vsyncpa [#allocation7], 0 }
  0x13   :  { %25 = vsyncpa [#allocation15], 0  ;;  %s4721_s14 = smov [#allocation8]  }
  0x14   :  { %s45_s0 = sshll.u32 %s4721_s14, 4  ;;  %s46_s0 = int_to_ptr.vmem [resolvable:$true] %s45_s0 }
  0x15   :  { %s4576_s15 = scalar_lea.vmem %s46_s0, 512  ;;  %p4581_p6 = scmp.lt.s32.totalorder %s46_s0, %s46_s0 }
  0x16   :  { %p4577_p5 = scmp.ne.s32.totalorder %s46_s0, %s4576_s15  ;;  %p4582_p7 = scmp.lt.s32.totalorder %s4576_s15, %s4576_s15 }
  0x18   :  { %p4583_p8 = por %p4582_p7, %p4581_p6 }
  0x1a   :  { %p4584_p9 = pnand %p4583_p8, %p4577_p5 }
  0x1c   :  { %4587 = shalt.err (!%p4584_p9)
}
  0x1d   :  { %s4722_s16 = smov 256   ;;  %s4723_s17 = smov 16  }
  0x1e   :  { %51 = dma.hbm_to_vmem [thread:$0]  %s6145_s3, 512, %s46_s0, [#allocation9], %s4722_s16, %s4722_s16, %s4723_s17  }
  0x1f   :  { %s4724_s20 = smov [#allocation5]  }
  0x20   :  { %s33_s21 = sshll.u32 %s4724_s20, 4  ;;  %s34_s21 = int_to_ptr.vmem [resolvable:$true] %s33_s21 }
  0x21   :  { %s4596_s22 = scalar_lea.vmem %s34_s21, 1024  ;;  %p4601_p11 = scmp.lt.s32.totalorder %s34_s21, %s34_s21 }
  0x22   :  { %p4597_p10 = scmp.ne.s32.totalorder %s34_s21, %s4596_s22  ;;  %p4602_p12 = scmp.lt.s32.totalorder %s4596_s22, %s4596_s22 }
  0x24   :  { %p4603_p13 = por %p4602_p12, %p4601_p11 }
  0x26   :  { %p4604_p0 = pnand %p4603_p13, %p4597_p10 }
  0x28   :  { %4607 = shalt.err (!%p4604_p0)
}
  0x29   :  { %s4725_s23 = smov 64   ;;  %s4726_s24 = smov 4  }
  0x2a   :  { %39 = dma.hbm_to_vmem [thread:$0]  %s6144_s2, 1024, %s34_s21, [#allocation6], %s4725_s23, %s4725_s23, %s4726_s24  }
  0x2b   :  { %s4727_s27 = smov [#allocation10]   ;;  %s4728_s29 = smov [#allocation11]  }
  0x2c   :  { %s57_s28 = sshll.u32 %s4727_s27, 4  ;;  %s71_s3 = sshll.u32 %s4728_s29, 4  ;;  %s58_s28 = int_to_ptr.vmem [resolvable:$true] %s57_s28  ;;  %s72_s3 = int_to_ptr.vmem [resolvable:$true] %s71_s3 }
  0x2d   :  { %s4616_s30 = scalar_lea.vmem %s58_s28, 4096  ;;  %p4621_p2 = scmp.lt.s32.totalorder %s58_s28, %s58_s28 }
  0x2e   :  { %p4617_p1 = scmp.ne.s32.totalorder %s58_s28, %s4616_s30  ;;  %p4622_p3 = scmp.lt.s32.totalorder %s4616_s30, %s4616_s30 }
  0x30   :  { %p4623_p4 = por %p4622_p3, %p4621_p2 }
  0x32   :  { %p4624_p5 = pnand %p4623_p4, %p4617_p1 }
  0x34   :  { %4627 = shalt.err (!%p4624_p5)
}
  0x35   :  { %63 = dma.hbm_to_vmem [thread:$0]  %s6146_s4, 4096, %s58_s28, [#allocation9], %s4722_s16, %s4722_s16, %s4723_s17  }
  0x36   :  { %s4636_s2 = scalar_lea.vmem %s72_s3, 1024  ;;  %p4641_p7 = scmp.lt.s32.totalorder %s72_s3, %s72_s3 }
  0x37   :  { %p4637_p6 = scmp.ne.s32.totalorder %s72_s3, %s4636_s2  ;;  %p4642_p8 = scmp.lt.s32.totalorder %s4636_s2, %s4636_s2 }
  0x39   :  { %p4643_p9 = por %p4642_p8, %p4641_p7 }
  0x3b   :  { %p4644_p10 = pnand %p4643_p9, %p4637_p6 }
  0x3d   :  { %4647 = shalt.err (!%p4644_p10)
}
  0x3e   :  { %77 = dma.hbm_to_vmem [thread:$0]  %s6148_s6, 1024, %s72_s3, [#allocation12], %s4725_s23, %s4725_s23, %s4726_s24  }
  0x3f   :  { %4710 = dma.done.wait [#allocation6], 1024  }
  0x40   :  { %4711 = vsyncadd [#allocation6], 4294966272 }
  0x41   :  { %4712 = dma.done.wait [#allocation9], 4608  }
  0x42   :  { %4713 = vsyncadd [#allocation9], 4294962688 }
  0x43   :  { %4714 = dma.done.wait [#allocation12], 1024  }
  0x44   :  { %4715 = vsyncadd [#allocation12], 4294966272  ;;  %s101_s14 = sld [smem:[#allocation4]]  ;;  %v4729_v0 = vmov 0.0  }
  0x45   :  { %96 = vst [vmem:[#allocation14] sm:$0xff] %v4729_v0  ;;  %97 = vst [vmem:[#allocation14 + $0x8] sm:$0xff] %v4729_v0 }
  0x46   :  { %98 = vst [vmem:[#allocation16] sm:$0xff] %v4729_v0  ;;  %99 = vst [vmem:[#allocation16 + $0x8] sm:$0xff] %v4729_v0 }
  0x4a   :  { %p3682_p11 = scmp.gt.s32.totalorder %s101_s14, 0 }
  0x4c   :  { %105 = sbr.rel (%p3682_p11) target bundleno = 90 (0x5a), region = 49 }
  0x51   :  { %v4730_v1 = vmov 0.0  }
  0x52   :  { %106 = vst [vmem:[#allocation13] sm:$0xff] %v4730_v1  ;;  %107 = vst [vmem:[#allocation13 + $0x8] sm:$0xff] %v4730_v1 }
  0x53   :  { %108 = vst [vmem:[#allocation13 + $0x10] sm:$0xff] %v4730_v1  ;;  %109 = vst [vmem:[#allocation13 + $0x18] sm:$0xff] %v4730_v1 }
  0x54   :  { %110 = vst [vmem:[#allocation13 + $0x20] sm:$0xff] %v4730_v1  ;;  %111 = vst [vmem:[#allocation13 + $0x28] sm:$0xff] %v4730_v1 }
  0x55   :  { %112 = vst [vmem:[#allocation13 + $0x30] sm:$0xff] %v4730_v1  ;;  %113 = vst [vmem:[#allocation13 + $0x38] sm:$0xff] %v4730_v1 }
  0x56   :  { %114 = vst [vmem:[#allocation13 + $0x40] sm:$0xff] %v4730_v1  ;;  %115 = vst [vmem:[#allocation13 + $0x48] sm:$0xff] %v4730_v1 }
  0x57   :  { %116 = vst [vmem:[#allocation13 + $0x50] sm:$0xff] %v4730_v1  ;;  %117 = vst [vmem:[#allocation13 + $0x58] sm:$0xff] %v4730_v1 }
  0x58   :  { %118 = vst [vmem:[#allocation13 + $0x60] sm:$0xff] %v4730_v1  ;;  %119 = vst [vmem:[#allocation13 + $0x68] sm:$0xff] %v4730_v1 }
  0x59   :  { %120 = vst [vmem:[#allocation13 + $0x70] sm:$0xff] %v4730_v1  ;;  %121 = vst [vmem:[#allocation13 + $0x78] sm:$0xff] %v4730_v1 }
  0x5a PF:  { %p3683_p12 = scmp.le.s32.totalorder %s101_s14, 0 }
  0x5c   :  { %125 = sbr.rel (%p3683_p12) target bundleno = 3857 (0xf11), region = 53 }
  0x61   :  { %v4150_v2 = vld [vmem:[#allocation8 + $0x4] ss:$16 sps:$4 sm:$0xff]   ;;  %v4152_v3 = vld [vmem:[#allocation8 + $0xc] ss:$16 sps:$4 sm:$0xff]   ;;  %v6154_v4 = vmov 0   ;;  %vm228_vm0 = vcmask 130048   ;;  %v148_v62 = vlaneseq }
  0x62   :  { %285 = vmatprep.mubr.bf16.mxu0 %v6154_v4  ;;  %398 = vmatprep.mubr.bf16.mxu1 %v6154_v4  ;;  %v4154_v5 = vld [vmem:[#allocation8] ss:$16 sps:$4 sm:$0xff]   ;;  %v4155_v6 = vld [vmem:[#allocation8 + $0x8] ss:$16 sps:$4 sm:$0xff]   ;;  %v4815_v8 = vld [vmem:[#allocation10 + $0xe4] ss:$16 sps:$4 sm:$0xff]  }
  0x63   :  { %267 = vmatprep.subr.bf16.mxu0 %v4150_v2  ;;  %4148 = vset.pattern.permute.xlu0 %v6154_v4  ;;  %v4156_v7 = vld [vmem:[#allocation5] sm:$0xff]   ;;  %v4832_v13 = vld [vmem:[#allocation10 + $0xec] ss:$16 sps:$4 sm:$0xff]   ;;  %v4834_v14 = vld [vmem:[#allocation10 + $0xe8] ss:$16 sps:$4 sm:$0xff]   ;;  %v6152_v55 = vmov 0.0  }
  0x64   :  { %380 = vmatprep.subr.bf16.mxu1 %v4152_v3  ;;  %4149 = vset.pattern.permute.xlu1 %v6154_v4  ;;  %v4817_v9 = vld [vmem:[#allocation10 + $0xe0] ss:$16 sps:$4 sm:$0xff]   ;;  %v4820_v10 = vld [vmem:[#allocation10 + $0xc4] ss:$16 sps:$4 sm:$0xff]   ;;  %v4160_v15 = vld [vmem:[#allocation5 + $0x8] sm:$0xff]   ;;  %vm4733_vm3 = vmmov 0  }
  0x65   :  { %268 = vmatpush1.bf16.msra.mxu0 %v4154_v5  ;;  %381 = vmatpush1.bf16.msra.mxu1 %v4155_v6  ;;  %v4826_v11 = vld [vmem:[#allocation10 + $0xc0] ss:$16 sps:$4 sm:$0xff]   ;;  %v4830_v12 = vld [vmem:[#allocation10 + $0xa4] ss:$16 sps:$4 sm:$0xff]   ;;  %v4844_v18 = vld [vmem:[#allocation10 + $0xcc] ss:$16 sps:$4 sm:$0xff]  }
  0x66   :  { %766 = vmatprep.subr.bf16.mxu0 %v4815_v8  ;;  %v4837_v16 = vld [vmem:[#allocation10 + $0xa0] ss:$16 sps:$4 sm:$0xff]   ;;  %809 = vmatprep.subr.bf16.mxu1 %v4832_v13  ;;  %v4842_v17 = vld [vmem:[#allocation10 + $0x84] ss:$16 sps:$4 sm:$0xff]   ;;  %v4846_v19 = vld [vmem:[#allocation10 + $0xc8] ss:$16 sps:$4 sm:$0xff]  }
  0x67   :  { %v4852_v20 = vld [vmem:[#allocation10 + $0x80] ss:$16 sps:$4 sm:$0xff]   ;;  %v4854_v21 = vld [vmem:[#allocation10 + $0x64] ss:$16 sps:$4 sm:$0xff]   ;;  %v4858_v22 = vld [vmem:[#allocation10 + $0xac] ss:$16 sps:$4 sm:$0xff]  }
  0x68   :  { %3696 = vmatmul.mubr.msk.bf16.vlgmr.msra.gmra.mxu0 %vm228_vm0, %v4156_v7  ;;  %3704 = vmatmul.mubr.msk.bf16.vlgmr.msra.gmra.mxu1 %vm228_vm0, %v4156_v7  ;;  %v4862_v23 = vld [vmem:[#allocation10 + $0xa8] ss:$16 sps:$4 sm:$0xff]   ;;  %v4164_v24 = vld [vmem:[#allocation5 + $0x10] sm:$0xff]   ;;  %v4870_v27 = vld [vmem:[#allocation10 + $0x8c] ss:$16 sps:$4 sm:$0xff]   ;;  %v5014_v0 = vshrl.u32 %v148_v62, 7 }
  0x69   :  { %767 = vmatpush1.bf16.msra.mxu0 %v4817_v9  ;;  %295 = vmatprep.mubr.bf16.mxu0 %v6154_v4  ;;  %v4865_v25 = vld [vmem:[#allocation10 + $0x60] ss:$16 sps:$4 sm:$0xff]   ;;  %v4868_v26 = vld [vmem:[#allocation10 + $0x44] ss:$16 sps:$4 sm:$0xff]   ;;  %v4874_v28 = vld [vmem:[#allocation10 + $0x88] ss:$16 sps:$4 sm:$0xff]  }
  0x6a   :  { %408 = vmatprep.mubr.bf16.mxu1 %v6154_v4  ;;  %768 = vmatprep.subr.bf16.mxu0 %v4820_v10  ;;  %v4880_v29 = vld [vmem:[#allocation10 + $0x6c] ss:$16 sps:$4 sm:$0xff]   ;;  %v4883_v30 = vld [vmem:[#allocation10 + $0x40] ss:$16 sps:$4 sm:$0xff]   ;;  %v4888_v31 = vld [vmem:[#allocation10 + $0x24] ss:$16 sps:$4 sm:$0xff]  }
  0x6b   :  { %810 = vmatpush1.bf16.msra.mxu1 %v4834_v14  ;;  %v4890_v32 = vld [vmem:[#allocation10 + $0x68] ss:$16 sps:$4 sm:$0xff]   ;;  %v4893_v34 = vld [vmem:[#allocation10 + $0x20] ss:$16 sps:$4 sm:$0xff]   ;;  %v4896_v35 = vld [vmem:[#allocation10 + $0x4c] ss:$16 sps:$4 sm:$0xff]  }
  0x6c   :  { %811 = vmatprep.subr.bf16.mxu1 %v4844_v18  ;;  %v4171_v33 = vld [vmem:[#allocation5 + $0x18] sm:$0xff]   ;;  %v4902_v37 = vld [vmem:[#allocation10 + $0x4] ss:$16 sps:$4 sm:$0xff]   ;;  %v4910_v39 = vld [vmem:[#allocation10] ss:$16 sps:$4 sm:$0xff]   ;;  %v150_v7 = vsub.s32 0, %v5014_v0 }
  0x6d   :  { %769 = vmatpush1.bf16.msra.mxu0 %v4826_v11  ;;  %v4900_v36 = vld [vmem:[#allocation10 + $0x48] ss:$16 sps:$4 sm:$0xff]   ;;  %v4906_v38 = vld [vmem:[#allocation10 + $0x2c] ss:$16 sps:$4 sm:$0xff]   ;;  %6169 = vst [vmem:[#allocation23_spill] sm:$0xff] %v4910_v39  ;;  %v4915_v40 = vld [vmem:[%s6143_s1] sm:$0xff] }
  0x6e   :  { %770 = vmatprep.subr.bf16.mxu0 %v4830_v12  ;;  %v4919_v41 = vld [vmem:[#allocation10 + $0x28] ss:$16 sps:$4 sm:$0xff]   ;;  %vm1007_vm1 = vcmp.gt.s32.totalorder %v4915_v40, 0  ;;  %v4178_v44 = vld [vmem:[#allocation5 + $0x20] sm:$0xff]   ;;  %v4932_v45 = vld [vmem:[#allocation10 + $0xc] ss:$16 sps:$4 sm:$0xff]  }
  0x6f   :  { %812 = vmatpush1.bf16.msra.mxu1 %v4846_v19  ;;  %v4925_v42 = vld [vmem:[%s6143_s1 + $0x8] sm:$0xff]  ;;  %v1009_v43 = vsel %vm1007_vm1, 1, %v6154_v4  ;;  %v4192_v49 = vld [vmem:[#allocation5 + $0x30] sm:$0xff]   ;;  %v4202_v50 = vld [vmem:[#allocation5 + $0x38] sm:$0xff]   ;;  %vm1713_vm4 = vcmp.gt.s32.totalorder %v4915_v40, 2  ;;  %vm2066_vm5 = vcmp.gt.s32.totalorder %v4915_v40, 3 }
  0x70   :  { %3697 = vmatmul.mubr.msk.bf16.gmra.mxu0 %vm228_vm0, %v4160_v15  ;;  %3705 = vmatmul.mubr.msk.bf16.gmra.mxu1 %vm228_vm0, %v4160_v15  ;;  %vm1008_vm2 = vcmp.gt.s32.totalorder %v4925_v42, 0  ;;  %v4935_v47 = vld [vmem:[#allocation10 + $0x8] ss:$16 sps:$4 sm:$0xff]   ;;  %v4958_v51 = vld [vmem:[#allocation14] sm:$0xff]  ;;  %v4985_v56 = vld [vmem:[#allocation11 + $0x30] sm:$0xff]   ;;  %v1715_v6 = vsel %vm1713_vm4, 1, %v6154_v4 }
  0x71   :  { %305 = vmatprep.mubr.bf16.mxu0 %v6154_v4  ;;  %418 = vmatprep.mubr.bf16.mxu1 %v6154_v4  ;;  %v1010_v46 = vsel %vm1008_vm2, 1, %v6154_v4  ;;  %v4185_v48 = vld [vmem:[#allocation5 + $0x28] sm:$0xff]   ;;  %v4980_v54 = vld [vmem:[#allocation11 + $0x38] sm:$0xff]   ;;  %v4994_v58 = vld [vmem:[#allocation11 + $0x20] sm:$0xff]   ;;  %vm2419_vm6 = vcmp.gt.s32.totalorder %v4915_v40, 4  ;;  %vm2772_vm7 = vcmp.gt.s32.totalorder %v4915_v40, 5 }
  0x72   :  { %771 = vmatpush1.bf16.msra.mxu0 %v4837_v16  ;;  %813 = vmatprep.subr.bf16.mxu1 %v4858_v22  ;;  %v4960_v52 = vld [vmem:[#allocation14 + $0x8] sm:$0xff]  ;;  %v4999_v59 = vld [vmem:[#allocation11 + $0x18] sm:$0xff]   ;;  %v5003_v60 = vld [vmem:[#allocation11 + $0x10] sm:$0xff]   ;;  %vm3125_vm8 = vcmp.gt.s32.totalorder %v4915_v40, 6  ;;  %vm3478_vm9 = vcmp.gt.s32.totalorder %v4915_v40, 7  ;;  %vm1360_vm10 = vcmp.gt.s32.totalorder %v4915_v40, 1 }
  0x73   :  { %772 = vmatprep.subr.bf16.mxu0 %v4842_v17  ;;  %814 = vmatpush1.bf16.msra.mxu1 %v4862_v23  ;;  %v605_v53 = vpack.c.bf16 %v4960_v52, %v4958_v51  ;;  %v4990_v57 = vld [vmem:[#allocation11 + $0x28] sm:$0xff]   ;;  %v5011_v63 = vld [vmem:[#allocation11] sm:$0xff]   ;;  %vm1361_vm11 = vcmp.gt.s32.totalorder %v4925_v42, 1  ;;  %vm1714_vm14 = vcmp.gt.s32.totalorder %v4925_v42, 2  ;;  %vm2067_vm15 = vcmp.gt.s32.totalorder %v4925_v42, 3 }
  0x74   :  { %815 = vmatprep.subr.bf16.mxu1 %v4870_v27  ;;  %1012 = vperm.xlu0 %4148, %v1009_v43   ;;  %v5007_v61 = vld [vmem:[#allocation11 + $0x8] sm:$0xff]   ;;  %vm2773_vm1 = vcmp.gt.s32.totalorder %v4925_v42, 5  ;;  %vm3126_vm2 = vcmp.gt.s32.totalorder %v4925_v42, 6  ;;  %vm3479_vm4 = vcmp.gt.s32.totalorder %v4925_v42, 7 }
  0x76   :  { %773 = vmatpush1.bf16.msra.mxu0 %v4852_v20 }
  0x77   :  { %774 = vmatprep.subr.bf16.mxu0 %v4854_v21  ;;  %816 = vmatpush1.bf16.msra.mxu1 %v4874_v28 }
  0x78   :  { %3698 = vmatmul.mubr.msk.bf16.gmra.mxu0 %vm228_vm0, %v4164_v24  ;;  %3706 = vmatmul.mubr.msk.bf16.gmra.mxu1 %vm228_vm0, %v4164_v24 }
  0x79   :  { %315 = vmatprep.mubr.bf16.mxu0 %v6154_v4  ;;  %428 = vmatprep.mubr.bf16.mxu1 %v6154_v4 }
  0x7a   :  { %775 = vmatpush1.bf16.msra.mxu0 %v4865_v25  ;;  %817 = vmatprep.subr.bf16.mxu1 %v4880_v29 }
  0x7b   :  { %776 = vmatprep.subr.bf16.mxu0 %v4868_v26  ;;  %818 = vmatpush1.bf16.msra.mxu1 %v4890_v32 }
  0x7c   :  { %819 = vmatprep.subr.bf16.mxu1 %v4896_v35  ;;  %1015 = vperm.xlu0 %4148, %v1010_v46  }
  0x7e   :  { %777 = vmatpush1.bf16.msra.mxu0 %v4883_v30 }
  0x7f   :  { %778 = vmatprep.subr.bf16.mxu0 %v4888_v31  ;;  %820 = vmatpush1.bf16.msra.mxu1 %v4900_v36 }
  0x80   :  { %3699 = vmatmul.mubr.msk.bf16.gmra.mxu0 %vm228_vm0, %v4171_v33  ;;  %3707 = vmatmul.mubr.msk.bf16.gmra.mxu1 %vm228_vm0, %v4171_v33 }
  0x81   :  { %325 = vmatprep.mubr.bf16.mxu0 %v6154_v4  ;;  %438 = vmatprep.mubr.bf16.mxu1 %v6154_v4 }
  0x82   :  { %779 = vmatpush1.bf16.msra.mxu0 %v4893_v34  ;;  %821 = vmatprep.subr.bf16.mxu1 %v4906_v38 }
  0x83   :  { %780 = vmatprep.subr.bf16.mxu0 %v4902_v37  ;;  %822 = vmatpush1.bf16.msra.mxu1 %v4919_v41 }
  0x84   :  { %823 = vmatprep.subr.bf16.mxu1 %v4932_v45  ;;  %1718 = vperm.xlu0 %4148, %v1715_v6  }
  0x86   :  { %781 = vmatpush1.bf16.msra.mxu0 %v4910_v39 }
  0x87   :  { %824 = vmatpush1.bf16.msra.mxu1 %v4935_v47  ;;  %3968 = vmatprep.subr.bf16.mxu0 %v6152_v55 }
  0x88   :  { %3700 = vmatmul.mubr.msk.bf16.gmra.mxu0 %vm228_vm0, %v4178_v44  ;;  %3708 = vmatmul.mubr.msk.bf16.gmra.mxu1 %vm228_vm0, %v4178_v44 }
  0x89   :  { %335 = vmatprep.mubr.bf16.mxu0 %v6154_v4  ;;  %448 = vmatprep.mubr.bf16.mxu1 %v6154_v4 }
  0x8a   :  { %1166 = vmatprep.subr.bf16.mxu1 %v4815_v8 }
  0x90   :  { %3701 = vmatmul.mubr.msk.bf16.gmra.mxu0 %vm228_vm0, %v4185_v48  ;;  %3709 = vmatmul.mubr.msk.bf16.gmra.mxu1 %vm228_vm0, %v4185_v48 }
  0x91   :  { %345 = vmatprep.mubr.bf16.mxu0 %v6154_v4  ;;  %458 = vmatprep.mubr.bf16.mxu1 %v6154_v4 }
  0x98   :  { %3702 = vmatmul.mubr.msk.bf16.gmra.mxu0 %vm228_vm0, %v4192_v49  ;;  %3710 = vmatmul.mubr.msk.bf16.gmra.mxu1 %vm228_vm0, %v4192_v49  ;;  %v2421_v49 = vsel %vm2419_vm6, 1, %v6154_v4 }
  0x99   :  { %355 = vmatprep.mubr.bf16.mxu0 %v6154_v4  ;;  %468 = vmatprep.mubr.bf16.mxu1 %v6154_v4 }
  0xa0   :  { %3703 = vmatmul.mubr.msk.bf16.gmra.mxu0 %vm228_vm0, %v4202_v50  ;;  %3711 = vmatmul.mubr.msk.bf16.gmra.mxu1 %vm228_vm0, %v4202_v50  ;;  %vm2420_vm0 = vcmp.gt.s32.totalorder %v4925_v42, 4 }
  0xa1   :  { %798 = vmatprep.mubr.bf16.mxu0 %v6154_v4  ;;  %841 = vmatprep.mubr.bf16.mxu1 %v6154_v4 }
  0xa8   :  { %799 = vmatmul.mubr.bf16.vlgmr.msra.gmra.mxu0 %v605_v53  ;;  %842 = vmatmul.mubr.bf16.vlgmr.msra.gmra.mxu1 %v605_v53 }
  0xa9   :  { %1167 = vmatpush1.bf16.msra.mxu1 %v4817_v9  ;;  %1198 = vmatprep.mubr.bf16.mxu1 %v6154_v4  ;;  %v158_v9 = vsub.s32 2, %v5014_v0 }
  0xaa   :  { %1168 = vmatprep.subr.bf16.mxu1 %v4820_v10  ;;  %3969 = vmatpush3.bf16.msra.mxu0 %v4980_v54  ;;  %v146_v10 = vld [vmem:[%s6147_s5] sm:$0xf] }
  0xab   :  { %3970 = vmatprep.subr.bf16.mxu0 %v6152_v55  ;;  %3984 = vmatprep.mubr.msk.bf16.mxu0 %vm4733_vm3, %v6152_v55  ;;  %v5046_v33 = vrot.slane %v146_v10, %v150_v7  ;;  %v5048_v43 = vrot.slane %v146_v10, %v158_v9 }
  0xad   :  { %1169 = vmatpush1.bf16.msra.mxu1 %v4826_v11  ;;  %v154_v11 = vsub.s32 1, %v5014_v0 }
  0xae   :  { %1170 = vmatprep.subr.bf16.mxu1 %v4830_v12  ;;  %3971 = vmatpush3.bf16.msra.mxu0 %v4985_v56 }
  0xaf   :  { %3972 = vmatprep.subr.bf16.mxu0 %v6152_v55  ;;  %v5050_v44 = vrot.slane %v146_v10, %v154_v11 }
  0xb1   :  { %1171 = vmatpush1.bf16.msra.mxu1 %v4837_v16  ;;  %v2068_v16 = vsel %vm2066_vm5, 1, %v6154_v4 }
  0xb2   :  { %1172 = vmatprep.subr.bf16.mxu1 %v4842_v17  ;;  %3973 = vmatpush3.bf16.msra.mxu0 %v4990_v57  ;;  %v162_v17 = vsub.s32 3, %v5014_v0 }
  0xb3   :  { %3974 = vmatprep.subr.bf16.mxu0 %v6152_v55  ;;  %2071 = vperm.xlu0 %4148, %v2068_v16  }
  0xb4   :  { %v5053_v50 = vrot.slane %v146_v10, %v162_v17  ;;  %v2774_v17 = vsel %vm2772_vm7, 1, %v6154_v4 }
  0xb5   :  { %1173 = vmatpush1.bf16.msra.mxu1 %v4852_v20 }
  0xb6   :  { %1174 = vmatprep.subr.bf16.mxu1 %v4854_v21  ;;  %3975 = vmatpush3.bf16.msra.mxu0 %v4994_v58 }
  0xb7   :  { %3976 = vmatprep.subr.bf16.mxu0 %v6152_v55  ;;  %2424 = vperm.xlu0 %4148, %v2421_v49  }
  0xb9   :  { %1175 = vmatpush1.bf16.msra.mxu1 %v4865_v25 }
  0xba   :  { %1176 = vmatprep.subr.bf16.mxu1 %v4868_v26  ;;  %3977 = vmatpush3.bf16.msra.mxu0 %v4999_v59 }
  0xbb   :  { %3978 = vmatprep.subr.bf16.mxu0 %v6152_v55  ;;  %2777 = vperm.xlu0 %4148, %v2774_v17  }
  0xbd   :  { %1177 = vmatpush1.bf16.msra.mxu1 %v4883_v30 }
  0xbe   :  { %1178 = vmatprep.subr.bf16.mxu1 %v4888_v31  ;;  %3979 = vmatpush3.bf16.msra.mxu0 %v5003_v60 }
  0xbf   :  { %3980 = vmatprep.subr.bf16.mxu0 %v6152_v55 }
  0xc1   :  { %1179 = vmatpush1.bf16.msra.mxu1 %v4893_v34 }
  0xc2   :  { %1180 = vmatprep.subr.bf16.mxu1 %v4902_v37  ;;  %3981 = vmatpush3.bf16.msra.mxu0 %v5007_v61 }
  0xc3   :  { %3982 = vmatprep.subr.bf16.mxu0 %v6152_v55 }
  0xc5   :  { %1181 = vmatpush1.bf16.msra.mxu1 %v4910_v39 }
  0xc6   :  { %3988 = vmatprep.subr.bf16.mxu1 %v6152_v55  ;;  %3983 = vmatpush3.bf16.msra.mxu0 %v5011_v63 }
  0xc7   :  { %1209 = vmatprep.subr.bf16.mxu0 %v4832_v13 }
 0x128   :  { %v5016_v1 = vpop.f32.mrf.mxu0  ;;  %v5018_v2 = vpop.f32.mrf.mxu1 }
 0x12a   :  { %v5023_v3 = vpop.f32.mrf.mxu0  ;;  %v5025_v5 = vpop.f32.mrf.mxu1 }
 0x12c   :  { %v5035_v12 = vpop.f32.mrf.mxu0  ;;  %v5037_v15 = vpop.f32.mrf.mxu1 }
 0x12e   :  { %v5042_v13 = vpop.f32.mrf.mxu0  ;;  %v5044_v24 = vpop.f32.mrf.mxu1 }
 0x130   :  { %v297_v46 = vpop.f32.mrf.mxu0  ;;  %v410_v48 = vpop.f32.mrf.mxu1 }
 0x131   :  { %v5056_v53 = vadd.f32 %v297_v46, %v5046_v33  ;;  %v5059_v62 = vadd.f32 %v410_v48, %v5048_v43 }
 0x132   :  { %v299_v6 = vpop.f32.mrf.mxu0  ;;  %v412_v7 = vpop.f32.mrf.mxu1 }
 0x133   :  { %6170 = vst [vmem:[#allocation24_spill] sm:$0xff] %v5056_v53  ;;  %6171 = vst [vmem:[#allocation25_spill] sm:$0xff] %v5059_v62  ;;  %v5063_v9 = vadd.f32 %v299_v6, %v5050_v44  ;;  %v5066_v11 = vadd.f32 %v412_v7, %v5053_v50 }
 0x134   :  { %v301_v16 = vpop.f32.mrf.mxu0  ;;  %v414_v10 = vpop.f32.mrf.mxu1 }
 0x135   :  { %6172 = vst [vmem:[#allocation26_spill] sm:$0xff] %v5063_v9  ;;  %6173 = vst [vmem:[#allocation27_spill] sm:$0xff] %v5066_v11  ;;  %v5070_v46 = vadd.f32 %v301_v16, %v5046_v33  ;;  %v5073_v48 = vadd.f32 %v414_v10, %v5048_v43  ;;  %v3127_v9 = vsel %vm3125_vm8, 1, %v6154_v4 }
 0x136   :  { %v303_v55 = vpop.f32.mrf.mxu0  ;;  %v416_v62 = vpop.f32.mrf.mxu1  ;;  %3130 = vperm.xlu0 %4148, %v3127_v9  }
 0x137   :  { %6174 = vst [vmem:[#allocation28_spill] sm:$0xff] %v5070_v46  ;;  %6175 = vst [vmem:[#allocation29_spill] sm:$0xff] %v5073_v48  ;;  %v5077_v6 = vadd.f32 %v303_v55, %v5050_v44  ;;  %v5080_v7 = vadd.f32 %v416_v62, %v5053_v50 }
 0x138   :  { %v307_v49 = vpop.f32.mrf.mxu0  ;;  %v420_v11 = vpop.f32.mrf.mxu1 }
 0x139   :  { %6176 = vst [vmem:[#allocation30_spill] sm:$0xff] %v5077_v6  ;;  %6177 = vst [vmem:[#allocation31_spill] sm:$0xff] %v5080_v7  ;;  %v5084_v16 = vadd.f32 %v307_v49, %v5046_v33  ;;  %v5087_v10 = vadd.f32 %v420_v11, %v5048_v43  ;;  %v3480_v6 = vsel %vm3478_vm9, 1, %v6154_v4 }
 0x13a   :  { %v309_v48 = vpop.f32.mrf.mxu0  ;;  %v422_v46 = vpop.f32.mrf.mxu1  ;;  %3483 = vperm.xlu0 %4148, %v3480_v6  }
 0x13b   :  { %6178 = vst [vmem:[#allocation32_spill] sm:$0xff] %v5084_v16  ;;  %6179 = vst [vmem:[#allocation33_spill] sm:$0xff] %v5087_v10  ;;  %v5091_v55 = vadd.f32 %v309_v48, %v5050_v44  ;;  %v5094_v62 = vadd.f32 %v422_v46, %v5053_v50 }
 0x13c   :  { %v311_v17 = vpop.f32.mrf.mxu0  ;;  %v424_v7 = vpop.f32.mrf.mxu1 }
 0x13d   :  { %6180 = vst [vmem:[#allocation34_spill] sm:$0xff] %v5091_v55  ;;  %6181 = vst [vmem:[#allocation35_spill] sm:$0xff] %v5094_v62  ;;  %v5098_v49 = vadd.f32 %v311_v17, %v5046_v33  ;;  %v5101_v11 = vadd.f32 %v424_v7, %v5048_v43 }
 0x13e   :  { %v313_v10 = vpop.f32.mrf.mxu0  ;;  %v426_v16 = vpop.f32.mrf.mxu1 }
 0x13f   :  { %6182 = vst [vmem:[#allocation36_spill] sm:$0xff] %v5098_v49  ;;  %6183 = vst [vmem:[#allocation37_spill] sm:$0xff] %v5101_v11  ;;  %v5104_v53 = vadd.f32 %v313_v10, %v5050_v44  ;;  %v5107_v48 = vadd.f32 %v426_v16, %v5053_v50 }
 0x140   :  { %v317_v9 = vpop.f32.mrf.mxu0  ;;  %v430_v46 = vpop.f32.mrf.mxu1 }
 0x141   :  { %6184 = vst [vmem:[#allocation38_spill] sm:$0xff] %v5104_v53  ;;  %6185 = vst [vmem:[#allocation39_spill] sm:$0xff] %v5107_v48  ;;  %v5110_v62 = vadd.f32 %v317_v9, %v5046_v33  ;;  %v5113_v17 = vadd.f32 %v430_v46, %v5048_v43 }
 0x142   :  { %v319_v4 = vpop.f32.mrf.mxu0  ;;  %v432_v7 = vpop.f32.mrf.mxu1 }
 0x143   :  { %6186 = vst [vmem:[#allocation40_spill] sm:$0xff] %v5110_v62  ;;  %6187 = vst [vmem:[#allocation41_spill] sm:$0xff] %v5113_v17  ;;  %v5116_v11 = vadd.f32 %v319_v4, %v5050_v44  ;;  %v5119_v10 = vadd.f32 %v432_v7, %v5053_v50 }
 0x144   :  { %v321_v53 = vpop.f32.mrf.mxu0  ;;  %v434_v16 = vpop.f32.mrf.mxu1 }
 0x145   :  { %6188 = vst [vmem:[#allocation42_spill] sm:$0xff] %v5116_v11  ;;  %6189 = vst [vmem:[#allocation43_spill] sm:$0xff] %v5119_v10  ;;  %v5122_v6 = vadd.f32 %v321_v53, %v5046_v33  ;;  %v5125_v48 = vadd.f32 %v434_v16, %v5048_v43 }
 0x146   :  { %v323_v9 = vpop.f32.mrf.mxu0  ;;  %v436_v62 = vpop.f32.mrf.mxu1 }
 0x147   :  { %6190 = vst [vmem:[#allocation44_spill] sm:$0xff] %v5122_v6  ;;  %6191 = vst [vmem:[#allocation45_spill] sm:$0xff] %v5125_v48  ;;  %v5128_v46 = vadd.f32 %v323_v9, %v5050_v44  ;;  %v5131_v17 = vadd.f32 %v436_v62, %v5053_v50 }
 0x148   :  { %v327_v4 = vpop.f32.mrf.mxu0  ;;  %v440_v11 = vpop.f32.mrf.mxu1 }
 0x149   :  { %6192 = vst [vmem:[#allocation46_spill] sm:$0xff] %v5128_v46  ;;  %6193 = vst [vmem:[#allocation47_spill] sm:$0xff] %v5131_v17  ;;  %v5134_v7 = vadd.f32 %v327_v4, %v5046_v33  ;;  %v5137_v10 = vadd.f32 %v440_v11, %v5048_v43 }
 0x14a   :  { %v329_v53 = vpop.f32.mrf.mxu0  ;;  %v442_v6 = vpop.f32.mrf.mxu1 }
 0x14b   :  { %6194 = vst [vmem:[#allocation48_spill] sm:$0xff] %v5134_v7  ;;  %6195 = vst [vmem:[#allocation49_spill] sm:$0xff] %v5137_v10  ;;  %v5140_v16 = vadd.f32 %v329_v53, %v5050_v44  ;;  %v5143_v48 = vadd.f32 %v442_v6, %v5053_v50 }
 0x14c   :  { %v331_v9 = vpop.f32.mrf.mxu0  ;;  %v444_v46 = vpop.f32.mrf.mxu1 }
 0x14d   :  { %6196 = vst [vmem:[#allocation50_spill] sm:$0xff] %v5140_v16  ;;  %6197 = vst [vmem:[#allocation51_spill] sm:$0xff] %v5143_v48  ;;  %v5146_v62 = vadd.f32 %v331_v9, %v5046_v33  ;;  %v5149_v17 = vadd.f32 %v444_v46, %v5048_v43 }
 0x14e   :  { %v333_v4 = vpop.f32.mrf.mxu0  ;;  %v446_v7 = vpop.f32.mrf.mxu1 }
 0x14f   :  { %6198 = vst [vmem:[#allocation52_spill] sm:$0xff] %v5146_v62  ;;  %6199 = vst [vmem:[#allocation53_spill] sm:$0xff] %v5149_v17  ;;  %v5152_v11 = vadd.f32 %v333_v4, %v5050_v44  ;;  %v5155_v10 = vadd.f32 %v446_v7, %v5053_v50 }
 0x150   :  { %v337_v53 = vpop.f32.mrf.mxu0  ;;  %v450_v16 = vpop.f32.mrf.mxu1 }
 0x151   :  { %6200 = vst [vmem:[#allocation54_spill] sm:$0xff] %v5152_v11  ;;  %6201 = vst [vmem:[#allocation55_spill] sm:$0xff] %v5155_v10  ;;  %v5158_v6 = vadd.f32 %v337_v53, %v5046_v33  ;;  %v5161_v48 = vadd.f32 %v450_v16, %v5048_v43 }
 0x152   :  { %v339_v9 = vpop.f32.mrf.mxu0  ;;  %v452_v62 = vpop.f32.mrf.mxu1 }
 0x153   :  { %6202 = vst [vmem:[#allocation56_spill] sm:$0xff] %v5158_v6  ;;  %6203 = vst [vmem:[#allocation57_spill] sm:$0xff] %v5161_v48  ;;  %v5164_v46 = vadd.f32 %v339_v9, %v5050_v44  ;;  %v5167_v17 = vadd.f32 %v452_v62, %v5053_v50 }
 0x154   :  { %v341_v4 = vpop.f32.mrf.mxu0  ;;  %v454_v11 = vpop.f32.mrf.mxu1 }
 0x155   :  { %6204 = vst [vmem:[#allocation58_spill] sm:$0xff] %v5164_v46  ;;  %6205 = vst [vmem:[#allocation59_spill] sm:$0xff] %v5167_v17  ;;  %v5170_v7 = vadd.f32 %v341_v4, %v5046_v33  ;;  %v5173_v10 = vadd.f32 %v454_v11, %v5048_v43 }
 0x156   :  { %v343_v53 = vpop.f32.mrf.mxu0  ;;  %v456_v6 = vpop.f32.mrf.mxu1 }
 0x157   :  { %6206 = vst [vmem:[#allocation60_spill] sm:$0xff] %v5170_v7  ;;  %6207 = vst [vmem:[#allocation61_spill] sm:$0xff] %v5173_v10  ;;  %v5176_v16 = vadd.f32 %v343_v53, %v5050_v44  ;;  %v5179_v48 = vadd.f32 %v456_v6, %v5053_v50 }
 0x158   :  { %v347_v9 = vpop.f32.mrf.mxu0  ;;  %v460_v46 = vpop.f32.mrf.mxu1 }
 0x159   :  { %6208 = vst [vmem:[#allocation62_spill] sm:$0xff] %v5176_v16  ;;  %6209 = vst [vmem:[#allocation63_spill] sm:$0xff] %v5179_v48  ;;  %v5182_v62 = vadd.f32 %v347_v9, %v5046_v33  ;;  %v5185_v17 = vadd.f32 %v460_v46, %v5048_v43 }
 0x15a   :  { %v349_v4 = vpop.f32.mrf.mxu0  ;;  %v462_v7 = vpop.f32.mrf.mxu1 }
 0x15b   :  { %6210 = vst [vmem:[#allocation64_spill] sm:$0xff] %v5182_v62  ;;  %6211 = vst [vmem:[#allocation65_spill] sm:$0xff] %v5185_v17  ;;  %v5188_v11 = vadd.f32 %v349_v4, %v5050_v44  ;;  %v5191_v10 = vadd.f32 %v462_v7, %v5053_v50 }
 0x15c   :  { %v351_v53 = vpop.f32.mrf.mxu0  ;;  %v464_v16 = vpop.f32.mrf.mxu1 }
 0x15d   :  { %6212 = vst [vmem:[#allocation66_spill] sm:$0xff] %v5188_v11  ;;  %6213 = vst [vmem:[#allocation67_spill] sm:$0xff] %v5191_v10  ;;  %v5194_v6 = vadd.f32 %v351_v53, %v5046_v33  ;;  %v5197_v48 = vadd.f32 %v464_v16, %v5048_v43 }
 0x15e   :  { %v353_v9 = vpop.f32.mrf.mxu0  ;;  %v466_v62 = vpop.f32.mrf.mxu1 }
 0x15f   :  { %6214 = vst [vmem:[#allocation68_spill] sm:$0xff] %v5194_v6  ;;  %6215 = vst [vmem:[#allocation69_spill] sm:$0xff] %v5197_v48  ;;  %v5200_v46 = vadd.f32 %v353_v9, %v5050_v44  ;;  %v5203_v17 = vadd.f32 %v466_v62, %v5053_v50 }
 0x160   :  { %v357_v4 = vpop.f32.mrf.mxu0  ;;  %v470_v11 = vpop.f32.mrf.mxu1 }
 0x161   :  { %6216 = vst [vmem:[#allocation70_spill] sm:$0xff] %v5200_v46  ;;  %6217 = vst [vmem:[#allocation71_spill] sm:$0xff] %v5203_v17  ;;  %v5206_v7 = vadd.f32 %v357_v4, %v5046_v33  ;;  %v5209_v10 = vadd.f32 %v470_v11, %v5048_v43  ;;  %v288_v11 = vadd.f32 %v5016_v1, %v5046_v33 }
 0x162   :  { %v359_v53 = vpop.f32.mrf.mxu0  ;;  %v472_v6 = vpop.f32.mrf.mxu1  ;;  %v294_v1 = vadd.f32 %v5042_v13, %v5050_v44 }
 0x163   :  { %6218 = vst [vmem:[#allocation72_spill] sm:$0xff] %v5206_v7  ;;  %6219 = vst [vmem:[#allocation73_spill] sm:$0xff] %v5209_v10  ;;  %v5212_v16 = vadd.f32 %v359_v53, %v5050_v44  ;;  %v5215_v48 = vadd.f32 %v472_v6, %v5053_v50 }
 0x164   :  { %v361_v9 = vpop.f32.mrf.mxu0  ;;  %v474_v46 = vpop.f32.mrf.mxu1 }
 0x165   :  { %6220 = vst [vmem:[#allocation74_spill] sm:$0xff] %v5212_v16  ;;  %6221 = vst [vmem:[#allocation75_spill] sm:$0xff] %v5215_v48  ;;  %v5218_v62 = vadd.f32 %v361_v9, %v5046_v33  ;;  %v5221_v17 = vadd.f32 %v474_v46, %v5048_v43  ;;  %v290_v48 = vadd.f32 %v5023_v3, %v5050_v44 }
 0x166   :  { %v363_v4 = vpop.f32.mrf.mxu0  ;;  %v476_v7 = vpop.f32.mrf.mxu1  ;;  %v292_v46 = vadd.f32 %v5035_v12, %v5046_v33  ;;  %v403_v12 = vadd.f32 %v5025_v5, %v5053_v50  ;;  %v401_v33 = vadd.f32 %v5018_v2, %v5048_v43 }
 0x167   :  { %6222 = vst [vmem:[#allocation76_spill] sm:$0xff] %v5218_v62  ;;  %6223 = vst [vmem:[#allocation77_spill] sm:$0xff] %v5221_v17  ;;  %v5226_v10 = vadd.f32 %v363_v4, %v5050_v44  ;;  %v5229_v53 = vadd.f32 %v476_v7, %v5053_v50  ;;  %v407_v44 = vadd.f32 %v5044_v24, %v5053_v50  ;;  %v5245_v50 = vld [vmem:[#allocation16] sm:$0xff] }
 0x168   :  { %v800_v6 = vpop.f32.mrf.mxu0  ;;  %v843_v16 = vpop.f32.mrf.mxu1 }
 0x169   :  { %6224 = vst [vmem:[#allocation78_spill] sm:$0xff] %v5226_v10  ;;  %6225 = vst [vmem:[#allocation79_spill] sm:$0xff] %v5229_v53  ;;  %v852_v9 = vadd.f32 %v800_v6, %v288_v11 }
 0x16a   :  { %v802_v62 = vpop.f32.mrf.mxu0  ;;  %v845_v10 = vpop.f32.mrf.mxu1 }
 0x16b   :  { %v3744_v17 = vmul.f32 -1.442695, %v852_v9  ;;  %v853_v49 = vadd.f32 %v802_v62, %v290_v48  ;;  %v855_v48 = vadd.f32 %v845_v10, %v403_v12 }
 0x16c   :  { %v804_v55 = vpop.f32.mrf.mxu0  ;;  %v847_v6 = vpop.f32.mrf.mxu1 }
 0x16d   :  { %4220 = vpow2.f32 %v3744_v17  ;;  %v3746_v4 = vmul.f32 -1.442695, %v853_v49  ;;  %v856_v7 = vadd.f32 %v804_v55, %v292_v46  ;;  %v854_v55 = vadd.f32 %v843_v16, %v401_v33 }
 0x16e   :  { %v806_v53 = vpop.f32.mrf.mxu0  ;;  %v849_v13 = vpop.f32.mrf.mxu1  ;;  %v405_v17 = vadd.f32 %v5037_v15, %v5048_v43 }
 0x16f   :  { %4222 = vpow2.f32 %v3746_v4  ;;  %v3745_v39 = vmul.f32 -1.442695, %v856_v7  ;;  %v857_v3 = vadd.f32 %v806_v53, %v294_v1  ;;  %v859_v62 = vadd.f32 %v849_v13, %v407_v44 }
 0x170   :  { %v858_v46 = vadd.f32 %v847_v6, %v405_v17 }
 0x171   :  { %4224 = vpow2.f32 %v3745_v39  ;;  %v3747_v11 = vmul.f32 -1.442695, %v857_v3  ;;  %v3748_v39 = vmul.f32 -1.442695, %v855_v48  ;;  %v3749_v2 = vmul.f32 -1.442695, %v859_v62 }
 0x172   :  { %v5248_v48 = vld [vmem:[#allocation16 + $0x8] sm:$0xff] }
 0x173   :  { %4226 = vpow2.f32 %v3747_v11 }
 0x174   :  { %4228 = vtanh.f32 %v854_v55 }
 0x17a   :  { %v4221_v49 = vpop.eup %4220 }
 0x17b   :  { %v866_v53 = vadd.f32 1.0, %v4221_v49 }
 0x17c   :  { %v4223_v9 = vpop.eup %4222 }
 0x17d   :  { %4230 = vrcp.f32 %v866_v53  ;;  %v878_v5 = vadd.f32 1.0, %v4223_v9 }
 0x17e   :  { %v4225_v1 = vpop.eup %4224  ;;  %4232 = vpow2.f32 %v3748_v39 }
 0x17f   :  { %4234 = vrcp.f32 %v878_v5  ;;  %v867_v10 = vadd.f32 1.0, %v4225_v1 }
 0x180   :  { %v4227_v4 = vpop.eup %4226  ;;  %4236 = vtanh.f32 %v858_v46 }
 0x181   :  { %4238 = vrcp.f32 %v867_v10  ;;  %v879_v24 = vadd.f32 1.0, %v4227_v4  ;;  %v4229_v15 = vpop.eup %4228 }
 0x182   :  { %4240 = vpow2.f32 %v3749_v2 }
 0x183   :  { %4242 = vrcp.f32 %v879_v24 }
 0x18a   :  { %v4231_v43 = vpop.eup %4230 }
 0x18b   :  { %v4233_v16 = vpop.eup %4232  ;;  %v898_v7 = vmul.f32 %v4231_v43, %v4229_v15  ;;  %v6226_v15 = vmov 0  }
 0x18c   :  { %v4235_v3 = vpop.eup %4234  ;;  %v892_v33 = vadd.f32 1.0, %v4233_v16 }
 0x18d   :  { %v4237_v11 = vpop.eup %4236  ;;  %v900_v6 = vmul.f32 %v4235_v3, %v5245_v50 }
 0x18e   :  { %v4239_v12 = vpop.eup %4238  ;;  %4244 = vrcp.f32 %v892_v33 }
 0x18f   :  { %v4241_v13 = vpop.eup %4240  ;;  %v5250_v44 = vadd.f32 %v900_v6, %v898_v7  ;;  %v899_v17 = vmul.f32 %v4239_v12, %v4237_v11 }
 0x190   :  { %v4243_v55 = vpop.eup %4242  ;;  %v893_v62 = vadd.f32 1.0, %v4241_v13 }
 0x191   :  { %v3750_v49 = vclamps-f32 %v5250_v44, 3.0  ;;  %v901_v39 = vmul.f32 %v4243_v55, %v5248_v48 }
 0x193   :  { %4246 = vtanh.f32 %v3750_v49  ;;  %v5256_v53 = vadd.f32 %v901_v39, %v899_v17 }
 0x194   :  { %4248 = vrcp.f32 %v893_v62 }
 0x195   :  { %v3751_v9 = vclamps-f32 %v5256_v53, 3.0 }
 0x197   :  { %4250 = vtanh.f32 %v3751_v9 }
 0x19b   :  { %v4245_v46 = vpop.eup %4244 }
 0x1a0   :  { %v4247_v5 = vpop.eup %4246 }
 0x1a1   :  { %v910_v1 = vmul.f32 %v4247_v5, %v4245_v46  ;;  %v4249_v2 = vpop.eup %4248 }
 0x1a4   :  { %v4251_v10 = vpop.eup %4250 }
 0x1a5   :  { %v911_v4 = vmul.f32 %v4251_v10, %v4249_v2  ;;  %v6227_v10 = vmov 0.0  }
 0x1a7   :  { %v912_v24 = vpack.c.bf16 %v911_v4, %v910_v1 }
 0x1a9   :  { %3985 = vmatmul.mubr.bf16.vlgmr.msra.gmra.mxu0 %v912_v24 }
 0x1aa   :  { %1210 = vmatpush1.bf16.msra.mxu0 %v4834_v14  ;;  %1241 = vmatprep.mubr.bf16.mxu0 %v6226_v15  ;;  %v1362_v14 = vsel %vm1360_vm10, 1, %v6226_v15 }
 0x1ab   :  { %1211 = vmatprep.subr.bf16.mxu0 %v4844_v18  ;;  %1365 = vperm.xlu1 %4149, %v1362_v14   ;;  %v1363_v18 = vsel %vm1361_vm11, 1, %v6226_v15 }
 0x1ae   :  { %1212 = vmatpush1.bf16.msra.mxu0 %v4846_v19  ;;  %v4734_v19 = vmov 1966171168  }
 0x1af   :  { %1213 = vmatprep.subr.bf16.mxu0 %v4858_v22  ;;  %1368 = vperm.xlu1 %4149, %v1363_v18   ;;  %v1029_v22 = vunpack.c.l.s4 %v4734_v19  ;;  %v5322_v19 = vld [vmem:[#allocation10 + $0xe0] ss:$16 sps:$4 sm:$0xff]  }
 0x1b2   :  { %1214 = vmatpush1.bf16.msra.mxu0 %v4862_v23  ;;  %v1030_v23 = vunpack.c.0.s8 %v1029_v22 }
 0x1b3   :  { %1215 = vmatprep.subr.bf16.mxu0 %v4870_v27  ;;  %v5282_v27 = vpop.permute.xlu0 %1012 }
 0x1b4   :  { %vm1017_vm12 = vcmp.eq.s32.totalorder %v5282_v27, 1 }
 0x1b6   :  { %1216 = vmatpush1.bf16.msra.mxu0 %v4874_v28  ;;  %v5285_v28 = vsub.s32 %v1030_v23, %v5014_v0 }
 0x1b7   :  { %1217 = vmatprep.subr.bf16.mxu0 %v4880_v29 }
 0x1ba   :  { %1218 = vmatpush1.bf16.msra.mxu0 %v4890_v32 }
 0x1bb   :  { %1219 = vmatprep.subr.bf16.mxu0 %v4896_v35  ;;  %v5288_v35 = vpop.permute.xlu0 %1015 }
 0x1bc   :  { %vm1018_vm13 = vcmp.eq.s32.totalorder %v5288_v35, 1 }
 0x1be   :  { %1220 = vmatpush1.bf16.msra.mxu0 %v4900_v36 }
 0x1bf   :  { %1221 = vmatprep.subr.bf16.mxu0 %v4906_v38 }
 0x1c2   :  { %1222 = vmatpush1.bf16.msra.mxu0 %v4919_v41 }
 0x1c3   :  { %1223 = vmatprep.subr.bf16.mxu0 %v4932_v45 }
 0x1c6   :  { %1224 = vmatpush1.bf16.msra.mxu0 %v4935_v47 }
 0x1c7   :  { %1519 = vmatprep.subr.bf16.mxu0 %v4815_v8 }
 0x269   :  { %v995_v29 = vpop.f32.mrf.mxu0 }
 0x26a   :  { %v3760_v8 = vclamps-f32 %v995_v29, 3.0  ;;  %v5327_v29 = vld [vmem:[#allocation10 + $0xc4] ss:$16 sps:$4 sm:$0xff]  }
 0x26b   :  { %v3986_v32 = vpop.f32.mrf.mxu0 }
 0x26c   :  { %v1023_v36 = vsel %vm1017_vm12, %v3760_v8, 0.0  ;;  %v5299_v7 = vsel %vm1017_vm12, %v3760_v8, %v4958_v51  ;;  %v5332_v32 = vld [vmem:[#allocation10 + $0xc0] ss:$16 sps:$4 sm:$0xff]  }
 0x26d   :  { %v1027_v38 = vcombine.high %v1023_v36, %v1023_v36  ;;  %v1034_v40 = vrot.slane %v1023_v36, %v5285_v28  ;;  %v998_v41 = vpop.f32.mrf.mxu0  ;;  %v5335_v36 = vld [vmem:[#allocation10 + $0xa4] ss:$16 sps:$4 sm:$0xff]  }
 0x26e   :  { %v3761_v45 = vclamps-f32 %v998_v41, 3.0 }
 0x26f   :  { %v1041_v47 = vrot.slane %v1027_v38, %v5285_v28  ;;  %v1042_v0 = vcombine.high %v1034_v40, %v1034_v40  ;;  %v1050_v43 = vrot.slane %v1034_v40, %v5285_v28  ;;  %3762 = vst.sshfl [vmem:[#allocation13] sm:$0x1 pattern:$0x73625140] %v1034_v40  ;;  %v3987_v16 = vpop.f32.mrf.mxu0  ;;  %v5340_v38 = vld [vmem:[#allocation10 + $0xa0] ss:$16 sps:$4 sm:$0xff]  }
 0x270   :  { %v5304_v3 = vsel %vm1018_vm13, %v3761_v45, %v4960_v52  ;;  %v1024_v11 = vsel %vm1018_vm13, %v3761_v45, 0.0  ;;  %v6231_v40 = vld [vmem:[#allocation26_spill] sm:$0xff] }
 0x271   :  { %v1043_v6 = vcombine.high %v1041_v47, %v1041_v47  ;;  %v1057_v12 = vrot.slane %v1041_v47, %v5285_v28  ;;  %v1064_v33 = vrot.slane %v1042_v0, %v5285_v28  ;;  %v1072_v13 = vcombine.high %v1050_v43, %v1050_v43  ;;  %3763 = vst.sshfl [vmem:[#allocation13 + $0x8] sm:$0x1 pattern:$0x73625140] %v1042_v0  ;;  %v6232_v0 = vld [vmem:[#allocation28_spill] sm:$0xff] }
 0x272   :  { %3764 = vst.sshfl [vmem:[#allocation13 + $0x20] sm:$0x1 pattern:$0x73625140] %v1041_v47  ;;  %v1076_v55 = vcombine.high %v1024_v11, %v1024_v11  ;;  %v1083_v51 = vrot.slane %v1024_v11, %v5285_v28  ;;  %v1165_v17 = vpack.c.bf16 %v5304_v3, %v5299_v7 }
 0x273   :  { %v1071_v52 = vrot.slane %v1043_v6, %v5285_v28  ;;  %v1073_v39 = vcombine.high %v1057_v12, %v1057_v12  ;;  %v1074_v62 = vcombine.high %v1064_v33, %v1064_v33  ;;  %1143 = vst [vmem:[#allocation13 + $0x10] sm:$0x1] %v1072_v13  ;;  %3765 = vst.sshfl [vmem:[#allocation13 + $0x28] sm:$0x1 pattern:$0x73625140] %v1043_v6 }
 0x274   :  { %v1090_v46 = vrot.slane %v1076_v55, %v5285_v28  ;;  %v1091_v5 = vcombine.high %v1083_v51, %v1083_v51  ;;  %v1099_v1 = vrot.slane %v1083_v51, %v5285_v28  ;;  %3766 = vst.sshfl [vmem:[#allocation13 + $0x40] sm:$0x1 pattern:$0x73625140] %v1083_v51  ;;  %1199 = vmatmul.mubr.bf16.vlgmr.msra.gmra.mxu1 %v1165_v17  ;;  %v6233_v6 = vld [vmem:[#allocation30_spill] sm:$0xff]  ;;  %v6234_v55 = vld [vmem:[#allocation27_spill] sm:$0xff] }
 0x275   :  { %1242 = vmatmul.mubr.bf16.vlgmr.msra.gmra.mxu0 %v1165_v17  ;;  %v1075_v2 = vcombine.high %v1071_v52, %v1071_v52  ;;  %1144 = vst [vmem:[#allocation13 + $0x18] sm:$0x1] %v1074_v62  ;;  %1147 = vst [vmem:[#allocation13 + $0x30] sm:$0x1] %v1073_v39  ;;  %3989 = vmatpush3.bf16.msra.mxu1 %v4980_v54  ;;  %v6235_v52 = vld [vmem:[#allocation25_spill] sm:$0xff] }
 0x276   :  { %4004 = vmatprep.mubr.msk.bf16.mxu1 %vm4733_vm3, %v6227_v10  ;;  %v1092_v4 = vcombine.high %v1090_v46, %v1090_v46  ;;  %v1106_v24 = vrot.slane %v1090_v46, %v5285_v28  ;;  %v1113_v14 = vrot.slane %v1091_v5, %v5285_v28  ;;  %v1121_v18 = vcombine.high %v1099_v1, %v1099_v1 }
 0x277   :  { %3767 = vst.sshfl [vmem:[#allocation13 + $0x48] sm:$0x1 pattern:$0x73625140] %v1091_v5  ;;  %3990 = vmatprep.subr.bf16.mxu1 %v6227_v10  ;;  %1148 = vst [vmem:[#allocation13 + $0x38] sm:$0x1] %v1075_v2  ;;  %1520 = vmatpush1.bf16.msra.mxu0 %v5322_v19 }
 0x278   :  { %3768 = vst.sshfl [vmem:[#allocation13 + $0x60] sm:$0x1 pattern:$0x73625140] %v1090_v46  ;;  %1551 = vmatprep.mubr.bf16.mxu0 %v6226_v15  ;;  %v1120_v54 = vrot.slane %v1092_v4, %v5285_v28  ;;  %v1122_v22 = vcombine.high %v1106_v24, %v1106_v24  ;;  %v1123_v23 = vcombine.high %v1113_v14, %v1113_v14  ;;  %1151 = vst [vmem:[#allocation13 + $0x50] sm:$0x1] %v1121_v18 }
 0x279   :  { %3769 = vst.sshfl [vmem:[#allocation13 + $0x68] sm:$0x1 pattern:$0x73625140] %v1092_v4  ;;  %1521 = vmatprep.subr.bf16.mxu0 %v5327_v29  ;;  %3991 = vmatpush3.bf16.msra.mxu1 %v4985_v56  ;;  %v5343_v56 = vld [vmem:[#allocation10 + $0x84] ss:$16 sps:$4 sm:$0xff]  }
 0x27a   :  { %v1124_v8 = vcombine.high %v1120_v54, %v1120_v54  ;;  %1152 = vst [vmem:[#allocation13 + $0x58] sm:$0x1] %v1123_v23  ;;  %1155 = vst [vmem:[#allocation13 + $0x70] sm:$0x1] %v1122_v22  ;;  %3992 = vmatprep.subr.bf16.mxu1 %v6227_v10  ;;  %v6236_v5 = vld [vmem:[#allocation31_spill] sm:$0xff]  ;;  %v6237_v24 = vld [vmem:[#allocation29_spill] sm:$0xff] }
 0x27b   :  { %1522 = vmatpush1.bf16.msra.mxu0 %v5332_v32 }
 0x27c   :  { %1156 = vst [vmem:[#allocation13 + $0x78] sm:$0x1] %v1124_v8  ;;  %1523 = vmatprep.subr.bf16.mxu0 %v5335_v36 }
 0x27d   :  { %3993 = vmatpush3.bf16.msra.mxu1 %v4990_v57 }
 0x27e   :  { %3994 = vmatprep.subr.bf16.mxu1 %v6227_v10 }
 0x27f   :  { %1524 = vmatpush1.bf16.msra.mxu0 %v5340_v38 }
 0x280   :  { %1525 = vmatprep.subr.bf16.mxu0 %v5343_v56 }
 0x281   :  { %3995 = vmatpush3.bf16.msra.mxu1 %v4994_v58  ;;  %v6230_v58 = vld [vmem:[#allocation24_spill] sm:$0xff] }
 0x282   :  { %3996 = vmatprep.subr.bf16.mxu1 %v6227_v10 }
 0x283   :  { %1526 = vmatpush1.bf16.msra.mxu0 %v4852_v20  ;;  %v5363_v20 = vld [vmem:[#allocation10 + $0xec] ss:$16 sps:$4 sm:$0xff]  }
 0x284   :  { %1527 = vmatprep.subr.bf16.mxu0 %v4854_v21  ;;  %6228 = vst [vmem:[#allocation80_spill] sm:$0xff] %v5363_v20  ;;  %v6229_v21 = vld [vmem:[#allocation23_spill] sm:$0xff] }
 0x285   :  { %3997 = vmatpush3.bf16.msra.mxu1 %v4999_v59 }
 0x286   :  { %3998 = vmatprep.subr.bf16.mxu1 %v6227_v10 }
 0x287   :  { %1528 = vmatpush1.bf16.msra.mxu0 %v4865_v25  ;;  %v1716_v25 = vsel %vm1714_vm14, 1, %v6226_v15 }
 0x288   :  { %1529 = vmatprep.subr.bf16.mxu0 %v4868_v26  ;;  %1721 = vperm.xlu1 %4149, %v1716_v25   ;;  %v2069_v26 = vsel %vm2067_vm15, 1, %v6226_v15 }
 0x289   :  { %3999 = vmatpush3.bf16.msra.mxu1 %v5003_v60 }
 0x28a   :  { %4000 = vmatprep.subr.bf16.mxu1 %v6227_v10 }
 0x28b   :  { %1530 = vmatpush1.bf16.msra.mxu0 %v4883_v30  ;;  %v2422_v30 = vsel %vm2420_vm0, 1, %v6226_v15 }
 0x28c   :  { %1531 = vmatprep.subr.bf16.mxu0 %v4888_v31  ;;  %2074 = vperm.xlu1 %4149, %v2069_v26   ;;  %v2775_v31 = vsel %vm2773_vm1, 1, %v6226_v15 }
 0x28d   :  { %4001 = vmatpush3.bf16.msra.mxu1 %v5007_v61 }
 0x28e   :  { %4002 = vmatprep.subr.bf16.mxu1 %v6227_v10 }
 0x28f   :  { %1532 = vmatpush1.bf16.msra.mxu0 %v4893_v34  ;;  %v3128_v34 = vsel %vm3126_vm2, 1, %v6226_v15 }
 0x290   :  { %1533 = vmatprep.subr.bf16.mxu0 %v4902_v37  ;;  %2427 = vperm.xlu1 %4149, %v2422_v30   ;;  %v3481_v37 = vsel %vm3479_vm4, 1, %v6226_v15 }
 0x291   :  { %4003 = vmatpush3.bf16.msra.mxu1 %v5011_v63 }
 0x292   :  { %1562 = vmatprep.subr.bf16.mxu1 %v5363_v20 }
 0x293   :  { %1534 = vmatpush1.bf16.msra.mxu0 %v6229_v21 }
 0x294   :  { %4008 = vmatprep.subr.bf16.mxu0 %v6227_v10  ;;  %2780 = vperm.xlu1 %4149, %v2775_v31   ;;  %v5388_v31 = vpop.permute.xlu1 %1365 }
 0x295   :  { %vm1370_vm5 = vcmp.eq.s32.totalorder %v5388_v31, 1 }
 0x298   :  { %3133 = vperm.xlu1 %4149, %v3128_v34  }
 0x29c   :  { %3486 = vperm.xlu1 %4149, %v3481_v37  }
 0x334   :  { %v1200_v57 = vpop.f32.mrf.mxu1 }
 0x335   :  { %v1252_v59 = vadd.f32 %v1200_v57, %v6230_v58  ;;  %v1243_v63 = vpop.f32.mrf.mxu0  ;;  %v1019_v57 = vsel %vm1017_vm12, %v3750_v49, %v5245_v50 }
 0x336   :  { %v1202_v60 = vpop.f32.mrf.mxu1  ;;  %v1254_v39 = vadd.f32 %v1243_v63, %v6235_v52  ;;  %v5428_v52 = vld [vmem:[#allocation10 + $0x8c] ss:$16 sps:$4 sm:$0xff]  }
 0x337   :  { %v3770_v61 = vmul.f32 -1.442695, %v1252_v59  ;;  %v1253_v41 = vadd.f32 %v1202_v60, %v6231_v40  ;;  %v1245_v42 = vpop.f32.mrf.mxu0 }
 0x338   :  { %v1204_v45 = vpop.f32.mrf.mxu1  ;;  %v1255_v51 = vadd.f32 %v1245_v42, %v6234_v55  ;;  %v5419_v55 = vld [vmem:[#allocation10 + $0xc8] ss:$16 sps:$4 sm:$0xff]  }
 0x339   :  { %4252 = vpow2.f32 %v3770_v61  ;;  %v3772_v47 = vmul.f32 -1.442695, %v1253_v41  ;;  %v1256_v43 = vadd.f32 %v1204_v45, %v6232_v0  ;;  %v1247_v13 = vpop.f32.mrf.mxu0  ;;  %v5401_v0 = vpop.permute.xlu1 %1368 }
 0x33a   :  { %v1206_v16 = vpop.f32.mrf.mxu1  ;;  %v3774_v46 = vmul.f32 -1.442695, %v1255_v51  ;;  %v1258_v14 = vadd.f32 %v1247_v13, %v6237_v24  ;;  %vm1371_vm6 = vcmp.eq.s32.totalorder %v5401_v0, 1  ;;  %v5416_v13 = vld [vmem:[#allocation10 + $0xcc] ss:$16 sps:$4 sm:$0xff]  }
 0x33b   :  { %4254 = vpow2.f32 %v3772_v47  ;;  %v3771_v11 = vmul.f32 -1.442695, %v1256_v43  ;;  %v1257_v12 = vadd.f32 %v1206_v16, %v6233_v6  ;;  %v1249_v17 = vpop.f32.mrf.mxu0  ;;  %v1020_v47 = vsel %vm1018_vm13, %v3751_v9, %v5248_v48  ;;  %v5422_v51 = vld [vmem:[#allocation10 + $0xac] ss:$16 sps:$4 sm:$0xff]  }
 0x33c   :  { %v1259_v1 = vadd.f32 %v1249_v17, %v6236_v5  ;;  %v5425_v17 = vld [vmem:[#allocation10 + $0xa8] ss:$16 sps:$4 sm:$0xff]   ;;  %v5440_v5 = vld [vmem:[#allocation10 + $0x4c] ss:$16 sps:$4 sm:$0xff]  }
 0x33d   :  { %4256 = vpow2.f32 %v3771_v11  ;;  %v3773_v33 = vmul.f32 -1.442695, %v1257_v12  ;;  %v5452_v24 = vld [vmem:[#allocation10 + $0xc] ss:$16 sps:$4 sm:$0xff]  }
 0x33e   :  { %v3775_v22 = vmul.f32 -1.442695, %v1259_v1  ;;  %v5443_v1 = vld [vmem:[#allocation10 + $0x48] ss:$16 sps:$4 sm:$0xff]  }
 0x33f   :  { %4258 = vpow2.f32 %v3773_v33  ;;  %v5412_v33 = vld [vmem:[#allocation10 + $0xe8] ss:$16 sps:$4 sm:$0xff]  }
 0x340   :  { %4260 = vtanh.f32 %v1254_v39  ;;  %v5431_v39 = vld [vmem:[#allocation10 + $0x88] ss:$16 sps:$4 sm:$0xff]  }
 0x346   :  { %v4253_v62 = vpop.eup %4252 }
 0x347   :  { %v1266_v2 = vadd.f32 1.0, %v4253_v62  ;;  %v5434_v62 = vld [vmem:[#allocation10 + $0x6c] ss:$16 sps:$4 sm:$0xff]  }
 0x348   :  { %v4255_v4 = vpop.eup %4254 }
 0x349   :  { %4262 = vrcp.f32 %v1266_v2  ;;  %v1278_v18 = vadd.f32 1.0, %v4255_v4  ;;  %v5446_v2 = vld [vmem:[#allocation10 + $0x2c] ss:$16 sps:$4 sm:$0xff]   ;;  %v5449_v4 = vld [vmem:[#allocation10 + $0x28] ss:$16 sps:$4 sm:$0xff]  }
 0x34a   :  { %v4257_v54 = vpop.eup %4256  ;;  %4264 = vpow2.f32 %v3774_v46  ;;  %v5437_v46 = vld [vmem:[#allocation10 + $0x68] ss:$16 sps:$4 sm:$0xff]  }
 0x34b   :  { %4266 = vrcp.f32 %v1278_v18  ;;  %v1267_v23 = vadd.f32 1.0, %v4257_v54  ;;  %v5458_v18 = vld [vmem:[#allocation10 + $0xe4] ss:$16 sps:$4 sm:$0xff]  }
 0x34c   :  { %v4259_v8 = vpop.eup %4258  ;;  %4268 = vtanh.f32 %v1258_v14  ;;  %v5455_v14 = vld [vmem:[#allocation10 + $0x8] ss:$16 sps:$4 sm:$0xff]  }
 0x34d   :  { %4270 = vrcp.f32 %v1267_v23  ;;  %v1279_v21 = vadd.f32 1.0, %v4259_v8  ;;  %v4261_v25 = vpop.eup %4260 }
 0x34e   :  { %4272 = vpow2.f32 %v3775_v22 }
 0x34f   :  { %4274 = vrcp.f32 %v1279_v21 }
 0x356   :  { %v4263_v26 = vpop.eup %4262 }
 0x357   :  { %v4265_v30 = vpop.eup %4264  ;;  %v1298_v34 = vmul.f32 %v4263_v26, %v4261_v25 }
 0x358   :  { %v4267_v37 = vpop.eup %4266  ;;  %v1292_v61 = vadd.f32 1.0, %v4265_v30 }
 0x359   :  { %v4269_v58 = vpop.eup %4268  ;;  %v1300_v59 = vmul.f32 %v4267_v37, %v1019_v57 }
 0x35a   :  { %v4271_v60 = vpop.eup %4270  ;;  %4276 = vrcp.f32 %v1292_v61 }
 0x35b   :  { %v4273_v63 = vpop.eup %4272  ;;  %v1302_v40 = vadd.f32 %v1300_v59, %v1298_v34  ;;  %v1299_v41 = vmul.f32 %v4271_v60, %v4269_v58 }
 0x35c   :  { %v4275_v45 = vpop.eup %4274  ;;  %v1293_v49 = vadd.f32 1.0, %v4273_v63 }
 0x35d   :  { %v3776_v44 = vclamps-f32 %v1302_v40, 3.0  ;;  %v1301_v50 = vmul.f32 %v4275_v45, %v1020_v47 }
 0x35f   :  { %4278 = vtanh.f32 %v3776_v44  ;;  %v5405_v27 = vsel %vm1370_vm5, %v3776_v44, %v1019_v57  ;;  %v1303_v43 = vadd.f32 %v1301_v50, %v1299_v41 }
 0x360   :  { %4280 = vrcp.f32 %v1293_v49 }
 0x361   :  { %v3777_v53 = vclamps-f32 %v1303_v43, 3.0 }
 0x363   :  { %4282 = vtanh.f32 %v3777_v53  ;;  %v5410_v48 = vsel %vm1371_vm6, %v3777_v53, %v1020_v47 }
 0x367   :  { %v4277_v9 = vpop.eup %4276 }
 0x36c   :  { %v4279_v35 = vpop.eup %4278 }
 0x36d   :  { %v1310_v16 = vmul.f32 %v4279_v35, %v4277_v9  ;;  %v4281_v42 = vpop.eup %4280  ;;  %v5486_v9 = vld [vmem:[#allocation11 + $0x38] sm:$0xff]  }
 0x370   :  { %v4283_v11 = vpop.eup %4282 }
 0x371   :  { %v1311_v6 = vmul.f32 %v4283_v11, %v4281_v42 }
 0x373   :  { %v1312_v12 = vpack.c.bf16 %v1311_v6, %v1310_v16 }
 0x375   :  { %4005 = vmatmul.mubr.bf16.vlgmr.msra.gmra.mxu1 %v1312_v12 }
 0x376   :  { %1563 = vmatpush1.bf16.msra.mxu1 %v5412_v33  ;;  %1594 = vmatprep.mubr.bf16.mxu1 %v6226_v15 }
 0x377   :  { %1564 = vmatprep.subr.bf16.mxu1 %v5416_v13 }
 0x37a   :  { %1565 = vmatpush1.bf16.msra.mxu1 %v5419_v55 }
 0x37b   :  { %1566 = vmatprep.subr.bf16.mxu1 %v5422_v51 }
 0x37e   :  { %1567 = vmatpush1.bf16.msra.mxu1 %v5425_v17 }
 0x37f   :  { %1568 = vmatprep.subr.bf16.mxu1 %v5428_v52 }
 0x382   :  { %1569 = vmatpush1.bf16.msra.mxu1 %v5431_v39 }
 0x383   :  { %1570 = vmatprep.subr.bf16.mxu1 %v5434_v62 }
 0x386   :  { %1571 = vmatpush1.bf16.msra.mxu1 %v5437_v46 }
 0x387   :  { %1572 = vmatprep.subr.bf16.mxu1 %v5440_v5 }
 0x38a   :  { %1573 = vmatpush1.bf16.msra.mxu1 %v5443_v1 }
 0x38b   :  { %1574 = vmatprep.subr.bf16.mxu1 %v5446_v2 }
 0x38e   :  { %1575 = vmatpush1.bf16.msra.mxu1 %v5449_v4 }
 0x38f   :  { %1576 = vmatprep.subr.bf16.mxu1 %v5452_v24 }
 0x392   :  { %1577 = vmatpush1.bf16.msra.mxu1 %v5455_v14 }
 0x393   :  { %1872 = vmatprep.subr.bf16.mxu1 %v5458_v18 }
 0x435   :  { %v1347_v54 = vpop.f32.mrf.mxu1 }
 0x436   :  { %v3778_v22 = vclamps-f32 %v1347_v54, 3.0 }
 0x437   :  { %v4006_v23 = vpop.f32.mrf.mxu1 }
 0x438   :  { %v1376_v8 = vsel %vm1370_vm5, %v3778_v22, 0.0  ;;  %v5469_v59 = vsel %vm1370_vm5, %v3778_v22, %v5299_v7  ;;  %v5498_v22 = vld [vmem:[#allocation11 + $0x30] sm:$0xff]  }
 0x439   :  { %v1380_v21 = vcombine.high %v1376_v8, %v1376_v8  ;;  %v1387_v25 = vrot.slane %v1376_v8, %v5285_v28  ;;  %v1350_v26 = vpop.f32.mrf.mxu1  ;;  %v5504_v8 = vld [vmem:[#allocation11 + $0x28] sm:$0xff]  }
 0x43a   :  { %v3779_v30 = vclamps-f32 %v1350_v26, 3.0  ;;  %v5517_v26 = vld [vmem:[#allocation10 + $0x64] ss:$16 sps:$4 sm:$0xff]  }
 0x43b   :  { %v1394_v34 = vrot.slane %v1380_v21, %v5285_v28  ;;  %v1395_v37 = vcombine.high %v1387_v25, %v1387_v25  ;;  %v1403_v57 = vrot.slane %v1387_v25, %v5285_v28  ;;  %3780 = vst.sshfl [vmem:[#allocation13 + $0x1] sm:$0x1 pattern:$0x73625140] %v1387_v25  ;;  %v4007_v58 = vpop.f32.mrf.mxu1  ;;  %v5510_v21 = vld [vmem:[#allocation11 + $0x20] sm:$0xff]  }
 0x43c   :  { %v5474_v60 = vsel %vm1371_vm6, %v3779_v30, %v5304_v3  ;;  %v1377_v61 = vsel %vm1371_vm6, %v3779_v30, 0.0  ;;  %v5514_v25 = vld [vmem:[#allocation10 + $0x80] ss:$16 sps:$4 sm:$0xff]   ;;  %v5520_v30 = vld [vmem:[#allocation11 + $0x18] sm:$0xff]  }
 0x43d   :  { %v1396_v63 = vcombine.high %v1394_v34, %v1394_v34  ;;  %v1410_v40 = vrot.slane %v1394_v34, %v5285_v28  ;;  %v1417_v41 = vrot.slane %v1395_v37, %v5285_v28  ;;  %v1425_v45 = vcombine.high %v1403_v57, %v1403_v57  ;;  %3781 = vst.sshfl [vmem:[#allocation13 + $0x9] sm:$0x1 pattern:$0x73625140] %v1395_v37  ;;  %v5527_v37 = vld [vmem:[#allocation10 + $0x44] ss:$16 sps:$4 sm:$0xff]  }
 0x43e   :  { %3782 = vst.sshfl [vmem:[#allocation13 + $0x21] sm:$0x1 pattern:$0x73625140] %v1394_v34  ;;  %v1429_v47 = vcombine.high %v1377_v61, %v1377_v61  ;;  %v1436_v7 = vrot.slane %v1377_v61, %v5285_v28  ;;  %v1518_v31 = vpack.c.bf16 %v5474_v60, %v5469_v59  ;;  %v5524_v34 = vld [vmem:[#allocation10 + $0x60] ss:$16 sps:$4 sm:$0xff]  }
 0x43f   :  { %v1424_v3 = vrot.slane %v1396_v63, %v5285_v28  ;;  %v1426_v44 = vcombine.high %v1410_v40, %v1410_v40  ;;  %v1427_v50 = vcombine.high %v1417_v41, %v1417_v41  ;;  %1496 = vst [vmem:[#allocation13 + $0x11] sm:$0x1] %v1425_v45  ;;  %3783 = vst.sshfl [vmem:[#allocation13 + $0x29] sm:$0x1 pattern:$0x73625140] %v1396_v63 }
 0x440   :  { %v1443_v0 = vrot.slane %v1429_v47, %v5285_v28  ;;  %v1444_v49 = vcombine.high %v1436_v7, %v1436_v7  ;;  %v1452_v43 = vrot.slane %v1436_v7, %v5285_v28  ;;  %3784 = vst.sshfl [vmem:[#allocation13 + $0x41] sm:$0x1 pattern:$0x73625140] %v1436_v7  ;;  %1552 = vmatmul.mubr.bf16.vlgmr.msra.gmra.mxu0 %v1518_v31  ;;  %v5530_v57 = vld [vmem:[#allocation11 + $0x10] sm:$0xff]   ;;  %v5540_v63 = vld [vmem:[#allocation11 + $0x8] sm:$0xff]  }
 0x441   :  { %1595 = vmatmul.mubr.bf16.vlgmr.msra.gmra.mxu1 %v1518_v31  ;;  %v1428_v53 = vcombine.high %v1424_v3, %v1424_v3  ;;  %1497 = vst [vmem:[#allocation13 + $0x19] sm:$0x1] %v1427_v50  ;;  %1500 = vst [vmem:[#allocation13 + $0x31] sm:$0x1] %v1426_v44  ;;  %4009 = vmatpush3.bf16.msra.mxu0 %v5486_v9  ;;  %v5534_v58 = vld [vmem:[#allocation10 + $0x40] ss:$16 sps:$4 sm:$0xff]  }
 0x442   :  { %4024 = vmatprep.mubr.msk.bf16.mxu0 %vm4733_vm3, %v6227_v10  ;;  %v1445_v35 = vcombine.high %v1443_v0, %v1443_v0  ;;  %v1459_v16 = vrot.slane %v1443_v0, %v5285_v28  ;;  %v1466_v42 = vrot.slane %v1444_v49, %v5285_v28  ;;  %v1474_v11 = vcombine.high %v1452_v43, %v1452_v43  ;;  %v5537_v61 = vld [vmem:[#allocation10 + $0x24] ss:$16 sps:$4 sm:$0xff]   ;;  %v5544_v40 = vld [vmem:[#allocation10 + $0x20] ss:$16 sps:$4 sm:$0xff]   ;;  %v6241_v31 = vld [vmem:[#allocation32_spill] sm:$0xff] }
 0x443   :  { %3785 = vst.sshfl [vmem:[#allocation13 + $0x49] sm:$0x1 pattern:$0x73625140] %v1444_v49  ;;  %4010 = vmatprep.subr.bf16.mxu0 %v6227_v10  ;;  %1501 = vst [vmem:[#allocation13 + $0x39] sm:$0x1] %v1428_v53  ;;  %1873 = vmatpush1.bf16.msra.mxu1 %v5322_v19 }
 0x444   :  { %3786 = vst.sshfl [vmem:[#allocation13 + $0x61] sm:$0x1 pattern:$0x73625140] %v1443_v0  ;;  %1904 = vmatprep.mubr.bf16.mxu1 %v6226_v15  ;;  %v1473_v6 = vrot.slane %v1445_v35, %v5285_v28  ;;  %v1475_v12 = vcombine.high %v1459_v16, %v1459_v16  ;;  %v1476_v54 = vcombine.high %v1466_v42, %v1466_v42  ;;  %1504 = vst [vmem:[#allocation13 + $0x51] sm:$0x1] %v1474_v11 }
 0x445   :  { %3787 = vst.sshfl [vmem:[#allocation13 + $0x69] sm:$0x1 pattern:$0x73625140] %v1445_v35  ;;  %1874 = vmatprep.subr.bf16.mxu1 %v5327_v29  ;;  %4011 = vmatpush3.bf16.msra.mxu0 %v5498_v22  ;;  %v5547_v41 = vld [vmem:[#allocation10 + $0x4] ss:$16 sps:$4 sm:$0xff]  }
 0x446   :  { %v1477_v23 = vcombine.high %v1473_v6, %v1473_v6  ;;  %1505 = vst [vmem:[#allocation13 + $0x59] sm:$0x1] %v1476_v54  ;;  %1508 = vst [vmem:[#allocation13 + $0x71] sm:$0x1] %v1475_v12  ;;  %4012 = vmatprep.subr.bf16.mxu0 %v6227_v10  ;;  %v5550_v45 = vld [vmem:[#allocation11] sm:$0xff]   ;;  %v6242_v49 = vld [vmem:[#allocation34_spill] sm:$0xff] }
 0x447   :  { %1875 = vmatpush1.bf16.msra.mxu1 %v5332_v32  ;;  %6238 = vst [vmem:[#allocation23_spill] sm:$0xff] %v5547_v41  ;;  %6239 = vst [vmem:[#allocation24_spill] sm:$0xff] %v5550_v45  ;;  %v5554_v47 = vld [vmem:[#allocation10] ss:$16 sps:$4 sm:$0xff]   ;;  %v6243_v16 = vld [vmem:[#allocation36_spill] sm:$0xff] }
 0x448   :  { %1509 = vst [vmem:[#allocation13 + $0x79] sm:$0x1] %v1477_v23  ;;  %1876 = vmatprep.subr.bf16.mxu1 %v5335_v36  ;;  %6240 = vst [vmem:[#allocation26_spill] sm:$0xff] %v5554_v47  ;;  %v6244_v54 = vld [vmem:[#allocation38_spill] sm:$0xff] }
 0x449   :  { %4013 = vmatpush3.bf16.msra.mxu0 %v5504_v8 }
 0x44a   :  { %4014 = vmatprep.subr.bf16.mxu0 %v6227_v10 }
 0x44b   :  { %1877 = vmatpush1.bf16.msra.mxu1 %v5340_v38 }
 0x44c   :  { %1878 = vmatprep.subr.bf16.mxu1 %v5343_v56 }
 0x44d   :  { %4015 = vmatpush3.bf16.msra.mxu0 %v5510_v21 }
 0x44e   :  { %4016 = vmatprep.subr.bf16.mxu0 %v6227_v10 }
 0x44f   :  { %1879 = vmatpush1.bf16.msra.mxu1 %v5514_v25 }
 0x450   :  { %1880 = vmatprep.subr.bf16.mxu1 %v5517_v26 }
 0x451   :  { %4017 = vmatpush3.bf16.msra.mxu0 %v5520_v30 }
 0x452   :  { %4018 = vmatprep.subr.bf16.mxu0 %v6227_v10 }
 0x453   :  { %1881 = vmatpush1.bf16.msra.mxu1 %v5524_v34 }
 0x454   :  { %1882 = vmatprep.subr.bf16.mxu1 %v5527_v37 }
 0x455   :  { %4019 = vmatpush3.bf16.msra.mxu0 %v5530_v57 }
 0x456   :  { %4020 = vmatprep.subr.bf16.mxu0 %v6227_v10 }
 0x457   :  { %1883 = vmatpush1.bf16.msra.mxu1 %v5534_v58 }
 0x458   :  { %1884 = vmatprep.subr.bf16.mxu1 %v5537_v61 }
 0x459   :  { %4021 = vmatpush3.bf16.msra.mxu0 %v5540_v63 }
 0x45a   :  { %4022 = vmatprep.subr.bf16.mxu0 %v6227_v10 }
 0x45b   :  { %1885 = vmatpush1.bf16.msra.mxu1 %v5544_v40 }
 0x45c   :  { %1886 = vmatprep.subr.bf16.mxu1 %v5547_v41 }
 0x45d   :  { %4023 = vmatpush3.bf16.msra.mxu0 %v5550_v45  ;;  %v6246_v45 = vld [vmem:[#allocation33_spill] sm:$0xff] }
 0x45e   :  { %1915 = vmatprep.subr.bf16.mxu0 %v5363_v20 }
 0x45f   :  { %1887 = vmatpush1.bf16.msra.mxu1 %v5554_v47 }
 0x460   :  { %4028 = vmatprep.subr.bf16.mxu1 %v6227_v10 }
 0x500   :  { %v1553_v7 = vpop.f32.mrf.mxu0 }
 0x501   :  { %v1605_v3 = vadd.f32 %v1553_v7, %v6241_v31  ;;  %v1596_v0 = vpop.f32.mrf.mxu1  ;;  %v6245_v7 = vld [vmem:[#allocation35_spill] sm:$0xff] }
 0x502   :  { %v1555_v44 = vpop.f32.mrf.mxu0 }
 0x503   :  { %v3788_v50 = vmul.f32 -1.442695, %v1605_v3  ;;  %v1606_v43 = vadd.f32 %v1555_v44, %v6242_v49  ;;  %v1598_v6 = vpop.f32.mrf.mxu1  ;;  %v1607_v44 = vadd.f32 %v1596_v0, %v6246_v45 }
 0x504   :  { %v1557_v53 = vpop.f32.mrf.mxu0  ;;  %v1608_v31 = vadd.f32 %v1598_v6, %v6245_v7 }
 0x505   :  { %4284 = vpow2.f32 %v3788_v50  ;;  %v3790_v35 = vmul.f32 -1.442695, %v1606_v43  ;;  %v1609_v42 = vadd.f32 %v1557_v53, %v6243_v16  ;;  %v1600_v20 = vpop.f32.mrf.mxu1  ;;  %v6247_v43 = vld [vmem:[#allocation39_spill] sm:$0xff] }
 0x506   :  { %v1559_v11 = vpop.f32.mrf.mxu0  ;;  %v3792_v50 = vmul.f32 -1.442695, %v1608_v31 }
 0x507   :  { %4286 = vpow2.f32 %v3790_v35  ;;  %v3789_v12 = vmul.f32 -1.442695, %v1609_v42  ;;  %v1610_v23 = vadd.f32 %v1559_v11, %v6244_v54  ;;  %v1602_v3 = vpop.f32.mrf.mxu1  ;;  %v6248_v35 = vld [vmem:[#allocation37_spill] sm:$0xff] }
 0x508   :  { %v1612_v41 = vadd.f32 %v1602_v3, %v6247_v43  ;;  %v1611_v42 = vadd.f32 %v1600_v20, %v6248_v35  ;;  %v1719_v35 = vpop.permute.xlu0 %1718 }
 0x509   :  { %4288 = vpow2.f32 %v3789_v12  ;;  %v3791_v47 = vmul.f32 -1.442695, %v1610_v23  ;;  %vm1723_vm7 = vcmp.eq.s32.totalorder %v1719_v35, 1 }
 0x50a   :  { %v3793_v54 = vmul.f32 -1.442695, %v1612_v41 }
 0x50b   :  { %4290 = vpow2.f32 %v3791_v47 }
 0x50c   :  { %4292 = vtanh.f32 %v1607_v44 }
 0x512   :  { %v4285_v49 = vpop.eup %4284 }
 0x513   :  { %v1619_v53 = vadd.f32 1.0, %v4285_v49 }
 0x514   :  { %v4287_v16 = vpop.eup %4286 }
 0x515   :  { %4294 = vrcp.f32 %v1619_v53  ;;  %v1631_v11 = vadd.f32 1.0, %v4287_v16 }
 0x516   :  { %v4289_v12 = vpop.eup %4288  ;;  %4296 = vpow2.f32 %v3792_v50 }
 0x517   :  { %4298 = vrcp.f32 %v1631_v11  ;;  %v1620_v47 = vadd.f32 1.0, %v4289_v12 }
 0x518   :  { %v4291_v6 = vpop.eup %4290  ;;  %4300 = vtanh.f32 %v1611_v42 }
 0x519   :  { %4302 = vrcp.f32 %v1620_v47  ;;  %v1632_v45 = vadd.f32 1.0, %v4291_v6  ;;  %v4293_v0 = vpop.eup %4292  ;;  %v1722_v6 = vpop.permute.xlu1 %1721 }
 0x51a   :  { %4304 = vpow2.f32 %v3793_v54  ;;  %vm1724_vm8 = vcmp.eq.s32.totalorder %v1722_v6, 1 }
 0x51b   :  { %4306 = vrcp.f32 %v1632_v45 }
 0x522   :  { %v4295_v23 = vpop.eup %4294 }
 0x523   :  { %v4297_v7 = vpop.eup %4296  ;;  %v1651_v31 = vmul.f32 %v4295_v23, %v4293_v0 }
 0x524   :  { %v4299_v3 = vpop.eup %4298  ;;  %v1645_v43 = vadd.f32 1.0, %v4297_v7 }
 0x525   :  { %v4301_v44 = vpop.eup %4300  ;;  %v1653_v20 = vmul.f32 %v4299_v3, %v5405_v27 }
 0x526   :  { %v4303_v49 = vpop.eup %4302  ;;  %4308 = vrcp.f32 %v1645_v43 }
 0x527   :  { %v4305_v50 = vpop.eup %4304  ;;  %v1655_v41 = vadd.f32 %v1653_v20, %v1651_v31  ;;  %v1652_v53 = vmul.f32 %v4303_v49, %v4301_v44 }
 0x528   :  { %v4307_v16 = vpop.eup %4306  ;;  %v1646_v12 = vadd.f32 1.0, %v4305_v50 }
 0x529   :  { %v3794_v42 = vclamps-f32 %v1655_v41, 3.0  ;;  %v1654_v11 = vmul.f32 %v4307_v16, %v5410_v48 }
 0x52b   :  { %v1656_v54 = vadd.f32 %v1654_v11, %v1652_v53  ;;  %4310 = vtanh.f32 %v3794_v42  ;;  %v5570_v47 = vsel %vm1723_vm7, %v3794_v42, %v5405_v27 }
 0x52c   :  { %4312 = vrcp.f32 %v1646_v12 }
 0x52d   :  { %v3795_v45 = vclamps-f32 %v1656_v54, 3.0 }
 0x52f   :  { %4314 = vtanh.f32 %v3795_v45  ;;  %v5574_v0 = vsel %vm1724_vm8, %v3795_v45, %v5410_v48 }
 0x533   :  { %v4309_v23 = vpop.eup %4308 }
 0x538   :  { %v4311_v7 = vpop.eup %4310 }
 0x539   :  { %v1663_v31 = vmul.f32 %v4311_v7, %v4309_v23  ;;  %v4313_v3 = vpop.eup %4312 }
 0x53c   :  { %v4315_v44 = vpop.eup %4314 }
 0x53d   :  { %v1664_v20 = vmul.f32 %v4315_v44, %v4313_v3 }
 0x53f   :  { %v1665_v49 = vpack.c.bf16 %v1664_v20, %v1663_v31 }
 0x541   :  { %4025 = vmatmul.mubr.bf16.vlgmr.msra.gmra.mxu0 %v1665_v49 }
 0x542   :  { %1916 = vmatpush1.bf16.msra.mxu0 %v5412_v33  ;;  %1947 = vmatprep.mubr.bf16.mxu0 %v6226_v15 }
 0x543   :  { %1917 = vmatprep.subr.bf16.mxu0 %v5416_v13 }
 0x546   :  { %1918 = vmatpush1.bf16.msra.mxu0 %v5419_v55 }
 0x547   :  { %1919 = vmatprep.subr.bf16.mxu0 %v5422_v51 }
 0x54a   :  { %1920 = vmatpush1.bf16.msra.mxu0 %v5425_v17 }
 0x54b   :  { %1921 = vmatprep.subr.bf16.mxu0 %v5428_v52 }
 0x54e   :  { %1922 = vmatpush1.bf16.msra.mxu0 %v5431_v39 }
 0x54f   :  { %1923 = vmatprep.subr.bf16.mxu0 %v5434_v62 }
 0x552   :  { %1924 = vmatpush1.bf16.msra.mxu0 %v5437_v46 }
 0x553   :  { %1925 = vmatprep.subr.bf16.mxu0 %v5440_v5 }
 0x556   :  { %1926 = vmatpush1.bf16.msra.mxu0 %v5443_v1 }
 0x557   :  { %1927 = vmatprep.subr.bf16.mxu0 %v5446_v2 }
 0x55a   :  { %1928 = vmatpush1.bf16.msra.mxu0 %v5449_v4 }
 0x55b   :  { %1929 = vmatprep.subr.bf16.mxu0 %v5452_v24 }
 0x55e   :  { %1930 = vmatpush1.bf16.msra.mxu0 %v5455_v14 }
 0x55f   :  { %2225 = vmatprep.subr.bf16.mxu0 %v5458_v18 }
 0x601   :  { %v1700_v27 = vpop.f32.mrf.mxu0 }
 0x602   :  { %v3796_v48 = vclamps-f32 %v1700_v27, 3.0 }
 0x603   :  { %v4026_v43 = vpop.f32.mrf.mxu0 }
 0x604   :  { %v1729_v50 = vsel %vm1723_vm7, %v3796_v48, 0.0  ;;  %v5599_v23 = vsel %vm1723_vm7, %v3796_v48, %v5469_v59 }
 0x605   :  { %v1733_v41 = vcombine.high %v1729_v50, %v1729_v50  ;;  %v1740_v53 = vrot.slane %v1729_v50, %v5285_v28  ;;  %v1703_v16 = vpop.f32.mrf.mxu0 }
 0x606   :  { %v3797_v42 = vclamps-f32 %v1703_v16, 3.0 }
 0x607   :  { %v1747_v11 = vrot.slane %v1733_v41, %v5285_v28  ;;  %v1748_v12 = vcombine.high %v1740_v53, %v1740_v53  ;;  %v1756_v54 = vrot.slane %v1740_v53, %v5285_v28  ;;  %3798 = vst.sshfl [vmem:[#allocation13 + $0x2] sm:$0x1 pattern:$0x73625140] %v1740_v53  ;;  %v4027_v45 = vpop.f32.mrf.mxu0 }
 0x608   :  { %v5603_v7 = vsel %vm1724_vm8, %v3797_v42, %v5474_v60  ;;  %v1730_v31 = vsel %vm1724_vm8, %v3797_v42, 0.0 }
 0x609   :  { %v1749_v3 = vcombine.high %v1747_v11, %v1747_v11  ;;  %v1763_v44 = vrot.slane %v1747_v11, %v5285_v28  ;;  %v1770_v20 = vrot.slane %v1748_v12, %v5285_v28  ;;  %v1778_v49 = vcombine.high %v1756_v54, %v1756_v54  ;;  %3799 = vst.sshfl [vmem:[#allocation13 + $0xa] sm:$0x1 pattern:$0x73625140] %v1748_v12 }
 0x60a   :  { %3800 = vst.sshfl [vmem:[#allocation13 + $0x22] sm:$0x1 pattern:$0x73625140] %v1747_v11  ;;  %v1782_v27 = vcombine.high %v1730_v31, %v1730_v31  ;;  %v1789_v43 = vrot.slane %v1730_v31, %v5285_v28  ;;  %v1871_v59 = vpack.c.bf16 %v5603_v7, %v5599_v23 }
 0x60b   :  { %v1777_v35 = vrot.slane %v1749_v3, %v5285_v28  ;;  %v1779_v60 = vcombine.high %v1763_v44, %v1763_v44  ;;  %v1780_v48 = vcombine.high %v1770_v20, %v1770_v20  ;;  %1849 = vst [vmem:[#allocation13 + $0x12] sm:$0x1] %v1778_v49  ;;  %3801 = vst.sshfl [vmem:[#allocation13 + $0x2a] sm:$0x1 pattern:$0x73625140] %v1749_v3 }
 0x60c   :  { %v1796_v6 = vrot.slane %v1782_v27, %v5285_v28  ;;  %v1797_v50 = vcombine.high %v1789_v43, %v1789_v43  ;;  %v1805_v41 = vrot.slane %v1789_v43, %v5285_v28  ;;  %3802 = vst.sshfl [vmem:[#allocation13 + $0x42] sm:$0x1 pattern:$0x73625140] %v1789_v43  ;;  %1905 = vmatmul.mubr.bf16.vlgmr.msra.gmra.mxu1 %v1871_v59  ;;  %v6254_v43 = vld [vmem:[#allocation42_spill] sm:$0xff] }
 0x60d   :  { %1948 = vmatmul.mubr.bf16.vlgmr.msra.gmra.mxu0 %v1871_v59  ;;  %v1781_v53 = vcombine.high %v1777_v35, %v1777_v35  ;;  %1850 = vst [vmem:[#allocation13 + $0x1a] sm:$0x1] %v1780_v48  ;;  %1853 = vst [vmem:[#allocation13 + $0x32] sm:$0x1] %v1779_v60  ;;  %4029 = vmatpush3.bf16.msra.mxu1 %v5486_v9  ;;  %v6255_v48 = vld [vmem:[#allocation44_spill] sm:$0xff] }
 0x60e   :  { %4044 = vmatprep.mubr.msk.bf16.mxu1 %vm4733_vm3, %v6227_v10  ;;  %v1798_v16 = vcombine.high %v1796_v6, %v1796_v6  ;;  %v1812_v42 = vrot.slane %v1796_v6, %v5285_v28  ;;  %v1819_v11 = vrot.slane %v1797_v50, %v5285_v28  ;;  %v1827_v12 = vcombine.high %v1805_v41, %v1805_v41 }
 0x60f   :  { %3803 = vst.sshfl [vmem:[#allocation13 + $0x4a] sm:$0x1 pattern:$0x73625140] %v1797_v50  ;;  %4030 = vmatprep.subr.bf16.mxu1 %v6227_v10  ;;  %1854 = vst [vmem:[#allocation13 + $0x3a] sm:$0x1] %v1781_v53  ;;  %2226 = vmatpush1.bf16.msra.mxu0 %v5322_v19 }
 0x610   :  { %3804 = vst.sshfl [vmem:[#allocation13 + $0x62] sm:$0x1 pattern:$0x73625140] %v1796_v6  ;;  %2257 = vmatprep.mubr.bf16.mxu0 %v6226_v15  ;;  %v1826_v54 = vrot.slane %v1798_v16, %v5285_v28  ;;  %v1828_v45 = vcombine.high %v1812_v42, %v1812_v42  ;;  %v1829_v31 = vcombine.high %v1819_v11, %v1819_v11  ;;  %1857 = vst [vmem:[#allocation13 + $0x52] sm:$0x1] %v1827_v12 }
 0x611   :  { %3805 = vst.sshfl [vmem:[#allocation13 + $0x6a] sm:$0x1 pattern:$0x73625140] %v1798_v16  ;;  %2227 = vmatprep.subr.bf16.mxu0 %v5327_v29  ;;  %4031 = vmatpush3.bf16.msra.mxu1 %v5498_v22  ;;  %v6249_v19 = vld [vmem:[#allocation23_spill] sm:$0xff]  ;;  %v6250_v29 = vld [vmem:[#allocation24_spill] sm:$0xff] }
 0x612   :  { %v1830_v3 = vcombine.high %v1826_v54, %v1826_v54  ;;  %1858 = vst [vmem:[#allocation13 + $0x5a] sm:$0x1] %v1829_v31  ;;  %1861 = vst [vmem:[#allocation13 + $0x72] sm:$0x1] %v1828_v45  ;;  %4032 = vmatprep.subr.bf16.mxu1 %v6227_v10  ;;  %v6256_v16 = vld [vmem:[#allocation46_spill] sm:$0xff]  ;;  %v6257_v54 = vld [vmem:[#allocation43_spill] sm:$0xff] }
 0x613   :  { %2228 = vmatpush1.bf16.msra.mxu0 %v5332_v32  ;;  %v6251_v32 = vld [vmem:[#allocation80_spill] sm:$0xff] }
 0x614   :  { %1862 = vst [vmem:[#allocation13 + $0x7a] sm:$0x1] %v1830_v3  ;;  %2229 = vmatprep.subr.bf16.mxu0 %v5335_v36  ;;  %v6252_v36 = vld [vmem:[#allocation26_spill] sm:$0xff]  ;;  %v6258_v3 = vld [vmem:[#allocation41_spill] sm:$0xff] }
 0x615   :  { %4033 = vmatpush3.bf16.msra.mxu1 %v5504_v8 }
 0x616   :  { %4034 = vmatprep.subr.bf16.mxu1 %v6227_v10 }
 0x617   :  { %2230 = vmatpush1.bf16.msra.mxu0 %v5340_v38 }
 0x618   :  { %2231 = vmatprep.subr.bf16.mxu0 %v5343_v56  ;;  %v6253_v56 = vld [vmem:[#allocation40_spill] sm:$0xff] }
 0x619   :  { %4035 = vmatpush3.bf16.msra.mxu1 %v5510_v21 }
 0x61a   :  { %4036 = vmatprep.subr.bf16.mxu1 %v6227_v10 }
 0x61b   :  { %2232 = vmatpush1.bf16.msra.mxu0 %v5514_v25 }
 0x61c   :  { %2233 = vmatprep.subr.bf16.mxu0 %v5517_v26 }
 0x61d   :  { %4037 = vmatpush3.bf16.msra.mxu1 %v5520_v30 }
 0x61e   :  { %4038 = vmatprep.subr.bf16.mxu1 %v6227_v10 }
 0x61f   :  { %2234 = vmatpush1.bf16.msra.mxu0 %v5524_v34 }
 0x620   :  { %2235 = vmatprep.subr.bf16.mxu0 %v5527_v37 }
 0x621   :  { %4039 = vmatpush3.bf16.msra.mxu1 %v5530_v57 }
 0x622   :  { %4040 = vmatprep.subr.bf16.mxu1 %v6227_v10 }
 0x623   :  { %2236 = vmatpush1.bf16.msra.mxu0 %v5534_v58 }
 0x624   :  { %2237 = vmatprep.subr.bf16.mxu0 %v5537_v61 }
 0x625   :  { %4041 = vmatpush3.bf16.msra.mxu1 %v5540_v63 }
 0x626   :  { %4042 = vmatprep.subr.bf16.mxu1 %v6227_v10 }
 0x627   :  { %2238 = vmatpush1.bf16.msra.mxu0 %v5544_v40 }
 0x628   :  { %2239 = vmatprep.subr.bf16.mxu0 %v6249_v19 }
 0x629   :  { %4043 = vmatpush3.bf16.msra.mxu1 %v6250_v29 }
 0x62a   :  { %2268 = vmatprep.subr.bf16.mxu1 %v6251_v32 }
 0x62b   :  { %2240 = vmatpush1.bf16.msra.mxu0 %v6252_v36 }
 0x62c   :  { %4048 = vmatprep.subr.bf16.mxu0 %v6227_v10 }
 0x6cc   :  { %v1906_v38 = vpop.f32.mrf.mxu1 }
 0x6cd   :  { %v1958_v44 = vadd.f32 %v1906_v38, %v6253_v56  ;;  %v1949_v27 = vpop.f32.mrf.mxu0 }
 0x6ce   :  { %v1908_v20 = vpop.f32.mrf.mxu1  ;;  %v1960_v32 = vadd.f32 %v1949_v27, %v6258_v3 }
 0x6cf   :  { %v3806_v49 = vmul.f32 -1.442695, %v1958_v44  ;;  %v1959_v59 = vadd.f32 %v1908_v20, %v6254_v43  ;;  %v1951_v41 = vpop.f32.mrf.mxu0  ;;  %v6259_v44 = vld [vmem:[#allocation47_spill] sm:$0xff] }
 0x6d0   :  { %v1910_v35 = vpop.f32.mrf.mxu1  ;;  %v1961_v45 = vadd.f32 %v1951_v41, %v6257_v54 }
 0x6d1   :  { %4316 = vpow2.f32 %v3806_v49  ;;  %v3808_v60 = vmul.f32 -1.442695, %v1959_v59  ;;  %v1962_v6 = vadd.f32 %v1910_v35, %v6255_v48  ;;  %v1953_v12 = vpop.f32.mrf.mxu0  ;;  %v6260_v59 = vld [vmem:[#allocation45_spill] sm:$0xff] }
 0x6d2   :  { %v1912_v50 = vpop.f32.mrf.mxu1  ;;  %v3810_v56 = vmul.f32 -1.442695, %v1961_v45  ;;  %v1964_v35 = vadd.f32 %v1953_v12, %v6260_v59 }
 0x6d3   :  { %4318 = vpow2.f32 %v3808_v60  ;;  %v3807_v53 = vmul.f32 -1.442695, %v1962_v6  ;;  %v1963_v42 = vadd.f32 %v1912_v50, %v6256_v16  ;;  %v1955_v31 = vpop.f32.mrf.mxu0 }
 0x6d4   :  { %v1965_v20 = vadd.f32 %v1955_v31, %v6259_v44 }
 0x6d5   :  { %4320 = vpow2.f32 %v3807_v53  ;;  %v3809_v11 = vmul.f32 -1.442695, %v1963_v42 }
 0x6d6   :  { %v3811_v6 = vmul.f32 -1.442695, %v1965_v20  ;;  %v2072_v20 = vpop.permute.xlu0 %2071 }
 0x6d7   :  { %4322 = vpow2.f32 %v3809_v11  ;;  %vm2076_vm9 = vcmp.eq.s32.totalorder %v2072_v20, 1 }
 0x6d8   :  { %4324 = vtanh.f32 %v1960_v32 }
 0x6de   :  { %v4317_v38 = vpop.eup %4316 }
 0x6df   :  { %v1972_v49 = vadd.f32 1.0, %v4317_v38 }
 0x6e0   :  { %v4319_v43 = vpop.eup %4318 }
 0x6e1   :  { %4326 = vrcp.f32 %v1972_v49  ;;  %v1984_v60 = vadd.f32 1.0, %v4319_v43 }
 0x6e2   :  { %v4321_v48 = vpop.eup %4320  ;;  %4328 = vpow2.f32 %v3810_v56 }
 0x6e3   :  { %4330 = vrcp.f32 %v1984_v60  ;;  %v1973_v50 = vadd.f32 1.0, %v4321_v48  ;;  %v2075_v48 = vpop.permute.xlu1 %2074 }
 0x6e4   :  { %v4323_v41 = vpop.eup %4322  ;;  %4332 = vtanh.f32 %v1964_v35  ;;  %vm2077_vm10 = vcmp.eq.s32.totalorder %v2075_v48, 1  ;;  %v5714_v48 = vld [vmem:[#allocation10 + $0xe0] ss:$16 sps:$4 sm:$0xff]  }
 0x6e5   :  { %4334 = vrcp.f32 %v1973_v50  ;;  %v1985_v27 = vadd.f32 1.0, %v4323_v41  ;;  %v4325_v53 = vpop.eup %4324 }
 0x6e6   :  { %4336 = vpow2.f32 %v3811_v6 }
 0x6e7   :  { %4338 = vrcp.f32 %v1985_v27 }
 0x6ee   :  { %v4327_v16 = vpop.eup %4326 }
 0x6ef   :  { %v4329_v42 = vpop.eup %4328  ;;  %v2004_v11 = vmul.f32 %v4327_v16, %v4325_v53 }
 0x6f0   :  { %v4331_v54 = vpop.eup %4330  ;;  %v1998_v3 = vadd.f32 1.0, %v4329_v42 }
 0x6f1   :  { %v4333_v45 = vpop.eup %4332  ;;  %v2006_v12 = vmul.f32 %v4331_v54, %v5570_v47 }
 0x6f2   :  { %v4335_v31 = vpop.eup %4334  ;;  %4340 = vrcp.f32 %v1998_v3 }
 0x6f3   :  { %v4337_v32 = vpop.eup %4336  ;;  %v2008_v38 = vadd.f32 %v2006_v12, %v2004_v11  ;;  %v2005_v56 = vmul.f32 %v4335_v31, %v4333_v45 }
 0x6f4   :  { %v4339_v44 = vpop.eup %4338  ;;  %v1999_v59 = vadd.f32 1.0, %v4337_v32 }
 0x6f5   :  { %v3812_v49 = vclamps-f32 %v2008_v38, 3.0  ;;  %v2007_v43 = vmul.f32 %v4339_v44, %v5574_v0 }
 0x6f7   :  { %v2009_v35 = vadd.f32 %v2007_v43, %v2005_v56  ;;  %4342 = vtanh.f32 %v3812_v49  ;;  %v5664_v60 = vsel %vm2076_vm9, %v3812_v49, %v5570_v47 }
 0x6f8   :  { %4344 = vrcp.f32 %v1999_v59 }
 0x6f9   :  { %v3813_v6 = vclamps-f32 %v2009_v35, 3.0 }
 0x6fb   :  { %4346 = vtanh.f32 %v3813_v6  ;;  %v5668_v50 = vsel %vm2077_vm10, %v3813_v6, %v5574_v0 }
 0x6ff   :  { %v4341_v41 = vpop.eup %4340 }
 0x704   :  { %v4343_v27 = vpop.eup %4342 }
 0x705   :  { %v2016_v53 = vmul.f32 %v4343_v27, %v4341_v41  ;;  %v4345_v16 = vpop.eup %4344  ;;  %v5719_v27 = vld [vmem:[#allocation10 + $0xc4] ss:$16 sps:$4 sm:$0xff]  }
 0x708   :  { %v4347_v42 = vpop.eup %4346 }
 0x709   :  { %v2017_v11 = vmul.f32 %v4347_v42, %v4345_v16  ;;  %v5724_v16 = vld [vmem:[#allocation10 + $0xc0] ss:$16 sps:$4 sm:$0xff]   ;;  %v5727_v42 = vld [vmem:[#allocation10 + $0xa4] ss:$16 sps:$4 sm:$0xff]  }
 0x70b   :  { %v2018_v54 = vpack.c.bf16 %v2017_v11, %v2016_v53  ;;  %v5732_v11 = vld [vmem:[#allocation10 + $0xa0] ss:$16 sps:$4 sm:$0xff]  }
 0x70d   :  { %4045 = vmatmul.mubr.bf16.vlgmr.msra.gmra.mxu1 %v2018_v54 }
 0x70e   :  { %2269 = vmatpush1.bf16.msra.mxu1 %v5412_v33  ;;  %2300 = vmatprep.mubr.bf16.mxu1 %v6226_v15 }
 0x70f   :  { %2270 = vmatprep.subr.bf16.mxu1 %v5416_v13 }
 0x712   :  { %2271 = vmatpush1.bf16.msra.mxu1 %v5419_v55 }
 0x713   :  { %2272 = vmatprep.subr.bf16.mxu1 %v5422_v51 }
 0x716   :  { %2273 = vmatpush1.bf16.msra.mxu1 %v5425_v17 }
 0x717   :  { %2274 = vmatprep.subr.bf16.mxu1 %v5428_v52 }
 0x71a   :  { %2275 = vmatpush1.bf16.msra.mxu1 %v5431_v39 }
 0x71b   :  { %2276 = vmatprep.subr.bf16.mxu1 %v5434_v62 }
 0x71e   :  { %2277 = vmatpush1.bf16.msra.mxu1 %v5437_v46 }
 0x71f   :  { %2278 = vmatprep.subr.bf16.mxu1 %v5440_v5 }
 0x722   :  { %2279 = vmatpush1.bf16.msra.mxu1 %v5443_v1 }
 0x723   :  { %2280 = vmatprep.subr.bf16.mxu1 %v5446_v2 }
 0x726   :  { %2281 = vmatpush1.bf16.msra.mxu1 %v5449_v4 }
 0x727   :  { %2282 = vmatprep.subr.bf16.mxu1 %v5452_v24 }
 0x72a   :  { %2283 = vmatpush1.bf16.msra.mxu1 %v5455_v14 }
 0x72b   :  { %2578 = vmatprep.subr.bf16.mxu1 %v5458_v18 }
 0x7cd   :  { %v2053_v33 = vpop.f32.mrf.mxu1 }
 0x7ce   :  { %v3814_v13 = vclamps-f32 %v2053_v33, 3.0 }
 0x7cf   :  { %v4046_v55 = vpop.f32.mrf.mxu1 }
 0x7d0   :  { %v2082_v51 = vsel %vm2076_vm9, %v3814_v13, 0.0  ;;  %v5693_v4 = vsel %vm2076_vm9, %v3814_v13, %v5599_v23 }
 0x7d1   :  { %v2086_v17 = vcombine.high %v2082_v51, %v2082_v51  ;;  %v2093_v52 = vrot.slane %v2082_v51, %v5285_v28  ;;  %v2056_v39 = vpop.f32.mrf.mxu1 }
 0x7d2   :  { %v3815_v62 = vclamps-f32 %v2056_v39, 3.0 }
 0x7d3   :  { %v2100_v46 = vrot.slane %v2086_v17, %v5285_v28  ;;  %v2101_v5 = vcombine.high %v2093_v52, %v2093_v52  ;;  %v2109_v1 = vrot.slane %v2093_v52, %v5285_v28  ;;  %3816 = vst.sshfl [vmem:[#allocation13 + $0x3] sm:$0x1 pattern:$0x73625140] %v2093_v52  ;;  %v4047_v2 = vpop.f32.mrf.mxu1  ;;  %v6266_v17 = vld [vmem:[#allocation51_spill] sm:$0xff] }
 0x7d4   :  { %v5697_v24 = vsel %vm2077_vm10, %v3815_v62, %v5603_v7  ;;  %v2083_v14 = vsel %vm2077_vm10, %v3815_v62, 0.0  ;;  %v6267_v62 = vld [vmem:[#allocation49_spill] sm:$0xff]  ;;  %v6268_v2 = vld [vmem:[#allocation55_spill] sm:$0xff] }
 0x7d5   :  { %v2102_v18 = vcombine.high %v2100_v46, %v2100_v46  ;;  %v2116_v47 = vrot.slane %v2100_v46, %v5285_v28  ;;  %v2123_v0 = vrot.slane %v2101_v5, %v5285_v28  ;;  %v2131_v45 = vcombine.high %v2109_v1, %v2109_v1  ;;  %3817 = vst.sshfl [vmem:[#allocation13 + $0xb] sm:$0x1 pattern:$0x73625140] %v2101_v5 }
 0x7d6   :  { %3818 = vst.sshfl [vmem:[#allocation13 + $0x23] sm:$0x1 pattern:$0x73625140] %v2100_v46  ;;  %v2135_v12 = vcombine.high %v2083_v14, %v2083_v14  ;;  %v2142_v31 = vrot.slane %v2083_v14, %v5285_v28  ;;  %v2224_v23 = vpack.c.bf16 %v5697_v24, %v5693_v4 }
 0x7d7   :  { %v2130_v3 = vrot.slane %v2102_v18, %v5285_v28  ;;  %v2132_v7 = vcombine.high %v2116_v47, %v2116_v47  ;;  %v2133_v32 = vcombine.high %v2123_v0, %v2123_v0  ;;  %2202 = vst [vmem:[#allocation13 + $0x13] sm:$0x1] %v2131_v45  ;;  %3819 = vst.sshfl [vmem:[#allocation13 + $0x2b] sm:$0x1 pattern:$0x73625140] %v2102_v18 }
 0x7d8   :  { %v2149_v38 = vrot.slane %v2135_v12, %v5285_v28  ;;  %v2150_v56 = vcombine.high %v2142_v31, %v2142_v31  ;;  %v2158_v44 = vrot.slane %v2142_v31, %v5285_v28  ;;  %3820 = vst.sshfl [vmem:[#allocation13 + $0x43] sm:$0x1 pattern:$0x73625140] %v2142_v31  ;;  %2258 = vmatmul.mubr.bf16.vlgmr.msra.gmra.mxu0 %v2224_v23  ;;  %v6269_v0 = vld [vmem:[#allocation53_spill] sm:$0xff] }
 0x7d9   :  { %2301 = vmatmul.mubr.bf16.vlgmr.msra.gmra.mxu1 %v2224_v23  ;;  %v2134_v20 = vcombine.high %v2130_v3, %v2130_v3  ;;  %2203 = vst [vmem:[#allocation13 + $0x1b] sm:$0x1] %v2133_v32  ;;  %2206 = vst [vmem:[#allocation13 + $0x33] sm:$0x1] %v2132_v7  ;;  %4049 = vmatpush3.bf16.msra.mxu0 %v5486_v9 }
 0x7da   :  { %4064 = vmatprep.mubr.msk.bf16.mxu0 %vm4733_vm3, %v6227_v10  ;;  %v2151_v49 = vcombine.high %v2149_v38, %v2149_v38  ;;  %v2165_v43 = vrot.slane %v2149_v38, %v5285_v28  ;;  %v2172_v59 = vrot.slane %v2150_v56, %v5285_v28  ;;  %v2180_v35 = vcombine.high %v2158_v44, %v2158_v44 }
 0x7db   :  { %3821 = vst.sshfl [vmem:[#allocation13 + $0x4b] sm:$0x1 pattern:$0x73625140] %v2150_v56  ;;  %4050 = vmatprep.subr.bf16.mxu0 %v6227_v10  ;;  %2207 = vst [vmem:[#allocation13 + $0x3b] sm:$0x1] %v2134_v20  ;;  %2579 = vmatpush1.bf16.msra.mxu1 %v5714_v48 }
 0x7dc   :  { %3822 = vst.sshfl [vmem:[#allocation13 + $0x63] sm:$0x1 pattern:$0x73625140] %v2149_v38  ;;  %2610 = vmatprep.mubr.bf16.mxu1 %v6226_v15  ;;  %v2179_v9 = vrot.slane %v2151_v49, %v5285_v28  ;;  %v2181_v6 = vcombine.high %v2165_v43, %v2165_v43  ;;  %v2182_v41 = vcombine.high %v2172_v59, %v2172_v59  ;;  %2210 = vst [vmem:[#allocation13 + $0x53] sm:$0x1] %v2180_v35 }
 0x7dd   :  { %3823 = vst.sshfl [vmem:[#allocation13 + $0x6b] sm:$0x1 pattern:$0x73625140] %v2151_v49  ;;  %2580 = vmatprep.subr.bf16.mxu1 %v5719_v27  ;;  %4051 = vmatpush3.bf16.msra.mxu0 %v5498_v22  ;;  %v5735_v22 = vld [vmem:[#allocation10 + $0x84] ss:$16 sps:$4 sm:$0xff]  }
 0x7de   :  { %v2183_v53 = vcombine.high %v2179_v9, %v2179_v9  ;;  %2211 = vst [vmem:[#allocation13 + $0x5b] sm:$0x1] %v2182_v41  ;;  %2214 = vst [vmem:[#allocation13 + $0x73] sm:$0x1] %v2181_v6  ;;  %4052 = vmatprep.subr.bf16.mxu0 %v6227_v10 }
 0x7df   :  { %2581 = vmatpush1.bf16.msra.mxu1 %v5724_v16 }
 0x7e0   :  { %2215 = vst [vmem:[#allocation13 + $0x7b] sm:$0x1] %v2183_v53  ;;  %2582 = vmatprep.subr.bf16.mxu1 %v5727_v42 }
 0x7e1   :  { %4053 = vmatpush3.bf16.msra.mxu0 %v5504_v8  ;;  %v5755_v8 = vld [vmem:[#allocation10 + $0xec] ss:$16 sps:$4 sm:$0xff]  }
 0x7e2   :  { %4054 = vmatprep.subr.bf16.mxu0 %v6227_v10  ;;  %6261 = vst [vmem:[#allocation28_spill] sm:$0xff] %v5755_v8 }
 0x7e3   :  { %2583 = vmatpush1.bf16.msra.mxu1 %v5732_v11 }
 0x7e4   :  { %2584 = vmatprep.subr.bf16.mxu1 %v5735_v22 }
 0x7e5   :  { %4055 = vmatpush3.bf16.msra.mxu0 %v5510_v21 }
 0x7e6   :  { %4056 = vmatprep.subr.bf16.mxu0 %v6227_v10 }
 0x7e7   :  { %2585 = vmatpush1.bf16.msra.mxu1 %v5514_v25  ;;  %v6262_v25 = vld [vmem:[#allocation48_spill] sm:$0xff] }
 0x7e8   :  { %2586 = vmatprep.subr.bf16.mxu1 %v5517_v26 }
 0x7e9   :  { %4057 = vmatpush3.bf16.msra.mxu0 %v5520_v30 }
 0x7ea   :  { %4058 = vmatprep.subr.bf16.mxu0 %v6227_v10 }
 0x7eb   :  { %2587 = vmatpush1.bf16.msra.mxu1 %v5524_v34 }
 0x7ec   :  { %2588 = vmatprep.subr.bf16.mxu1 %v5527_v37 }
 0x7ed   :  { %4059 = vmatpush3.bf16.msra.mxu0 %v5530_v57  ;;  %v6263_v57 = vld [vmem:[#allocation50_spill] sm:$0xff] }
 0x7ee   :  { %4060 = vmatprep.subr.bf16.mxu0 %v6227_v10 }
 0x7ef   :  { %2589 = vmatpush1.bf16.msra.mxu1 %v5534_v58 }
 0x7f0   :  { %2590 = vmatprep.subr.bf16.mxu1 %v5537_v61 }
 0x7f1   :  { %4061 = vmatpush3.bf16.msra.mxu0 %v5540_v63 }
 0x7f2   :  { %4062 = vmatprep.subr.bf16.mxu0 %v6227_v10 }
 0x7f3   :  { %2591 = vmatpush1.bf16.msra.mxu1 %v5544_v40  ;;  %v6264_v40 = vld [vmem:[#allocation52_spill] sm:$0xff] }
 0x7f4   :  { %2592 = vmatprep.subr.bf16.mxu1 %v6249_v19 }
 0x7f5   :  { %4063 = vmatpush3.bf16.msra.mxu0 %v6250_v29 }
 0x7f6   :  { %2621 = vmatprep.subr.bf16.mxu0 %v5755_v8 }
 0x7f7   :  { %2593 = vmatpush1.bf16.msra.mxu1 %v6252_v36  ;;  %v6265_v36 = vld [vmem:[#allocation54_spill] sm:$0xff] }
 0x7f8   :  { %4068 = vmatprep.subr.bf16.mxu1 %v6227_v10 }
 0x898   :  { %v2259_v21 = vpop.f32.mrf.mxu0 }
 0x899   :  { %v2311_v26 = vadd.f32 %v2259_v21, %v6262_v25  ;;  %v2302_v37 = vpop.f32.mrf.mxu1  ;;  %v5769_v25 = vpop.permute.xlu0 %2424 }
 0x89a   :  { %v2261_v30 = vpop.f32.mrf.mxu0  ;;  %v2313_v46 = vadd.f32 %v2302_v37, %v6267_v62  ;;  %vm2429_vm11 = vcmp.eq.s32.totalorder %v5769_v25, 1  ;;  %v5808_v62 = vld [vmem:[#allocation10 + $0x6c] ss:$16 sps:$4 sm:$0xff]  }
 0x89b   :  { %v3824_v34 = vmul.f32 -1.442695, %v2311_v26  ;;  %v2312_v58 = vadd.f32 %v2261_v30, %v6263_v57  ;;  %v2304_v54 = vpop.f32.mrf.mxu1 }
 0x89c   :  { %v2263_v61 = vpop.f32.mrf.mxu0  ;;  %v2314_v52 = vadd.f32 %v2304_v54, %v6266_v17  ;;  %v5799_v17 = vld [vmem:[#allocation10 + $0xa8] ss:$16 sps:$4 sm:$0xff]  }
 0x89d   :  { %4348 = vpow2.f32 %v3824_v34  ;;  %v3826_v63 = vmul.f32 -1.442695, %v2312_v58  ;;  %v2315_v19 = vadd.f32 %v2263_v61, %v6264_v40  ;;  %v2306_v51 = vpop.f32.mrf.mxu1  ;;  %v5778_v58 = vpop.permute.xlu1 %2427 }
 0x89e   :  { %v2265_v29 = vpop.f32.mrf.mxu0  ;;  %v3828_v1 = vmul.f32 -1.442695, %v2314_v52  ;;  %v2317_v45 = vadd.f32 %v2306_v51, %v6269_v0  ;;  %vm2430_vm12 = vcmp.eq.s32.totalorder %v5778_v58, 1  ;;  %v5796_v51 = vld [vmem:[#allocation10 + $0xac] ss:$16 sps:$4 sm:$0xff]  }
 0x89f   :  { %4350 = vpow2.f32 %v3826_v63  ;;  %v3825_v33 = vmul.f32 -1.442695, %v2315_v19  ;;  %v2316_v13 = vadd.f32 %v2265_v29, %v6265_v36  ;;  %v2308_v39 = vpop.f32.mrf.mxu1  ;;  %v5802_v52 = vld [vmem:[#allocation10 + $0x8c] ss:$16 sps:$4 sm:$0xff]   ;;  %v5832_v0 = vld [vmem:[#allocation10 + $0xe4] ss:$16 sps:$4 sm:$0xff]  }
 0x8a0   :  { %v2318_v14 = vadd.f32 %v2308_v39, %v6268_v2  ;;  %v5805_v39 = vld [vmem:[#allocation10 + $0x88] ss:$16 sps:$4 sm:$0xff]   ;;  %v5820_v2 = vld [vmem:[#allocation10 + $0x2c] ss:$16 sps:$4 sm:$0xff]  }
 0x8a1   :  { %4352 = vpow2.f32 %v3825_v33  ;;  %v3827_v55 = vmul.f32 -1.442695, %v2316_v13  ;;  %v5786_v13 = vld [vmem:[#allocation10 + $0xe8] ss:$16 sps:$4 sm:$0xff]  }
 0x8a2   :  { %v3829_v23 = vmul.f32 -1.442695, %v2318_v14  ;;  %v5823_v14 = vld [vmem:[#allocation10 + $0x28] ss:$16 sps:$4 sm:$0xff]  }
 0x8a3   :  { %4354 = vpow2.f32 %v3827_v55  ;;  %v5790_v55 = vld [vmem:[#allocation10 + $0xcc] ss:$16 sps:$4 sm:$0xff]  }
 0x8a4   :  { %4356 = vtanh.f32 %v2313_v46  ;;  %v5811_v46 = vld [vmem:[#allocation10 + $0x68] ss:$16 sps:$4 sm:$0xff]  }
 0x8aa   :  { %v4349_v5 = vpop.eup %4348 }
 0x8ab   :  { %v2325_v18 = vadd.f32 1.0, %v4349_v5  ;;  %v5814_v5 = vld [vmem:[#allocation10 + $0x4c] ss:$16 sps:$4 sm:$0xff]  }
 0x8ac   :  { %v4351_v47 = vpop.eup %4350 }
 0x8ad   :  { %4358 = vrcp.f32 %v2325_v18  ;;  %v2337_v12 = vadd.f32 1.0, %v4351_v47  ;;  %v5826_v18 = vld [vmem:[#allocation10 + $0xc] ss:$16 sps:$4 sm:$0xff]   ;;  %v5829_v47 = vld [vmem:[#allocation10 + $0x8] ss:$16 sps:$4 sm:$0xff]  }
 0x8ae   :  { %v4353_v31 = vpop.eup %4352  ;;  %4360 = vpow2.f32 %v3828_v1  ;;  %v5817_v1 = vld [vmem:[#allocation10 + $0x48] ss:$16 sps:$4 sm:$0xff]  }
 0x8af   :  { %4362 = vrcp.f32 %v2337_v12  ;;  %v2326_v3 = vadd.f32 1.0, %v4353_v31 }
 0x8b0   :  { %v4355_v7 = vpop.eup %4354  ;;  %4364 = vtanh.f32 %v2317_v45 }
 0x8b1   :  { %4366 = vrcp.f32 %v2326_v3  ;;  %v2338_v32 = vadd.f32 1.0, %v4355_v7  ;;  %v4357_v38 = vpop.eup %4356 }
 0x8b2   :  { %4368 = vpow2.f32 %v3829_v23 }
 0x8b3   :  { %4370 = vrcp.f32 %v2338_v32 }
 0x8ba   :  { %v4359_v56 = vpop.eup %4358 }
 0x8bb   :  { %v4361_v44 = vpop.eup %4360  ;;  %v2357_v20 = vmul.f32 %v4359_v56, %v4357_v38 }
 0x8bc   :  { %v4363_v49 = vpop.eup %4362  ;;  %v2351_v9 = vadd.f32 1.0, %v4361_v44 }
 0x8bd   :  { %v4365_v43 = vpop.eup %4364  ;;  %v2359_v59 = vmul.f32 %v4363_v49, %v5664_v60 }
 0x8be   :  { %v4367_v35 = vpop.eup %4366  ;;  %4372 = vrcp.f32 %v2351_v9 }
 0x8bf   :  { %v4369_v6 = vpop.eup %4368  ;;  %v2361_v41 = vadd.f32 %v2359_v59, %v2357_v20  ;;  %v2358_v53 = vmul.f32 %v4367_v35, %v4365_v43 }
 0x8c0   :  { %v4371_v21 = vpop.eup %4370  ;;  %v2352_v34 = vadd.f32 1.0, %v4369_v6 }
 0x8c1   :  { %v3830_v26 = vclamps-f32 %v2361_v41, 3.0  ;;  %v2360_v30 = vmul.f32 %v4371_v21, %v5668_v50 }
 0x8c3   :  { %v2362_v37 = vadd.f32 %v2360_v30, %v2358_v53  ;;  %4374 = vtanh.f32 %v3830_v26  ;;  %v5776_v57 = vsel %vm2429_vm11, %v3830_v26, %v5664_v60 }
 0x8c4   :  { %4376 = vrcp.f32 %v2352_v34 }
 0x8c5   :  { %v3831_v61 = vclamps-f32 %v2362_v37, 3.0 }
 0x8c7   :  { %4378 = vtanh.f32 %v3831_v61  ;;  %v5784_v63 = vsel %vm2430_vm12, %v3831_v61, %v5668_v50  ;;  %v5793_v50 = vld [vmem:[#allocation10 + $0xc8] ss:$16 sps:$4 sm:$0xff]  }
 0x8cb   :  { %v4373_v40 = vpop.eup %4372 }
 0x8d0   :  { %v4375_v19 = vpop.eup %4374 }
 0x8d1   :  { %v2369_v29 = vmul.f32 %v4375_v19, %v4373_v40  ;;  %v4377_v54 = vpop.eup %4376  ;;  %v5860_v40 = vld [vmem:[#allocation11 + $0x38] sm:$0xff]  }
 0x8d4   :  { %v4379_v33 = vpop.eup %4378 }
 0x8d5   :  { %v2370_v36 = vmul.f32 %v4379_v33, %v4377_v54 }
 0x8d7   :  { %v2371_v60 = vpack.c.bf16 %v2370_v36, %v2369_v29 }
 0x8d9   :  { %4065 = vmatmul.mubr.bf16.vlgmr.msra.gmra.mxu0 %v2371_v60 }
 0x8da   :  { %2622 = vmatpush1.bf16.msra.mxu0 %v5786_v13  ;;  %2653 = vmatprep.mubr.bf16.mxu0 %v6226_v15 }
 0x8db   :  { %2623 = vmatprep.subr.bf16.mxu0 %v5790_v55 }
 0x8de   :  { %2624 = vmatpush1.bf16.msra.mxu0 %v5793_v50 }
 0x8df   :  { %2625 = vmatprep.subr.bf16.mxu0 %v5796_v51 }
 0x8e2   :  { %2626 = vmatpush1.bf16.msra.mxu0 %v5799_v17 }
 0x8e3   :  { %2627 = vmatprep.subr.bf16.mxu0 %v5802_v52 }
 0x8e6   :  { %2628 = vmatpush1.bf16.msra.mxu0 %v5805_v39 }
 0x8e7   :  { %2629 = vmatprep.subr.bf16.mxu0 %v5808_v62 }
 0x8ea   :  { %2630 = vmatpush1.bf16.msra.mxu0 %v5811_v46 }
 0x8eb   :  { %2631 = vmatprep.subr.bf16.mxu0 %v5814_v5 }
 0x8ee   :  { %2632 = vmatpush1.bf16.msra.mxu0 %v5817_v1 }
 0x8ef   :  { %2633 = vmatprep.subr.bf16.mxu0 %v5820_v2 }
 0x8f2   :  { %2634 = vmatpush1.bf16.msra.mxu0 %v5823_v14 }
 0x8f3   :  { %2635 = vmatprep.subr.bf16.mxu0 %v5826_v18 }
 0x8f6   :  { %2636 = vmatpush1.bf16.msra.mxu0 %v5829_v47 }
 0x8f7   :  { %2931 = vmatprep.subr.bf16.mxu0 %v5832_v0 }
 0x999   :  { %v2406_v45 = vpop.f32.mrf.mxu0 }
 0x99a   :  { %v3832_v12 = vclamps-f32 %v2406_v45, 3.0 }
 0x99b   :  { %v4066_v31 = vpop.f32.mrf.mxu0 }
 0x99c   :  { %v2435_v23 = vsel %vm2429_vm11, %v3832_v12, 0.0  ;;  %v5843_v43 = vsel %vm2429_vm11, %v3832_v12, %v5693_v4  ;;  %v5872_v12 = vld [vmem:[#allocation11 + $0x30] sm:$0xff]  }
 0x99d   :  { %v2439_v3 = vcombine.high %v2435_v23, %v2435_v23  ;;  %v2446_v7 = vrot.slane %v2435_v23, %v5285_v28  ;;  %v2409_v32 = vpop.f32.mrf.mxu0  ;;  %v5878_v23 = vld [vmem:[#allocation11 + $0x28] sm:$0xff]  }
 0x99e   :  { %v3833_v38 = vclamps-f32 %v2409_v32, 3.0  ;;  %v5891_v32 = vld [vmem:[#allocation10 + $0x64] ss:$16 sps:$4 sm:$0xff]  }
 0x99f   :  { %v2453_v56 = vrot.slane %v2439_v3, %v5285_v28  ;;  %v2454_v44 = vcombine.high %v2446_v7, %v2446_v7  ;;  %v2462_v20 = vrot.slane %v2446_v7, %v5285_v28  ;;  %3834 = vst.sshfl [vmem:[#allocation13 + $0x4] sm:$0x1 pattern:$0x73625140] %v2446_v7  ;;  %v4067_v49 = vpop.f32.mrf.mxu0  ;;  %v5884_v3 = vld [vmem:[#allocation11 + $0x20] sm:$0xff]  }
 0x9a0   :  { %v5848_v59 = vsel %vm2430_vm12, %v3833_v38, %v5697_v24  ;;  %v2436_v35 = vsel %vm2430_vm12, %v3833_v38, 0.0  ;;  %v5888_v7 = vld [vmem:[#allocation10 + $0x80] ss:$16 sps:$4 sm:$0xff]   ;;  %v5894_v38 = vld [vmem:[#allocation11 + $0x18] sm:$0xff]  }
 0x9a1   :  { %v2455_v9 = vcombine.high %v2453_v56, %v2453_v56  ;;  %v2469_v6 = vrot.slane %v2453_v56, %v5285_v28  ;;  %v2476_v41 = vrot.slane %v2454_v44, %v5285_v28  ;;  %v2484_v53 = vcombine.high %v2462_v20, %v2462_v20  ;;  %3835 = vst.sshfl [vmem:[#allocation13 + $0xc] sm:$0x1 pattern:$0x73625140] %v2454_v44  ;;  %v5901_v44 = vld [vmem:[#allocation10 + $0x44] ss:$16 sps:$4 sm:$0xff]  }
 0x9a2   :  { %3836 = vst.sshfl [vmem:[#allocation13 + $0x24] sm:$0x1 pattern:$0x73625140] %v2453_v56  ;;  %v2488_v21 = vcombine.high %v2436_v35, %v2436_v35  ;;  %v2495_v4 = vrot.slane %v2436_v35, %v5285_v28  ;;  %v2577_v25 = vpack.c.bf16 %v5848_v59, %v5843_v43  ;;  %v5898_v56 = vld [vmem:[#allocation10 + $0x60] ss:$16 sps:$4 sm:$0xff]  }
 0x9a3   :  { %v2483_v24 = vrot.slane %v2455_v9, %v5285_v28  ;;  %v2485_v26 = vcombine.high %v2469_v6, %v2469_v6  ;;  %v2486_v30 = vcombine.high %v2476_v41, %v2476_v41  ;;  %2555 = vst [vmem:[#allocation13 + $0x14] sm:$0x1] %v2484_v53  ;;  %3837 = vst.sshfl [vmem:[#allocation13 + $0x2c] sm:$0x1 pattern:$0x73625140] %v2455_v9 }
 0x9a4   :  { %v2502_v34 = vrot.slane %v2488_v21, %v5285_v28  ;;  %v2503_v37 = vcombine.high %v2495_v4, %v2495_v4  ;;  %v2511_v58 = vrot.slane %v2495_v4, %v5285_v28  ;;  %3838 = vst.sshfl [vmem:[#allocation13 + $0x44] sm:$0x1 pattern:$0x73625140] %v2495_v4  ;;  %2611 = vmatmul.mubr.bf16.vlgmr.msra.gmra.mxu1 %v2577_v25  ;;  %v5904_v20 = vld [vmem:[#allocation11 + $0x10] sm:$0xff]   ;;  %v5914_v9 = vld [vmem:[#allocation11 + $0x8] sm:$0xff]  }
 0x9a5   :  { %2654 = vmatmul.mubr.bf16.vlgmr.msra.gmra.mxu0 %v2577_v25  ;;  %v2487_v61 = vcombine.high %v2483_v24, %v2483_v24  ;;  %2556 = vst [vmem:[#allocation13 + $0x1c] sm:$0x1] %v2486_v30  ;;  %2559 = vst [vmem:[#allocation13 + $0x34] sm:$0x1] %v2485_v26  ;;  %4069 = vmatpush3.bf16.msra.mxu1 %v5860_v40  ;;  %v5908_v49 = vld [vmem:[#allocation10 + $0x40] ss:$16 sps:$4 sm:$0xff]  }
 0x9a6   :  { %4084 = vmatprep.mubr.msk.bf16.mxu1 %vm4733_vm3, %v6227_v10  ;;  %v2504_v19 = vcombine.high %v2502_v34, %v2502_v34  ;;  %v2518_v29 = vrot.slane %v2502_v34, %v5285_v28  ;;  %v2525_v54 = vrot.slane %v2503_v37, %v5285_v28  ;;  %v2533_v33 = vcombine.high %v2511_v58, %v2511_v58  ;;  %v5911_v35 = vld [vmem:[#allocation10 + $0x24] ss:$16 sps:$4 sm:$0xff]   ;;  %v5918_v6 = vld [vmem:[#allocation10 + $0x20] ss:$16 sps:$4 sm:$0xff]   ;;  %v6273_v25 = vld [vmem:[#allocation56_spill] sm:$0xff] }
 0x9a7   :  { %3839 = vst.sshfl [vmem:[#allocation13 + $0x4c] sm:$0x1 pattern:$0x73625140] %v2503_v37  ;;  %4070 = vmatprep.subr.bf16.mxu1 %v6227_v10  ;;  %2560 = vst [vmem:[#allocation13 + $0x3c] sm:$0x1] %v2487_v61  ;;  %2932 = vmatpush1.bf16.msra.mxu0 %v5714_v48 }
 0x9a8   :  { %3840 = vst.sshfl [vmem:[#allocation13 + $0x64] sm:$0x1 pattern:$0x73625140] %v2502_v34  ;;  %2963 = vmatprep.mubr.bf16.mxu0 %v6226_v15  ;;  %v2532_v36 = vrot.slane %v2504_v19, %v5285_v28  ;;  %v2534_v60 = vcombine.high %v2518_v29, %v2518_v29  ;;  %v2535_v45 = vcombine.high %v2525_v54, %v2525_v54  ;;  %2563 = vst [vmem:[#allocation13 + $0x54] sm:$0x1] %v2533_v33 }
 0x9a9   :  { %3841 = vst.sshfl [vmem:[#allocation13 + $0x6c] sm:$0x1 pattern:$0x73625140] %v2504_v19  ;;  %2933 = vmatprep.subr.bf16.mxu0 %v5719_v27  ;;  %4071 = vmatpush3.bf16.msra.mxu1 %v5872_v12  ;;  %v5921_v41 = vld [vmem:[#allocation10 + $0x4] ss:$16 sps:$4 sm:$0xff]  }
 0x9aa   :  { %v2536_v31 = vcombine.high %v2532_v36, %v2532_v36  ;;  %2564 = vst [vmem:[#allocation13 + $0x5c] sm:$0x1] %v2535_v45  ;;  %2567 = vst [vmem:[#allocation13 + $0x74] sm:$0x1] %v2534_v60  ;;  %4072 = vmatprep.subr.bf16.mxu1 %v6227_v10  ;;  %v5924_v53 = vld [vmem:[#allocation11] sm:$0xff]   ;;  %v6274_v37 = vld [vmem:[#allocation58_spill] sm:$0xff] }
 0x9ab   :  { %2934 = vmatpush1.bf16.msra.mxu0 %v5724_v16  ;;  %6270 = vst [vmem:[#allocation30_spill] sm:$0xff] %v5921_v41  ;;  %6271 = vst [vmem:[#allocation27_spill] sm:$0xff] %v5924_v53  ;;  %v5928_v21 = vld [vmem:[#allocation10] ss:$16 sps:$4 sm:$0xff]   ;;  %v6275_v29 = vld [vmem:[#allocation60_spill] sm:$0xff] }
 0x9ac   :  { %2568 = vst [vmem:[#allocation13 + $0x7c] sm:$0x1] %v2536_v31  ;;  %2935 = vmatprep.subr.bf16.mxu0 %v5727_v42  ;;  %6272 = vst [vmem:[#allocation25_spill] sm:$0xff] %v5928_v21  ;;  %v6276_v45 = vld [vmem:[#allocation62_spill] sm:$0xff] }
 0x9ad   :  { %4073 = vmatpush3.bf16.msra.mxu1 %v5878_v23 }
 0x9ae   :  { %4074 = vmatprep.subr.bf16.mxu1 %v6227_v10 }
 0x9af   :  { %2936 = vmatpush1.bf16.msra.mxu0 %v5732_v11 }
 0x9b0   :  { %2937 = vmatprep.subr.bf16.mxu0 %v5735_v22 }
 0x9b1   :  { %4075 = vmatpush3.bf16.msra.mxu1 %v5884_v3 }
 0x9b2   :  { %4076 = vmatprep.subr.bf16.mxu1 %v6227_v10 }
 0x9b3   :  { %2938 = vmatpush1.bf16.msra.mxu0 %v5888_v7 }
 0x9b4   :  { %2939 = vmatprep.subr.bf16.mxu0 %v5891_v32 }
 0x9b5   :  { %4077 = vmatpush3.bf16.msra.mxu1 %v5894_v38 }
 0x9b6   :  { %4078 = vmatprep.subr.bf16.mxu1 %v6227_v10 }
 0x9b7   :  { %2940 = vmatpush1.bf16.msra.mxu0 %v5898_v56 }
 0x9b8   :  { %2941 = vmatprep.subr.bf16.mxu0 %v5901_v44 }
 0x9b9   :  { %4079 = vmatpush3.bf16.msra.mxu1 %v5904_v20 }
 0x9ba   :  { %4080 = vmatprep.subr.bf16.mxu1 %v6227_v10 }
 0x9bb   :  { %2942 = vmatpush1.bf16.msra.mxu0 %v5908_v49 }
 0x9bc   :  { %2943 = vmatprep.subr.bf16.mxu0 %v5911_v35 }
 0x9bd   :  { %4081 = vmatpush3.bf16.msra.mxu1 %v5914_v9 }
 0x9be   :  { %4082 = vmatprep.subr.bf16.mxu1 %v6227_v10 }
 0x9bf   :  { %2944 = vmatpush1.bf16.msra.mxu0 %v5918_v6 }
 0x9c0   :  { %2945 = vmatprep.subr.bf16.mxu0 %v5921_v41 }
 0x9c1   :  { %4083 = vmatpush3.bf16.msra.mxu1 %v5924_v53  ;;  %v6278_v53 = vld [vmem:[#allocation57_spill] sm:$0xff] }
 0x9c2   :  { %2974 = vmatprep.subr.bf16.mxu1 %v5755_v8 }
 0x9c3   :  { %2946 = vmatpush1.bf16.msra.mxu0 %v5928_v21 }
 0x9c4   :  { %4088 = vmatprep.subr.bf16.mxu0 %v6227_v10 }
 0xa64   :  { %v2612_v4 = vpop.f32.mrf.mxu1 }
 0xa65   :  { %v2664_v24 = vadd.f32 %v2612_v4, %v6273_v25  ;;  %v2655_v34 = vpop.f32.mrf.mxu0  ;;  %v6277_v4 = vld [vmem:[#allocation59_spill] sm:$0xff] }
 0xa66   :  { %v2614_v26 = vpop.f32.mrf.mxu1 }
 0xa67   :  { %v3842_v30 = vmul.f32 -1.442695, %v2664_v24  ;;  %v2665_v58 = vadd.f32 %v2614_v26, %v6274_v37  ;;  %v2657_v36 = vpop.f32.mrf.mxu0  ;;  %v2666_v26 = vadd.f32 %v2655_v34, %v6278_v53 }
 0xa68   :  { %v2616_v61 = vpop.f32.mrf.mxu1  ;;  %v2667_v25 = vadd.f32 %v2657_v36, %v6277_v4 }
 0xa69   :  { %4380 = vpow2.f32 %v3842_v30  ;;  %v3844_v19 = vmul.f32 -1.442695, %v2665_v58  ;;  %v2668_v54 = vadd.f32 %v2616_v61, %v6275_v29  ;;  %v2659_v8 = vpop.f32.mrf.mxu0  ;;  %v6279_v58 = vld [vmem:[#allocation63_spill] sm:$0xff] }
 0xa6a   :  { %v2618_v33 = vpop.f32.mrf.mxu1  ;;  %v3846_v30 = vmul.f32 -1.442695, %v2667_v25 }
 0xa6b   :  { %4382 = vpow2.f32 %v3844_v19  ;;  %v3843_v60 = vmul.f32 -1.442695, %v2668_v54  ;;  %v2669_v31 = vadd.f32 %v2618_v33, %v6276_v45  ;;  %v2661_v24 = vpop.f32.mrf.mxu0  ;;  %v6280_v19 = vld [vmem:[#allocation61_spill] sm:$0xff] }
 0xa6c   :  { %v2671_v41 = vadd.f32 %v2661_v24, %v6279_v58  ;;  %v2670_v54 = vadd.f32 %v2659_v8, %v6280_v19  ;;  %v2778_v19 = vpop.permute.xlu0 %2777 }
 0xa6d   :  { %4384 = vpow2.f32 %v3843_v60  ;;  %v3845_v21 = vmul.f32 -1.442695, %v2669_v31  ;;  %vm2782_vm13 = vcmp.eq.s32.totalorder %v2778_v19, 1 }
 0xa6e   :  { %v3847_v45 = vmul.f32 -1.442695, %v2671_v41 }
 0xa6f   :  { %4386 = vpow2.f32 %v3845_v21 }
 0xa70   :  { %4388 = vtanh.f32 %v2666_v26 }
 0xa76   :  { %v4381_v37 = vpop.eup %4380 }
 0xa77   :  { %v2678_v61 = vadd.f32 1.0, %v4381_v37 }
 0xa78   :  { %v4383_v29 = vpop.eup %4382 }
 0xa79   :  { %4390 = vrcp.f32 %v2678_v61  ;;  %v2690_v33 = vadd.f32 1.0, %v4383_v29 }
 0xa7a   :  { %v4385_v60 = vpop.eup %4384  ;;  %4392 = vpow2.f32 %v3846_v30 }
 0xa7b   :  { %4394 = vrcp.f32 %v2690_v33  ;;  %v2679_v21 = vadd.f32 1.0, %v4385_v60 }
 0xa7c   :  { %v4387_v36 = vpop.eup %4386  ;;  %4396 = vtanh.f32 %v2670_v54 }
 0xa7d   :  { %4398 = vrcp.f32 %v2679_v21  ;;  %v2691_v53 = vadd.f32 1.0, %v4387_v36  ;;  %v4389_v34 = vpop.eup %4388  ;;  %v2781_v36 = vpop.permute.xlu1 %2780 }
 0xa7e   :  { %4400 = vpow2.f32 %v3847_v45  ;;  %vm2783_vm14 = vcmp.eq.s32.totalorder %v2781_v36, 1 }
 0xa7f   :  { %4402 = vrcp.f32 %v2691_v53 }
 0xa86   :  { %v4391_v31 = vpop.eup %4390 }
 0xa87   :  { %v4393_v4 = vpop.eup %4392  ;;  %v2710_v25 = vmul.f32 %v4391_v31, %v4389_v34 }
 0xa88   :  { %v4395_v24 = vpop.eup %4394  ;;  %v2704_v58 = vadd.f32 1.0, %v4393_v4 }
 0xa89   :  { %v4397_v26 = vpop.eup %4396  ;;  %v2712_v8 = vmul.f32 %v4395_v24, %v5776_v57 }
 0xa8a   :  { %v4399_v37 = vpop.eup %4398  ;;  %4404 = vrcp.f32 %v2704_v58 }
 0xa8b   :  { %v4401_v30 = vpop.eup %4400  ;;  %v2714_v41 = vadd.f32 %v2712_v8, %v2710_v25  ;;  %v2711_v61 = vmul.f32 %v4399_v37, %v4397_v26 }
 0xa8c   :  { %v4403_v29 = vpop.eup %4402  ;;  %v2705_v60 = vadd.f32 1.0, %v4401_v30 }
 0xa8d   :  { %v3848_v54 = vclamps-f32 %v2714_v41, 3.0  ;;  %v2713_v33 = vmul.f32 %v4403_v29, %v5784_v63 }
 0xa8f   :  { %v2715_v45 = vadd.f32 %v2713_v33, %v2711_v61  ;;  %4406 = vtanh.f32 %v3848_v54  ;;  %v5944_v21 = vsel %vm2782_vm13, %v3848_v54, %v5776_v57 }
 0xa90   :  { %4408 = vrcp.f32 %v2705_v60 }
 0xa91   :  { %v3849_v53 = vclamps-f32 %v2715_v45, 3.0 }
 0xa93   :  { %4410 = vtanh.f32 %v3849_v53  ;;  %v5948_v34 = vsel %vm2783_vm14, %v3849_v53, %v5784_v63 }
 0xa97   :  { %v4405_v31 = vpop.eup %4404 }
 0xa9c   :  { %v4407_v4 = vpop.eup %4406 }
 0xa9d   :  { %v2722_v25 = vmul.f32 %v4407_v4, %v4405_v31  ;;  %v4409_v24 = vpop.eup %4408 }
 0xaa0   :  { %v4411_v26 = vpop.eup %4410 }
 0xaa1   :  { %v2723_v8 = vmul.f32 %v4411_v26, %v4409_v24 }
 0xaa3   :  { %v2724_v37 = vpack.c.bf16 %v2723_v8, %v2722_v25 }
 0xaa5   :  { %4085 = vmatmul.mubr.bf16.vlgmr.msra.gmra.mxu1 %v2724_v37 }
 0xaa6   :  { %2975 = vmatpush1.bf16.msra.mxu1 %v5786_v13  ;;  %3006 = vmatprep.mubr.bf16.mxu1 %v6226_v15 }
 0xaa7   :  { %2976 = vmatprep.subr.bf16.mxu1 %v5790_v55 }
 0xaaa   :  { %2977 = vmatpush1.bf16.msra.mxu1 %v5793_v50 }
 0xaab   :  { %2978 = vmatprep.subr.bf16.mxu1 %v5796_v51 }
 0xaae   :  { %2979 = vmatpush1.bf16.msra.mxu1 %v5799_v17 }
 0xaaf   :  { %2980 = vmatprep.subr.bf16.mxu1 %v5802_v52 }
 0xab2   :  { %2981 = vmatpush1.bf16.msra.mxu1 %v5805_v39 }
 0xab3   :  { %2982 = vmatprep.subr.bf16.mxu1 %v5808_v62 }
 0xab6   :  { %2983 = vmatpush1.bf16.msra.mxu1 %v5811_v46 }
 0xab7   :  { %2984 = vmatprep.subr.bf16.mxu1 %v5814_v5 }
 0xaba   :  { %2985 = vmatpush1.bf16.msra.mxu1 %v5817_v1 }
 0xabb   :  { %2986 = vmatprep.subr.bf16.mxu1 %v5820_v2 }
 0xabe   :  { %2987 = vmatpush1.bf16.msra.mxu1 %v5823_v14 }
 0xabf   :  { %2988 = vmatprep.subr.bf16.mxu1 %v5826_v18 }
 0xac2   :  { %2989 = vmatpush1.bf16.msra.mxu1 %v5829_v47 }
 0xac3   :  { %3284 = vmatprep.subr.bf16.mxu1 %v5832_v0 }
 0xb65   :  { %v2759_v57 = vpop.f32.mrf.mxu1 }
 0xb66   :  { %v3850_v63 = vclamps-f32 %v2759_v57, 3.0 }
 0xb67   :  { %v4086_v58 = vpop.f32.mrf.mxu1 }
 0xb68   :  { %v2788_v30 = vsel %vm2782_vm13, %v3850_v63, 0.0  ;;  %v5973_v0 = vsel %vm2782_vm13, %v3850_v63, %v5843_v43 }
 0xb69   :  { %v2792_v41 = vcombine.high %v2788_v30, %v2788_v30  ;;  %v2799_v61 = vrot.slane %v2788_v30, %v5285_v28  ;;  %v2762_v29 = vpop.f32.mrf.mxu1 }
 0xb6a   :  { %v3851_v54 = vclamps-f32 %v2762_v29, 3.0 }
 0xb6b   :  { %v2806_v33 = vrot.slane %v2792_v41, %v5285_v28  ;;  %v2807_v60 = vcombine.high %v2799_v61, %v2799_v61  ;;  %v2815_v45 = vrot.slane %v2799_v61, %v5285_v28  ;;  %3852 = vst.sshfl [vmem:[#allocation13 + $0x5] sm:$0x1 pattern:$0x73625140] %v2799_v61  ;;  %v4087_v53 = vpop.f32.mrf.mxu1 }
 0xb6c   :  { %v5977_v31 = vsel %vm2783_vm14, %v3851_v54, %v5848_v59  ;;  %v2789_v4 = vsel %vm2783_vm14, %v3851_v54, 0.0 }
 0xb6d   :  { %v2808_v25 = vcombine.high %v2806_v33, %v2806_v33  ;;  %v2822_v24 = vrot.slane %v2806_v33, %v5285_v28  ;;  %v2829_v26 = vrot.slane %v2807_v60, %v5285_v28  ;;  %v2837_v8 = vcombine.high %v2815_v45, %v2815_v45  ;;  %3853 = vst.sshfl [vmem:[#allocation13 + $0xd] sm:$0x1 pattern:$0x73625140] %v2807_v60 }
 0xb6e   :  { %3854 = vst.sshfl [vmem:[#allocation13 + $0x25] sm:$0x1 pattern:$0x73625140] %v2806_v33  ;;  %v2841_v37 = vcombine.high %v2789_v4, %v2789_v4  ;;  %v2848_v57 = vrot.slane %v2789_v4, %v5285_v28  ;;  %v2930_v43 = vpack.c.bf16 %v5977_v31, %v5973_v0 }
 0xb6f   :  { %v2836_v19 = vrot.slane %v2808_v25, %v5285_v28  ;;  %v2838_v59 = vcombine.high %v2822_v24, %v2822_v24  ;;  %v2839_v63 = vcombine.high %v2829_v26, %v2829_v26  ;;  %2908 = vst [vmem:[#allocation13 + $0x15] sm:$0x1] %v2837_v8  ;;  %3855 = vst.sshfl [vmem:[#allocation13 + $0x2d] sm:$0x1 pattern:$0x73625140] %v2808_v25 }
 0xb70   :  { %v2855_v36 = vrot.slane %v2841_v37, %v5285_v28  ;;  %v2856_v58 = vcombine.high %v2848_v57, %v2848_v57  ;;  %v2864_v30 = vrot.slane %v2848_v57, %v5285_v28  ;;  %3856 = vst.sshfl [vmem:[#allocation13 + $0x45] sm:$0x1 pattern:$0x73625140] %v2848_v57  ;;  %2964 = vmatmul.mubr.bf16.vlgmr.msra.gmra.mxu0 %v2930_v43  ;;  %v6287_v24 = vld [vmem:[#allocation68_spill] sm:$0xff] }
 0xb71   :  { %3007 = vmatmul.mubr.bf16.vlgmr.msra.gmra.mxu1 %v2930_v43  ;;  %v2840_v41 = vcombine.high %v2836_v19, %v2836_v19  ;;  %2909 = vst [vmem:[#allocation13 + $0x1d] sm:$0x1] %v2839_v63  ;;  %2912 = vst [vmem:[#allocation13 + $0x35] sm:$0x1] %v2838_v59  ;;  %4089 = vmatpush3.bf16.msra.mxu0 %v5860_v40  ;;  %v6288_v43 = vld [vmem:[#allocation70_spill] sm:$0xff] }
 0xb72   :  { %4104 = vmatprep.mubr.msk.bf16.mxu0 %vm4733_vm3, %v6227_v10  ;;  %v2857_v61 = vcombine.high %v2855_v36, %v2855_v36  ;;  %v2871_v29 = vrot.slane %v2855_v36, %v5285_v28  ;;  %v2878_v54 = vrot.slane %v2856_v58, %v5285_v28  ;;  %v2886_v33 = vcombine.high %v2864_v30, %v2864_v30 }
 0xb73   :  { %3857 = vst.sshfl [vmem:[#allocation13 + $0x4d] sm:$0x1 pattern:$0x73625140] %v2856_v58  ;;  %4090 = vmatprep.subr.bf16.mxu0 %v6227_v10  ;;  %2913 = vst [vmem:[#allocation13 + $0x3d] sm:$0x1] %v2840_v41  ;;  %3285 = vmatpush1.bf16.msra.mxu1 %v5714_v48 }
 0xb74   :  { %3858 = vst.sshfl [vmem:[#allocation13 + $0x65] sm:$0x1 pattern:$0x73625140] %v2855_v36  ;;  %3316 = vmatprep.mubr.bf16.mxu1 %v6226_v15  ;;  %v2885_v60 = vrot.slane %v2857_v61, %v5285_v28  ;;  %v2887_v45 = vcombine.high %v2871_v29, %v2871_v29  ;;  %v2888_v53 = vcombine.high %v2878_v54, %v2878_v54  ;;  %2916 = vst [vmem:[#allocation13 + $0x55] sm:$0x1] %v2886_v33 }
 0xb75   :  { %3859 = vst.sshfl [vmem:[#allocation13 + $0x6d] sm:$0x1 pattern:$0x73625140] %v2857_v61  ;;  %3286 = vmatprep.subr.bf16.mxu1 %v5719_v27  ;;  %4091 = vmatpush3.bf16.msra.mxu0 %v5872_v12  ;;  %v6281_v48 = vld [vmem:[#allocation30_spill] sm:$0xff]  ;;  %v6282_v27 = vld [vmem:[#allocation27_spill] sm:$0xff] }
 0xb76   :  { %v2889_v4 = vcombine.high %v2885_v60, %v2885_v60  ;;  %2917 = vst [vmem:[#allocation13 + $0x5d] sm:$0x1] %v2888_v53  ;;  %2920 = vst [vmem:[#allocation13 + $0x75] sm:$0x1] %v2887_v45  ;;  %4092 = vmatprep.subr.bf16.mxu0 %v6227_v10  ;;  %v6289_v36 = vld [vmem:[#allocation67_spill] sm:$0xff]  ;;  %v6290_v41 = vld [vmem:[#allocation65_spill] sm:$0xff] }
 0xb77   :  { %3287 = vmatpush1.bf16.msra.mxu1 %v5724_v16  ;;  %v6283_v16 = vld [vmem:[#allocation28_spill] sm:$0xff]  ;;  %v6291_v33 = vld [vmem:[#allocation71_spill] sm:$0xff] }
 0xb78   :  { %2921 = vst [vmem:[#allocation13 + $0x7d] sm:$0x1] %v2889_v4  ;;  %3288 = vmatprep.subr.bf16.mxu1 %v5727_v42  ;;  %v6284_v42 = vld [vmem:[#allocation25_spill] sm:$0xff] }
 0xb79   :  { %4093 = vmatpush3.bf16.msra.mxu0 %v5878_v23  ;;  %v6292_v4 = vld [vmem:[#allocation69_spill] sm:$0xff] }
 0xb7a   :  { %4094 = vmatprep.subr.bf16.mxu0 %v6227_v10 }
 0xb7b   :  { %3289 = vmatpush1.bf16.msra.mxu1 %v5732_v11 }
 0xb7c   :  { %3290 = vmatprep.subr.bf16.mxu1 %v5735_v22  ;;  %v6285_v22 = vld [vmem:[#allocation64_spill] sm:$0xff] }
 0xb7d   :  { %4095 = vmatpush3.bf16.msra.mxu0 %v5884_v3 }
 0xb7e   :  { %4096 = vmatprep.subr.bf16.mxu0 %v6227_v10 }
 0xb7f   :  { %3291 = vmatpush1.bf16.msra.mxu1 %v5888_v7 }
 0xb80   :  { %3292 = vmatprep.subr.bf16.mxu1 %v5891_v32 }
 0xb81   :  { %4097 = vmatpush3.bf16.msra.mxu0 %v5894_v38 }
 0xb82   :  { %4098 = vmatprep.subr.bf16.mxu0 %v6227_v10 }
 0xb83   :  { %3293 = vmatpush1.bf16.msra.mxu1 %v5898_v56 }
 0xb84   :  { %3294 = vmatprep.subr.bf16.mxu1 %v5901_v44 }
 0xb85   :  { %4099 = vmatpush3.bf16.msra.mxu0 %v5904_v20 }
 0xb86   :  { %4100 = vmatprep.subr.bf16.mxu0 %v6227_v10 }
 0xb87   :  { %3295 = vmatpush1.bf16.msra.mxu1 %v5908_v49  ;;  %v6286_v49 = vld [vmem:[#allocation66_spill] sm:$0xff] }
 0xb88   :  { %3296 = vmatprep.subr.bf16.mxu1 %v5911_v35 }
 0xb89   :  { %4101 = vmatpush3.bf16.msra.mxu0 %v5914_v9 }
 0xb8a   :  { %4102 = vmatprep.subr.bf16.mxu0 %v6227_v10 }
 0xb8b   :  { %3297 = vmatpush1.bf16.msra.mxu1 %v5918_v6 }
 0xb8c   :  { %3298 = vmatprep.subr.bf16.mxu1 %v6281_v48 }
 0xb8d   :  { %4103 = vmatpush3.bf16.msra.mxu0 %v6282_v27 }
 0xb8e   :  { %3327 = vmatprep.subr.bf16.mxu0 %v6283_v16 }
 0xb8f   :  { %3299 = vmatpush1.bf16.msra.mxu1 %v6284_v42 }
 0xb90   :  { %4108 = vmatprep.subr.bf16.mxu1 %v6227_v10 }
 0xc30   :  { %v2965_v11 = vpop.f32.mrf.mxu0 }
 0xc31   :  { %v3017_v7 = vadd.f32 %v2965_v11, %v6285_v22  ;;  %v3008_v44 = vpop.f32.mrf.mxu1 }
 0xc32   :  { %v2967_v32 = vpop.f32.mrf.mxu0  ;;  %v3019_v61 = vadd.f32 %v3008_v44, %v6290_v41 }
 0xc33   :  { %v3860_v56 = vmul.f32 -1.442695, %v3017_v7  ;;  %v3018_v35 = vadd.f32 %v2967_v32, %v6286_v49  ;;  %v3010_v37 = vpop.f32.mrf.mxu1 }
 0xc34   :  { %v2969_v25 = vpop.f32.mrf.mxu0  ;;  %v3020_v58 = vadd.f32 %v3010_v37, %v6289_v36 }
 0xc35   :  { %4412 = vpow2.f32 %v3860_v56  ;;  %v3862_v6 = vmul.f32 -1.442695, %v3018_v35  ;;  %v3021_v26 = vadd.f32 %v2969_v25, %v6287_v24  ;;  %v3012_v63 = vpop.f32.mrf.mxu1 }
 0xc36   :  { %v2971_v8 = vpop.f32.mrf.mxu0  ;;  %v3864_v54 = vmul.f32 -1.442695, %v3020_v58  ;;  %v3023_v48 = vadd.f32 %v3012_v63, %v6292_v4 }
 0xc37   :  { %4414 = vpow2.f32 %v3862_v6  ;;  %v3861_v57 = vmul.f32 -1.442695, %v3021_v26  ;;  %v3022_v19 = vadd.f32 %v2971_v8, %v6288_v43  ;;  %v3014_v30 = vpop.f32.mrf.mxu1 }
 0xc38   :  { %v3024_v60 = vadd.f32 %v3014_v30, %v6291_v33 }
 0xc39   :  { %4416 = vpow2.f32 %v3861_v57  ;;  %v3863_v59 = vmul.f32 -1.442695, %v3022_v19 }
 0xc3a   :  { %v3865_v11 = vmul.f32 -1.442695, %v3024_v60 }
 0xc3b   :  { %4418 = vpow2.f32 %v3863_v59  ;;  %v3131_v59 = vpop.permute.xlu0 %3130 }
 0xc3c   :  { %4420 = vtanh.f32 %v3019_v61  ;;  %vm3135_vm15 = vcmp.eq.s32.totalorder %v3131_v59, 1  ;;  %v3134_v61 = vpop.permute.xlu1 %3133 }
 0xc3d   :  { %vm3136_vm0 = vcmp.eq.s32.totalorder %v3134_v61, 1 }
 0xc42   :  { %v4413_v29 = vpop.eup %4412 }
 0xc43   :  { %v3031_v45 = vadd.f32 1.0, %v4413_v29 }
 0xc44   :  { %v4415_v53 = vpop.eup %4414 }
 0xc45   :  { %4422 = vrcp.f32 %v3031_v45  ;;  %v3043_v16 = vadd.f32 1.0, %v4415_v53 }
 0xc46   :  { %v4417_v42 = vpop.eup %4416  ;;  %4424 = vpow2.f32 %v3864_v54 }
 0xc47   :  { %4426 = vrcp.f32 %v3043_v16  ;;  %v3032_v22 = vadd.f32 1.0, %v4417_v42 }
 0xc48   :  { %v4419_v7 = vpop.eup %4418  ;;  %4428 = vtanh.f32 %v3023_v48 }
 0xc49   :  { %4430 = vrcp.f32 %v3032_v22  ;;  %v3044_v32 = vadd.f32 1.0, %v4419_v7  ;;  %v4421_v56 = vpop.eup %4420 }
 0xc4a   :  { %4432 = vpow2.f32 %v3865_v11 }
 0xc4b   :  { %4434 = vrcp.f32 %v3044_v32 }
 0xc52   :  { %v4423_v44 = vpop.eup %4422 }
 0xc53   :  { %v4425_v49 = vpop.eup %4424  ;;  %v3063_v35 = vmul.f32 %v4423_v44, %v4421_v56 }
 0xc54   :  { %v4427_v25 = vpop.eup %4426  ;;  %v3057_v8 = vadd.f32 1.0, %v4425_v49 }
 0xc55   :  { %v4429_v6 = vpop.eup %4428  ;;  %v3065_v24 = vmul.f32 %v4427_v25, %v5944_v21 }
 0xc56   :  { %v4431_v26 = vpop.eup %4430  ;;  %4436 = vrcp.f32 %v3057_v8 }
 0xc57   :  { %v4433_v37 = vpop.eup %4432  ;;  %v3067_v57 = vadd.f32 %v3065_v24, %v3063_v35  ;;  %v3064_v43 = vmul.f32 %v4431_v26, %v4429_v6 }
 0xc58   :  { %v4435_v19 = vpop.eup %4434  ;;  %v3058_v58 = vadd.f32 1.0, %v4433_v37 }
 0xc59   :  { %v3866_v63 = vclamps-f32 %v3067_v57, 3.0  ;;  %v3066_v36 = vmul.f32 %v4435_v19, %v5948_v34 }
 0xc5b   :  { %v3068_v30 = vadd.f32 %v3066_v36, %v3064_v43  ;;  %4438 = vtanh.f32 %v3866_v63  ;;  %v6038_v41 = vsel %vm3135_vm15, %v3866_v63, %v5944_v21  ;;  %v6294_v63 = vld [vmem:[#allocation74_spill] sm:$0xff] }
 0xc5c   :  { %4440 = vrcp.f32 %v3058_v58 }
 0xc5d   :  { %v3867_v29 = vclamps-f32 %v3068_v30, 3.0 }
 0xc5f   :  { %4442 = vtanh.f32 %v3867_v29  ;;  %v6042_v54 = vsel %vm3136_vm0, %v3867_v29, %v5948_v34 }
 0xc63   :  { %v4437_v33 = vpop.eup %4436 }
 0xc68   :  { %v4439_v60 = vpop.eup %4438 }
 0xc69   :  { %v3075_v45 = vmul.f32 %v4439_v60, %v4437_v33  ;;  %v4441_v53 = vpop.eup %4440 }
 0xc6c   :  { %v4443_v4 = vpop.eup %4442 }
 0xc6d   :  { %v3076_v48 = vmul.f32 %v4443_v4, %v4441_v53 }
 0xc6f   :  { %v3077_v16 = vpack.c.bf16 %v3076_v48, %v3075_v45  ;;  %v6297_v45 = vld [vmem:[#allocation75_spill] sm:$0xff]  ;;  %v6298_v48 = vld [vmem:[#allocation73_spill] sm:$0xff] }
 0xc71   :  { %4105 = vmatmul.mubr.bf16.vlgmr.msra.gmra.mxu0 %v3077_v16 }
 0xc72   :  { %3328 = vmatpush1.bf16.msra.mxu0 %v5786_v13  ;;  %3359 = vmatprep.mubr.bf16.mxu0 %v6226_v15 }
 0xc73   :  { %3329 = vmatprep.subr.bf16.mxu0 %v5790_v55 }
 0xc76   :  { %3330 = vmatpush1.bf16.msra.mxu0 %v5793_v50 }
 0xc77   :  { %3331 = vmatprep.subr.bf16.mxu0 %v5796_v51 }
 0xc7a   :  { %3332 = vmatpush1.bf16.msra.mxu0 %v5799_v17 }
 0xc7b   :  { %3333 = vmatprep.subr.bf16.mxu0 %v5802_v52 }
 0xc7e   :  { %3334 = vmatpush1.bf16.msra.mxu0 %v5805_v39 }
 0xc7f   :  { %3335 = vmatprep.subr.bf16.mxu0 %v5808_v62 }
 0xc82   :  { %3336 = vmatpush1.bf16.msra.mxu0 %v5811_v46 }
 0xc83   :  { %3337 = vmatprep.subr.bf16.mxu0 %v5814_v5 }
 0xc86   :  { %3338 = vmatpush1.bf16.msra.mxu0 %v5817_v1 }
 0xc87   :  { %3339 = vmatprep.subr.bf16.mxu0 %v5820_v2 }
 0xc8a   :  { %3340 = vmatpush1.bf16.msra.mxu0 %v5823_v14 }
 0xc8b   :  { %3341 = vmatprep.subr.bf16.mxu0 %v5826_v18 }
 0xc8e   :  { %3342 = vmatpush1.bf16.msra.mxu0 %v5829_v47 }
 0xd31   :  { %v3112_v15 = vpop.f32.mrf.mxu0 }
 0xd32   :  { %v3868_v13 = vclamps-f32 %v3112_v15, 3.0 }
 0xd33   :  { %v4106_v55 = vpop.f32.mrf.mxu0 }
 0xd34   :  { %v3141_v50 = vsel %vm3135_vm15, %v3868_v13, 0.0  ;;  %v6066_v2 = vsel %vm3135_vm15, %v3868_v13, %v5973_v0  ;;  %v6299_v55 = vld [vmem:[#allocation79_spill] sm:$0xff] }
 0xd35   :  { %v3145_v51 = vcombine.high %v3141_v50, %v3141_v50  ;;  %v3152_v17 = vrot.slane %v3141_v50, %v5285_v28  ;;  %v3115_v52 = vpop.f32.mrf.mxu0 }
 0xd36   :  { %v3869_v39 = vclamps-f32 %v3115_v52, 3.0  ;;  %v6300_v52 = vld [vmem:[#allocation77_spill] sm:$0xff] }
 0xd37   :  { %v3159_v62 = vrot.slane %v3145_v51, %v5285_v28  ;;  %v3160_v46 = vcombine.high %v3152_v17, %v3152_v17  ;;  %v3168_v5 = vrot.slane %v3152_v17, %v5285_v28  ;;  %3870 = vst.sshfl [vmem:[#allocation13 + $0x6] sm:$0x1 pattern:$0x73625140] %v3152_v17  ;;  %v4107_v1 = vpop.f32.mrf.mxu0 }
 0xd38   :  { %v6070_v14 = vsel %vm3136_vm0, %v3869_v39, %v5977_v31  ;;  %v3142_v18 = vsel %vm3136_vm0, %v3869_v39, 0.0 }
 0xd39   :  { %v3161_v47 = vcombine.high %v3159_v62, %v3159_v62  ;;  %v3175_v21 = vrot.slane %v3159_v62, %v5285_v28  ;;  %v3182_v34 = vrot.slane %v3160_v46, %v5285_v28  ;;  %v3190_v42 = vcombine.high %v3168_v5, %v3168_v5  ;;  %3871 = vst.sshfl [vmem:[#allocation13 + $0xe] sm:$0x1 pattern:$0x73625140] %v3160_v46 }
 0xd3a   :  { %3872 = vst.sshfl [vmem:[#allocation13 + $0x26] sm:$0x1 pattern:$0x73625140] %v3159_v62  ;;  %v3194_v11 = vcombine.high %v3142_v18, %v3142_v18  ;;  %v3201_v22 = vrot.slane %v3142_v18, %v5285_v28  ;;  %v3283_v0 = vpack.c.bf16 %v6070_v14, %v6066_v2 }
 0xd3b   :  { %v3189_v7 = vrot.slane %v3161_v47, %v5285_v28  ;;  %v3191_v31 = vcombine.high %v3175_v21, %v3175_v21  ;;  %v3192_v32 = vcombine.high %v3182_v34, %v3182_v34  ;;  %3261 = vst [vmem:[#allocation13 + $0x16] sm:$0x1] %v3190_v42  ;;  %3873 = vst.sshfl [vmem:[#allocation13 + $0x2e] sm:$0x1 pattern:$0x73625140] %v3161_v47 }
 0xd3c   :  { %v3208_v56 = vrot.slane %v3194_v11, %v5285_v28  ;;  %v3209_v44 = vcombine.high %v3201_v22, %v3201_v22  ;;  %v3217_v49 = vrot.slane %v3201_v22, %v5285_v28  ;;  %3874 = vst.sshfl [vmem:[#allocation13 + $0x46] sm:$0x1 pattern:$0x73625140] %v3201_v22  ;;  %3317 = vmatmul.mubr.bf16.vlgmr.msra.gmra.mxu1 %v3283_v0 }
 0xd3d   :  { %3360 = vmatmul.mubr.bf16.vlgmr.msra.gmra.mxu0 %v3283_v0  ;;  %v3193_v35 = vcombine.high %v3189_v7, %v3189_v7  ;;  %3262 = vst [vmem:[#allocation13 + $0x1e] sm:$0x1] %v3192_v32  ;;  %3265 = vst [vmem:[#allocation13 + $0x36] sm:$0x1] %v3191_v31  ;;  %4109 = vmatpush3.bf16.msra.mxu1 %v5860_v40 }
 0xd3e   :  { %4124 = vmatprep.mubr.msk.bf16.mxu1 %vm4733_vm3, %v6227_v10  ;;  %v3210_v25 = vcombine.high %v3208_v56, %v3208_v56  ;;  %v3224_v6 = vrot.slane %v3208_v56, %v5285_v28  ;;  %v3231_v24 = vrot.slane %v3209_v44, %v5285_v28  ;;  %v3239_v26 = vcombine.high %v3217_v49, %v3217_v49 }
 0xd3f   :  { %3875 = vst.sshfl [vmem:[#allocation13 + $0x4e] sm:$0x1 pattern:$0x73625140] %v3209_v44  ;;  %4110 = vmatprep.subr.bf16.mxu1 %v6227_v10  ;;  %3266 = vst [vmem:[#allocation13 + $0x3e] sm:$0x1] %v3193_v35  ;;  %v3484_v44 = vpop.permute.xlu0 %3483 }
 0xd40   :  { %3876 = vst.sshfl [vmem:[#allocation13 + $0x66] sm:$0x1 pattern:$0x73625140] %v3208_v56  ;;  %v3238_v8 = vrot.slane %v3210_v25, %v5285_v28  ;;  %v3240_v37 = vcombine.high %v3224_v6, %v3224_v6  ;;  %v3241_v57 = vcombine.high %v3231_v24, %v3231_v24  ;;  %3269 = vst [vmem:[#allocation13 + $0x56] sm:$0x1] %v3239_v26 }
 0xd41   :  { %3877 = vst.sshfl [vmem:[#allocation13 + $0x6e] sm:$0x1 pattern:$0x73625140] %v3210_v25  ;;  %4111 = vmatpush3.bf16.msra.mxu1 %v5872_v12  ;;  %vm3488_vm3 = vcmp.eq.s32.totalorder %v3484_v44, 1 }
 0xd42   :  { %v3242_v40 = vcombine.high %v3238_v8, %v3238_v8  ;;  %3270 = vst [vmem:[#allocation13 + $0x5e] sm:$0x1] %v3241_v57  ;;  %3273 = vst [vmem:[#allocation13 + $0x76] sm:$0x1] %v3240_v37  ;;  %4112 = vmatprep.subr.bf16.mxu1 %v6227_v10  ;;  %v3487_v8 = vpop.permute.xlu1 %3486 }
 0xd43   :  { %vm3489_vm1 = vcmp.eq.s32.totalorder %v3487_v8, 1 }
 0xd44   :  { %3274 = vst [vmem:[#allocation13 + $0x7e] sm:$0x1] %v3242_v40 }
 0xd45   :  { %4113 = vmatpush3.bf16.msra.mxu1 %v5878_v23  ;;  %v6293_v23 = vld [vmem:[#allocation72_spill] sm:$0xff] }
 0xd46   :  { %4114 = vmatprep.subr.bf16.mxu1 %v6227_v10 }
 0xd49   :  { %4115 = vmatpush3.bf16.msra.mxu1 %v5884_v3 }
 0xd4a   :  { %4116 = vmatprep.subr.bf16.mxu1 %v6227_v10 }
 0xd4d   :  { %4117 = vmatpush3.bf16.msra.mxu1 %v5894_v38 }
 0xd4e   :  { %4118 = vmatprep.subr.bf16.mxu1 %v6227_v10 }
 0xd51   :  { %4119 = vmatpush3.bf16.msra.mxu1 %v5904_v20  ;;  %v6295_v20 = vld [vmem:[#allocation76_spill] sm:$0xff] }
 0xd52   :  { %4120 = vmatprep.subr.bf16.mxu1 %v6227_v10 }
 0xd55   :  { %4121 = vmatpush3.bf16.msra.mxu1 %v5914_v9 }
 0xd56   :  { %4122 = vmatprep.subr.bf16.mxu1 %v6227_v10  ;;  %v6296_v10 = vld [vmem:[#allocation78_spill] sm:$0xff] }
 0xd59   :  { %4123 = vmatpush3.bf16.msra.mxu1 %v6282_v27 }
 0xdfc   :  { %v3318_v12 = vpop.f32.mrf.mxu1 }
 0xdfd   :  { %v3370_v43 = vadd.f32 %v3318_v12, %v6293_v23  ;;  %v3361_v59 = vpop.f32.mrf.mxu0 }
 0xdfe   :  { %v3320_v3 = vpop.f32.mrf.mxu1  ;;  %v3372_v16 = vadd.f32 %v3361_v59, %v6298_v48 }
 0xdff   :  { %v3878_v19 = vmul.f32 -1.442695, %v3370_v43  ;;  %v3371_v38 = vadd.f32 %v3320_v3, %v6294_v63  ;;  %v3363_v9 = vpop.f32.mrf.mxu0 }
 0xe00   :  { %v3322_v36 = vpop.f32.mrf.mxu1  ;;  %v3373_v53 = vadd.f32 %v3363_v9, %v6297_v45 }
 0xe01   :  { %4444 = vpow2.f32 %v3878_v19  ;;  %v3880_v58 = vmul.f32 -1.442695, %v3371_v38  ;;  %v3374_v30 = vadd.f32 %v3322_v36, %v6295_v20  ;;  %v3365_v60 = vpop.f32.mrf.mxu0 }
 0xe02   :  { %v3324_v61 = vpop.f32.mrf.mxu1  ;;  %v3882_v13 = vmul.f32 -1.442695, %v3373_v53  ;;  %v3376_v39 = vadd.f32 %v3365_v60, %v6300_v52 }
 0xe03   :  { %4446 = vpow2.f32 %v3880_v58  ;;  %v3879_v29 = vmul.f32 -1.442695, %v3374_v30  ;;  %v3375_v33 = vadd.f32 %v3324_v61, %v6296_v10  ;;  %v3367_v4 = vpop.f32.mrf.mxu0 }
 0xe04   :  { %v3377_v50 = vadd.f32 %v3367_v4, %v6299_v55 }
 0xe05   :  { %4448 = vpow2.f32 %v3879_v29  ;;  %v3881_v27 = vmul.f32 -1.442695, %v3375_v33 }
 0xe06   :  { %v3883_v5 = vmul.f32 -1.442695, %v3377_v50 }
 0xe07   :  { %4450 = vpow2.f32 %v3881_v27 }
 0xe08   :  { %4452 = vtanh.f32 %v3372_v16 }
 0xe0e   :  { %v4445_v15 = vpop.eup %4444 }
 0xe0f   :  { %v3384_v51 = vadd.f32 1.0, %v4445_v15 }
 0xe10   :  { %v4447_v17 = vpop.eup %4446 }
 0xe11   :  { %4454 = vrcp.f32 %v3384_v51  ;;  %v3396_v62 = vadd.f32 1.0, %v4447_v17 }
 0xe12   :  { %v4449_v46 = vpop.eup %4448  ;;  %4456 = vpow2.f32 %v3882_v13 }
 0xe13   :  { %4458 = vrcp.f32 %v3396_v62  ;;  %v3385_v1 = vadd.f32 1.0, %v4449_v46 }
 0xe14   :  { %v4451_v18 = vpop.eup %4450  ;;  %4460 = vtanh.f32 %v3376_v39 }
 0xe15   :  { %4462 = vrcp.f32 %v3385_v1  ;;  %v3397_v47 = vadd.f32 1.0, %v4451_v18  ;;  %v4453_v21 = vpop.eup %4452 }
 0xe16   :  { %4464 = vpow2.f32 %v3883_v5 }
 0xe17   :  { %4466 = vrcp.f32 %v3397_v47 }
 0xe1e   :  { %v4455_v34 = vpop.eup %4454 }
 0xe1f   :  { %v4457_v42 = vpop.eup %4456  ;;  %v3416_v11 = vmul.f32 %v4455_v34, %v4453_v21 }
 0xe20   :  { %v4459_v22 = vpop.eup %4458  ;;  %v3410_v32 = vadd.f32 1.0, %v4457_v42 }
 0xe21   :  { %v4461_v0 = vpop.eup %4460  ;;  %v3418_v7 = vmul.f32 %v4459_v22, %v6038_v41 }
 0xe22   :  { %v4463_v31 = vpop.eup %4462  ;;  %4468 = vrcp.f32 %v3410_v32 }
 0xe23   :  { %v4465_v56 = vpop.eup %4464  ;;  %v3420_v49 = vadd.f32 %v3418_v7, %v3416_v11  ;;  %v3417_v35 = vmul.f32 %v4463_v31, %v4461_v0 }
 0xe24   :  { %v4467_v25 = vpop.eup %4466  ;;  %v3411_v26 = vadd.f32 1.0, %v4465_v56 }
 0xe25   :  { %v3884_v6 = vclamps-f32 %v3420_v49, 3.0  ;;  %v3419_v24 = vmul.f32 %v4467_v25, %v6042_v54 }
 0xe27   :  { %v3490_v37 = vsel %vm3488_vm3, %v3884_v6, %v6038_v41  ;;  %v3421_v57 = vadd.f32 %v3419_v24, %v3417_v35  ;;  %4470 = vtanh.f32 %v3884_v6 }
 0xe28   :  { %3630 = vst [vmem:[#allocation16] sm:$0xff] %v3490_v37  ;;  %4472 = vrcp.f32 %v3411_v26 }
 0xe29   :  { %v3885_v40 = vclamps-f32 %v3421_v57, 3.0 }
 0xe2b   :  { %v3491_v12 = vsel %vm3489_vm1, %v3885_v40, %v6042_v54  ;;  %4474 = vtanh.f32 %v3885_v40 }
 0xe2c   :  { %3631 = vst [vmem:[#allocation16 + $0x8] sm:$0xff] %v3491_v12 }
 0xe2f   :  { %v4469_v23 = vpop.eup %4468 }
 0xe34   :  { %v4471_v43 = vpop.eup %4470 }
 0xe35   :  { %v3428_v3 = vmul.f32 %v4471_v43, %v4469_v23  ;;  %v4473_v19 = vpop.eup %4472 }
 0xe38   :  { %v4475_v59 = vpop.eup %4474 }
 0xe39   :  { %v3429_v63 = vmul.f32 %v4475_v59, %v4473_v19 }
 0xe3b   :  { %v3430_v38 = vpack.c.bf16 %v3429_v63, %v3428_v3 }
 0xe3d   :  { %4125 = vmatmul.mubr.bf16.vlgmr.msra.gmra.mxu1 %v3430_v38 }
 0xefd   :  { %v3465_v41 = vpop.f32.mrf.mxu1 }
 0xefe   :  { %v3886_v36 = vclamps-f32 %v3465_v41, 3.0 }
 0xeff   :  { %v4126_v58 = vpop.f32.mrf.mxu1 }
 0xf00   :  { %v3492_v20 = vsel %vm3488_vm3, %v3886_v36, %v6066_v2  ;;  %v3494_v30 = vsel %vm3488_vm3, %v3886_v36, 0.0 }
 0xf01   :  { %v3498_v61 = vcombine.high %v3494_v30, %v3494_v30  ;;  %v3505_v54 = vrot.slane %v3494_v30, %v5285_v28  ;;  %3628 = vst [vmem:[#allocation14] sm:$0xff] %v3492_v20  ;;  %v3468_v9 = vpop.f32.mrf.mxu1 }
 0xf02   :  { %v3887_v29 = vclamps-f32 %v3468_v9, 3.0 }
 0xf03   :  { %v3512_v10 = vrot.slane %v3498_v61, %v5285_v28  ;;  %v3513_v33 = vcombine.high %v3505_v54, %v3505_v54  ;;  %v3521_v27 = vrot.slane %v3505_v54, %v5285_v28  ;;  %3888 = vst.sshfl [vmem:[#allocation13 + $0x7] sm:$0x1 pattern:$0x73625140] %v3505_v54  ;;  %v4127_v60 = vpop.f32.mrf.mxu1 }
 0xf04   :  { %v3493_v45 = vsel %vm3489_vm1, %v3887_v29, %v6070_v14  ;;  %v3495_v2 = vsel %vm3489_vm1, %v3887_v29, 0.0 }
 0xf05   :  { %v3514_v53 = vcombine.high %v3512_v10, %v3512_v10  ;;  %v3528_v4 = vrot.slane %v3512_v10, %v5285_v28  ;;  %v3535_v48 = vrot.slane %v3513_v33, %v5285_v28  ;;  %v3543_v16 = vcombine.high %v3521_v27, %v3521_v27  ;;  %3889 = vst.sshfl [vmem:[#allocation13 + $0xf] sm:$0x1 pattern:$0x73625140] %v3513_v33 }
 0xf06   :  { %3890 = vst.sshfl [vmem:[#allocation13 + $0x27] sm:$0x1 pattern:$0x73625140] %v3512_v10  ;;  %3629 = vst [vmem:[#allocation14 + $0x8] sm:$0xff] %v3493_v45  ;;  %v3547_v15 = vcombine.high %v3495_v2, %v3495_v2  ;;  %v3554_v13 = vrot.slane %v3495_v2, %v5285_v28 }
 0xf07   :  { %v3542_v55 = vrot.slane %v3514_v53, %v5285_v28  ;;  %v3544_v50 = vcombine.high %v3528_v4, %v3528_v4  ;;  %v3545_v51 = vcombine.high %v3535_v48, %v3535_v48  ;;  %3614 = vst [vmem:[#allocation13 + $0x17] sm:$0x1] %v3543_v16  ;;  %3891 = vst.sshfl [vmem:[#allocation13 + $0x2f] sm:$0x1 pattern:$0x73625140] %v3514_v53 }
 0xf08   :  { %v3561_v14 = vrot.slane %v3547_v15, %v5285_v28  ;;  %v3562_v17 = vcombine.high %v3554_v13, %v3554_v13  ;;  %v3570_v52 = vrot.slane %v3554_v13, %v5285_v28  ;;  %3892 = vst.sshfl [vmem:[#allocation13 + $0x47] sm:$0x1 pattern:$0x73625140] %v3554_v13 }
 0xf09   :  { %v3546_v39 = vcombine.high %v3542_v55, %v3542_v55  ;;  %3615 = vst [vmem:[#allocation13 + $0x1f] sm:$0x1] %v3545_v51  ;;  %3618 = vst [vmem:[#allocation13 + $0x37] sm:$0x1] %v3544_v50 }
 0xf0a   :  { %v3563_v62 = vcombine.high %v3561_v14, %v3561_v14  ;;  %v3577_v46 = vrot.slane %v3561_v14, %v5285_v28  ;;  %v3584_v5 = vrot.slane %v3562_v17, %v5285_v28  ;;  %v3592_v1 = vcombine.high %v3570_v52, %v3570_v52  ;;  %3893 = vst.sshfl [vmem:[#allocation13 + $0x4f] sm:$0x1 pattern:$0x73625140] %v3562_v17 }
 0xf0b   :  { %3894 = vst.sshfl [vmem:[#allocation13 + $0x67] sm:$0x1 pattern:$0x73625140] %v3561_v14  ;;  %3619 = vst [vmem:[#allocation13 + $0x3f] sm:$0x1] %v3546_v39 }
 0xf0c   :  { %v3591_v18 = vrot.slane %v3563_v62, %v5285_v28  ;;  %v3593_v47 = vcombine.high %v3577_v46, %v3577_v46  ;;  %v3594_v21 = vcombine.high %v3584_v5, %v3584_v5  ;;  %3622 = vst [vmem:[#allocation13 + $0x57] sm:$0x1] %v3592_v1  ;;  %3895 = vst.sshfl [vmem:[#allocation13 + $0x6f] sm:$0x1 pattern:$0x73625140] %v3563_v62 }
 0xf0e   :  { %v3595_v34 = vcombine.high %v3591_v18, %v3591_v18  ;;  %3623 = vst [vmem:[#allocation13 + $0x5f] sm:$0x1] %v3594_v21  ;;  %3626 = vst [vmem:[#allocation13 + $0x77] sm:$0x1] %v3593_v47 }
 0xf10   :  { %3627 = vst [vmem:[#allocation13 + $0x7f] sm:$0x1] %v3595_v34 }
 0xf11 PF:  { %s4735_s5 = smov [#allocation14]   ;;  %s4736_s18 = smov [#allocation13]  }
 0xf12   :  { %s3649_s17 = sshll.u32 %s4735_s5, 4  ;;  %s3637_s19 = sshll.u32 %s4736_s18, 4  ;;  %s3650_s17 = int_to_ptr.vmem [resolvable:$true] %s3649_s17  ;;  %s3638_s19 = int_to_ptr.vmem [resolvable:$true] %s3637_s19 }
 0xf13   :  { %s4648_s20 = scalar_lea.vmem %s3650_s17, 256  ;;  %p4653_p0 = scmp.lt.s32.totalorder %s3650_s17, %s3650_s17 }
 0xf14   :  { %p4649_p13 = scmp.ne.s32.totalorder %s3650_s17, %s4648_s20  ;;  %p4654_p1 = scmp.lt.s32.totalorder %s4648_s20, %s4648_s20 }
 0xf16   :  { %p4655_p2 = por %p4654_p1, %p4653_p0 }
 0xf18   :  { %p4656_p3 = pnand %p4655_p2, %p4649_p13 }
 0xf1a   :  { %4659 = shalt.err (!%p4656_p3)
}
 0xf1b   :  { %s4737_s21 = smov 128   ;;  %s4738_s22 = smov 8  }
 0xf1c   :  { %3655 = dma.vmem_to_hbm [thread:$0]  %s3650_s17, 256, %s6150_s8, [#allocation15], %s4737_s21, %s4737_s21, %s4738_s22  }
 0xf1d   :  { %s4668_s25 = scalar_lea.vmem %s3638_s19, 2048  ;;  %p4673_p5 = scmp.lt.s32.totalorder %s3638_s19, %s3638_s19 }
 0xf1e   :  { %p4669_p4 = scmp.ne.s32.totalorder %s3638_s19, %s4668_s25  ;;  %p4674_p6 = scmp.lt.s32.totalorder %s4668_s25, %s4668_s25 }
 0xf20   :  { %p4675_p7 = por %p4674_p6, %p4673_p5 }
 0xf22   :  { %p4676_p8 = pnand %p4675_p7, %p4669_p4 }
 0xf24   :  { %4679 = shalt.err (!%p4676_p8)
}
 0xf25   :  { %3643 = dma.vmem_to_hbm [thread:$0]  %s3638_s19, 2048, %s6149_s7, [#allocation7], %s4737_s21, %s4737_s21, %s4738_s22  }
 0xf26   :  { %s4739_s28 = smov [#allocation16]  }
 0xf27   :  { %s3661_s29 = sshll.u32 %s4739_s28, 4  ;;  %s3662_s29 = int_to_ptr.vmem [resolvable:$true] %s3661_s29 }
 0xf28   :  { %s4688_s3 = scalar_lea.vmem %s3662_s29, 256  ;;  %p4693_p10 = scmp.lt.s32.totalorder %s3662_s29, %s3662_s29 }
 0xf29   :  { %p4689_p9 = scmp.ne.s32.totalorder %s3662_s29, %s4688_s3  ;;  %p4694_p11 = scmp.lt.s32.totalorder %s4688_s3, %s4688_s3 }
 0xf2b   :  { %p4695_p12 = por %p4694_p11, %p4693_p10 }
 0xf2d   :  { %p4696_p13 = pnand %p4695_p12, %p4689_p9 }
 0xf2f   :  { %4699 = shalt.err (!%p4696_p13)
}
 0xf30   :  { %3667 = dma.vmem_to_hbm [thread:$0]  %s3662_s29, 256, %s6151_s9, [#allocation15], %s4737_s21, %s4737_s21, %s4738_s22  }
 0xf31   :  { %4716 = dma.done.wait [#allocation7], 2048  }
 0xf32   :  { %4717 = vsyncadd [#allocation7], 4294965248 }
 0xf33   :  { %4718 = dma.done.wait [#allocation15], 512  }
 0xf34   :  { %4719 = vsyncadd [#allocation15], 4294966784 }
 0xf35   :  { %3677 = vsyncpa [#allocation6], 1 }
 0xf36   :  { %3678 = vsyncpa [#allocation9], 1 }
 0xf37   :  { %3679 = vsyncpa [#allocation12], 1 }
 0xf38   :  { %3680 = vsyncpa [#allocation7], 1 }
 0xf39   :  { %3681 = vsyncpa [#allocation15], 1 }

</bundles_post_ra>
